<compile_context>
chip_gen: v7x
topology: tpu7x:2x2x1
jax: 0.10.0
libtpu: 0.0.40
codegen_flags: <defaults>
</compile_context>

<pallas_src>
import functools

import jax
import jax.numpy as jnp
from jax.experimental import pallas as pl
from jax.experimental.pallas import tpu as pltpu


def _round_up(x, m):
    return (x + m - 1) // m * m


def _pick_tile_h(H, max_tile_h):
    """Largest divisor of H that is <= max_tile_h (>= 1)."""
    th = max(1, min(H, max_tile_h))
    while H % th:
        th -= 1
    return th


def _make_kernel(*, TH, Wp, Cin_p, Cout_p, merge_sc):
    """Build the fused ResNet-block kernel for one (batch, H-tile) grid step."""
    HW1 = (TH + 2) * Wp        # rows of h1 computed (output rows + 1-row halo each side)
    HWo = TH * Wp              # rows of the final output for this tile
    Lblk = (TH + 4) * Wp       # rows of the (pre-padded) x tile (2-row halo each side)
    taps = [(dh, dw) for dh in (-1, 0, 1) for dw in (-1, 0, 1)]

    def kernel(*refs):
        if merge_sc:
            (x_ref, w1_ref, b1_ref, w2_ref, b2_ref, bsc_ref, mask_ref,
             o_ref, slab1_ref, slab2_ref) = refs
            wsc_ref = None
        else:
            (x_ref, w1_ref, b1_ref, w2_ref, b2_ref, wsc_ref, bsc_ref, mask_ref,
             o_ref, slab1_ref, slab2_ref) = refs

        # ---- conv1 im2col: nine static, row-shifted copies of the x tile ----
        # slab1[q, tap] = x_tile[q + (1+dh)*Wp + dw]; the two out-of-range cells
        # (tap (-1,-1) row 0 and tap (1,1) row HW1-1) only feed positions that the
        # column/row mask zeroes, but are pre-zeroed so no uninitialized VMEM (NaNs)
        # can leak through the mask multiply.
        for tt, (dh, dw) in enumerate(taps):
            off = (1 + dh) * Wp + dw
            d0 = max(0, -off)
            d1 = min(HW1, Lblk - off)
            cols = pl.ds(tt * Cin_p, Cin_p)
            if d0 > 0:
                slab1_ref[pl.ds(0, d0), cols] = jnp.zeros((d0, Cin_p), slab1_ref.dtype)
            if d1 < HW1:
                slab1_ref[pl.ds(d1, HW1 - d1), cols] = jnp.zeros(
                    (HW1 - d1, Cin_p), slab1_ref.dtype)
            slab1_ref[pl.ds(d0, d1 - d0), cols] = x_ref[pl.ds(d0 + off, d1 - d0), :]

        # ---- conv1 (+ fused 1x1 shortcut columns when merge_sc): ONE wide-K MXU matmul.
        #      BN scales are folded into the weights; only the bias is added here. ----
        h1sc = jnp.dot(slab1_ref[...], w1_ref[...], preferred_element_type=jnp.float32)
        if merge_sc:
            h1 = h1sc[:, :Cout_p]
            sc = h1sc[Wp:Wp + HWo, Cout_p:] + bsc_ref[...]
        else:
            h1 = h1sc
            # shortcut 1x1 reads the x tile directly at the output rows (block rows [2, TH+2))
            sc = jnp.dot(x_ref[pl.ds(2 * Wp, HWo), :], wsc_ref[...],
                         preferred_element_type=jnp.float32) + bsc_ref[...]

        # bn1 bias + ReLU; mask zeroes halo columns AND out-of-image halo rows so that
        # conv2's halo taps read exact zeros (matches zero padding of the real conv).
        h1 = jnp.maximum(h1 + b1_ref[...], 0.0) * mask_ref[...]
        h1 = h1.astype(slab2_ref.dtype)

        # ---- conv2 im2col: write h1 straight into slab2's nine tap column groups at
        #      row-shifted offsets (no p2 staging buffer, no reload round trip). ----
        for tt, (dh, dw) in enumerate(taps):
            off = (1 + dh) * Wp + dw
            d0 = max(0, -off)
            d1 = min(HWo, HW1 - off)
            cols = pl.ds(tt * Cout_p, Cout_p)
            if d0 > 0:      # clipped cells only feed discarded halo-column outputs
                slab2_ref[pl.ds(0, d0), cols] = jnp.zeros((d0, Cout_p), slab2_ref.dtype)
            if d1 < HWo:
                slab2_ref[pl.ds(d1, HWo - d1), cols] = jnp.zeros(
                    (HWo - d1, Cout_p), slab2_ref.dtype)
            slab2_ref[pl.ds(d0, d1 - d0), cols] = h1[d0 + off:d1 + off, :]

        # ---- conv2 (ONE wide-K matmul) + bn2 bias, residual add, ReLU ----
        h2 = jnp.dot(slab2_ref[...], w2_ref[...], preferred_element_type=jnp.float32)
        h2 = h2 + b2_ref[...]

        # lane-dense store (last dim = Cout padded to 128)
        o_ref[...] = jnp.maximum(h2 + sc, 0.0).astype(o_ref.dtype)

    return kernel


def resnet_block_forward(x_nchw, params, *, compute_dtype=jnp.bfloat16,
                         out_dtype=None, tile_h=8, merge_shortcut=None, eps=1e-5):
    N, Cin, H, W = x_nchw.shape
    Cout = params["w1"].shape[0]
    out_dtype = x_nchw.dtype if out_dtype is None else out_dtype

    Cin_p = _round_up(Cin, 128)              # lane-pad channels
    Cout_p = _round_up(Cout, 128)
    Wp = _round_up(W + 2, 8)                 # padded row width (sublane-aligned)
    TH = _pick_tile_h(H, tile_h)             # image rows per grid step (H tiling)
    NT = H // TH
    HW1 = (TH + 2) * Wp
    HWo = TH * Wp
    Lblk = (TH + 4) * Wp

    if merge_shortcut is None:
        # Fuse the 1x1 shortcut into conv1's RHS only when it rides along for free on the
        # 256-wide v6e/v7x MXU. TODO(synk): on v5e (128-wide MXU) prefer merge_shortcut=False.
        merge_shortcut = (Cout_p == 128)

    # ---- wrapper glue (runs once in XLA): NCHW -> zero-padded NHWC tiles (2-row halo),
    #      weight repack + BN-scale folding ----
    x_nhwc = jnp.transpose(x_nchw, (0, 2, 3, 1))                        # (N,H,W,Cin)
    x_pad = jnp.pad(x_nhwc, ((0, 0), (2, 2), (1, Wp - W - 1), (0, Cin_p - Cin)))
    row_idx = jnp.arange(NT)[:, None] * TH + jnp.arange(TH + 4)[None, :]
    x_tiles = x_pad[:, row_idx].reshape(N, NT, Lblk, Cin_p).astype(compute_dtype)

    def fold_bn(stats):
        gamma, beta, mean, var = stats
        scale = gamma / jnp.sqrt(var + eps)
        bias = beta - mean * scale
        return scale, bias

    s1, b1 = fold_bn(params["bn1"])
    s2, b2 = fold_bn(params["bn2"])
    ssc, bsc = fold_bn(params["bnsc"])

    def pack3x3(w, scale, cin, cin_p):
        # (Cout,Cin,3,3) -> (3,3,Cin,Cout), fold BN scale into output channels, im2col-pack.
        wt = jnp.transpose(w, (2, 3, 1, 0)) * scale[None, None, None, :]
        wt = jnp.pad(wt, ((0, 0), (0, 0), (0, cin_p - cin), (0, Cout_p - Cout)))
        return wt.reshape(9 * cin_p, Cout_p)

    w1_p = pack3x3(params["w1"], s1, Cin, Cin_p)                       # f32 for now
    w2_p = pack3x3(params["w2"], s2, Cout, Cout_p).astype(compute_dtype)
    wsc = jnp.transpose(params["wsc"][:, :, 0, 0], (1, 0)) * ssc[None, :]   # (Cin, Cout)
    wsc_p = jnp.pad(wsc, ((0, Cin_p - Cin), (0, Cout_p - Cout)))

    if merge_shortcut:
        # shortcut columns: only the center-tap row block is nonzero
        wsc_wide = jnp.zeros((9 * Cin_p, Cout_p), jnp.float32).at[
            4 * Cin_p:5 * Cin_p].set(wsc_p)
        w1_p = jnp.concatenate([w1_p, wsc_wide], axis=1)               # (9*Cin_p, 2*Cout_p)
    w1_p = w1_p.astype(compute_dtype)
    wsc_p = wsc_p.astype(compute_dtype)
    N1 = w1_p.shape[1]

    def pad_bias(b):
        return jnp.pad(b, (0, Cout_p - Cout)).reshape(1, Cout_p).astype(jnp.float32)

    b1_k, b2_k, bsc_k = pad_bias(b1), pad_bias(b2), pad_bias(bsc)

    # per-tile validity of h1 positions (zero outside image rows AND image columns)
    img_row = jnp.arange(NT)[:, None] * TH - 1 + jnp.arange(TH + 2)[None, :]   # (NT,TH+2)
    row_ok = (img_row >= 0) & (img_row < H)
    cols = jnp.arange(Wp)
    col_ok = (cols >= 1) & (cols <= W)
    mask = (row_ok[:, :, None] & col_ok[None, None, :]).astype(jnp.float32)
    mask = mask.reshape(NT, HW1, 1)

    kernel = _make_kernel(TH=TH, Wp=Wp, Cin_p=Cin_p, Cout_p=Cout_p,
                          merge_sc=merge_shortcut)

    # ---- VMEM budget (with headroom) and cost hints ----
    csz = jnp.dtype(compute_dtype).itemsize
    osz = jnp.dtype(out_dtype).itemsize
    est = (2 * Lblk * Cin_p * csz                                   # x tile (double buffered)
           + 2 * HWo * Cout_p * osz                                 # out tile
           + 2 * (9 * Cin_p * N1 + 9 * Cout_p * Cout_p
                  + (0 if merge_shortcut else Cin_p * Cout_p)) * csz  # weights (worst case x2)
           + (HW1 * 9 * Cin_p + HWo * 9 * Cout_p) * csz             # im2col scratch slabs
           + (HW1 * N1 + 2 * HWo * Cout_p) * 4                      # f32 temporaries
           + 2 * (HW1 + 3 * Cout_p) * 4)                            # mask + biases
    vmem_limit = int(min(64 * 2 ** 20, max(32 * 2 ** 20, 1.4 * est)))

    flops = 2 * N * NT * (HW1 * 9 * Cin_p * N1 + HWo * 9 * Cout_p * Cout_p
                          + (0 if merge_shortcut else HWo * Cin_p * Cout_p))
    bytes_accessed = (x_tiles.size * csz + (w1_p.size + w2_p.size) * csz
                      + N * NT * HWo * Cout_p * osz)
    cost = pl.CostEstimate(flops=int(flops), transcendentals=0,
                           bytes_accessed=int(bytes_accessed))

    def run(single_buffer_consts):
        def const_spec(shape):
            # operands whose index_map is constant across the whole grid
            index_map = lambda n, t: (0,) * len(shape)
            if single_buffer_consts:
                return pl.BlockSpec(shape, index_map, pipeline_mode=pl.Buffered(1))
            return pl.BlockSpec(shape, index_map)

        in_specs = [
            pl.BlockSpec((None, None, Lblk, Cin_p), lambda n, t: (n, t, 0, 0)),  # x tile
            const_spec((9 * Cin_p, N1)),          # conv1 (+ shortcut) weights, BN1 folded
            const_spec((1, Cout_p)),              # bn1 bias
            const_spec((9 * Cout_p, Cout_p)),     # conv2 weights, BN2 folded
            const_spec((1, Cout_p)),              # bn2 bias
        ]
        args = [x_tiles, w1_p, b1_k, w2_p, b2_k]
        if not merge_shortcut:
            in_specs.append(const_spec((Cin_p, Cout_p)))               # shortcut 1x1 weights
            args.append(wsc_p)
        in_specs.append(const_spec((1, Cout_p)))                       # bn_sc bias
        args.append(bsc_k)
        in_specs.append(pl.BlockSpec((None, HW1, 1), lambda n, t: (t, 0, 0)))  # per-tile mask
        args.append(mask)

        return pl.pallas_call(
            kernel,
            out_shape=jax.ShapeDtypeStruct((N, H * Wp, Cout_p), out_dtype),
            grid_spec=pltpu.PrefetchScalarGridSpec(
                num_scalar_prefetch=0,
                grid=(N, NT),
                in_specs=in_specs,
                out_specs=pl.BlockSpec((None, HWo, Cout_p), lambda n, t: (n, t, 0)),
                scratch_shapes=[
                    pltpu.VMEM((HW1, 9 * Cin_p), compute_dtype),   # conv1 im2col slab
                    pltpu.VMEM((HWo, 9 * Cout_p), compute_dtype),  # conv2 im2col slab
                ],
            ),
            compiler_params=pltpu.CompilerParams(
                dimension_semantics=("parallel", "parallel"),
                vmem_limit_bytes=vmem_limit),
            cost_estimate=cost,
        )(*args)

    try:
        out_flat = run(True)     # single-buffer the grid-invariant operands (saves VMEM)
    except Exception:            # pl.Buffered(1) unsupported in this build -> default buffering
        out_flat = run(False)

    # drop padded columns / channels, back to NCHW (garbage lives only in the dropped region)
    out = out_flat.reshape(N, H, Wp, Cout_p)[:, :, 1:W + 1, :Cout]
    return jnp.transpose(out, (0, 3, 1, 2))


def reference(x, p, eps=1e-5):
    """Pure-JAX reference (eval-mode BN) for correctness checking."""
    def bn(z, stats):
        g, b, m, v = (t.reshape(1, -1, 1, 1) for t in stats)
        return (z - m) / jnp.sqrt(v + eps) * g + b
    dn = ("NCHW", "OIHW", "NCHW")
    h = jax.lax.conv_general_dilated(x, p["w1"], (1, 1), ((1, 1), (1, 1)), dimension_numbers=dn)
    h = jax.nn.relu(bn(h, p["bn1"]))
    h = jax.lax.conv_general_dilated(h, p["w2"], (1, 1), ((1, 1), (1, 1)), dimension_numbers=dn)
    h = bn(h, p["bn2"])
    sc = jax.lax.conv_general_dilated(x, p["wsc"], (1, 1), ((0, 0), (0, 0)), dimension_numbers=dn)
    sc = bn(sc, p["bnsc"])
    return jax.nn.relu(h + sc)


if __name__ == "__main__":
    N, Cin, Cout, H, W = 2, 4, 8, 16, 16
    keys = jax.random.split(jax.random.PRNGKey(0), 16)

    def bn_stats(k0, k1, k2, k3):
        return (1.0 + 0.1 * jax.random.normal(keys[k0], (Cout,), jnp.float32),   # gamma
                0.1 * jax.random.normal(keys[k1], (Cout,), jnp.float32),         # beta
                0.1 * jax.random.normal(keys[k2], (Cout,), jnp.float32),         # running mean
                0.5 + jax.random.uniform(keys[k3], (Cout,), jnp.float32))        # running var

    params = {
        "w1": 0.2 * jax.random.normal(keys[0], (Cout, Cin, 3, 3), jnp.float32),
        "w2": 0.2 * jax.random.normal(keys[1], (Cout, Cout, 3, 3), jnp.float32),
        "wsc": 0.2 * jax.random.normal(keys[2], (Cout, Cin, 1, 1), jnp.float32),
        "bn1": bn_stats(3, 4, 5, 6),
        "bn2": bn_stats(7, 8, 9, 10),
        "bnsc": bn_stats(11, 12, 13, 14),
    }

    x = jax.random.normal(keys[15], (N, Cin, H, W), jnp.float32)
    ref = reference(x, params)

    # f32-compute path, merged-shortcut matmul (Cout_p == 128): primary correctness check
    out_f32 = jax.block_until_ready(
        resnet_block_forward(x, params, compute_dtype=jnp.float32))
    assert out_f32.shape == ref.shape == (N, Cout, H, W)
    if not bool(jnp.allclose(out_f32, ref, rtol=5e-2, atol=5e-2)):
        raise AssertionError("Pallas ResNetBlock (f32, merged shortcut) mismatch vs reference")

    # f32-compute path with the separate shortcut matmul (the >128-channel / v5e code path)
    out_sep = jax.block_until_ready(
        resnet_block_forward(x, params, compute_dtype=jnp.float32, merge_shortcut=False))
    if not bool(jnp.allclose(out_sep, ref, rtol=5e-2, atol=5e-2)):
        raise AssertionError("Pallas ResNetBlock (f32, separate shortcut) mismatch vs reference")

    # bf16 matmul-input + bf16-output fast path (v6e/v7x): looser tolerance for bf16 rounding
    out_bf16 = jax.block_until_ready(
        resnet_block_forward(x, params, compute_dtype=jnp.bfloat16, out_dtype=jnp.bfloat16))
    assert out_bf16.shape == ref.shape
    if not bool(jnp.allclose(out_bf16.astype(jnp.float32), ref, rtol=2e-1, atol=2e-1)):
        raise AssertionError("Pallas ResNetBlock (bf16) mismatch vs reference")

    print("KERNEL_OK")
</pallas_src>

<mosaic_0001>
module attributes {stable_mosaic.version = 11 : i64} {
  func.func @kernel(%arg0: i32, %arg1: i32, %arg2: memref<1x1x288x128xf32, #tpu.memory_space<vmem>>, %arg3: memref<1152x256xf32, #tpu.memory_space<vmem>>, %arg4: memref<1x128xf32, #tpu.memory_space<vmem>>, %arg5: memref<1152x128xf32, #tpu.memory_space<vmem>>, %arg6: memref<1x128xf32, #tpu.memory_space<vmem>>, %arg7: memref<1x128xf32, #tpu.memory_space<vmem>>, %arg8: memref<1x240x1xf32, #tpu.memory_space<vmem>>, %arg9: memref<1x192x128xf32, #tpu.memory_space<vmem>>, %arg10: memref<240x1152xf32, #tpu.memory_space<vmem>>, %arg11: memref<192x1152xf32, #tpu.memory_space<vmem>>) attributes {dimension_semantics = [#tpu.dimension_semantics<parallel>, #tpu.dimension_semantics<parallel>], iteration_bounds = array<i64: 2, 2>, scalar_prefetch = 0 : i64, scratch_operands = 2 : i64, tpu.core_type = #tpu.core_type<tc>, window_params = [{transform_indices = @transform_0, window_bounds = array<i64: 1, 1, 288, 128>}, {pipeline_mode = #tpu.pipeline_mode<synchronous>, transform_indices = @transform_1, window_bounds = array<i64: 1152, 256>}, {pipeline_mode = #tpu.pipeline_mode<synchronous>, transform_indices = @transform_2, window_bounds = array<i64: 1, 128>}, {pipeline_mode = #tpu.pipeline_mode<synchronous>, transform_indices = @transform_3, window_bounds = array<i64: 1152, 128>}, {pipeline_mode = #tpu.pipeline_mode<synchronous>, transform_indices = @transform_4, window_bounds = array<i64: 1, 128>}, {pipeline_mode = #tpu.pipeline_mode<synchronous>, transform_indices = @transform_5, window_bounds = array<i64: 1, 128>}, {transform_indices = @transform_6, window_bounds = array<i64: 1, 240, 1>}, {transform_indices = @transform_7, window_bounds = array<i64: 1, 192, 128>}]} {
    %cst = arith.constant 0.000000e+00 : f32
    %0 = vector.broadcast %cst : f32 to vector<1x128xf32>
    %c0 = arith.constant 0 : index
    %c0_0 = arith.constant 0 : index
    %1 = vector.load %arg10[%c0, %c0_0] : memref<240x1152xf32, #tpu.memory_space<vmem>>, vector<1x128xf32>
    tpu.vector_store %arg10[%c0, %c0_0], %0 {strides = array<i32>} : memref<240x1152xf32, #tpu.memory_space<vmem>>, vector<1x128xf32>,
    %c0_1 = arith.constant 0 : index
    %c0_2 = arith.constant 0 : index
    %c0_3 = arith.constant 0 : index
    %c0_4 = arith.constant 0 : index
    %2 = vector.load %arg2[%c0_1, %c0_2, %c0_3, %c0_4] : memref<1x1x288x128xf32, #tpu.memory_space<vmem>>, vector<1x1x239x128xf32>
    %3 = vector.shape_cast %2 : vector<1x1x239x128xf32> to vector<239x128xf32>
    %c1 = arith.constant 1 : index
    %c0_5 = arith.constant 0 : index
    %4 = vector.load %arg10[%c1, %c0_5] : memref<240x1152xf32, #tpu.memory_space<vmem>>, vector<239x128xf32>
    tpu.vector_store %arg10[%c1, %c0_5], %3 {strides = array<i32>} : memref<240x1152xf32, #tpu.memory_space<vmem>>, vector<239x128xf32>,
    %c0_6 = arith.constant 0 : index
    %c0_7 = arith.constant 0 : index
    %c0_8 = arith.constant 0 : index
    %c0_9 = arith.constant 0 : index
    %5 = vector.load %arg2[%c0_6, %c0_7, %c0_8, %c0_9] : memref<1x1x288x128xf32, #tpu.memory_space<vmem>>, vector<1x1x240x128xf32>
    %6 = vector.shape_cast %5 : vector<1x1x240x128xf32> to vector<240x128xf32>
    %c0_10 = arith.constant 0 : index
    %c128 = arith.constant 128 : index
    %7 = vector.load %arg10[%c0_10, %c128] : memref<240x1152xf32, #tpu.memory_space<vmem>>, vector<240x128xf32>
    tpu.vector_store %arg10[%c0_10, %c128], %6 {strides = array<i32>} : memref<240x1152xf32, #tpu.memory_space<vmem>>, vector<240x128xf32>,
    %c0_11 = arith.constant 0 : index
    %c0_12 = arith.constant 0 : index
    %c1_13 = arith.constant 1 : index
    %c0_14 = arith.constant 0 : index
    %8 = vector.load %arg2[%c0_11, %c0_12, %c1_13, %c0_14] : memref<1x1x288x128xf32, #tpu.memory_space<vmem>>, vector<1x1x240x128xf32>
    %9 = vector.shape_cast %8 : vector<1x1x240x128xf32> to vector<240x128xf32>
    %c0_15 = arith.constant 0 : index
    %c256 = arith.constant 256 : index
    %10 = vector.load %arg10[%c0_15, %c256] : memref<240x1152xf32, #tpu.memory_space<vmem>>, vector<240x128xf32>
    tpu.vector_store %arg10[%c0_15, %c256], %9 {strides = array<i32>} : memref<240x1152xf32, #tpu.memory_space<vmem>>, vector<240x128xf32>,
    %c0_16 = arith.constant 0 : index
    %c0_17 = arith.constant 0 : index
    %c23 = arith.constant 23 : index
    %c0_18 = arith.constant 0 : index
    %11 = vector.load %arg2[%c0_16, %c0_17, %c23, %c0_18] : memref<1x1x288x128xf32, #tpu.memory_space<vmem>>, vector<1x1x240x128xf32>
    %12 = vector.shape_cast %11 : vector<1x1x240x128xf32> to vector<240x128xf32>
    %c0_19 = arith.constant 0 : index
    %c384 = arith.constant 384 : index
    %13 = vector.load %arg10[%c0_19, %c384] : memref<240x1152xf32, #tpu.memory_space<vmem>>, vector<240x128xf32>
    tpu.vector_store %arg10[%c0_19, %c384], %12 {strides = array<i32>} : memref<240x1152xf32, #tpu.memory_space<vmem>>, vector<240x128xf32>,
    %c0_20 = arith.constant 0 : index
    %c0_21 = arith.constant 0 : index
    %c24 = arith.constant 24 : index
    %c0_22 = arith.constant 0 : index
    %14 = vector.load %arg2[%c0_20, %c0_21, %c24, %c0_22] : memref<1x1x288x128xf32, #tpu.memory_space<vmem>>, vector<1x1x240x128xf32>
    %15 = vector.shape_cast %14 : vector<1x1x240x128xf32> to vector<240x128xf32>
    %c0_23 = arith.constant 0 : index
    %c512 = arith.constant 512 : index
    %16 = vector.load %arg10[%c0_23, %c512] : memref<240x1152xf32, #tpu.memory_space<vmem>>, vector<240x128xf32>
    tpu.vector_store %arg10[%c0_23, %c512], %15 {strides = array<i32>} : memref<240x1152xf32, #tpu.memory_space<vmem>>, vector<240x128xf32>,
    %c0_24 = arith.constant 0 : index
    %c0_25 = arith.constant 0 : index
    %c25 = arith.constant 25 : index
    %c0_26 = arith.constant 0 : index
    %17 = vector.load %arg2[%c0_24, %c0_25, %c25, %c0_26] : memref<1x1x288x128xf32, #tpu.memory_space<vmem>>, vector<1x1x240x128xf32>
    %18 = vector.shape_cast %17 : vector<1x1x240x128xf32> to vector<240x128xf32>
    %c0_27 = arith.constant 0 : index
    %c640 = arith.constant 640 : index
    %19 = vector.load %arg10[%c0_27, %c640] : memref<240x1152xf32, #tpu.memory_space<vmem>>, vector<240x128xf32>
    tpu.vector_store %arg10[%c0_27, %c640], %18 {strides = array<i32>} : memref<240x1152xf32, #tpu.memory_space<vmem>>, vector<240x128xf32>,
    %c0_28 = arith.constant 0 : index
    %c0_29 = arith.constant 0 : index
    %c47 = arith.constant 47 : index
    %c0_30 = arith.constant 0 : index
    %20 = vector.load %arg2[%c0_28, %c0_29, %c47, %c0_30] : memref<1x1x288x128xf32, #tpu.memory_space<vmem>>, vector<1x1x240x128xf32>
    %21 = vector.shape_cast %20 : vector<1x1x240x128xf32> to vector<240x128xf32>
    %c0_31 = arith.constant 0 : index
    %c768 = arith.constant 768 : index
    %22 = vector.load %arg10[%c0_31, %c768] : memref<240x1152xf32, #tpu.memory_space<vmem>>, vector<240x128xf32>
    tpu.vector_store %arg10[%c0_31, %c768], %21 {strides = array<i32>} : memref<240x1152xf32, #tpu.memory_space<vmem>>, vector<240x128xf32>,
    %c0_32 = arith.constant 0 : index
    %c0_33 = arith.constant 0 : index
    %c48 = arith.constant 48 : index
    %c0_34 = arith.constant 0 : index
    %23 = vector.load %arg2[%c0_32, %c0_33, %c48, %c0_34] : memref<1x1x288x128xf32, #tpu.memory_space<vmem>>, vector<1x1x240x128xf32>
    %24 = vector.shape_cast %23 : vector<1x1x240x128xf32> to vector<240x128xf32>
    %c0_35 = arith.constant 0 : index
    %c896 = arith.constant 896 : index
    %25 = vector.load %arg10[%c0_35, %c896] : memref<240x1152xf32, #tpu.memory_space<vmem>>, vector<240x128xf32>
    tpu.vector_store %arg10[%c0_35, %c896], %24 {strides = array<i32>} : memref<240x1152xf32, #tpu.memory_space<vmem>>, vector<240x128xf32>,
    %cst_36 = arith.constant 0.000000e+00 : f32
    %26 = vector.broadcast %cst_36 : f32 to vector<1x128xf32>
    %c239 = arith.constant 239 : index
    %c1024 = arith.constant 1024 : index
    %27 = vector.load %arg10[%c239, %c1024] : memref<240x1152xf32, #tpu.memory_space<vmem>>, vector<1x128xf32>
    tpu.vector_store %arg10[%c239, %c1024], %26 {strides = array<i32>} : memref<240x1152xf32, #tpu.memory_space<vmem>>, vector<1x128xf32>,
    %c0_37 = arith.constant 0 : index
    %c0_38 = arith.constant 0 : index
    %c49 = arith.constant 49 : index
    %c0_39 = arith.constant 0 : index
    %28 = vector.load %arg2[%c0_37, %c0_38, %c49, %c0_39] : memref<1x1x288x128xf32, #tpu.memory_space<vmem>>, vector<1x1x239x128xf32>
    %29 = vector.shape_cast %28 : vector<1x1x239x128xf32> to vector<239x128xf32>
    %c0_40 = arith.constant 0 : index
    %c1024_41 = arith.constant 1024 : index
    %30 = vector.load %arg10[%c0_40, %c1024_41] : memref<240x1152xf32, #tpu.memory_space<vmem>>, vector<239x128xf32>
    tpu.vector_store %arg10[%c0_40, %c1024_41], %29 {strides = array<i32>} : memref<240x1152xf32, #tpu.memory_space<vmem>>, vector<239x128xf32>,
    %c0_42 = arith.constant 0 : index
    %c0_43 = arith.constant 0 : index
    %31 = vector.load %arg10[%c0_42, %c0_43] : memref<240x1152xf32, #tpu.memory_space<vmem>>, vector<240x1152xf32>
    %c0_44 = arith.constant 0 : index
    %c0_45 = arith.constant 0 : index
    %32 = vector.load %arg3[%c0_44, %c0_45] : memref<1152x256xf32, #tpu.memory_space<vmem>>, vector<1152x256xf32>
    %cst_46 = arith.constant dense<0.000000e+00> : vector<240x256xf32>
    %33 = tpu.matmul %31, %32, %cst_46 {dimension_numbers = #tpu.dot_dimension_numbers<[1], [0], [0], [1], [0, 0, 1, 1], [], []>} : vector<240x1152xf32>, vector<1152x256xf32>, vector<240x256xf32> -> vector<240x256xf32>
    %34 = vector.extract_strided_slice %33 {offsets = [0, 0], sizes = [240, 128], strides = [1, 1]} : vector<240x256xf32> to vector<240x128xf32>
    %35 = vector.extract_strided_slice %33 {offsets = [24, 128], sizes = [192, 128], strides = [1, 1]} : vector<240x256xf32> to vector<192x128xf32>
    %c0_47 = arith.constant 0 : index
    %c0_48 = arith.constant 0 : index
    %36 = vector.load %arg7[%c0_47, %c0_48] : memref<1x128xf32, #tpu.memory_space<vmem>>, vector<1x128xf32>
    %37 = vector.broadcast %36 : vector<1x128xf32> to vector<192x128xf32>
    %38 = arith.addf %35, %37 : vector<192x128xf32>
    %c0_49 = arith.constant 0 : index
    %c0_50 = arith.constant 0 : index
    %39 = vector.load %arg4[%c0_49, %c0_50] : memref<1x128xf32, #tpu.memory_space<vmem>>, vector<1x128xf32>
    %40 = vector.broadcast %39 : vector<1x128xf32> to vector<240x128xf32>
    %41 = arith.addf %34, %40 : vector<240x128xf32>
    %cst_51 = arith.constant 0.000000e+00 : f32
    %42 = vector.broadcast %cst_51 : f32 to vector<240x128xf32>
    %43 = arith.maximumf %41, %42 : vector<240x128xf32>
    %c0_52 = arith.constant 0 : index
    %c0_53 = arith.constant 0 : index
    %c0_54 = arith.constant 0 : index
    %44 = vector.load %arg8[%c0_52, %c0_53, %c0_54] : memref<1x240x1xf32, #tpu.memory_space<vmem>>, vector<1x240x1xf32>
    %45 = vector.shape_cast %44 : vector<1x240x1xf32> to vector<240x1xf32>
    %46 = vector.broadcast %45 : vector<240x1xf32> to vector<240x128xf32>
    %47 = arith.mulf %43, %46 : vector<240x128xf32>
    %cst_55 = arith.constant 0.000000e+00 : f32
    %48 = vector.broadcast %cst_55 : f32 to vector<1x128xf32>
    %c0_56 = arith.constant 0 : index
    %c0_57 = arith.constant 0 : index
    %49 = vector.load %arg11[%c0_56, %c0_57] : memref<192x1152xf32, #tpu.memory_space<vmem>>, vector<1x128xf32>
    tpu.vector_store %arg11[%c0_56, %c0_57], %48 {strides = array<i32>} : memref<192x1152xf32, #tpu.memory_space<vmem>>, vector<1x128xf32>,
    %50 = vector.extract_strided_slice %47 {offsets = [0, 0], sizes = [191, 128], strides = [1, 1]} : vector<240x128xf32> to vector<191x128xf32>
    %c1_58 = arith.constant 1 : index
    %c0_59 = arith.constant 0 : index
    %51 = vector.load %arg11[%c1_58, %c0_59] : memref<192x1152xf32, #tpu.memory_space<vmem>>, vector<191x128xf32>
    tpu.vector_store %arg11[%c1_58, %c0_59], %50 {strides = array<i32>} : memref<192x1152xf32, #tpu.memory_space<vmem>>, vector<191x128xf32>,
    %52 = vector.extract_strided_slice %47 {offsets = [0, 0], sizes = [192, 128], strides = [1, 1]} : vector<240x128xf32> to vector<192x128xf32>
    %c0_60 = arith.constant 0 : index
    %c128_61 = arith.constant 128 : index
    %53 = vector.load %arg11[%c0_60, %c128_61] : memref<192x1152xf32, #tpu.memory_space<vmem>>, vector<192x128xf32>
    tpu.vector_store %arg11[%c0_60, %c128_61], %52 {strides = array<i32>} : memref<192x1152xf32, #tpu.memory_space<vmem>>, vector<192x128xf32>,
    %54 = vector.extract_strided_slice %47 {offsets = [1, 0], sizes = [192, 128], strides = [1, 1]} : vector<240x128xf32> to vector<192x128xf32>
    %c0_62 = arith.constant 0 : index
    %c256_63 = arith.constant 256 : index
    %55 = vector.load %arg11[%c0_62, %c256_63] : memref<192x1152xf32, #tpu.memory_space<vmem>>, vector<192x128xf32>
    tpu.vector_store %arg11[%c0_62, %c256_63], %54 {strides = array<i32>} : memref<192x1152xf32, #tpu.memory_space<vmem>>, vector<192x128xf32>,
    %56 = vector.extract_strided_slice %47 {offsets = [23, 0], sizes = [192, 128], strides = [1, 1]} : vector<240x128xf32> to vector<192x128xf32>
    %c0_64 = arith.constant 0 : index
    %c384_65 = arith.constant 384 : index
    %57 = vector.load %arg11[%c0_64, %c384_65] : memref<192x1152xf32, #tpu.memory_space<vmem>>, vector<192x128xf32>
    tpu.vector_store %arg11[%c0_64, %c384_65], %56 {strides = array<i32>} : memref<192x1152xf32, #tpu.memory_space<vmem>>, vector<192x128xf32>,
    %58 = vector.extract_strided_slice %47 {offsets = [24, 0], sizes = [192, 128], strides = [1, 1]} : vector<240x128xf32> to vector<192x128xf32>
    %c0_66 = arith.constant 0 : index
    %c512_67 = arith.constant 512 : index
    %59 = vector.load %arg11[%c0_66, %c512_67] : memref<192x1152xf32, #tpu.memory_space<vmem>>, vector<192x128xf32>
    tpu.vector_store %arg11[%c0_66, %c512_67], %58 {strides = array<i32>} : memref<192x1152xf32, #tpu.memory_space<vmem>>, vector<192x128xf32>,
    %60 = vector.extract_strided_slice %47 {offsets = [25, 0], sizes = [192, 128], strides = [1, 1]} : vector<240x128xf32> to vector<192x128xf32>
    %c0_68 = arith.constant 0 : index
    %c640_69 = arith.constant 640 : index
    %61 = vector.load %arg11[%c0_68, %c640_69] : memref<192x1152xf32, #tpu.memory_space<vmem>>, vector<192x128xf32>
    tpu.vector_store %arg11[%c0_68, %c640_69], %60 {strides = array<i32>} : memref<192x1152xf32, #tpu.memory_space<vmem>>, vector<192x128xf32>,
    %62 = vector.extract_strided_slice %47 {offsets = [47, 0], sizes = [192, 128], strides = [1, 1]} : vector<240x128xf32> to vector<192x128xf32>
    %c0_70 = arith.constant 0 : index
    %c768_71 = arith.constant 768 : index
    %63 = vector.load %arg11[%c0_70, %c768_71] : memref<192x1152xf32, #tpu.memory_space<vmem>>, vector<192x128xf32>
    tpu.vector_store %arg11[%c0_70, %c768_71], %62 {strides = array<i32>} : memref<192x1152xf32, #tpu.memory_space<vmem>>, vector<192x128xf32>,
    %64 = vector.extract_strided_slice %47 {offsets = [48, 0], sizes = [192, 128], strides = [1, 1]} : vector<240x128xf32> to vector<192x128xf32>
    %c0_72 = arith.constant 0 : index
    %c896_73 = arith.constant 896 : index
    %65 = vector.load %arg11[%c0_72, %c896_73] : memref<192x1152xf32, #tpu.memory_space<vmem>>, vector<192x128xf32>
    tpu.vector_store %arg11[%c0_72, %c896_73], %64 {strides = array<i32>} : memref<192x1152xf32, #tpu.memory_space<vmem>>, vector<192x128xf32>,
    %cst_74 = arith.constant 0.000000e+00 : f32
    %66 = vector.broadcast %cst_74 : f32 to vector<1x128xf32>
    %c191 = arith.constant 191 : index
    %c1024_75 = arith.constant 1024 : index
    %67 = vector.load %arg11[%c191, %c1024_75] : memref<192x1152xf32, #tpu.memory_space<vmem>>, vector<1x128xf32>
    tpu.vector_store %arg11[%c191, %c1024_75], %66 {strides = array<i32>} : memref<192x1152xf32, #tpu.memory_space<vmem>>, vector<1x128xf32>,
    %68 = vector.extract_strided_slice %47 {offsets = [49, 0], sizes = [191, 128], strides = [1, 1]} : vector<240x128xf32> to vector<191x128xf32>
    %c0_76 = arith.constant 0 : index
    %c1024_77 = arith.constant 1024 : index
    %69 = vector.load %arg11[%c0_76, %c1024_77] : memref<192x1152xf32, #tpu.memory_space<vmem>>, vector<191x128xf32>
    tpu.vector_store %arg11[%c0_76, %c1024_77], %68 {strides = array<i32>} : memref<192x1152xf32, #tpu.memory_space<vmem>>, vector<191x128xf32>,
    %c0_78 = arith.constant 0 : index
    %c0_79 = arith.constant 0 : index
    %70 = vector.load %arg11[%c0_78, %c0_79] : memref<192x1152xf32, #tpu.memory_space<vmem>>, vector<192x1152xf32>
    %c0_80 = arith.constant 0 : index
    %c0_81 = arith.constant 0 : index
    %71 = vector.load %arg5[%c0_80, %c0_81] : memref<1152x128xf32, #tpu.memory_space<vmem>>, vector<1152x128xf32>
    %cst_82 = arith.constant dense<0.000000e+00> : vector<192x128xf32>
    %72 = tpu.matmul %70, %71, %cst_82 {dimension_numbers = #tpu.dot_dimension_numbers<[1], [0], [0], [1], [0, 0, 1, 1], [], []>} : vector<192x1152xf32>, vector<1152x128xf32>, vector<192x128xf32> -> vector<192x128xf32>
    %c0_83 = arith.constant 0 : index
    %c0_84 = arith.constant 0 : index
    %73 = vector.load %arg6[%c0_83, %c0_84] : memref<1x128xf32, #tpu.memory_space<vmem>>, vector<1x128xf32>
    %74 = vector.broadcast %73 : vector<1x128xf32> to vector<192x128xf32>
    %75 = arith.addf %72, %74 : vector<192x128xf32>
    %76 = arith.addf %75, %38 : vector<192x128xf32>
    %cst_85 = arith.constant 0.000000e+00 : f32
    %77 = vector.broadcast %cst_85 : f32 to vector<192x128xf32>
    %78 = arith.maximumf %76, %77 : vector<192x128xf32>
    %c0_86 = arith.constant 0 : index
    %c0_87 = arith.constant 0 : index
    %c0_88 = arith.constant 0 : index
    %79 = vector.load %arg9[%c0_86, %c0_87, %c0_88] : memref<1x192x128xf32, #tpu.memory_space<vmem>>, vector<1x192x128xf32>
    %80 = vector.shape_cast %79 : vector<1x192x128xf32> to vector<192x128xf32>
    %81 = vector.shape_cast %78 : vector<192x128xf32> to vector<1x192x128xf32>
    tpu.vector_store %arg9[%c0_86, %c0_87, %c0_88], %81 {strides = array<i32>} : memref<1x192x128xf32, #tpu.memory_space<vmem>>, vector<1x192x128xf32>,
    return
  }
  func.func @transform_0(%arg0: i32, %arg1: i32) -> (i32, i32, i32, i32) {
    %c0_i32 = arith.constant 0 : i32
    %c0_i32_0 = arith.constant 0 : i32
    %c0_i32_1 = arith.constant 0 : i32
    return %arg0, %arg1, %c0_i32, %c0_i32_0 : i32, i32, i32, i32
  }
  func.func @transform_1(%arg0: i32, %arg1: i32) -> (i32, i32) {
    %c0_i32 = arith.constant 0 : i32
    %c0_i32_0 = arith.constant 0 : i32
    %c0_i32_1 = arith.constant 0 : i32
    return %c0_i32, %c0_i32_0 : i32, i32
  }
  func.func @transform_2(%arg0: i32, %arg1: i32) -> (i32, i32) {
    %c0_i32 = arith.constant 0 : i32
    %c0_i32_0 = arith.constant 0 : i32
    %c0_i32_1 = arith.constant 0 : i32
    return %c0_i32, %c0_i32_0 : i32, i32
  }
  func.func @transform_3(%arg0: i32, %arg1: i32) -> (i32, i32) {
    %c0_i32 = arith.constant 0 : i32
    %c0_i32_0 = arith.constant 0 : i32
    %c0_i32_1 = arith.constant 0 : i32
    return %c0_i32, %c0_i32_0 : i32, i32
  }
  func.func @transform_4(%arg0: i32, %arg1: i32) -> (i32, i32) {
    %c0_i32 = arith.constant 0 : i32
    %c0_i32_0 = arith.constant 0 : i32
    %c0_i32_1 = arith.constant 0 : i32
    return %c0_i32, %c0_i32_0 : i32, i32
  }
  func.func @transform_5(%arg0: i32, %arg1: i32) -> (i32, i32) {
    %c0_i32 = arith.constant 0 : i32
    %c0_i32_0 = arith.constant 0 : i32
    %c0_i32_1 = arith.constant 0 : i32
    return %c0_i32, %c0_i32_0 : i32, i32
  }
  func.func @transform_6(%arg0: i32, %arg1: i32) -> (i32, i32, i32) {
    %c0_i32 = arith.constant 0 : i32
    %c0_i32_0 = arith.constant 0 : i32
    %c0_i32_1 = arith.constant 0 : i32
    return %arg1, %c0_i32, %c0_i32_0 : i32, i32, i32
  }
  func.func @transform_7(%arg0: i32, %arg1: i32) -> (i32, i32, i32) {
    %c0_i32 = arith.constant 0 : i32
    %c0_i32_0 = arith.constant 0 : i32
    return %arg0, %arg1, %c0_i32 : i32, i32, i32
  }
}

module attributes {stable_mosaic.version = 11 : i64} {
  func.func @kernel(%arg0: i32, %arg1: i32, %arg2: memref<1x1x288x128xf32, #tpu.memory_space<vmem>>, %arg3: memref<1152x256xf32, #tpu.memory_space<vmem>>, %arg4: memref<1x128xf32, #tpu.memory_space<vmem>>, %arg5: memref<1152x128xf32, #tpu.memory_space<vmem>>, %arg6: memref<1x128xf32, #tpu.memory_space<vmem>>, %arg7: memref<1x128xf32, #tpu.memory_space<vmem>>, %arg8: memref<1x240x1xf32, #tpu.memory_space<vmem>>, %arg9: memref<1x192x128xf32, #tpu.memory_space<vmem>>, %arg10: memref<240x1152xf32, #tpu.memory_space<vmem>>, %arg11: memref<192x1152xf32, #tpu.memory_space<vmem>>) attributes {dimension_semantics = [#tpu.dimension_semantics<parallel>, #tpu.dimension_semantics<parallel>], iteration_bounds = array<i64: 2, 2>, scalar_prefetch = 0 : i64, scratch_operands = 2 : i64, tpu.core_type = #tpu.core_type<tc>, window_params = [{transform_indices = @transform_0, window_bounds = array<i64: 1, 1, 288, 128>}, {pipeline_mode = #tpu.pipeline_mode<synchronous>, transform_indices = @transform_1, window_bounds = array<i64: 1152, 256>}, {pipeline_mode = #tpu.pipeline_mode<synchronous>, transform_indices = @transform_2, window_bounds = array<i64: 1, 128>}, {pipeline_mode = #tpu.pipeline_mode<synchronous>, transform_indices = @transform_3, window_bounds = array<i64: 1152, 128>}, {pipeline_mode = #tpu.pipeline_mode<synchronous>, transform_indices = @transform_4, window_bounds = array<i64: 1, 128>}, {pipeline_mode = #tpu.pipeline_mode<synchronous>, transform_indices = @transform_5, window_bounds = array<i64: 1, 128>}, {transform_indices = @transform_6, window_bounds = array<i64: 1, 240, 1>}, {transform_indices = @transform_7, window_bounds = array<i64: 1, 192, 128>}]} {
    %cst = arith.constant 0.000000e+00 : f32
    %0 = vector.broadcast %cst : f32 to vector<1x128xf32>
    %c0 = arith.constant 0 : index
    %c0_0 = arith.constant 0 : index
    %1 = vector.load %arg10[%c0, %c0_0] : memref<240x1152xf32, #tpu.memory_space<vmem>>, vector<1x128xf32>
    tpu.vector_store %arg10[%c0, %c0_0], %0 {strides = array<i32>} : memref<240x1152xf32, #tpu.memory_space<vmem>>, vector<1x128xf32>,
    %c0_1 = arith.constant 0 : index
    %c0_2 = arith.constant 0 : index
    %c0_3 = arith.constant 0 : index
    %c0_4 = arith.constant 0 : index
    %2 = vector.load %arg2[%c0_1, %c0_2, %c0_3, %c0_4] : memref<1x1x288x128xf32, #tpu.memory_space<vmem>>, vector<1x1x239x128xf32>
    %3 = vector.shape_cast %2 : vector<1x1x239x128xf32> to vector<239x128xf32>
    %c1 = arith.constant 1 : index
    %c0_5 = arith.constant 0 : index
    %4 = vector.load %arg10[%c1, %c0_5] : memref<240x1152xf32, #tpu.memory_space<vmem>>, vector<239x128xf32>
    tpu.vector_store %arg10[%c1, %c0_5], %3 {strides = array<i32>} : memref<240x1152xf32, #tpu.memory_space<vmem>>, vector<239x128xf32>,
    %c0_6 = arith.constant 0 : index
    %c0_7 = arith.constant 0 : index
    %c0_8 = arith.constant 0 : index
    %c0_9 = arith.constant 0 : index
    %5 = vector.load %arg2[%c0_6, %c0_7, %c0_8, %c0_9] : memref<1x1x288x128xf32, #tpu.memory_space<vmem>>, vector<1x1x240x128xf32>
    %6 = vector.shape_cast %5 : vector<1x1x240x128xf32> to vector<240x128xf32>
    %c0_10 = arith.constant 0 : index
    %c128 = arith.constant 128 : index
    %7 = vector.load %arg10[%c0_10, %c128] : memref<240x1152xf32, #tpu.memory_space<vmem>>, vector<240x128xf32>
    tpu.vector_store %arg10[%c0_10, %c128], %6 {strides = array<i32>} : memref<240x1152xf32, #tpu.memory_space<vmem>>, vector<240x128xf32>,
    %c0_11 = arith.constant 0 : index
    %c0_12 = arith.constant 0 : index
    %c1_13 = arith.constant 1 : index
    %c0_14 = arith.constant 0 : index
    %8 = vector.load %arg2[%c0_11, %c0_12, %c1_13, %c0_14] : memref<1x1x288x128xf32, #tpu.memory_space<vmem>>, vector<1x1x240x128xf32>
    %9 = vector.shape_cast %8 : vector<1x1x240x128xf32> to vector<240x128xf32>
    %c0_15 = arith.constant 0 : index
    %c256 = arith.constant 256 : index
    %10 = vector.load %arg10[%c0_15, %c256] : memref<240x1152xf32, #tpu.memory_space<vmem>>, vector<240x128xf32>
    tpu.vector_store %arg10[%c0_15, %c256], %9 {strides = array<i32>} : memref<240x1152xf32, #tpu.memory_space<vmem>>, vector<240x128xf32>,
    %c0_16 = arith.constant 0 : index
    %c0_17 = arith.constant 0 : index
    %c23 = arith.constant 23 : index
    %c0_18 = arith.constant 0 : index
    %11 = vector.load %arg2[%c0_16, %c0_17, %c23, %c0_18] : memref<1x1x288x128xf32, #tpu.memory_space<vmem>>, vector<1x1x240x128xf32>
    %12 = vector.shape_cast %11 : vector<1x1x240x128xf32> to vector<240x128xf32>
    %c0_19 = arith.constant 0 : index
    %c384 = arith.constant 384 : index
    %13 = vector.load %arg10[%c0_19, %c384] : memref<240x1152xf32, #tpu.memory_space<vmem>>, vector<240x128xf32>
    tpu.vector_store %arg10[%c0_19, %c384], %12 {strides = array<i32>} : memref<240x1152xf32, #tpu.memory_space<vmem>>, vector<240x128xf32>,
    %c0_20 = arith.constant 0 : index
    %c0_21 = arith.constant 0 : index
    %c24 = arith.constant 24 : index
    %c0_22 = arith.constant 0 : index
    %14 = vector.load %arg2[%c0_20, %c0_21, %c24, %c0_22] : memref<1x1x288x128xf32, #tpu.memory_space<vmem>>, vector<1x1x240x128xf32>
    %15 = vector.shape_cast %14 : vector<1x1x240x128xf32> to vector<240x128xf32>
    %c0_23 = arith.constant 0 : index
    %c512 = arith.constant 512 : index
    %16 = vector.load %arg10[%c0_23, %c512] : memref<240x1152xf32, #tpu.memory_space<vmem>>, vector<240x128xf32>
    tpu.vector_store %arg10[%c0_23, %c512], %15 {strides = array<i32>} : memref<240x1152xf32, #tpu.memory_space<vmem>>, vector<240x128xf32>,
    %c0_24 = arith.constant 0 : index
    %c0_25 = arith.constant 0 : index
    %c25 = arith.constant 25 : index
    %c0_26 = arith.constant 0 : index
    %17 = vector.load %arg2[%c0_24, %c0_25, %c25, %c0_26] : memref<1x1x288x128xf32, #tpu.memory_space<vmem>>, vector<1x1x240x128xf32>
    %18 = vector.shape_cast %17 : vector<1x1x240x128xf32> to vector<240x128xf32>
    %c0_27 = arith.constant 0 : index
    %c640 = arith.constant 640 : index
    %19 = vector.load %arg10[%c0_27, %c640] : memref<240x1152xf32, #tpu.memory_space<vmem>>, vector<240x128xf32>
    tpu.vector_store %arg10[%c0_27, %c640], %18 {strides = array<i32>} : memref<240x1152xf32, #tpu.memory_space<vmem>>, vector<240x128xf32>,
    %c0_28 = arith.constant 0 : index
    %c0_29 = arith.constant 0 : index
    %c47 = arith.constant 47 : index
    %c0_30 = arith.constant 0 : index
    %20 = vector.load %arg2[%c0_28, %c0_29, %c47, %c0_30] : memref<1x1x288x128xf32, #tpu.memory_space<vmem>>, vector<1x1x240x128xf32>
    %21 = vector.shape_cast %20 : vector<1x1x240x128xf32> to vector<240x128xf32>
    %c0_31 = arith.constant 0 : index
    %c768 = arith.constant 768 : index
    %22 = vector.load %arg10[%c0_31, %c768] : memref<240x1152xf32, #tpu.memory_space<vmem>>, vector<240x128xf32>
    tpu.vector_store %arg10[%c0_31, %c768], %21 {strides = array<i32>} : memref<240x1152xf32, #tpu.memory_space<vmem>>, vector<240x128xf32>,
    %c0_32 = arith.constant 0 : index
    %c0_33 = arith.constant 0 : index
    %c48 = arith.constant 48 : index
    %c0_34 = arith.constant 0 : index
    %23 = vector.load %arg2[%c0_32, %c0_33, %c48, %c0_34] : memref<1x1x288x128xf32, #tpu.memory_space<vmem>>, vector<1x1x240x128xf32>
    %24 = vector.shape_cast %23 : vector<1x1x240x128xf32> to vector<240x128xf32>
    %c0_35 = arith.constant 0 : index
    %c896 = arith.constant 896 : index
    %25 = vector.load %arg10[%c0_35, %c896] : memref<240x1152xf32, #tpu.memory_space<vmem>>, vector<240x128xf32>
    tpu.vector_store %arg10[%c0_35, %c896], %24 {strides = array<i32>} : memref<240x1152xf32, #tpu.memory_space<vmem>>, vector<240x128xf32>,
    %cst_36 = arith.constant 0.000000e+00 : f32
    %26 = vector.broadcast %cst_36 : f32 to vector<1x128xf32>
    %c239 = arith.constant 239 : index
    %c1024 = arith.constant 1024 : index
    %27 = vector.load %arg10[%c239, %c1024] : memref<240x1152xf32, #tpu.memory_space<vmem>>, vector<1x128xf32>
    tpu.vector_store %arg10[%c239, %c1024], %26 {strides = array<i32>} : memref<240x1152xf32, #tpu.memory_space<vmem>>, vector<1x128xf32>,
    %c0_37 = arith.constant 0 : index
    %c0_38 = arith.constant 0 : index
    %c49 = arith.constant 49 : index
    %c0_39 = arith.constant 0 : index
    %28 = vector.load %arg2[%c0_37, %c0_38, %c49, %c0_39] : memref<1x1x288x128xf32, #tpu.memory_space<vmem>>, vector<1x1x239x128xf32>
    %29 = vector.shape_cast %28 : vector<1x1x239x128xf32> to vector<239x128xf32>
    %c0_40 = arith.constant 0 : index
    %c1024_41 = arith.constant 1024 : index
    %30 = vector.load %arg10[%c0_40, %c1024_41] : memref<240x1152xf32, #tpu.memory_space<vmem>>, vector<239x128xf32>
    tpu.vector_store %arg10[%c0_40, %c1024_41], %29 {strides = array<i32>} : memref<240x1152xf32, #tpu.memory_space<vmem>>, vector<239x128xf32>,
    %c0_42 = arith.constant 0 : index
    %c0_43 = arith.constant 0 : index
    %31 = vector.load %arg10[%c0_42, %c0_43] : memref<240x1152xf32, #tpu.memory_space<vmem>>, vector<240x1152xf32>
    %c0_44 = arith.constant 0 : index
    %c0_45 = arith.constant 0 : index
    %32 = vector.load %arg3[%c0_44, %c0_45] : memref<1152x256xf32, #tpu.memory_space<vmem>>, vector<1152x256xf32>
    %cst_46 = arith.constant dense<0.000000e+00> : vector<240x256xf32>
    %33 = tpu.matmul %31, %32, %cst_46 {dimension_numbers = #tpu.dot_dimension_numbers<[1], [0], [0], [1], [0, 0, 1, 1], [], []>} : vector<240x1152xf32>, vector<1152x256xf32>, vector<240x256xf32> -> vector<240x256xf32>
    %34 = vector.extract_strided_slice %33 {offsets = [0, 0], sizes = [240, 128], strides = [1, 1]} : vector<240x256xf32> to vector<240x128xf32>
    %35 = vector.extract_strided_slice %33 {offsets = [24, 128], sizes = [192, 128], strides = [1, 1]} : vector<240x256xf32> to vector<192x128xf32>
    %c0_47 = arith.constant 0 : index
    %c0_48 = arith.constant 0 : index
    %36 = vector.load %arg7[%c0_47, %c0_48] : memref<1x128xf32, #tpu.memory_space<vmem>>, vector<1x128xf32>
    %37 = vector.broadcast %36 : vector<1x128xf32> to vector<192x128xf32>
    %38 = arith.addf %35, %37 : vector<192x128xf32>
    %c0_49 = arith.constant 0 : index
    %c0_50 = arith.constant 0 : index
    %39 = vector.load %arg4[%c0_49, %c0_50] : memref<1x128xf32, #tpu.memory_space<vmem>>, vector<1x128xf32>
    %40 = vector.broadcast %39 : vector<1x128xf32> to vector<240x128xf32>
    %41 = arith.addf %34, %40 : vector<240x128xf32>
    %cst_51 = arith.constant 0.000000e+00 : f32
    %42 = vector.broadcast %cst_51 : f32 to vector<240x128xf32>
    %43 = arith.maximumf %41, %42 : vector<240x128xf32>
    %c0_52 = arith.constant 0 : index
    %c0_53 = arith.constant 0 : index
    %c0_54 = arith.constant 0 : index
    %44 = vector.load %arg8[%c0_52, %c0_53, %c0_54] : memref<1x240x1xf32, #tpu.memory_space<vmem>>, vector<1x240x1xf32>
    %45 = vector.shape_cast %44 : vector<1x240x1xf32> to vector<240x1xf32>
    %46 = vector.broadcast %45 : vector<240x1xf32> to vector<240x128xf32>
    %47 = arith.mulf %43, %46 : vector<240x128xf32>
    %cst_55 = arith.constant 0.000000e+00 : f32
    %48 = vector.broadcast %cst_55 : f32 to vector<1x128xf32>
    %c0_56 = arith.constant 0 : index
    %c0_57 = arith.constant 0 : index
    %49 = vector.load %arg11[%c0_56, %c0_57] : memref<192x1152xf32, #tpu.memory_space<vmem>>, vector<1x128xf32>
    tpu.vector_store %arg11[%c0_56, %c0_57], %48 {strides = array<i32>} : memref<192x1152xf32, #tpu.memory_space<vmem>>, vector<1x128xf32>,
    %50 = vector.extract_strided_slice %47 {offsets = [0, 0], sizes = [191, 128], strides = [1, 1]} : vector<240x128xf32> to vector<191x128xf32>
    %c1_58 = arith.constant 1 : index
    %c0_59 = arith.constant 0 : index
    %51 = vector.load %arg11[%c1_58, %c0_59] : memref<192x1152xf32, #tpu.memory_space<vmem>>, vector<191x128xf32>
    tpu.vector_store %arg11[%c1_58, %c0_59], %50 {strides = array<i32>} : memref<192x1152xf32, #tpu.memory_space<vmem>>, vector<191x128xf32>,
    %52 = vector.extract_strided_slice %47 {offsets = [0, 0], sizes = [192, 128], strides = [1, 1]} : vector<240x128xf32> to vector<192x128xf32>
    %c0_60 = arith.constant 0 : index
    %c128_61 = arith.constant 128 : index
    %53 = vector.load %arg11[%c0_60, %c128_61] : memref<192x1152xf32, #tpu.memory_space<vmem>>, vector<192x128xf32>
    tpu.vector_store %arg11[%c0_60, %c128_61], %52 {strides = array<i32>} : memref<192x1152xf32, #tpu.memory_space<vmem>>, vector<192x128xf32>,
    %54 = vector.extract_strided_slice %47 {offsets = [1, 0], sizes = [192, 128], strides = [1, 1]} : vector<240x128xf32> to vector<192x128xf32>
    %c0_62 = arith.constant 0 : index
    %c256_63 = arith.constant 256 : index
    %55 = vector.load %arg11[%c0_62, %c256_63] : memref<192x1152xf32, #tpu.memory_space<vmem>>, vector<192x128xf32>
    tpu.vector_store %arg11[%c0_62, %c256_63], %54 {strides = array<i32>} : memref<192x1152xf32, #tpu.memory_space<vmem>>, vector<192x128xf32>,
    %56 = vector.extract_strided_slice %47 {offsets = [23, 0], sizes = [192, 128], strides = [1, 1]} : vector<240x128xf32> to vector<192x128xf32>
    %c0_64 = arith.constant 0 : index
    %c384_65 = arith.constant 384 : index
    %57 = vector.load %arg11[%c0_64, %c384_65] : memref<192x1152xf32, #tpu.memory_space<vmem>>, vector<192x128xf32>
    tpu.vector_store %arg11[%c0_64, %c384_65], %56 {strides = array<i32>} : memref<192x1152xf32, #tpu.memory_space<vmem>>, vector<192x128xf32>,
    %58 = vector.extract_strided_slice %47 {offsets = [24, 0], sizes = [192, 128], strides = [1, 1]} : vector<240x128xf32> to vector<192x128xf32>
    %c0_66 = arith.constant 0 : index
    %c512_67 = arith.constant 512 : index
    %59 = vector.load %arg11[%c0_66, %c512_67] : memref<192x1152xf32, #tpu.memory_space<vmem>>, vector<192x128xf32>
    tpu.vector_store %arg11[%c0_66, %c512_67], %58 {strides = array<i32>} : memref<192x1152xf32, #tpu.memory_space<vmem>>, vector<192x128xf32>,
    %60 = vector.extract_strided_slice %47 {offsets = [25, 0], sizes = [192, 128], strides = [1, 1]} : vector<240x128xf32> to vector<192x128xf32>
    %c0_68 = arith.constant 0 : index
    %c640_69 = arith.constant 640 : index
    %61 = vector.load %arg11[%c0_68, %c640_69] : memref<192x1152xf32, #tpu.memory_space<vmem>>, vector<192x128xf32>
    tpu.vector_store %arg11[%c0_68, %c640_69], %60 {strides = array<i32>} : memref<192x1152xf32, #tpu.memory_space<vmem>>, vector<192x128xf32>,
    %62 = vector.extract_strided_slice %47 {offsets = [47, 0], sizes = [192, 128], strides = [1, 1]} : vector<240x128xf32> to vector<192x128xf32>
    %c0_70 = arith.constant 0 : index
    %c768_71 = arith.constant 768 : index
    %63 = vector.load %arg11[%c0_70, %c768_71] : memref<192x1152xf32, #tpu.memory_space<vmem>>, vector<192x128xf32>
    tpu.vector_store %arg11[%c0_70, %c768_71], %62 {strides = array<i32>} : memref<192x1152xf32, #tpu.memory_space<vmem>>, vector<192x128xf32>,
    %64 = vector.extract_strided_slice %47 {offsets = [48, 0], sizes = [192, 128], strides = [1, 1]} : vector<240x128xf32> to vector<192x128xf32>
    %c0_72 = arith.constant 0 : index
    %c896_73 = arith.constant 896 : index
    %65 = vector.load %arg11[%c0_72, %c896_73] : memref<192x1152xf32, #tpu.memory_space<vmem>>, vector<192x128xf32>
    tpu.vector_store %arg11[%c0_72, %c896_73], %64 {strides = array<i32>} : memref<192x1152xf32, #tpu.memory_space<vmem>>, vector<192x128xf32>,
    %cst_74 = arith.constant 0.000000e+00 : f32
    %66 = vector.broadcast %cst_74 : f32 to vector<1x128xf32>
    %c191 = arith.constant 191 : index
    %c1024_75 = arith.constant 1024 : index
    %67 = vector.load %arg11[%c191, %c1024_75] : memref<192x1152xf32, #tpu.memory_space<vmem>>, vector<1x128xf32>
    tpu.vector_store %arg11[%c191, %c1024_75], %66 {strides = array<i32>} : memref<192x1152xf32, #tpu.memory_space<vmem>>, vector<1x128xf32>,
    %68 = vector.extract_strided_slice %47 {offsets = [49, 0], sizes = [191, 128], strides = [1, 1]} : vector<240x128xf32> to vector<191x128xf32>
    %c0_76 = arith.constant 0 : index
    %c1024_77 = arith.constant 1024 : index
    %69 = vector.load %arg11[%c0_76, %c1024_77] : memref<192x1152xf32, #tpu.memory_space<vmem>>, vector<191x128xf32>
    tpu.vector_store %arg11[%c0_76, %c1024_77], %68 {strides = array<i32>} : memref<192x1152xf32, #tpu.memory_space<vmem>>, vector<191x128xf32>,
    %c0_78 = arith.constant 0 : index
    %c0_79 = arith.constant 0 : index
    %70 = vector.load %arg11[%c0_78, %c0_79] : memref<192x1152xf32, #tpu.memory_space<vmem>>, vector<192x1152xf32>
    %c0_80 = arith.constant 0 : index
    %c0_81 = arith.constant 0 : index
    %71 = vector.load %arg5[%c0_80, %c0_81] : memref<1152x128xf32, #tpu.memory_space<vmem>>, vector<1152x128xf32>
    %cst_82 = arith.constant dense<0.000000e+00> : vector<192x128xf32>
    %72 = tpu.matmul %70, %71, %cst_82 {dimension_numbers = #tpu.dot_dimension_numbers<[1], [0], [0], [1], [0, 0, 1, 1], [], []>} : vector<192x1152xf32>, vector<1152x128xf32>, vector<192x128xf32> -> vector<192x128xf32>
    %c0_83 = arith.constant 0 : index
    %c0_84 = arith.constant 0 : index
    %73 = vector.load %arg6[%c0_83, %c0_84] : memref<1x128xf32, #tpu.memory_space<vmem>>, vector<1x128xf32>
    %74 = vector.broadcast %73 : vector<1x128xf32> to vector<192x128xf32>
    %75 = arith.addf %72, %74 : vector<192x128xf32>
    %76 = arith.addf %75, %38 : vector<192x128xf32>
    %cst_85 = arith.constant 0.000000e+00 : f32
    %77 = vector.broadcast %cst_85 : f32 to vector<192x128xf32>
    %78 = arith.maximumf %76, %77 : vector<192x128xf32>
    %c0_86 = arith.constant 0 : index
    %c0_87 = arith.constant 0 : index
    %c0_88 = arith.constant 0 : index
    %79 = vector.load %arg9[%c0_86, %c0_87, %c0_88] : memref<1x192x128xf32, #tpu.memory_space<vmem>>, vector<1x192x128xf32>
    %80 = vector.shape_cast %79 : vector<1x192x128xf32> to vector<192x128xf32>
    %81 = vector.shape_cast %78 : vector<192x128xf32> to vector<1x192x128xf32>
    tpu.vector_store %arg9[%c0_86, %c0_87, %c0_88], %81 {strides = array<i32>} : memref<1x192x128xf32, #tpu.memory_space<vmem>>, vector<1x192x128xf32>,
    return
  }
  func.func @transform_0(%arg0: i32, %arg1: i32) -> (i32, i32, i32, i32) {
    %c0_i32 = arith.constant 0 : i32
    %c0_i32_0 = arith.constant 0 : i32
    %c0_i32_1 = arith.constant 0 : i32
    return %arg0, %arg1, %c0_i32, %c0_i32_0 : i32, i32, i32, i32
  }
  func.func @transform_1(%arg0: i32, %arg1: i32) -> (i32, i32) {
    %c0_i32 = arith.constant 0 : i32
    %c0_i32_0 = arith.constant 0 : i32
    %c0_i32_1 = arith.constant 0 : i32
    return %c0_i32, %c0_i32_0 : i32, i32
  }
  func.func @transform_2(%arg0: i32, %arg1: i32) -> (i32, i32) {
    %c0_i32 = arith.constant 0 : i32
    %c0_i32_0 = arith.constant 0 : i32
    %c0_i32_1 = arith.constant 0 : i32
    return %c0_i32, %c0_i32_0 : i32, i32
  }
  func.func @transform_3(%arg0: i32, %arg1: i32) -> (i32, i32) {
    %c0_i32 = arith.constant 0 : i32
    %c0_i32_0 = arith.constant 0 : i32
    %c0_i32_1 = arith.constant 0 : i32
    return %c0_i32, %c0_i32_0 : i32, i32
  }
  func.func @transform_4(%arg0: i32, %arg1: i32) -> (i32, i32) {
    %c0_i32 = arith.constant 0 : i32
    %c0_i32_0 = arith.constant 0 : i32
    %c0_i32_1 = arith.constant 0 : i32
    return %c0_i32, %c0_i32_0 : i32, i32
  }
  func.func @transform_5(%arg0: i32, %arg1: i32) -> (i32, i32) {
    %c0_i32 = arith.constant 0 : i32
    %c0_i32_0 = arith.constant 0 : i32
    %c0_i32_1 = arith.constant 0 : i32
    return %c0_i32, %c0_i32_0 : i32, i32
  }
  func.func @transform_6(%arg0: i32, %arg1: i32) -> (i32, i32, i32) {
    %c0_i32 = arith.constant 0 : i32
    %c0_i32_0 = arith.constant 0 : i32
    %c0_i32_1 = arith.constant 0 : i32
    return %arg1, %c0_i32, %c0_i32_0 : i32, i32, i32
  }
  func.func @transform_7(%arg0: i32, %arg1: i32) -> (i32, i32, i32) {
    %c0_i32 = arith.constant 0 : i32
    %c0_i32_0 = arith.constant 0 : i32
    return %arg0, %arg1, %c0_i32 : i32, i32, i32
  }
}

</mosaic_0001>

<bundles_post_ra>
// kernel: tpu_custom_call.1
= control target key start
LH: loop header
LB: loop body
LE: loop exit
PB: predicated region body
PF: predicated region fallthrough
CT: control target
= control target key end

     0   :  { %s8714_s0 = inlined_call_operand.hbm [shape: f32[2,2,288,128], index: 0, kind: input, shape index: {}]   ;;  %s8715_s1 = inlined_call_operand.hbm [shape: f32[1152,256], index: 1, kind: input, shape index: {}]   ;;  %s8716_s2 = inlined_call_operand.hbm [shape: f32[1,128], index: 2, kind: input, shape index: {}]   ;;  %s8717_s3 = inlined_call_operand.hbm [shape: f32[1152,128], index: 3, kind: input, shape index: {}]   ;;  %s8718_s4 = inlined_call_operand.hbm [shape: f32[1,128], index: 4, kind: input, shape index: {}]   ;;  %s8719_s5 = inlined_call_operand.hbm [shape: f32[1,128], index: 5, kind: input, shape index: {}]   ;;  %s8720_s6 = inlined_call_operand.vmem [shape: f32[2,240,1], index: 6, kind: input, shape index: {}]   ;;  %s8721_s7 = inlined_call_operand.hbm [shape: f32[2,384,128], index: 7, kind: output, shape index: {}]  }
   0x1   :  { %8754 = sst [smem:[#allocation37_spill]] %s8715_s1 }
   0x2   :  { %8755 = sst [smem:[#allocation38_spill]] %s8716_s2 }
   0x3   :  { %8756 = sst [smem:[#allocation39_spill]] %s8717_s3 }
   0x4   :  { %8757 = sst [smem:[#allocation40_spill]] %s8718_s4 }
   0x5   :  { %8758 = sst [smem:[#allocation41_spill]] %s8721_s7 }
   0x6   :  { %12 = vsyncpa [#allocation5], 0 }
   0x7   :  { %14 = vsyncpa [#allocation5 + $0x1], 0 }
   0x8   :  { %15 = vsyncpa [#allocation8], 0 }
   0x9   :  { %16 = vsyncpa [#allocation11], 0 }
   0xa   :  { %17 = vsyncpa [#allocation14], 0 }
   0xb   :  { %18 = vsyncpa [#allocation6], 0 }
   0xc   :  { %20 = vsyncpa [#allocation6 + $0x1], 0  ;;  %s6642_s24 = smov 0   ;;  %s6644_s25 = smov 0  }
   0xd   :  { %s6646_s26 = smov 0   ;;  %s6648_s27 = smov 0  }
   0xe   :  { %s6650_s28 = smov 0   ;;  %s6652_s29 = smov 0  }
   0xf   :  { %s6654_s30 = smov 0   ;;  %s6656_s8 = smov 0  }
  0x10 LB: > { %8759 = sst [smem:[#allocation21_spill]] %s6572_s28  ;;  %s8725_s9 = sadd.s32 4294967295, %s6584_s8   ;;  %s6584_s8 = sphi %s6656_s8, %s26_s8   ;;  %s6580_s30 = sphi %s6654_s30, %s8880_s30   ;;  %s6576_s29 = sphi %s6652_s29, %s8879_s29   ;;  %s6572_s28 = sphi %s6650_s28, %s8878_s28   ;;  %s6568_s27 = sphi %s6648_s27, %s8877_s27   ;;  %s6564_s26 = sphi %s6646_s26, %s8876_s26   ;;  %s6560_s25 = sphi %s6644_s25, %s8875_s25   ;;  %s6556_s24 = sphi %s6642_s24, %s8874_s24  }
  0x11   : > { %p5085_p0 = scmp.ge.s32.totalorder %s6584_s8, 1  ;;  %p6686_p1 = scmp.eq.s32.totalorder %s8725_s9, 0 }
  0x12   : > { %p230_p2 = scmp.lt.s32.totalorder %s6584_s8, 5  ;;  %s6586_s12 = smov [#allocation7]  }
  0x13   : > { %s8760_s10 = scalar_select %p6686_p1, 1, 0 }
  0x14   : > { %p6691_p3 = pnand %p5085_p0, %p230_p2  ;;  %s242_s13 = sshll.u32 %s6586_s12, 4  ;;  %s243_s13 = int_to_ptr.vmem [resolvable:$true] %s242_s13 }
  0x15   : > { %s6587_s15 = smov [#allocation10]   ;;  %s8763_s1 = sld [smem:[#allocation37_spill]] }
  0x16   : > { %s8761_s11 = scalar_select %p6691_p3, 1, 0 }
  0x17   : > { %p6133_p4 = pneg %p6691_p3  ;;  %s266_s16 = sshll.u32 %s6587_s15, 4  ;;  %s6703_s16 = int_to_ptr.vmem [resolvable:$true] %s266_s16 }
  0x19   : > { %p6699_p5 = pnand %p6133_p4, %p6686_p1 }
  0x1b   : > { %s6304_s19 = scalar_lea.hbm %s8763_s1, 36864  ;;  %p6713_p7 = pneg %p6699_p5 }
  0x1c   : > { %p6305_p6 = scmp.ne.s32.totalorder %s8763_s1, %s6304_s19  ;;  %p6311_p10 = scmp.lt.u32.totalorder %s6304_s19, %s8763_s1 }
  0x1e   : > { %p6307_p8 = pnand %p6713_p7, %p6305_p6 }
  0x20   : > { %p6308_p9 = pneg %p6307_p8 }
  0x22   : > { %p6313_p11 = pnand %p6311_p10, %p6308_p9 }
  0x24   : > { %6316 = shalt.err (!%p6313_p11)
}
  0x25   : > { %s6317_s15 = scalar_lea.vmem %s243_s13, 36864  ;;  %p6325_p2 = scmp.lt.s32.totalorder %s243_s13, %s243_s13 }
  0x26   : > { %p6318_p12 = scmp.ne.s32.totalorder %s243_s13, %s6317_s15  ;;  %p6326_p4 = scmp.lt.s32.totalorder %s6317_s15, %s6317_s15 }
  0x28   : > { %p6320_p13 = pnand %p6318_p12, %p6713_p7  ;;  %p6327_p3 = por %p6326_p4, %p6325_p2 }
  0x2a   : > { %p6321_p0 = pneg %p6320_p13 }
  0x2c   : > { %p6328_p1 = pnand %p6327_p3, %p6321_p0 }
  0x2e   : > { %6331 = shalt.err (!%p6328_p1)
}
  0x2f   : > { %s6588_s17 = smov 256   ;;  %s6589_s18 = smov 16  }
  0x30   : > { %6136 = dma.hbm_to_vmem [thread:$0]  (!%p6699_p5), %s8763_s1, 36864, %s243_s13, [#allocation8], %s6588_s17, %s6588_s17, %s6589_s18  }
  0x31   : > { %s8765_s3 = sld [smem:[#allocation39_spill]] }
  0x37   : > { %s6332_s12 = scalar_lea.hbm %s8765_s3, 18432 }
  0x38   : > { %p6333_p6 = scmp.ne.s32.totalorder %s8765_s3, %s6332_s12  ;;  %p6339_p8 = scmp.lt.u32.totalorder %s6332_s12, %s8765_s3 }
  0x3a   : > { %p6335_p3 = pnand %p6333_p6, %p6713_p7 }
  0x3c   : > { %p6336_p1 = pneg %p6335_p3 }
  0x3e   : > { %p6341_p9 = pnand %p6339_p8, %p6336_p1 }
  0x40   : > { %6344 = shalt.err (!%p6341_p9)
}
  0x41   : > { %s6345_s13 = scalar_lea.vmem %s6703_s16, 18432  ;;  %p6353_p13 = scmp.lt.s32.totalorder %s6703_s16, %s6703_s16 }
  0x42   : > { %p6346_p10 = scmp.ne.s32.totalorder %s6703_s16, %s6345_s13  ;;  %p6354_p0 = scmp.lt.s32.totalorder %s6345_s13, %s6345_s13 }
  0x44   : > { %p6348_p11 = pnand %p6346_p10, %p6713_p7  ;;  %p6355_p2 = por %p6354_p0, %p6353_p13 }
  0x46   : > { %p6349_p12 = pneg %p6348_p11 }
  0x48   : > { %p6356_p4 = pnand %p6355_p2, %p6349_p12 }
  0x4a   : > { %6359 = shalt.err (!%p6356_p4)
}
  0x4b   : > { %s8727_s7 = smov 128   ;;  %s8728_s28 = smov 8  }
  0x4c   : > { %6142 = dma.hbm_to_vmem [thread:$0]  (!%p6699_p5), %s8765_s3, 18432, %s6703_s16, [#allocation11], %s8727_s7, %s8727_s7, %s8728_s28  }
  0x4d   : > { %s6592_s18 = smov [#allocation9]   ;;  %s6593_s19 = smov [#allocation12]  }
  0x4e   : > { %s256_s20 = sshll.u32 %s6592_s18, 4  ;;  %s280_s21 = sshll.u32 %s6593_s19, 4  ;;  %s257_s20 = int_to_ptr.vmem [resolvable:$true] %s256_s20  ;;  %s6755_s21 = int_to_ptr.vmem [resolvable:$true] %s280_s21 }
  0x4f   : > { %s8766_s2 = sld [smem:[#allocation38_spill]] }
  0x55   : > { %s6360_s15 = scalar_lea.hbm %s8766_s2, 16 }
  0x56   : > { %p6361_p6 = scmp.ne.s32.totalorder %s8766_s2, %s6360_s15  ;;  %p6367_p8 = scmp.lt.u32.totalorder %s6360_s15, %s8766_s2 }
  0x58   : > { %p6363_p3 = pnand %p6361_p6, %p6713_p7 }
  0x5a   : > { %p6364_p1 = pneg %p6363_p3 }
  0x5c   : > { %p6369_p9 = pnand %p6367_p8, %p6364_p1 }
  0x5e   : > { %6372 = shalt.err (!%p6369_p9)
}
  0x5f   : > { %s6373_s17 = scalar_lea.vmem %s257_s20, 16  ;;  %s6380_s18 = scalar_lea.vmem %s257_s20, 32 }
  0x60   : > { %p6374_p10 = scmp.ne.s32.totalorder %s257_s20, %s6373_s17  ;;  %p6381_p13 = scmp.lt.s32.totalorder %s257_s20, %s257_s20 }
  0x61   : > { %p6382_p0 = scmp.lt.s32.totalorder %s6380_s18, %s6373_s17 }
  0x62   : > { %p6376_p11 = pnand %p6374_p10, %p6713_p7 }
  0x63   : > { %p6383_p2 = por %p6382_p0, %p6381_p13 }
  0x64   : > { %p6377_p12 = pneg %p6376_p11 }
  0x66   : > { %p6384_p4 = pnand %p6383_p2, %p6377_p12 }
  0x68   : > { %6387 = shalt.err (!%p6384_p4)
}
  0x69   : > { %6139 = dma.hbm_to_vmem [thread:$0]  (!%p6699_p5), %s8766_s2, 16, %s257_s20, [#allocation8]  }
  0x6a   : > { %s8767_s4 = sld [smem:[#allocation40_spill]] }
  0x70   : > { %s6388_s15 = scalar_lea.hbm %s8767_s4, 16 }
  0x71   : > { %p6389_p6 = scmp.ne.s32.totalorder %s8767_s4, %s6388_s15  ;;  %p6395_p8 = scmp.lt.u32.totalorder %s6388_s15, %s8767_s4 }
  0x73   : > { %p6391_p3 = pnand %p6389_p6, %p6713_p7 }
  0x75   : > { %p6392_p1 = pneg %p6391_p3 }
  0x77   : > { %p6397_p9 = pnand %p6395_p8, %p6392_p1 }
  0x79   : > { %6400 = shalt.err (!%p6397_p9)
}
  0x7a   : > { %s6401_s20 = scalar_lea.vmem %s6755_s21, 16  ;;  %s6408_s18 = scalar_lea.vmem %s6755_s21, 32 }
  0x7b   : > { %p6402_p10 = scmp.ne.s32.totalorder %s6755_s21, %s6401_s20  ;;  %p6409_p13 = scmp.lt.s32.totalorder %s6755_s21, %s6755_s21 }
  0x7c   : > { %p6410_p0 = scmp.lt.s32.totalorder %s6408_s18, %s6401_s20 }
  0x7d   : > { %p6404_p11 = pnand %p6402_p10, %p6713_p7 }
  0x7e   : > { %p6411_p2 = por %p6410_p0, %p6409_p13 }
  0x7f   : > { %p6405_p12 = pneg %p6404_p11 }
  0x81   : > { %p6412_p4 = pnand %p6411_p2, %p6405_p12 }
  0x83   : > { %6415 = shalt.err (!%p6412_p4)
}
  0x84   : > { %6145 = dma.hbm_to_vmem [thread:$0]  (!%p6699_p5), %s8767_s4, 16, %s6755_s21, [#allocation11]  }
  0x85   : > { %s6594_s23 = smov [#allocation13]   ;;  %s6416_s9 = scalar_lea.hbm %s8719_s5, 16 }
  0x86   : > { %s291_s12 = sshll.u32 %s6594_s23, 4  ;;  %p6417_p6 = scmp.ne.s32.totalorder %s8719_s5, %s6416_s9  ;;  %s292_s12 = int_to_ptr.vmem [resolvable:$true] %s291_s12 }
  0x87   : > { %p6423_p8 = scmp.lt.u32.totalorder %s6416_s9, %s8719_s5 }
  0x88   : > { %p6419_p3 = pnand %p6417_p6, %p6713_p7 }
  0x8a   : > { %p6420_p1 = pneg %p6419_p3 }
  0x8c   : > { %p6425_p9 = pnand %p6423_p8, %p6420_p1 }
  0x8e   : > { %6428 = shalt.err (!%p6425_p9)
}
  0x8f   : > { %s6429_s21 = scalar_lea.vmem %s292_s12, 16  ;;  %s6436_s1 = scalar_lea.vmem %s292_s12, 32 }
  0x90   : > { %p6430_p10 = scmp.ne.s32.totalorder %s292_s12, %s6429_s21  ;;  %p6437_p13 = scmp.lt.s32.totalorder %s292_s12, %s292_s12 }
  0x91   : > { %p6438_p0 = scmp.lt.s32.totalorder %s6436_s1, %s6429_s21 }
  0x92   : > { %p6432_p11 = pnand %p6430_p10, %p6713_p7 }
  0x93   : > { %p6439_p2 = por %p6438_p0, %p6437_p13 }
  0x94   : > { %p6433_p12 = pneg %p6432_p11 }
  0x96   : > { %p6440_p4 = pnand %p6439_p2, %p6433_p12 }
  0x98   : > { %6443 = shalt.err (!%p6440_p4)
}
  0x99   : > { %6148 = dma.hbm_to_vmem [thread:$0]  (!%p6699_p5), %s8719_s5, 16, %s292_s12, [#allocation14]  }
  0x9a   : > { %s5084_s22 = sadd.s32 4294967294, %s6584_s8   ;;  %s35_s14 = sadd.s32 1, %s6576_s29 }
  0x9b   : > { %p36_p7 = scmp.ge.s32.totalorder %s35_s14, 2  ;;  %s38_s15 = sadd.s32 1, %s6580_s30 }
  0x9c   : > { %s47_s13 = sadd.s32 1, %s6564_s26  ;;  %p54_p6 = scmp.ne.s32.totalorder %s6564_s26, %s6560_s25 }
  0x9d   : > { %s8882_s14 = smov (%p36_p7, %s35_s14), 0  ;;  %s8884_s15 = smov (!%p36_p7, %s38_s15), %s6580_s30 }
  0x9e   : > { %s43_s9 = ssub.s32 %s6576_s29, %s8882_s14  ;;  %p55_p5 = scmp.eq.s32.totalorder %s6584_s8, 0 }
  0x9f   : > { %p40_p3 = scmp.ge.s32.totalorder %s8884_s15, 2  ;;  %p60_p1 = scmp.ne.s32.totalorder %s6560_s25, %s6556_s24 }
  0xa0   : > { %s8768_s12 = sadd.s32 4294967295, %s6584_s8   ;;  %p223_p9 = scmp.eq.s32.totalorder %s5084_s22, 3 }
  0xa1   : > { %p217_p8 = scmp.eq.s32.totalorder %s8768_s12, 3  ;;  %s8886_s15 = smov (%p40_p3, %s8884_s15), 0 }
  0xa2   : > { %p8769_p10 = scmp.ne.s32.totalorder %s8760_s10, 0  ;;  %s42_s20 = ssub.s32 %s6580_s30, %s8886_s15 }
  0xa3   : > { %p6844_p12 = por %p217_p8, %p54_p6  ;;  %p6850_p13 = por %p223_p9, %p60_p1 }
  0xa4   : > { %p6837_p11 = por %p8769_p10, %p60_p1  ;;  %s44_s21 = sor.u32 %s43_s9, %s42_s20 }
  0xa5   : > { %s8771_s17 = scalar_select %p6844_p12, 1, 0 }
  0xa6   : > { %s8772_s18 = scalar_select %p6850_p13, 1, 0 }
  0xa7   : > { %p56_p0 = por %p55_p5, %p54_p6  ;;  %p45_p2 = scmp.eq.s32.totalorder %s44_s21, 0 }
  0xa8   : > { %s302_s1 = sand.u32 1, %s6564_s26   ;;  %p6162_p4 = scmp.lt.s32.totalorder %s6584_s8, 4 }
  0xa9   : > { %s6102_s19 = smul.u32 288, %s302_s1 }
  0xaa   : > { %s6860_s23 = scalar_select %p45_p2, %s6564_s26, %s47_s13  }
  0xab   : > { %s6103_s22 = smul.u32 36, %s6576_s29  ;;  %s306_s7 = scalar_lea.vmem [#allocation4], %s6102_s19 }
  0xac   : > { %s6104_s12 = smul.u32 72, %s6580_s30  ;;  %s315_s28 = sshll.u32 %s306_s7, 4  ;;  %s6868_s28 = int_to_ptr.vmem [resolvable:$true] %s315_s28 }
  0xad   : > { %p6864_p7 = pnand %p6162_p4, %p56_p0  ;;  %s6875_s7 = scalar_lea.sflag [#allocation5], %s302_s1 }
  0xae   : > { %s312_s3 = sadd.s32 %s6104_s12, %s6103_s22  ;;  %s6449_s22 = scalar_lea.hbm %s8714_s0, 18432 }
  0xaf   : > { %s5092_s9 = sshll.u32 %s312_s3, 7  ;;  %p6446_p5 = pneg %p6864_p7 }
  0xb0   : > { %s6873_s4 = scalar_lea.hbm %s8714_s0, %s5092_s9 }
  0xb1   : > { %s6444_s13 = scalar_lea.hbm %s6873_s4, 4608  ;;  %p6450_p8 = scmp.lt.u32.totalorder %s6873_s4, %s8714_s0 }
  0xb2   : > { %p6445_p6 = scmp.ne.s32.totalorder %s6873_s4, %s6444_s13  ;;  %p6451_p9 = scmp.lt.u32.totalorder %s6449_s22, %s6444_s13 }
  0xb3   : > { %p6453_p0 = scmp.lt.u32.totalorder %s6444_s13, %s6873_s4 }
  0xb4   : > { %p6447_p3 = pnand %p6446_p5, %p6445_p6  ;;  %p6452_p10 = por %p6451_p9, %p6450_p8 }
  0xb6   : > { %p6448_p1 = pneg %p6447_p3  ;;  %p6454_p2 = por %p6453_p0, %p6452_p10 }
  0xb8   : > { %p6455_p4 = pnand %p6454_p2, %p6448_p1 }
  0xba   : > { %6458 = shalt.err (!%p6455_p4)
}
  0xbb   : > { %s6459_s1 = scalar_lea.vmem %s6868_s28, 4608  ;;  %s6595_s20 = smov [#allocation4]  }
  0xbc   : > { %p6460_p6 = scmp.ne.s32.totalorder %s6868_s28, %s6459_s1  ;;  %s6464_s21 = sshll.u32 %s6595_s20, 4  ;;  %s6465_s21 = int_to_ptr.vmem [resolvable:$false] %s6464_s21 }
  0xbd   : > { %s6466_s3 = scalar_lea.vmem %s6465_s21, 9216  ;;  %p6467_p12 = scmp.lt.s32.totalorder %s6868_s28, %s6465_s21 }
  0xbe   : > { %p6462_p3 = pnand %p6460_p6, %p6446_p5  ;;  %p6468_p8 = scmp.lt.s32.totalorder %s6466_s3, %s6459_s1 }
  0xc0   : > { %p6463_p13 = pneg %p6462_p3  ;;  %p6469_p9 = por %p6468_p8, %p6467_p12 }
  0xc2   : > { %p6470_p10 = pnand %p6469_p9, %p6463_p13 }
  0xc4   : > { %6473 = shalt.err (!%p6470_p10)
}
  0xc5   : > { %s8774_s13 = smov 8   ;;  %s8775_s19 = smov 128  }
  0xc6   : > { %6152 = dma.hbm_to_vmem [thread:$0]  (!%p6864_p7), %s6873_s4, 4608, %s6868_s28, %s6875_s7, %s8775_s19, %s8775_s19, %s8774_s13  }
  0xc7   : > { %p8776_p5 = scmp.ne.s32.totalorder %s8761_s11, 0 }
  0xc9   : > { %335 = sbr.rel (%p8776_p5) target bundleno = 1660 (0x67c), region = 48 }
  0xd0   : > { %s6909_s22 = sand.u32 1, %s6560_s25  }
  0xd1   : > { %s6105_s12 = smul.u32 288, %s6909_s22  ;;  %s338_s9 = scalar_lea.sflag [#allocation5], %s6909_s22 }
  0xd3   : > { %s6913_s1 = scalar_lea.vmem [#allocation4], %s6105_s12 }
  0xd4   : > { %6535 = dma.done.wait (%p6837_p11), %s338_s9, 4608  }
  0xd5   : > { %6537 = vsyncadd (%p6837_p11), %s338_s9, 4294962688  ;;  %p8777_p12 = scmp.ne.s32.totalorder %s8760_s10, 0 }
  0xd7   : > { %6539 = dma.done.wait (%p8777_p12), [#allocation8], 36880  }
  0xd8   : > { %6541 = vsyncadd (%p8777_p12), [#allocation8], 4294930416 }
  0xd9   : > { %6543 = dma.done.wait (%p8777_p12), [#allocation11], 18448  }
  0xda   : > { %6545 = vsyncadd (%p8777_p12), [#allocation11], 4294948848 }
  0xdb   : > { %6547 = dma.done.wait (%p8777_p12), [#allocation14], 16  }
  0xdc   : > { %6549 = vsyncadd (%p8777_p12), [#allocation14], 4294967280  ;;  %v8730_v0 = vmov 0.0   ;;  %v1336_v1 = vld [vmem:[#allocation7 + $0x8] sm:$0xff]  ;;  %v1338_v2 = vld [vmem:[#allocation7 + $0x18] sm:$0xff]  ;;  %vm464_vm0 = vcmask 1040384  }
  0xdd   : > { %403 = vst [vmem:[#allocation2] sm:$0x1] %v8730_v0  ;;  %1004 = vst [vmem:[#allocation2 + $0x86f] sm:$0x1] %v8730_v0  ;;  %2670 = vmatprep.mubr.f32.mxu1 %v8730_v0  ;;  %v1335_v3 = vld [vmem:[#allocation7] sm:$0xff]  ;;  %v5214_v4 = vpack.c.bf16 %v1338_v2, %v1336_v1  ;;  %v1337_v5 = vld [vmem:[#allocation7 + $0x10] sm:$0xff] }
  0xde   : > { %3126 = vst [vmem:[#allocation3] sm:$0x1] %v8730_v0  ;;  %3521 = vst [vmem:[#allocation3 + $0x6bf] sm:$0x1] %v8730_v0  ;;  %v1340_v6 = vld [vmem:[#allocation7 + $0x28] sm:$0xff]  ;;  %v1342_v7 = vld [vmem:[#allocation7 + $0x38] sm:$0xff]  ;;  %v5216_v8 = vpack.c.bf16 %v1337_v5, %v1335_v3 }
  0xdf   : > { %v5218_v9 = vpack.c.bf16 %v1342_v7, %v1340_v6  ;;  %v1339_v10 = vld [vmem:[#allocation7 + $0x20] sm:$0xff]  ;;  %v1341_v11 = vld [vmem:[#allocation7 + $0x30] sm:$0xff]  ;;  %v1344_v12 = vld [vmem:[#allocation7 + $0x48] sm:$0xff]  ;;  %5215 = vmatprep.subr.bf16.mxu0 %v5214_v4  ;;  %p397_p11 = scmp.lt.s32.totalorder %s6568_s27, 1  ;;  %vm3271_vm1 = vcmask 1046528   ;;  %s6106_s16 = smul.u32 192, %s6909_s22 }
  0xe0   : > { %v1346_v13 = vld [vmem:[#allocation7 + $0x58] sm:$0xff]  ;;  %5217 = vmatpush1.bf16.msra.mxu0 %v5216_v8  ;;  %v5220_v14 = vpack.c.bf16 %v1341_v11, %v1339_v10  ;;  %v1343_v16 = vld [vmem:[#allocation7 + $0x40] sm:$0xff]  ;;  %v1345_v17 = vld [vmem:[#allocation7 + $0x50] sm:$0xff]  ;;  %s8869_s20 = sld [smem:[#allocation21_spill]]  ;;  %s4925_s21 = smul.u32 24, %s6568_s27 }
  0xe1   : > { %5219 = vmatprep.subr.bf16.mxu0 %v5218_v9  ;;  %v5222_v15 = vpack.c.bf16 %v1346_v13, %v1344_v12  ;;  %v1348_v18 = vld [vmem:[#allocation7 + $0x68] sm:$0xff]  ;;  %v1350_v19 = vld [vmem:[#allocation7 + $0x78] sm:$0xff]  ;;  %v5224_v20 = vpack.c.bf16 %v1345_v17, %v1343_v16  ;;  %v1347_v22 = vld [vmem:[#allocation7 + $0x60] sm:$0xff]  ;;  %s398_s2 = scalar_select %p397_p11, %s6568_s27, 1 }
  0xe2   : > { %v5226_v21 = vpack.c.bf16 %v1350_v19, %v1348_v18  ;;  %v1349_v23 = vld [vmem:[#allocation7 + $0x70] sm:$0xff]  ;;  %v1352_v24 = vld [vmem:[#allocation7 + $0x88] sm:$0xff]  ;;  %v1354_v25 = vld [vmem:[#allocation7 + $0x98] sm:$0xff]  ;;  %s8548_s7 = scalar_lea.vmem [#allocation15], %s6106_s16  ;;  %p8872_p7 = scmp.ne.s32.totalorder %s8771_s17, 0 }
  0xe3   : > { %v5228_v26 = vpack.c.bf16 %v1349_v23, %v1347_v22  ;;  %v5230_v27 = vpack.c.bf16 %v1354_v25, %v1352_v24  ;;  %v1351_v28 = vld [vmem:[#allocation7 + $0x80] sm:$0xff]  ;;  %v1353_v29 = vld [vmem:[#allocation7 + $0x90] sm:$0xff]  ;;  %v1356_v30 = vld [vmem:[#allocation7 + $0xa8] sm:$0xff]  ;;  %s6107_s4 = smul.u32 240, %s398_s2  ;;  %s4933_s13 = sshll.u32 %s8548_s7, 4  ;;  %s8653_s13 = int_to_ptr.vmem [resolvable:$true] %s4933_s13 }
  0xe4   : > { %5221 = vmatpush1.bf16.msra.mxu0 %v5220_v14  ;;  %v1358_v31 = vld [vmem:[#allocation7 + $0xb8] sm:$0xff]  ;;  %v5232_v32 = vpack.c.bf16 %v1353_v29, %v1351_v28  ;;  %v1355_v34 = vld [vmem:[#allocation7 + $0xa0] sm:$0xff]  ;;  %v1357_v35 = vld [vmem:[#allocation7 + $0xb0] sm:$0xff]  ;;  %s6474_s10 = scalar_lea.vmem %s8653_s13, 3072  ;;  %s6599_s11 = smov [#allocation15]  }
  0xe5   : > { %5223 = vmatprep.subr.bf16.mxu0 %v5222_v15  ;;  %v5234_v33 = vpack.c.bf16 %v1358_v31, %v1356_v30  ;;  %v1360_v36 = vld [vmem:[#allocation7 + $0xc8] sm:$0xff]  ;;  %v1362_v37 = vld [vmem:[#allocation7 + $0xd8] sm:$0xff]  ;;  %v5236_v38 = vpack.c.bf16 %v1357_v35, %v1355_v34  ;;  %v1359_v40 = vld [vmem:[#allocation7 + $0xc0] sm:$0xff]  ;;  %s7802_s28 = scalar_lea.vmem %s8720_s6, %s6107_s4  ;;  %s4918_s4 = scalar_lea.sflag [#allocation6], %s6909_s22 }
  0xe6   : > { %v5238_v39 = vpack.c.bf16 %v1362_v37, %v1360_v36  ;;  %v1361_v41 = vld [vmem:[#allocation7 + $0xd0] sm:$0xff]  ;;  %v584_v42 = vld [vmem:[%s6913_s1] sm:$0xff]  ;;  %v1364_v43 = vld [vmem:[#allocation7 + $0xe8] sm:$0xff]  ;;  %s6108_s3 = smul.u32 48, %s8869_s20  ;;  %p6475_p13 = scmp.ne.s32.totalorder %s8653_s13, %s6474_s10 }
  0xe7   : > { %v1366_v44 = vld [vmem:[#allocation7 + $0xf8] sm:$0xff]  ;;  %1687 = vmatprep.mubr.f32.mxu0 %v584_v42  ;;  %v465_v45 = vrot.slane %v584_v42, 7  ;;  %v6938_v46 = vld [vmem:[%s6913_s1 + $0x8] sm:$0xff]  ;;  %v6941_v47 = vld [vmem:[%s6913_s1 + $0x10] sm:$0xff]  ;;  %v5240_v48 = vpack.c.bf16 %v1361_v41, %v1359_v40 }
  0xe8   : > { %5225 = vmatpush1.bf16.msra.mxu0 %v5224_v20  ;;  %v1363_v49 = vld [vmem:[#allocation7 + $0xe0] sm:$0xff]  ;;  %v1365_v50 = vld [vmem:[#allocation7 + $0xf0] sm:$0xff]  ;;  %v466_v51 = vrot.slane %v6938_v46, 7  ;;  %v468_v52 = vrot.slane %v6941_v47, 7  ;;  %v5242_v53 = vpack.c.bf16 %v1366_v44, %v1364_v43  ;;  %v6946_v54 = vld [vmem:[%s6913_s1 + $0x18] sm:$0xff]  ;;  %s4930_s27 = sadd.s32 %s6108_s3, %s4925_s21  ;;  %p6476_p1 = pnand %p6475_p13, %p8872_p7 }
  0xe9   : > { %5227 = vmatprep.subr.bf16.mxu0 %v5226_v21  ;;  %554 = vst [vmem:[#allocation2] sm:$0xfe] %v465_v45  ;;  %v6949_v55 = vld [vmem:[%s6913_s1 + $0x20] sm:$0xff]  ;;  %v1368_v56 = vld [vmem:[#allocation7 + $0x108] sm:$0xff]  ;;  %v1370_v57 = vld [vmem:[#allocation7 + $0x118] sm:$0xff]  ;;  %v470_v60 = vrot.slane %v6946_v54, 7  ;;  %v5244_v62 = vpack.c.bf16 %v1365_v50, %v1363_v49 }
  0xea   : > { %v6952_v58 = vsel %vm464_vm0, %v465_v45, %v466_v51  ;;  %v6955_v59 = vsel %vm464_vm0, %v466_v51, %v468_v52  ;;  %v472_v61 = vrot.slane %v6949_v55, 7  ;;  %v6960_v63 = vld [vmem:[%s6913_s1 + $0x28] sm:$0xff]  ;;  %v6963_v1 = vld [vmem:[%s6913_s1 + $0x30] sm:$0xff]  ;;  %v5246_v6 = vpack.c.bf16 %v1370_v57, %v1368_v56  ;;  %v1367_v7 = vld [vmem:[#allocation7 + $0x100] sm:$0xff]  ;;  %s5103_s19 = sshll.u32 %s4930_s27, 7  ;;  %p6477_p0 = pneg %p6476_p1 }
  0xeb   : > { %v6966_v2 = vsel %vm464_vm0, %v468_v52, %v470_v60  ;;  %v474_v4 = vrot.slane %v6960_v63, 7  ;;  %v476_v5 = vrot.slane %v6963_v1, 7  ;;  %v1369_v8 = vld [vmem:[#allocation7 + $0x110] sm:$0xff]  ;;  %v6974_v9 = vld [vmem:[%s6913_s1 + $0x38] sm:$0xff]  ;;  %v1372_v10 = vld [vmem:[#allocation7 + $0x128] sm:$0xff] }
  0xec   : > { %5229 = vmatpush1.bf16.msra.mxu0 %v5228_v26  ;;  %v6969_v3 = vsel %vm464_vm0, %v470_v60, %v472_v61  ;;  %v1374_v11 = vld [vmem:[#allocation7 + $0x138] sm:$0xff]  ;;  %v478_v14 = vrot.slane %v6974_v9, 7  ;;  %v6984_v15 = vld [vmem:[%s6913_s1 + $0x40] sm:$0xff]  ;;  %v6988_v17 = vld [vmem:[%s6913_s1 + $0x48] sm:$0xff]  ;;  %v5248_v18 = vpack.c.bf16 %v1369_v8, %v1367_v7 }
  0xed   : > { %5231 = vmatprep.subr.bf16.mxu0 %v5230_v27  ;;  %v6977_v12 = vsel %vm464_vm0, %v472_v61, %v474_v4  ;;  %v6980_v13 = vsel %vm464_vm0, %v474_v4, %v476_v5  ;;  %v480_v16 = vrot.slane %v6984_v15, 7  ;;  %v482_v20 = vrot.slane %v6988_v17, 7  ;;  %v6995_v21 = vld [vmem:[%s6913_s1 + $0x50] sm:$0xff]  ;;  %v1371_v23 = vld [vmem:[#allocation7 + $0x120] sm:$0xff]  ;;  %v7002_v27 = vld [vmem:[%s6913_s1 + $0x58] sm:$0xff] }
  0xee   : > { %v6991_v19 = vsel %vm464_vm0, %v476_v5, %v478_v14  ;;  %v5250_v22 = vpack.c.bf16 %v1374_v11, %v1372_v10  ;;  %v1373_v24 = vld [vmem:[#allocation7 + $0x130] sm:$0xff]  ;;  %v484_v26 = vrot.slane %v6995_v21, 7  ;;  %v1376_v28 = vld [vmem:[#allocation7 + $0x148] sm:$0xff]  ;;  %v1378_v29 = vld [vmem:[#allocation7 + $0x158] sm:$0xff]  ;;  %v486_v31 = vrot.slane %v7002_v27, 7 }
  0xef   : > { %v6998_v25 = vsel %vm464_vm0, %v478_v14, %v480_v16  ;;  %v7005_v30 = vsel %vm464_vm0, %v480_v16, %v482_v20  ;;  %v7015_v34 = vld [vmem:[%s6913_s1 + $0x68] sm:$0xff]  ;;  %v5252_v35 = vpack.c.bf16 %v1373_v24, %v1371_v23  ;;  %v1375_v36 = vld [vmem:[#allocation7 + $0x140] sm:$0xff]  ;;  %v1377_v37 = vld [vmem:[#allocation7 + $0x150] sm:$0xff]  ;;  %v5254_v41 = vpack.c.bf16 %v1378_v29, %v1376_v28 }
  0xf0   : > { %5233 = vmatpush1.bf16.msra.mxu0 %v5232_v32  ;;  %v7009_v32 = vsel %vm464_vm0, %v482_v20, %v484_v26  ;;  %v490_v40 = vrot.slane %v7015_v34, 7  ;;  %v7023_v42 = vld [vmem:[%s6913_s1 + $0x70] sm:$0xff]  ;;  %v7026_v43 = vld [vmem:[%s6913_s1 + $0x78] sm:$0xff]  ;;  %v1380_v44 = vld [vmem:[#allocation7 + $0x168] sm:$0xff]  ;;  %v5256_v52 = vpack.c.bf16 %v1377_v37, %v1375_v36 }
  0xf1   : > { %5235 = vmatprep.subr.bf16.mxu0 %v5234_v33  ;;  %v7012_v33 = vld [vmem:[%s6913_s1 + $0x60] sm:$0xff]  ;;  %v1382_v45 = vld [vmem:[#allocation7 + $0x178] sm:$0xff]  ;;  %v492_v50 = vrot.slane %v7023_v42, 7  ;;  %v494_v51 = vrot.slane %v7026_v43, 7  ;;  %v7040_v56 = vld [vmem:[%s6913_s1 + $0x88] sm:$0xff] }
  0xf2   : > { %v1379_v57 = vld [vmem:[#allocation7 + $0x160] sm:$0xff]  ;;  %v1381_v60 = vld [vmem:[#allocation7 + $0x170] sm:$0xff]  ;;  %v498_v5 = vrot.slane %v7040_v56, 7  ;;  %v7054_v8 = vld [vmem:[%s6913_s1 + $0x98] sm:$0xff] }
  0xf3   : > { %v7043_v61 = vsel %vm464_vm0, %v490_v40, %v492_v50  ;;  %v7051_v7 = vld [vmem:[%s6913_s1 + $0x90] sm:$0xff]  ;;  %v1384_v10 = vld [vmem:[#allocation7 + $0x188] sm:$0xff]  ;;  %v1386_v11 = vld [vmem:[#allocation7 + $0x198] sm:$0xff]  ;;  %v502_v20 = vrot.slane %v7054_v8, 7 }
  0xf4   : > { %5237 = vmatpush1.bf16.msra.mxu0 %v5236_v38  ;;  %v7018_v38 = vsel %vm464_vm0, %v484_v26, %v486_v31  ;;  %v7065_v23 = vld [vmem:[%s6913_s1 + $0xa0] sm:$0xff]  ;;  %v7068_v24 = vld [vmem:[%s6913_s1 + $0xa8] sm:$0xff]  ;;  %v1385_v37 = vld [vmem:[#allocation7 + $0x190] sm:$0xff] }
  0xf5   : > { %5239 = vmatprep.subr.bf16.mxu0 %v5238_v39  ;;  %v488_v39 = vrot.slane %v7012_v33, 7  ;;  %v504_v29 = vrot.slane %v7065_v23, 7  ;;  %v1383_v36 = vld [vmem:[#allocation7 + $0x180] sm:$0xff] }
  0xf7   : > { %v7032_v49 = vsel %vm464_vm0, %v488_v39, %v490_v40  ;;  %v1388_v40 = vld [vmem:[#allocation7 + $0x1a8] sm:$0xff] }
  0xf8   : > { %5241 = vmatpush1.bf16.msra.mxu0 %v5240_v48  ;;  %v7029_v48 = vsel %vm464_vm0, %v486_v31, %v488_v39  ;;  %v506_v31 = vrot.slane %v7068_v24, 7  ;;  %v7079_v39 = vld [vmem:[%s6913_s1 + $0xb0] sm:$0xff] }
  0xf9   : > { %5243 = vmatprep.subr.bf16.mxu0 %v5242_v53  ;;  %v7037_v53 = vld [vmem:[%s6913_s1 + $0x80] sm:$0xff] }
  0xfa   : > { %v496_v4 = vrot.slane %v7037_v53, 7 }
  0xfc   : > { %5245 = vmatpush1.bf16.msra.mxu0 %v5244_v62  ;;  %v7046_v62 = vsel %vm464_vm0, %v492_v50, %v494_v51  ;;  %v7057_v14 = vsel %vm464_vm0, %v494_v51, %v496_v4  ;;  %v7060_v16 = vsel %vm464_vm0, %v496_v4, %v498_v5  ;;  %v508_v50 = vrot.slane %v7079_v39, 7  ;;  %v7089_v51 = vld [vmem:[%s6913_s1 + $0xb8] sm:$0xff] }
  0xfd   : > { %5247 = vmatprep.subr.bf16.mxu0 %v5246_v6  ;;  %v5258_v6 = vpack.c.bf16 %v1382_v45, %v1380_v44  ;;  %v7082_v44 = vsel %vm464_vm0, %v502_v20, %v504_v29  ;;  %v7085_v45 = vsel %vm464_vm0, %v504_v29, %v506_v31  ;;  %8778 = vst [vmem:[#allocation22_spill] sm:$0xff] %v7089_v51  ;;  %v7107_v29 = vld [vmem:[%s6913_s1 + $0xd0] sm:$0xff] }
  0xfe   : > { %v7096_v4 = vsel %vm464_vm0, %v506_v31, %v508_v50  ;;  %8783 = vst [vmem:[#allocation27_spill] sm:$0xff] %v7107_v29  ;;  %v1394_v31 = vld [vmem:[#allocation7 + $0x1d8] sm:$0xff]  ;;  %v516_v0 = vrot.slane %v7107_v29, 7 }
  0xff   : > { %8780 = vst [vmem:[#allocation24_spill] sm:$0xff] %v7096_v4  ;;  %v1398_v4 = vld [vmem:[#allocation7 + $0x1f8] sm:$0xff] }
 0x100   : > { %5249 = vmatpush1.bf16.msra.mxu0 %v5248_v18  ;;  %v500_v18 = vrot.slane %v7051_v7, 7 }
 0x101   : > { %5251 = vmatprep.subr.bf16.mxu0 %v5250_v22  ;;  %v5260_v22 = vpack.c.bf16 %v1381_v60, %v1379_v57  ;;  %v7093_v57 = vld [vmem:[%s6913_s1 + $0xc0] sm:$0xff]  ;;  %v5264_v60 = vpack.c.bf16 %v1385_v37, %v1383_v36  ;;  %v1392_v36 = vld [vmem:[#allocation7 + $0x1c8] sm:$0xff] }
 0x102   : > { %v7071_v26 = vsel %vm464_vm0, %v498_v5, %v500_v18  ;;  %v7074_v28 = vsel %vm464_vm0, %v500_v18, %v502_v20  ;;  %8779 = vst [vmem:[#allocation23_spill] sm:$0xff] %v7093_v57  ;;  %v512_v5 = vrot.slane %v7093_v57, 7  ;;  %v1389_v18 = vld [vmem:[#allocation7 + $0x1b0] sm:$0xff]  ;;  %v5270_v29 = vpack.c.bf16 %v1394_v31, %v1392_v36  ;;  %v7144_v36 = vld [vmem:[%s6913_s1 + $0x1] sm:$0xff] }
 0x103   : > { %8791 = vst [vmem:[#allocation35_spill] sm:$0xff] %v7144_v36  ;;  %v1395_v31 = vld [vmem:[#allocation7 + $0x1e0] sm:$0xff]  ;;  %v7156_v36 = vld [vmem:[%s6913_s1 + $0x11] sm:$0xff] }
 0x104   : > { %5253 = vmatpush1.bf16.msra.mxu0 %v5252_v35  ;;  %v5262_v35 = vpack.c.bf16 %v1386_v11, %v1384_v10  ;;  %v1387_v11 = vld [vmem:[#allocation7 + $0x1a0] sm:$0xff] }
 0x105   : > { %5255 = vmatprep.subr.bf16.mxu0 %v5254_v41  ;;  %v1390_v41 = vld [vmem:[#allocation7 + $0x1b8] sm:$0xff] }
 0x106   : > { %v5266_v10 = vpack.c.bf16 %v1390_v41, %v1388_v40 }
 0x108   : > { %5257 = vmatpush1.bf16.msra.mxu0 %v5256_v52  ;;  %v510_v52 = vrot.slane %v7089_v51, 7  ;;  %v1396_v51 = vld [vmem:[#allocation7 + $0x1e8] sm:$0xff] }
 0x109   : > { %5259 = vmatprep.subr.bf16.mxu0 %v5258_v6  ;;  %v7100_v6 = vld [vmem:[%s6913_s1 + $0xc8] sm:$0xff] }
 0x10a   : > { %8781 = vst [vmem:[#allocation25_spill] sm:$0xff] %v7100_v6  ;;  %v7103_v20 = vsel %vm464_vm0, %v508_v50, %v510_v52  ;;  %v7110_v37 = vsel %vm464_vm0, %v510_v52, %v512_v5  ;;  %v7121_v50 = vld [vmem:[%s6913_s1 + $0xe0] sm:$0xff] }
 0x10b   : > { %8782 = vst [vmem:[#allocation26_spill] sm:$0xff] %v7103_v20  ;;  %8784 = vst [vmem:[#allocation28_spill] sm:$0xff] %v7110_v37  ;;  %v520_v52 = vrot.slane %v7121_v50, 7  ;;  %v7128_v37 = vld [vmem:[%s6913_s1 + $0xe8] sm:$0xff]  ;;  %v1391_v20 = vld [vmem:[#allocation7 + $0x1c0] sm:$0xff] }
 0x10c   : > { %5261 = vmatpush1.bf16.msra.mxu0 %v5260_v22  ;;  %v514_v22 = vrot.slane %v7100_v6, 7  ;;  %8787 = vst [vmem:[#allocation31_spill] sm:$0xff] %v7121_v50  ;;  %v5268_v6 = vpack.c.bf16 %v1389_v18, %v1387_v11  ;;  %8788 = vst [vmem:[#allocation32_spill] sm:$0xff] %v7128_v37  ;;  %v7138_v18 = vld [vmem:[%s6913_s1 + $0x17] sm:$0xff]  ;;  %v1400_v50 = vld [vmem:[#allocation7 + $0x208] sm:$0xff] }
 0x10d   : > { %5263 = vmatprep.subr.bf16.mxu0 %v5262_v35  ;;  %v7114_v35 = vld [vmem:[%s6913_s1 + $0xd8] sm:$0xff]  ;;  %8790 = vst [vmem:[#allocation34_spill] sm:$0xff] %v7138_v18  ;;  %v1397_v37 = vld [vmem:[#allocation7 + $0x1f0] sm:$0xff] }
 0x10e   : > { %8785 = vst [vmem:[#allocation29_spill] sm:$0xff] %v7114_v35  ;;  %v7117_v40 = vsel %vm464_vm0, %v512_v5, %v514_v22  ;;  %v518_v41 = vrot.slane %v7114_v35, 7  ;;  %v7124_v57 = vsel %vm464_vm0, %v514_v22, %v516_v0  ;;  %v1393_v5 = vld [vmem:[#allocation7 + $0x1d0] sm:$0xff]  ;;  %v433_v35 = vld [vmem:[%s6913_s1 + $0xe8] sm:$0x7f] }
 0x10f   : > { %8786 = vst [vmem:[#allocation30_spill] sm:$0xff] %v7117_v40  ;;  %v522_v11 = vrot.slane %v433_v35, 7  ;;  %v5272_v22 = vpack.c.bf16 %v1393_v5, %v1391_v20  ;;  %v7147_v35 = vld [vmem:[%s6913_s1 + $0x1f] sm:$0xff]  ;;  %v7150_v18 = vld [vmem:[%s6913_s1 + $0x9] sm:$0xff] }
 0x110   : > { %5265 = vmatpush1.bf16.msra.mxu0 %v5264_v60  ;;  %v7131_v40 = vsel %vm464_vm0, %v516_v0, %v518_v41  ;;  %v7135_v60 = vsel %vm464_vm0, %v518_v41, %v520_v52  ;;  %v5274_v0 = vpack.c.bf16 %v1398_v4, %v1396_v51  ;;  %v1402_v41 = vld [vmem:[#allocation7 + $0x218] sm:$0xff]  ;;  %8792 = vst [vmem:[#allocation36_spill] sm:$0xff] %v7150_v18  ;;  %v1399_v20 = vld [vmem:[#allocation7 + $0x200] sm:$0xff]  ;;  %v1404_v5 = vld [vmem:[#allocation7 + $0x228] sm:$0xff] }
 0x111   : > { %5267 = vmatprep.subr.bf16.mxu0 %v5266_v10  ;;  %8789 = vst [vmem:[#allocation33_spill] sm:$0xff] %v7135_v60  ;;  %v7141_v10 = vsel %vm464_vm0, %v520_v52, %v522_v11  ;;  %v5276_v60 = vpack.c.bf16 %v1397_v37, %v1395_v31  ;;  %v1401_v52 = vld [vmem:[#allocation7 + $0x210] sm:$0xff]  ;;  %v1406_v11 = vld [vmem:[#allocation7 + $0x238] sm:$0xff]  ;;  %v1408_v18 = vld [vmem:[#allocation7 + $0x248] sm:$0xff] }
 0x112   : > { %v1065_v51 = vld [vmem:[#allocation2] sm:$0xff]  ;;  %v5280_v4 = vpack.c.bf16 %v1401_v52, %v1399_v20  ;;  %v5282_v37 = vpack.c.bf16 %v1406_v11, %v1404_v5  ;;  %v1407_v52 = vld [vmem:[#allocation7 + $0x240] sm:$0xff]  ;;  %v1412_v5 = vld [vmem:[#allocation7 + $0x268] sm:$0xff] }
 0x113   : > { %v1405_v31 = vld [vmem:[#allocation7 + $0x230] sm:$0xff]  ;;  %v1414_v11 = vld [vmem:[#allocation7 + $0x278] sm:$0xff] }
 0x114   : > { %5269 = vmatpush1.bf16.msra.mxu0 %v5268_v6  ;;  %v5278_v6 = vpack.c.bf16 %v1402_v41, %v1400_v50  ;;  %v1410_v50 = vld [vmem:[#allocation7 + $0x258] sm:$0xff]  ;;  %v7160_v41 = vld [vmem:[%s6913_s1 + $0x2f] sm:$0xff] }
 0x115   : > { %5271 = vmatprep.subr.bf16.mxu0 %v5270_v29  ;;  %v7153_v29 = vld [vmem:[%s6913_s1 + $0x27] sm:$0xff]  ;;  %v5286_v20 = vpack.c.bf16 %v1410_v50, %v1408_v18  ;;  %v5290_v18 = vpack.c.bf16 %v1414_v11, %v1412_v5  ;;  %v1418_v50 = vld [vmem:[#allocation7 + $0x298] sm:$0xff] }
 0x116   : > { %v1420_v5 = vld [vmem:[#allocation7 + $0x2a8] sm:$0xff]  ;;  %v1422_v11 = vld [vmem:[#allocation7 + $0x2b8] sm:$0xff] }
 0x118   : > { %5273 = vmatpush1.bf16.msra.mxu0 %v5272_v22  ;;  %v1403_v22 = vld [vmem:[#allocation7 + $0x220] sm:$0xff] }
 0x119   : > { %5275 = vmatprep.subr.bf16.mxu0 %v5274_v0  ;;  %v5284_v0 = vpack.c.bf16 %v1405_v31, %v1403_v22  ;;  %v1413_v22 = vld [vmem:[#allocation7 + $0x270] sm:$0xff]  ;;  %v1416_v31 = vld [vmem:[#allocation7 + $0x288] sm:$0xff] }
 0x11c   : > { %5277 = vmatpush1.bf16.msra.mxu0 %v5276_v60  ;;  %v7163_v60 = vld [vmem:[%s6913_s1 + $0x19] sm:$0xff] }
 0x11d   : > { %5279 = vmatprep.subr.bf16.mxu0 %v5278_v6  ;;  %v1409_v6 = vld [vmem:[#allocation7 + $0x250] sm:$0xff]  ;;  %677 = vst [vmem:[#allocation2 + $0xe8] sm:$0xff] %v7163_v60 }
 0x11f   : > { %1688 = vmatmul.mubr.f32.vlgmr.msra.gmra.mrb[0].mxu0 %v1065_v51  ;;  %v7168_v51 = vld [vmem:[%s6913_s1 + $0x37] sm:$0xff] }
 0x120   : > { %5281 = vmatpush1.bf16.msra.mxu0 %v5280_v4  ;;  %1692 = vmatprep.mubr.f32.mxu0 %v6938_v46  ;;  %v5288_v46 = vpack.c.bf16 %v1409_v6, %v1407_v52  ;;  %v7172_v4 = vld [vmem:[%s6913_s1 + $0x21] sm:$0xff]  ;;  %v1417_v6 = vld [vmem:[#allocation7 + $0x290] sm:$0xff] }
 0x121   : > { %5283 = vmatprep.subr.bf16.mxu0 %v5282_v37  ;;  %v1411_v37 = vld [vmem:[#allocation7 + $0x260] sm:$0xff]  ;;  %678 = vst [vmem:[#allocation2 + $0x130] sm:$0xff] %v7172_v4 }
 0x122   : > { %v1415_v52 = vld [vmem:[#allocation7 + $0x280] sm:$0xff] }
 0x123   : > { %1693 = vmatmul.mubr.f32.gmra.mrb[2].mxu0 %v6952_v58  ;;  %v7177_v58 = vld [vmem:[%s6913_s1 + $0x3f] sm:$0xff] }
 0x124   : > { %1697 = vmatprep.mubr.f32.mxu0 %v6941_v47  ;;  %5285 = vmatpush1.bf16.msra.mxu0 %v5284_v0  ;;  %v5292_v47 = vpack.c.bf16 %v1413_v22, %v1411_v37  ;;  %v7181_v0 = vld [vmem:[%s6913_s1 + $0x29] sm:$0xff]  ;;  %v1419_v37 = vld [vmem:[#allocation7 + $0x2a0] sm:$0xff] }
 0x125   : > { %5287 = vmatprep.subr.bf16.mxu0 %v5286_v20  ;;  %v5294_v20 = vpack.c.bf16 %v1418_v50, %v1416_v31  ;;  %679 = vst [vmem:[#allocation2 + $0x178] sm:$0xff] %v7181_v0  ;;  %v1421_v22 = vld [vmem:[#allocation7 + $0x2b0] sm:$0xff]  ;;  %v1424_v31 = vld [vmem:[#allocation7 + $0x2c8] sm:$0xff]  ;;  %v1426_v50 = vld [vmem:[#allocation7 + $0x2d8] sm:$0xff] }
 0x127   : > { %1698 = vmatmul.mubr.f32.gmra.mrb[4].mxu0 %v6955_v59  ;;  %v7186_v59 = vld [vmem:[%s6913_s1 + $0x47] sm:$0xff] }
 0x128   : > { %1702 = vmatprep.mubr.f32.mxu0 %v6946_v54  ;;  %5289 = vmatpush1.bf16.msra.mxu0 %v5288_v46  ;;  %v5296_v54 = vpack.c.bf16 %v1417_v6, %v1415_v52  ;;  %v7190_v46 = vld [vmem:[%s6913_s1 + $0x31] sm:$0xff]  ;;  %v1423_v52 = vld [vmem:[#allocation7 + $0x2c0] sm:$0xff] }
 0x129   : > { %5291 = vmatprep.subr.bf16.mxu0 %v5290_v18  ;;  %v5298_v18 = vpack.c.bf16 %v1422_v11, %v1420_v5  ;;  %680 = vst [vmem:[#allocation2 + $0x1c0] sm:$0xff] %v7190_v46  ;;  %v1425_v6 = vld [vmem:[#allocation7 + $0x2d0] sm:$0xff]  ;;  %v1428_v5 = vld [vmem:[#allocation7 + $0x2e8] sm:$0xff]  ;;  %v1430_v11 = vld [vmem:[#allocation7 + $0x2f8] sm:$0xff] }
 0x12b   : > { %1703 = vmatmul.mubr.f32.gmra.mrb[6].mxu0 %v6966_v2  ;;  %v7195_v2 = vld [vmem:[%s6913_s1 + $0x4f] sm:$0xff] }
 0x12c   : > { %1708 = vmatprep.mubr.f32.mxu0 %v6949_v55  ;;  %5293 = vmatpush1.bf16.msra.mxu0 %v5292_v47  ;;  %v5300_v55 = vpack.c.bf16 %v1421_v22, %v1419_v37  ;;  %v7199_v47 = vld [vmem:[%s6913_s1 + $0x39] sm:$0xff]  ;;  %v1429_v22 = vld [vmem:[#allocation7 + $0x2f0] sm:$0xff] }
 0x12d   : > { %5295 = vmatprep.subr.bf16.mxu0 %v5294_v20  ;;  %v5302_v20 = vpack.c.bf16 %v1426_v50, %v1424_v31  ;;  %681 = vst [vmem:[#allocation2 + $0x208] sm:$0xff] %v7199_v47  ;;  %v1427_v37 = vld [vmem:[#allocation7 + $0x2e0] sm:$0xff]  ;;  %v1432_v31 = vld [vmem:[#allocation7 + $0x308] sm:$0xff]  ;;  %v1434_v50 = vld [vmem:[#allocation7 + $0x318] sm:$0xff] }
 0x12f   : > { %1709 = vmatmul.mubr.f32.gmra.mrb[8].mxu0 %v6969_v3  ;;  %v7204_v3 = vld [vmem:[%s6913_s1 + $0x57] sm:$0xff] }
 0x130   : > { %1714 = vmatprep.mubr.f32.mxu0 %v6960_v63  ;;  %5297 = vmatpush1.bf16.msra.mxu0 %v5296_v54  ;;  %v5304_v63 = vpack.c.bf16 %v1425_v6, %v1423_v52  ;;  %v7208_v54 = vld [vmem:[%s6913_s1 + $0x41] sm:$0xff]  ;;  %v1433_v6 = vld [vmem:[#allocation7 + $0x310] sm:$0xff] }
 0x131   : > { %5299 = vmatprep.subr.bf16.mxu0 %v5298_v18  ;;  %v5306_v18 = vpack.c.bf16 %v1430_v11, %v1428_v5  ;;  %682 = vst [vmem:[#allocation2 + $0x250] sm:$0xff] %v7208_v54  ;;  %v1431_v52 = vld [vmem:[#allocation7 + $0x300] sm:$0xff]  ;;  %v1436_v5 = vld [vmem:[#allocation7 + $0x328] sm:$0xff]  ;;  %v1438_v11 = vld [vmem:[#allocation7 + $0x338] sm:$0xff] }
 0x133   : > { %1715 = vmatmul.mubr.f32.gmra.mrb[10].mxu0 %v6977_v12  ;;  %v7213_v12 = vld [vmem:[%s6913_s1 + $0x5f] sm:$0xff] }
 0x134   : > { %1720 = vmatprep.mubr.f32.mxu0 %v6963_v1  ;;  %5301 = vmatpush1.bf16.msra.mxu0 %v5300_v55  ;;  %v5308_v1 = vpack.c.bf16 %v1429_v22, %v1427_v37  ;;  %v7217_v55 = vld [vmem:[%s6913_s1 + $0x49] sm:$0xff]  ;;  %v1435_v37 = vld [vmem:[#allocation7 + $0x320] sm:$0xff] }
 0x135   : > { %5303 = vmatprep.subr.bf16.mxu0 %v5302_v20  ;;  %v5310_v20 = vpack.c.bf16 %v1434_v50, %v1432_v31  ;;  %683 = vst [vmem:[#allocation2 + $0x298] sm:$0xff] %v7217_v55  ;;  %v1437_v22 = vld [vmem:[#allocation7 + $0x330] sm:$0xff]  ;;  %v1440_v31 = vld [vmem:[#allocation7 + $0x348] sm:$0xff]  ;;  %v1442_v50 = vld [vmem:[#allocation7 + $0x358] sm:$0xff] }
 0x137   : > { %1721 = vmatmul.mubr.f32.gmra.mrb[12].mxu0 %v6980_v13  ;;  %v7222_v13 = vld [vmem:[%s6913_s1 + $0x67] sm:$0xff] }
 0x138   : > { %1726 = vmatprep.mubr.f32.mxu0 %v6974_v9  ;;  %5305 = vmatpush1.bf16.msra.mxu0 %v5304_v63  ;;  %v5312_v9 = vpack.c.bf16 %v1433_v6, %v1431_v52  ;;  %v7226_v63 = vld [vmem:[%s6913_s1 + $0x51] sm:$0xff]  ;;  %v1439_v52 = vld [vmem:[#allocation7 + $0x340] sm:$0xff] }
 0x139   : > { %5307 = vmatprep.subr.bf16.mxu0 %v5306_v18  ;;  %v5314_v18 = vpack.c.bf16 %v1438_v11, %v1436_v5  ;;  %684 = vst [vmem:[#allocation2 + $0x2e0] sm:$0xff] %v7226_v63  ;;  %v1441_v6 = vld [vmem:[#allocation7 + $0x350] sm:$0xff]  ;;  %v1444_v5 = vld [vmem:[#allocation7 + $0x368] sm:$0xff]  ;;  %v1446_v11 = vld [vmem:[#allocation7 + $0x378] sm:$0xff] }
 0x13b   : > { %1727 = vmatmul.mubr.f32.gmra.mrb[14].mxu0 %v6991_v19  ;;  %v7231_v19 = vld [vmem:[%s6913_s1 + $0x6f] sm:$0xff] }
 0x13c   : > { %1732 = vmatprep.mubr.f32.mxu0 %v6984_v15  ;;  %5309 = vmatpush1.bf16.msra.mxu0 %v5308_v1  ;;  %v5316_v15 = vpack.c.bf16 %v1437_v22, %v1435_v37  ;;  %v7235_v1 = vld [vmem:[%s6913_s1 + $0x59] sm:$0xff]  ;;  %v1445_v22 = vld [vmem:[#allocation7 + $0x370] sm:$0xff] }
 0x13d   : > { %5311 = vmatprep.subr.bf16.mxu0 %v5310_v20  ;;  %v5318_v20 = vpack.c.bf16 %v1442_v50, %v1440_v31  ;;  %685 = vst [vmem:[#allocation2 + $0x328] sm:$0xff] %v7235_v1  ;;  %v1443_v37 = vld [vmem:[#allocation7 + $0x360] sm:$0xff]  ;;  %v1448_v31 = vld [vmem:[#allocation7 + $0x388] sm:$0xff]  ;;  %v1450_v50 = vld [vmem:[#allocation7 + $0x398] sm:$0xff] }
 0x13f   : > { %1733 = vmatmul.mubr.f32.gmra.mrb[16].mxu0 %v6998_v25  ;;  %v7241_v25 = vld [vmem:[%s6913_s1 + $0x77] sm:$0xff] }
 0x140   : > { %1738 = vmatprep.mubr.f32.mxu0 %v6988_v17  ;;  %5313 = vmatpush1.bf16.msra.mxu0 %v5312_v9  ;;  %v5320_v17 = vpack.c.bf16 %v1441_v6, %v1439_v52  ;;  %v7244_v9 = vld [vmem:[%s6913_s1 + $0x61] sm:$0xff]  ;;  %v1449_v6 = vld [vmem:[#allocation7 + $0x390] sm:$0xff] }
 0x141   : > { %5315 = vmatprep.subr.bf16.mxu0 %v5314_v18  ;;  %v5322_v18 = vpack.c.bf16 %v1446_v11, %v1444_v5  ;;  %686 = vst [vmem:[#allocation2 + $0x370] sm:$0xff] %v7244_v9  ;;  %v1447_v52 = vld [vmem:[#allocation7 + $0x380] sm:$0xff]  ;;  %v1452_v5 = vld [vmem:[#allocation7 + $0x3a8] sm:$0xff]  ;;  %v1454_v11 = vld [vmem:[#allocation7 + $0x3b8] sm:$0xff] }
 0x143   : > { %1739 = vmatmul.mubr.f32.gmra.mrb[18].mxu0 %v7005_v30  ;;  %v7249_v30 = vld [vmem:[%s6913_s1 + $0x7f] sm:$0xff] }
 0x144   : > { %1744 = vmatprep.mubr.f32.mxu0 %v6995_v21  ;;  %5317 = vmatpush1.bf16.msra.mxu0 %v5316_v15  ;;  %v5324_v21 = vpack.c.bf16 %v1445_v22, %v1443_v37  ;;  %v7253_v15 = vld [vmem:[%s6913_s1 + $0x69] sm:$0xff]  ;;  %v1451_v37 = vld [vmem:[#allocation7 + $0x3a0] sm:$0xff] }
 0x145   : > { %5319 = vmatprep.subr.bf16.mxu0 %v5318_v20  ;;  %v5326_v20 = vpack.c.bf16 %v1450_v50, %v1448_v31  ;;  %687 = vst [vmem:[#allocation2 + $0x3b8] sm:$0xff] %v7253_v15  ;;  %v1453_v22 = vld [vmem:[#allocation7 + $0x3b0] sm:$0xff]  ;;  %v1456_v31 = vld [vmem:[#allocation7 + $0x3c8] sm:$0xff]  ;;  %v1458_v50 = vld [vmem:[#allocation7 + $0x3d8] sm:$0xff] }
 0x147   : > { %1745 = vmatmul.mubr.f32.gmra.mrb[20].mxu0 %v7009_v32  ;;  %v7259_v32 = vld [vmem:[%s6913_s1 + $0x87] sm:$0xff] }
 0x148   : > { %1750 = vmatprep.mubr.f32.mxu0 %v7002_v27  ;;  %5321 = vmatpush1.bf16.msra.mxu0 %v5320_v17  ;;  %v5328_v27 = vpack.c.bf16 %v1449_v6, %v1447_v52  ;;  %v7262_v17 = vld [vmem:[%s6913_s1 + $0x71] sm:$0xff]  ;;  %v1455_v52 = vld [vmem:[#allocation7 + $0x3c0] sm:$0xff] }
 0x149   : > { %5323 = vmatprep.subr.bf16.mxu0 %v5322_v18  ;;  %v5330_v18 = vpack.c.bf16 %v1454_v11, %v1452_v5  ;;  %688 = vst [vmem:[#allocation2 + $0x400] sm:$0xff] %v7262_v17  ;;  %v1457_v6 = vld [vmem:[#allocation7 + $0x3d0] sm:$0xff]  ;;  %v1460_v5 = vld [vmem:[#allocation7 + $0x3e8] sm:$0xff]  ;;  %v1462_v11 = vld [vmem:[#allocation7 + $0x3f8] sm:$0xff] }
 0x14b   : > { %1751 = vmatmul.mubr.f32.gmra.mrb[22].mxu0 %v7018_v38  ;;  %v7267_v38 = vld [vmem:[%s6913_s1 + $0x8f] sm:$0xff] }
 0x14c   : > { %1756 = vmatprep.mubr.f32.mxu0 %v7012_v33  ;;  %5325 = vmatpush1.bf16.msra.mxu0 %v5324_v21  ;;  %v5332_v33 = vpack.c.bf16 %v1453_v22, %v1451_v37  ;;  %v7271_v21 = vld [vmem:[%s6913_s1 + $0x79] sm:$0xff]  ;;  %v1461_v22 = vld [vmem:[#allocation7 + $0x3f0] sm:$0xff] }
 0x14d   : > { %5327 = vmatprep.subr.bf16.mxu0 %v5326_v20  ;;  %v5334_v20 = vpack.c.bf16 %v1458_v50, %v1456_v31  ;;  %689 = vst [vmem:[#allocation2 + $0x448] sm:$0xff] %v7271_v21  ;;  %v1459_v37 = vld [vmem:[#allocation7 + $0x3e0] sm:$0xff]  ;;  %v1464_v31 = vld [vmem:[#allocation7 + $0x408] sm:$0xff]  ;;  %v1466_v50 = vld [vmem:[#allocation7 + $0x418] sm:$0xff] }
 0x14f   : > { %1757 = vmatmul.mubr.f32.gmra.mrb[24].mxu0 %v7029_v48  ;;  %v7277_v48 = vld [vmem:[%s6913_s1 + $0x97] sm:$0xff] }
 0x150   : > { %1762 = vmatprep.mubr.f32.mxu0 %v7015_v34  ;;  %5329 = vmatpush1.bf16.msra.mxu0 %v5328_v27  ;;  %v5336_v34 = vpack.c.bf16 %v1457_v6, %v1455_v52  ;;  %v7280_v27 = vld [vmem:[%s6913_s1 + $0x81] sm:$0xff]  ;;  %v7303_v52 = vld [vmem:[%s6913_s1 + $0xaf] sm:$0xff] }
 0x151   : > { %5331 = vmatprep.subr.bf16.mxu0 %v5330_v18  ;;  %v5338_v18 = vpack.c.bf16 %v1462_v11, %v1460_v5  ;;  %690 = vst [vmem:[#allocation2 + $0x490] sm:$0xff] %v7280_v27  ;;  %v7316_v6 = vld [vmem:[%s6913_s1 + $0xa1] sm:$0xff] }
 0x152   : > { %694 = vst [vmem:[#allocation2 + $0x5b0] sm:$0xff] %v7316_v6  ;;  %v7358_v5 = vld [vmem:[%s6913_s1 + $0xdf] sm:$0xff] }
 0x153   : > { %1763 = vmatmul.mubr.f32.gmra.mrb[26].mxu0 %v7032_v49  ;;  %v5340_v49 = vpack.c.bf16 %v1461_v22, %v1459_v37  ;;  %v8796_v11 = vld [vmem:[#allocation26_spill] sm:$0xff]  ;;  %v8800_v37 = vld [vmem:[#allocation28_spill] sm:$0xff]  ;;  %v8801_v22 = vld [vmem:[#allocation25_spill] sm:$0xff] }
 0x154   : > { %1768 = vmatprep.mubr.f32.mxu0 %v7023_v42  ;;  %5333 = vmatpush1.bf16.msra.mxu0 %v5332_v33  ;;  %v7285_v42 = vld [vmem:[%s6913_s1 + $0x9f] sm:$0xff]  ;;  %v7289_v33 = vld [vmem:[%s6913_s1 + $0x89] sm:$0xff] }
 0x155   : > { %5335 = vmatprep.subr.bf16.mxu0 %v5334_v20  ;;  %v5342_v20 = vpack.c.bf16 %v1466_v50, %v1464_v31  ;;  %691 = vst [vmem:[#allocation2 + $0x4d8] sm:$0xff] %v7289_v33  ;;  %v7376_v31 = vld [vmem:[%s6913_s1 + $0xef] sm:$0xff]  ;;  %v7379_v50 = vld [vmem:[%s6913_s1 + $0xd9] sm:$0xff] }
 0x156   : > { %8803 = vst [vmem:[#allocation28_spill] sm:$0xff] %v7379_v50  ;;  %701 = vst [vmem:[#allocation2 + $0x7a8] sm:$0xff] %v7379_v50  ;;  %v1470_v50 = vld [vmem:[#allocation7 + $0x438] sm:$0xff] }
 0x157   : > { %1769 = vmatmul.mubr.f32.gmra.mrb[28].mxu0 %v7043_v61  ;;  %v7295_v61 = vld [vmem:[%s6913_s1 + $0xa7] sm:$0xff] }
 0x158   : > { %1774 = vmatprep.mubr.f32.mxu0 %v7026_v43  ;;  %5337 = vmatpush1.bf16.msra.mxu0 %v5336_v34  ;;  %v7298_v43 = vld [vmem:[%s6913_s1 + $0x91] sm:$0xff] }
 0x159   : > { %5339 = vmatprep.subr.bf16.mxu0 %v5338_v18  ;;  %692 = vst [vmem:[#allocation2 + $0x520] sm:$0xff] %v7298_v43  ;;  %v8798_v34 = vld [vmem:[#allocation23_spill] sm:$0xff] }
 0x15a   : > { %v7370_v18 = vld [vmem:[%s6913_s1 + $0xd1] sm:$0xff]  ;;  %8802 = vst [vmem:[#allocation23_spill] sm:$0xff] %v7376_v31  ;;  %v7413_v31 = vld [vmem:[%s6913_s1 + $0x28] sm:$0xff] }
 0x15b   : > { %1775 = vmatmul.mubr.f32.gmra.mrb[30].mxu0 %v7046_v62  ;;  %v7307_v62 = vld [vmem:[%s6913_s1 + $0x99] sm:$0xff]  ;;  %8799 = vst [vmem:[#allocation26_spill] sm:$0xff] %v7370_v18  ;;  %700 = vst [vmem:[#allocation2 + $0x760] sm:$0xff] %v7370_v18  ;;  %v1469_v18 = vld [vmem:[#allocation7 + $0x430] sm:$0xff] }
 0x15c   : > { %1780 = vmatprep.mubr.f32.mxu0 %v7037_v53  ;;  %5341 = vmatpush1.bf16.msra.mxu0 %v5340_v49  ;;  %693 = vst [vmem:[#allocation2 + $0x568] sm:$0xff] %v7307_v62  ;;  %v7312_v53 = vld [vmem:[%s6913_s1 + $0xb7] sm:$0xff]  ;;  %v8804_v49 = vld [vmem:[#allocation30_spill] sm:$0xff] }
 0x15d   : > { %5343 = vmatprep.subr.bf16.mxu0 %v5342_v20  ;;  %v7384_v20 = vld [vmem:[%s6913_s1 + $0xf7] sm:$0xff] }
 0x15e   : > { %8805 = vst [vmem:[#allocation25_spill] sm:$0xff] %v7384_v20  ;;  %v1465_v20 = vld [vmem:[#allocation7 + $0x410] sm:$0xff] }
 0x15f   : > { %1781 = vmatmul.mubr.f32.gmra.mrb[32].mxu0 %v7057_v14  ;;  %v7325_v14 = vld [vmem:[%s6913_s1 + $0xa9] sm:$0xff] }
 0x160   : > { %1786 = vmatprep.mubr.f32.mxu0 %v7040_v56  ;;  %v7321_v56 = vld [vmem:[%s6913_s1 + $0xbf] sm:$0xff]  ;;  %695 = vst [vmem:[#allocation2 + $0x5f8] sm:$0xff] %v7325_v14 }
 0x163   : > { %1787 = vmatmul.mubr.f32.gmra.mrb[34].mxu0 %v7060_v16  ;;  %v7334_v16 = vld [vmem:[%s6913_s1 + $0xb1] sm:$0xff] }
 0x164   : > { %1792 = vmatprep.mubr.f32.mxu0 %v7051_v7  ;;  %v7330_v7 = vld [vmem:[%s6913_s1 + $0xc7] sm:$0xff]  ;;  %696 = vst [vmem:[#allocation2 + $0x640] sm:$0xff] %v7334_v16 }
 0x167   : > { %1793 = vmatmul.mubr.f32.gmra.mrb[36].mxu0 %v7071_v26  ;;  %v7343_v26 = vld [vmem:[%s6913_s1 + $0xb9] sm:$0xff] }
 0x168   : > { %1798 = vmatprep.mubr.f32.mxu0 %v7054_v8  ;;  %v7340_v8 = vld [vmem:[%s6913_s1 + $0xcf] sm:$0xff]  ;;  %697 = vst [vmem:[#allocation2 + $0x688] sm:$0xff] %v7343_v26 }
 0x16b   : > { %1799 = vmatmul.mubr.f32.gmra.mrb[38].mxu0 %v7074_v28  ;;  %v7352_v28 = vld [vmem:[%s6913_s1 + $0xc1] sm:$0xff] }
 0x16c   : > { %1804 = vmatprep.mubr.f32.mxu0 %v7065_v23  ;;  %v7349_v23 = vld [vmem:[%s6913_s1 + $0xd7] sm:$0xff]  ;;  %698 = vst [vmem:[#allocation2 + $0x6d0] sm:$0xff] %v7352_v28 }
 0x16f   : > { %1805 = vmatmul.mubr.f32.gmra.mrb[40].mxu0 %v7082_v44  ;;  %v8793_v44 = vld [vmem:[#allocation24_spill] sm:$0xff] }
 0x170   : > { %1810 = vmatprep.mubr.f32.mxu0 %v7068_v24  ;;  %v8794_v24 = vld [vmem:[#allocation22_spill] sm:$0xff] }
 0x173   : > { %1811 = vmatmul.mubr.f32.gmra.mrb[42].mxu0 %v7085_v45  ;;  %v7361_v45 = vld [vmem:[%s6913_s1 + $0xc9] sm:$0xff] }
 0x174   : > { %1816 = vmatprep.mubr.f32.mxu0 %v7079_v39  ;;  %8795 = vst [vmem:[#allocation24_spill] sm:$0xff] %v7361_v45  ;;  %699 = vst [vmem:[#allocation2 + $0x718] sm:$0xff] %v7361_v45  ;;  %v7366_v39 = vld [vmem:[%s6913_s1 + $0xe7] sm:$0xff]  ;;  %v7418_v45 = vld [vmem:[%s6913_s1 + $0x30] sm:$0xff] }
 0x175   : > { %8797 = vst [vmem:[#allocation22_spill] sm:$0xff] %v7366_v39  ;;  %v1474_v39 = vld [vmem:[#allocation7 + $0x458] sm:$0xff]  ;;  %797 = vst [vmem:[#allocation2 + $0xf8] sm:$0xff] %v7418_v45 }
 0x177   : > { %1817 = vmatmul.mubr.f32.gmra.mrb[44].mxu0 %v8793_v44  ;;  %v8806_v44 = vld [vmem:[#allocation27_spill] sm:$0xff] }
 0x178   : > { %1822 = vmatprep.mubr.f32.mxu0 %v8794_v24  ;;  %v7388_v24 = vld [vmem:[%s6913_s1 + $0xe1] sm:$0xff] }
 0x179   : > { %8807 = vst [vmem:[#allocation30_spill] sm:$0xff] %v7388_v24  ;;  %702 = vst [vmem:[#allocation2 + $0x7f0] sm:$0xff] %v7388_v24  ;;  %v8814_v24 = vld [vmem:[#allocation32_spill] sm:$0xff] }
 0x17b   : > { %1823 = vmatmul.mubr.f32.gmra.mrb[46].mxu0 %v8796_v11  ;;  %v8808_v11 = vld [vmem:[#allocation29_spill] sm:$0xff] }
 0x17c   : > { %1828 = vmatprep.mubr.f32.mxu0 %v8798_v34  ;;  %v7394_v34 = vld [vmem:[%s6913_s1 + $0xff] sm:$0xff] }
 0x17d   : > { %8809 = vst [vmem:[#allocation27_spill] sm:$0xff] %v7394_v34  ;;  %v1468_v34 = vld [vmem:[#allocation7 + $0x428] sm:$0xff] }
 0x17f   : > { %1829 = vmatmul.mubr.f32.gmra.mrb[48].mxu0 %v8800_v37  ;;  %v7397_v37 = vld [vmem:[%s6913_s1 + $0xe9] sm:$0xff] }
 0x180   : > { %1834 = vmatprep.mubr.f32.mxu0 %v8801_v22  ;;  %8810 = vst [vmem:[#allocation29_spill] sm:$0xff] %v7397_v37  ;;  %703 = vst [vmem:[#allocation2 + $0x838] sm:$0xff] %v7397_v37  ;;  %v8811_v22 = vld [vmem:[#allocation31_spill] sm:$0xff]  ;;  %v8816_v37 = vld [vmem:[#allocation34_spill] sm:$0xff] }
 0x183   : > { %1835 = vmatmul.mubr.f32.gmra.mrb[50].mxu0 %v8804_v49  ;;  %v7403_v49 = vld [vmem:[%s6913_s1 + $0x18] sm:$0xff] }
 0x184   : > { %1840 = vmatprep.mubr.f32.mxu0 %v8806_v44  ;;  %8812 = vst [vmem:[#allocation31_spill] sm:$0xff] %v7403_v49  ;;  %v8813_v44 = vld [vmem:[#allocation33_spill] sm:$0xff] }
 0x185   : > { %v1467_v49 = vld [vmem:[#allocation7 + $0x420] sm:$0xff] }
 0x187   : > { %1841 = vmatmul.mubr.f32.gmra.mrb[52].mxu0 %v7124_v57  ;;  %v7408_v57 = vld [vmem:[%s6913_s1 + $0x20] sm:$0xff] }
 0x188   : > { %1846 = vmatprep.mubr.f32.mxu0 %v8808_v11  ;;  %8815 = vst [vmem:[#allocation33_spill] sm:$0xff] %v7408_v57  ;;  %v1463_v11 = vld [vmem:[#allocation7 + $0x400] sm:$0xff]  ;;  %v5348_v57 = vpack.c.bf16 %v1469_v18, %v1467_v49  ;;  %v1477_v49 = vld [vmem:[#allocation7 + $0x470] sm:$0xff] }
 0x189   : > { %v1475_v18 = vld [vmem:[#allocation7 + $0x460] sm:$0xff] }
 0x18b   : > { %1847 = vmatmul.mubr.f32.gmra.mrb[54].mxu0 %v7131_v40  ;;  %v5344_v40 = vpack.c.bf16 %v1465_v20, %v1463_v11  ;;  %v1473_v20 = vld [vmem:[#allocation7 + $0x450] sm:$0xff] }
 0x18c   : > { %1851 = vmatprep.mubr.f32.mxu0 %v8811_v22  ;;  %v5346_v22 = vpack.c.bf16 %v1470_v50, %v1468_v34  ;;  %v1476_v50 = vld [vmem:[#allocation7 + $0x468] sm:$0xff]  ;;  %v1478_v34 = vld [vmem:[#allocation7 + $0x478] sm:$0xff] }
 0x18d   : > { %v8818_v11 = vld [vmem:[#allocation36_spill] sm:$0xff] }
 0x18f   : > { %1852 = vmatmul.mubr.f32.gmra.mrb[56].mxu0 %v8813_v44  ;;  %v1472_v44 = vld [vmem:[#allocation7 + $0x448] sm:$0xff] }
 0x190   : > { %1856 = vmatprep.mubr.f32.mxu0 %v8814_v24  ;;  %v8817_v24 = vld [vmem:[#allocation35_spill] sm:$0xff] }
 0x193   : > { %1857 = vmatmul.mubr.f32.gmra.mrb[58].mxu0 %v7141_v10  ;;  %v5350_v10 = vpack.c.bf16 %v1474_v39, %v1472_v44  ;;  %v1480_v39 = vld [vmem:[#allocation7 + $0x488] sm:$0xff]  ;;  %v5356_v44 = vpack.c.bf16 %v1477_v49, %v1475_v18  ;;  %v1490_v18 = vld [vmem:[#allocation7 + $0x4d8] sm:$0xff] }
 0x194   : > { %1926 = vmatprep.mubr.f32.mxu0 %v8816_v37  ;;  %v1471_v37 = vld [vmem:[#allocation7 + $0x440] sm:$0xff] }
 0x197   : > { %1927 = vmatmul.mubr.f32.vlgmr.msra.gmra.mrb[60].mxu0 %v8817_v24  ;;  %v7424_v24 = vld [vmem:[%s6913_s1 + $0x38] sm:$0xff] }
 0x198   : > { %5345 = vmatpush1.bf16.msra.mxu0 %v5344_v40  ;;  %1931 = vmatprep.mubr.f32.mxu0 %v7147_v35  ;;  %v5352_v40 = vpack.c.bf16 %v1473_v20, %v1471_v37  ;;  %v5354_v35 = vpack.c.bf16 %v1478_v34, %v1476_v50  ;;  %798 = vst [vmem:[#allocation2 + $0x140] sm:$0xff] %v7424_v24  ;;  %v1479_v37 = vld [vmem:[#allocation7 + $0x480] sm:$0xff]  ;;  %v1484_v20 = vld [vmem:[#allocation7 + $0x4a8] sm:$0xff]  ;;  %v1486_v50 = vld [vmem:[#allocation7 + $0x4b8] sm:$0xff] }
 0x199   : > { %5347 = vmatprep.subr.bf16.mxu0 %v5346_v22  ;;  %v1482_v22 = vld [vmem:[#allocation7 + $0x498] sm:$0xff]  ;;  %v5362_v34 = vpack.c.bf16 %v1486_v50, %v1484_v20  ;;  %v1493_v20 = vld [vmem:[#allocation7 + $0x4f0] sm:$0xff]  ;;  %v1496_v50 = vld [vmem:[#allocation7 + $0x508] sm:$0xff] }
 0x19b   : > { %1932 = vmatmul.mubr.f32.gmra.mrb[62].mxu0 %v8818_v11  ;;  %v1483_v11 = vld [vmem:[#allocation7 + $0x4a0] sm:$0xff] }
 0x19c   : > { %1936 = vmatprep.mubr.f32.mxu0 %v7153_v29  ;;  %5349 = vmatpush1.bf16.msra.mxu0 %v5348_v57  ;;  %v7430_v29 = vld [vmem:[%s6913_s1 + $0x40] sm:$0xff]  ;;  %v5358_v57 = vpack.c.bf16 %v1482_v22, %v1480_v39  ;;  %v1489_v22 = vld [vmem:[#allocation7 + $0x4d0] sm:$0xff] }
 0x19d   : > { %5351 = vmatprep.subr.bf16.mxu0 %v5350_v10  ;;  %v1481_v10 = vld [vmem:[#allocation7 + $0x490] sm:$0xff]  ;;  %799 = vst [vmem:[#allocation2 + $0x188] sm:$0xff] %v7430_v29  ;;  %v1487_v39 = vld [vmem:[#allocation7 + $0x4c0] sm:$0xff] }
 0x19f   : > { %1937 = vmatmul.mubr.f32.gmra.mrb[64].mxu0 %v7156_v36  ;;  %v5360_v36 = vpack.c.bf16 %v1481_v10, %v1479_v37  ;;  %v1491_v10 = vld [vmem:[#allocation7 + $0x4e0] sm:$0xff] }
 0x1a0   : > { %1941 = vmatprep.mubr.f32.mxu0 %v7160_v41  ;;  %5353 = vmatpush1.bf16.msra.mxu0 %v5352_v40  ;;  %v7436_v41 = vld [vmem:[%s6913_s1 + $0x48] sm:$0xff]  ;;  %v1485_v40 = vld [vmem:[#allocation7 + $0x4b0] sm:$0xff] }
 0x1a1   : > { %5355 = vmatprep.subr.bf16.mxu0 %v5354_v35  ;;  %800 = vst [vmem:[#allocation2 + $0x1d0] sm:$0xff] %v7436_v41  ;;  %v1488_v35 = vld [vmem:[#allocation7 + $0x4c8] sm:$0xff] }
 0x1a2   : > { %v5366_v49 = vpack.c.bf16 %v1490_v18, %v1488_v35  ;;  %v1500_v35 = vld [vmem:[#allocation7 + $0x528] sm:$0xff]  ;;  %v1502_v18 = vld [vmem:[#allocation7 + $0x538] sm:$0xff] }
 0x1a3   : > { %1942 = vmatmul.mubr.f32.gmra.mrb[6].mxu0 %v7163_v60  ;;  %v5364_v60 = vpack.c.bf16 %v1485_v40, %v1483_v11  ;;  %v1495_v11 = vld [vmem:[#allocation7 + $0x500] sm:$0xff]  ;;  %v1497_v40 = vld [vmem:[#allocation7 + $0x510] sm:$0xff] }
 0x1a4   : > { %1947 = vmatprep.mubr.f32.mxu0 %v7168_v51  ;;  %5357 = vmatpush1.bf16.msra.mxu0 %v5356_v44  ;;  %v7442_v51 = vld [vmem:[%s6913_s1 + $0x50] sm:$0xff]  ;;  %v1492_v44 = vld [vmem:[#allocation7 + $0x4e8] sm:$0xff] }
 0x1a5   : > { %5359 = vmatprep.subr.bf16.mxu0 %v5358_v57  ;;  %801 = vst [vmem:[#allocation2 + $0x218] sm:$0xff] %v7442_v51  ;;  %v1494_v57 = vld [vmem:[#allocation7 + $0x4f8] sm:$0xff] }
 0x1a6   : > { %v5370_v37 = vpack.c.bf16 %v1494_v57, %v1492_v44  ;;  %v1506_v44 = vld [vmem:[#allocation7 + $0x558] sm:$0xff] }
 0x1a7   : > { %1948 = vmatmul.mubr.f32.gmra.mrb[8].mxu0 %v7172_v4  ;;  %v5368_v4 = vpack.c.bf16 %v1489_v22, %v1487_v39  ;;  %v1501_v39 = vld [vmem:[#allocation7 + $0x530] sm:$0xff]  ;;  %v1504_v22 = vld [vmem:[#allocation7 + $0x548] sm:$0xff] }
 0x1a8   : > { %1953 = vmatprep.mubr.f32.mxu0 %v7177_v58  ;;  %5361 = vmatpush1.bf16.msra.mxu0 %v5360_v36  ;;  %v7448_v58 = vld [vmem:[%s6913_s1 + $0x58] sm:$0xff]  ;;  %v5382_v57 = vpack.c.bf16 %v1506_v44, %v1504_v22  ;;  %v1517_v22 = vld [vmem:[#allocation7 + $0x5b0] sm:$0xff]  ;;  %v1520_v44 = vld [vmem:[#allocation7 + $0x5c8] sm:$0xff] }
 0x1a9   : > { %5363 = vmatprep.subr.bf16.mxu0 %v5362_v34  ;;  %802 = vst [vmem:[#allocation2 + $0x260] sm:$0xff] %v7448_v58  ;;  %v1498_v36 = vld [vmem:[#allocation7 + $0x518] sm:$0xff] }
 0x1aa   : > { %v5374_v34 = vpack.c.bf16 %v1498_v36, %v1496_v50  ;;  %v1507_v36 = vld [vmem:[#allocation7 + $0x560] sm:$0xff] }
 0x1ab   : > { %1954 = vmatmul.mubr.f32.gmra.mrb[10].mxu0 %v7181_v0  ;;  %v5372_v0 = vpack.c.bf16 %v1493_v20, %v1491_v10  ;;  %v1508_v10 = vld [vmem:[#allocation7 + $0x568] sm:$0xff]  ;;  %v1510_v20 = vld [vmem:[#allocation7 + $0x578] sm:$0xff] }
 0x1ac   : > { %1959 = vmatprep.mubr.f32.mxu0 %v7186_v59  ;;  %5365 = vmatpush1.bf16.msra.mxu0 %v5364_v60  ;;  %v7454_v59 = vld [vmem:[%s6913_s1 + $0x60] sm:$0xff]  ;;  %v5378_v60 = vpack.c.bf16 %v1502_v18, %v1500_v35  ;;  %v5386_v50 = vpack.c.bf16 %v1510_v20, %v1508_v10  ;;  %v1513_v18 = vld [vmem:[#allocation7 + $0x590] sm:$0xff]  ;;  %v1524_v10 = vld [vmem:[#allocation7 + $0x5e8] sm:$0xff] }
 0x1ad   : > { %5367 = vmatprep.subr.bf16.mxu0 %v5366_v49  ;;  %803 = vst [vmem:[#allocation2 + $0x2a8] sm:$0xff] %v7454_v59  ;;  %v1499_v49 = vld [vmem:[#allocation7 + $0x520] sm:$0xff]  ;;  %v1526_v20 = vld [vmem:[#allocation7 + $0x5f8] sm:$0xff] }
 0x1ae   : > { %v1511_v35 = vld [vmem:[#allocation7 + $0x580] sm:$0xff] }
 0x1af   : > { %1960 = vmatmul.mubr.f32.gmra.mrb[12].mxu0 %v7190_v46  ;;  %v5376_v46 = vpack.c.bf16 %v1497_v40, %v1495_v11  ;;  %v1514_v11 = vld [vmem:[#allocation7 + $0x598] sm:$0xff] }
 0x1b0   : > { %1965 = vmatprep.mubr.f32.mxu0 %v7195_v2  ;;  %5369 = vmatpush1.bf16.msra.mxu0 %v5368_v4  ;;  %v7460_v2 = vld [vmem:[%s6913_s1 + $0x68] sm:$0xff]  ;;  %v1503_v4 = vld [vmem:[#allocation7 + $0x540] sm:$0xff] }
 0x1b1   : > { %5371 = vmatprep.subr.bf16.mxu0 %v5370_v37  ;;  %804 = vst [vmem:[#allocation2 + $0x2f0] sm:$0xff] %v7460_v2  ;;  %v1505_v37 = vld [vmem:[#allocation7 + $0x550] sm:$0xff] }
 0x1b3   : > { %1966 = vmatmul.mubr.f32.gmra.mrb[14].mxu0 %v7199_v47  ;;  %v5380_v47 = vpack.c.bf16 %v1501_v39, %v1499_v49  ;;  %v1515_v39 = vld [vmem:[#allocation7 + $0x5a0] sm:$0xff] }
 0x1b4   : > { %1971 = vmatprep.mubr.f32.mxu0 %v7204_v3  ;;  %5373 = vmatpush1.bf16.msra.mxu0 %v5372_v0  ;;  %v7466_v3 = vld [vmem:[%s6913_s1 + $0x70] sm:$0xff] }
 0x1b5   : > { %5375 = vmatprep.subr.bf16.mxu0 %v5374_v34  ;;  %805 = vst [vmem:[#allocation2 + $0x338] sm:$0xff] %v7466_v3  ;;  %v1509_v0 = vld [vmem:[#allocation7 + $0x570] sm:$0xff]  ;;  %v1512_v34 = vld [vmem:[#allocation7 + $0x588] sm:$0xff] }
 0x1b6   : > { %v5390_v40 = vpack.c.bf16 %v1514_v11, %v1512_v34  ;;  %v1530_v34 = vld [vmem:[#allocation7 + $0x618] sm:$0xff] }
 0x1b7   : > { %1972 = vmatmul.mubr.f32.gmra.mrb[16].mxu0 %v7208_v54  ;;  %v5384_v54 = vpack.c.bf16 %v1505_v37, %v1503_v4  ;;  %v1519_v4 = vld [vmem:[#allocation7 + $0x5c0] sm:$0xff]  ;;  %v1521_v37 = vld [vmem:[#allocation7 + $0x5d0] sm:$0xff] }
 0x1b8   : > { %1977 = vmatprep.mubr.f32.mxu0 %v7213_v12  ;;  %5377 = vmatpush1.bf16.msra.mxu0 %v5376_v46  ;;  %v7472_v12 = vld [vmem:[%s6913_s1 + $0x78] sm:$0xff]  ;;  %v1516_v46 = vld [vmem:[#allocation7 + $0x5a8] sm:$0xff] }
 0x1b9   : > { %5379 = vmatprep.subr.bf16.mxu0 %v5378_v60  ;;  %806 = vst [vmem:[#allocation2 + $0x380] sm:$0xff] %v7472_v12  ;;  %v1518_v60 = vld [vmem:[#allocation7 + $0x5b8] sm:$0xff] }
 0x1ba   : > { %v5394_v49 = vpack.c.bf16 %v1518_v60, %v1516_v46  ;;  %v7585_v46 = vld [vmem:[%s6913_s1 + $0xf8] sm:$0xff]  ;;  %v1596_v60 = vld [vmem:[#allocation7 + $0x828] sm:$0xff] }
 0x1bb   : > { %1978 = vmatmul.mubr.f32.gmra.mrb[18].mxu0 %v7217_v55  ;;  %v5388_v55 = vpack.c.bf16 %v1509_v0, %v1507_v36  ;;  %v1525_v36 = vld [vmem:[#allocation7 + $0x5f0] sm:$0xff]  ;;  %v1528_v0 = vld [vmem:[#allocation7 + $0x608] sm:$0xff]  ;;  %822 = vst [vmem:[#allocation2 + $0x800] sm:$0xff] %v7585_v46 }
 0x1bc   : > { %1983 = vmatprep.mubr.f32.mxu0 %v7222_v13  ;;  %5381 = vmatpush1.bf16.msra.mxu0 %v5380_v47  ;;  %v7478_v13 = vld [vmem:[%s6913_s1 + $0x80] sm:$0xff]  ;;  %v1522_v47 = vld [vmem:[#allocation7 + $0x5d8] sm:$0xff]  ;;  %v5406_v11 = vpack.c.bf16 %v1530_v34, %v1528_v0  ;;  %v7612_v34 = vld [vmem:[%s6913_s1 + $0x2f] sm:$0xff] }
 0x1bd   : > { %5383 = vmatprep.subr.bf16.mxu0 %v5382_v57  ;;  %807 = vst [vmem:[#allocation2 + $0x3c8] sm:$0xff] %v7478_v13  ;;  %v5398_v57 = vpack.c.bf16 %v1522_v47, %v1520_v44  ;;  %v8821_v47 = vld [vmem:[#allocation26_spill] sm:$0xff]  ;;  %v8824_v0 = vld [vmem:[#allocation25_spill] sm:$0xff] }
 0x1bf   : > { %1984 = vmatmul.mubr.f32.gmra.mrb[20].mxu0 %v7226_v63  ;;  %v5392_v63 = vpack.c.bf16 %v1513_v18, %v1511_v35  ;;  %v8819_v35 = vld [vmem:[#allocation24_spill] sm:$0xff]  ;;  %v8820_v18 = vld [vmem:[#allocation22_spill] sm:$0xff] }
 0x1c0   : > { %1989 = vmatprep.mubr.f32.mxu0 %v7231_v19  ;;  %5385 = vmatpush1.bf16.msra.mxu0 %v5384_v54  ;;  %v7484_v19 = vld [vmem:[%s6913_s1 + $0x88] sm:$0xff]  ;;  %v5402_v54 = vpack.c.bf16 %v1526_v20, %v1524_v10  ;;  %v1602_v10 = vld [vmem:[#allocation7 + $0x858] sm:$0xff]  ;;  %v1599_v20 = vld [vmem:[#allocation7 + $0x840] sm:$0xff] }
 0x1c1   : > { %5387 = vmatprep.subr.bf16.mxu0 %v5386_v50  ;;  %808 = vst [vmem:[#allocation2 + $0x410] sm:$0xff] %v7484_v19  ;;  %v1523_v50 = vld [vmem:[#allocation7 + $0x5e0] sm:$0xff] }
 0x1c3   : > { %1990 = vmatmul.mubr.f32.gmra.mrb[22].mxu0 %v7235_v1  ;;  %v5396_v1 = vpack.c.bf16 %v1517_v22, %v1515_v39  ;;  %v1595_v39 = vld [vmem:[#allocation7 + $0x820] sm:$0xff]  ;;  %v1597_v22 = vld [vmem:[#allocation7 + $0x830] sm:$0xff] }
 0x1c4   : > { %1995 = vmatprep.mubr.f32.mxu0 %v7241_v25  ;;  %5389 = vmatpush1.bf16.msra.mxu0 %v5388_v55  ;;  %v7490_v25 = vld [vmem:[%s6913_s1 + $0x90] sm:$0xff]  ;;  %v7508_v55 = vld [vmem:[%s6913_s1 + $0xa8] sm:$0xff]  ;;  %v7591_v44 = vpack.c.bf16 %v1597_v22, %v1595_v39  ;;  %v1607_v22 = vld [vmem:[#allocation7 + $0x880] sm:$0xff] }
 0x1c5   : > { %5391 = vmatprep.subr.bf16.mxu0 %v5390_v40  ;;  %809 = vst [vmem:[#allocation2 + $0x458] sm:$0xff] %v7490_v25  ;;  %812 = vst [vmem:[#allocation2 + $0x530] sm:$0xff] %v7508_v55 }
 0x1c7   : > { %1996 = vmatmul.mubr.f32.gmra.mrb[24].mxu0 %v7244_v9  ;;  %v5400_v9 = vpack.c.bf16 %v1521_v37, %v1519_v4  ;;  %v7600_v4 = vld [vmem:[%s6913_s1 + $0x100] sm:$0xff]  ;;  %v1600_v37 = vld [vmem:[#allocation7 + $0x848] sm:$0xff] }
 0x1c8   : > { %2001 = vmatprep.mubr.f32.mxu0 %v7249_v30  ;;  %5393 = vmatpush1.bf16.msra.mxu0 %v5392_v63  ;;  %v7496_v30 = vld [vmem:[%s6913_s1 + $0x98] sm:$0xff]  ;;  %823 = vst [vmem:[#allocation2 + $0x848] sm:$0xff] %v7600_v4 }
 0x1c9   : > { %5395 = vmatprep.subr.bf16.mxu0 %v5394_v49  ;;  %810 = vst [vmem:[#allocation2 + $0x4a0] sm:$0xff] %v7496_v30  ;;  %v1598_v63 = vld [vmem:[#allocation7 + $0x838] sm:$0xff] }
 0x1ca   : > { %v7589_v49 = vpack.c.bf16 %v1598_v63, %v1596_v60  ;;  %v1610_v60 = vld [vmem:[#allocation7 + $0x898] sm:$0xff]  ;;  %v1529_v63 = vld [vmem:[#allocation7 + $0x610] sm:$0xff] }
 0x1cb   : > { %2002 = vmatmul.mubr.f32.gmra.mrb[26].mxu0 %v7253_v15  ;;  %v5404_v15 = vpack.c.bf16 %v1525_v36, %v1523_v50  ;;  %v8823_v50 = vld [vmem:[#allocation28_spill] sm:$0xff] }
 0x1cc   : > { %2007 = vmatprep.mubr.f32.mxu0 %v7259_v32  ;;  %5397 = vmatpush1.bf16.msra.mxu0 %v5396_v1  ;;  %v7502_v32 = vld [vmem:[%s6913_s1 + $0xa0] sm:$0xff]  ;;  %v8822_v1 = vld [vmem:[#allocation23_spill] sm:$0xff] }
 0x1cd   : > { %5399 = vmatprep.subr.bf16.mxu0 %v5398_v57  ;;  %811 = vst [vmem:[#allocation2 + $0x4e8] sm:$0xff] %v7502_v32  ;;  %v7597_v57 = vld [vmem:[%s6913_s1 + $0x101] sm:$0xff] }
 0x1cf   : > { %2008 = vmatmul.mubr.f32.gmra.mrb[28].mxu0 %v7262_v17  ;;  %v7514_v17 = vld [vmem:[%s6913_s1 + $0xb0] sm:$0xff] }
 0x1d0   : > { %2013 = vmatprep.mubr.f32.mxu0 %v7267_v38  ;;  %5401 = vmatpush1.bf16.msra.mxu0 %v5400_v9  ;;  %813 = vst [vmem:[#allocation2 + $0x578] sm:$0xff] %v7514_v17  ;;  %v7520_v38 = vld [vmem:[%s6913_s1 + $0xb8] sm:$0xff]  ;;  %v7604_v9 = vpack.c.bf16 %v1602_v10, %v1600_v37 }
 0x1d1   : > { %5403 = vmatprep.subr.bf16.mxu0 %v5402_v54  ;;  %814 = vst [vmem:[#allocation2 + $0x5c0] sm:$0xff] %v7520_v38  ;;  %v1601_v54 = vld [vmem:[#allocation7 + $0x850] sm:$0xff]  ;;  %v1534_v37 = vld [vmem:[#allocation7 + $0x638] sm:$0xff] }
 0x1d2   : > { %v7607_v36 = vpack.c.bf16 %v1601_v54, %v1599_v20  ;;  %v8830_v20 = vld [vmem:[#allocation29_spill] sm:$0xff] }
 0x1d3   : > { %2014 = vmatmul.mubr.f32.gmra.mrb[30].mxu0 %v7271_v21  ;;  %v7526_v21 = vld [vmem:[%s6913_s1 + $0xc0] sm:$0xff] }
 0x1d4   : > { %2019 = vmatprep.mubr.f32.mxu0 %v7277_v48  ;;  %5405 = vmatpush1.bf16.msra.mxu0 %v5404_v15  ;;  %815 = vst [vmem:[#allocation2 + $0x608] sm:$0xff] %v7526_v21  ;;  %v7532_v48 = vld [vmem:[%s6913_s1 + $0xc8] sm:$0xff]  ;;  %v1531_v54 = vld [vmem:[#allocation7 + $0x620] sm:$0xff] }
 0x1d5   : > { %5407 = vmatprep.subr.bf16.mxu0 %v5406_v11  ;;  %816 = vst [vmem:[#allocation2 + $0x650] sm:$0xff] %v7532_v48  ;;  %v1604_v15 = vld [vmem:[#allocation7 + $0x868] sm:$0xff]  ;;  %v1606_v11 = vld [vmem:[#allocation7 + $0x878] sm:$0xff] }
 0x1d7   : > { %2020 = vmatmul.mubr.f32.gmra.mrb[32].mxu0 %v7280_v27  ;;  %v7538_v27 = vld [vmem:[%s6913_s1 + $0xd0] sm:$0xff] }
 0x1d8   : > { %2025 = vmatprep.mubr.f32.mxu0 %v7285_v42  ;;  %817 = vst [vmem:[#allocation2 + $0x698] sm:$0xff] %v7538_v27  ;;  %v7544_v42 = vld [vmem:[%s6913_s1 + $0xd8] sm:$0xff] }
 0x1d9   : > { %818 = vst [vmem:[#allocation2 + $0x6e0] sm:$0xff] %v7544_v42 }
 0x1db   : > { %2026 = vmatmul.mubr.f32.gmra.mrb[34].mxu0 %v7289_v33 }
 0x1dc   : > { %2031 = vmatprep.mubr.f32.mxu0 %v7295_v61  ;;  %v7552_v61 = vld [vmem:[%s6913_s1 + $0xe0] sm:$0xff] }
 0x1dd   : > { %819 = vst [vmem:[#allocation2 + $0x728] sm:$0xff] %v7552_v61 }
 0x1df   : > { %2032 = vmatmul.mubr.f32.gmra.mrb[36].mxu0 %v7298_v43 }
 0x1e0   : > { %2037 = vmatprep.mubr.f32.mxu0 %v7303_v52  ;;  %v7558_v52 = vld [vmem:[%s6913_s1 + $0xe8] sm:$0xff] }
 0x1e1   : > { %820 = vst [vmem:[#allocation2 + $0x770] sm:$0xff] %v7558_v52 }
 0x1e3   : > { %2038 = vmatmul.mubr.f32.gmra.mrb[38].mxu0 %v7307_v62 }
 0x1e4   : > { %2043 = vmatprep.mubr.f32.mxu0 %v7312_v53 }
 0x1e7   : > { %2044 = vmatmul.mubr.f32.gmra.mrb[40].mxu0 %v7316_v6  ;;  %v7566_v6 = vld [vmem:[%s6913_s1 + $0xf1] sm:$0xff] }
 0x1e8   : > { %2049 = vmatprep.mubr.f32.mxu0 %v7321_v56  ;;  %v7569_v56 = vld [vmem:[%s6913_s1 + $0xf0] sm:$0xff] }
 0x1e9   : > { %821 = vst [vmem:[#allocation2 + $0x7b8] sm:$0xff] %v7569_v56 }
 0x1eb   : > { %2050 = vmatmul.mubr.f32.gmra.mrb[42].mxu0 %v7325_v14  ;;  %v1592_v14 = vld [vmem:[#allocation7 + $0x808] sm:$0xff] }
 0x1ec   : > { %2055 = vmatprep.mubr.f32.mxu0 %v7330_v7  ;;  %v1594_v7 = vld [vmem:[#allocation7 + $0x818] sm:$0xff] }
 0x1ef   : > { %2056 = vmatmul.mubr.f32.gmra.mrb[44].mxu0 %v7334_v16  ;;  %v1591_v16 = vld [vmem:[#allocation7 + $0x800] sm:$0xff] }
 0x1f0   : > { %2061 = vmatprep.mubr.f32.mxu0 %v7340_v8 }
 0x1f2   : > { %v7549_v33 = vpop.f32.mrb[0].mxu0 }
 0x1f3   : > { %v1691_v43 = vpop.f32.mrb[1].mxu0  ;;  %2062 = vmatmul.mubr.f32.gmra.mrb[46].mxu0 %v7343_v26  ;;  %v7574_v26 = vpack.c.bf16 %v1594_v7, %v1592_v14  ;;  %v1605_v14 = vld [vmem:[#allocation7 + $0x870] sm:$0xff] }
 0x1f4   : > { %2067 = vmatprep.mubr.f32.mxu0 %v7349_v23  ;;  %v1593_v23 = vld [vmem:[#allocation7 + $0x810] sm:$0xff]  ;;  %v7615_v43 = vpack.c.bf16 %v1606_v11, %v1604_v15  ;;  %v7633_v15 = vld [vmem:[%s6913_s1 + $0x3f] sm:$0xff]  ;;  %v1612_v11 = vld [vmem:[#allocation7 + $0x8a8] sm:$0xff] }
 0x1f5   : > { %5726 = vmatprep.subr.bf16.mxu1 %v7574_v26 }
 0x1f6   : > { %v7561_v62 = vpop.f32.mrb[2].mxu0 }
 0x1f7   : > { %v1696_v53 = vpop.f32.mrb[3].mxu0  ;;  %2068 = vmatmul.mubr.f32.gmra.mrb[48].mxu0 %v7352_v28  ;;  %v7577_v28 = vpack.c.bf16 %v1593_v23, %v1591_v16  ;;  %v8826_v16 = vld [vmem:[#allocation30_spill] sm:$0xff] }
 0x1f8   : > { %2073 = vmatprep.mubr.f32.mxu0 %v7358_v5  ;;  %v7580_v5 = vld [vmem:[%s6913_s1 + $0xf9] sm:$0xff] }
 0x1f9   : > { %5734 = vmatpush1.bf16.msra.mxu1 %v7577_v28  ;;  %v1603_v53 = vld [vmem:[#allocation7 + $0x860] sm:$0xff] }
 0x1fa   : > { %v7572_v8 = vpop.f32.mrb[4].mxu0  ;;  %5727 = vmatprep.subr.bf16.mxu1 %v7589_v49  ;;  %v7617_v7 = vpack.c.bf16 %v1605_v14, %v1603_v53  ;;  %v1527_v23 = vld [vmem:[#allocation7 + $0x600] sm:$0xff]  ;;  %v1614_v53 = vld [vmem:[#allocation7 + $0x8b8] sm:$0xff] }
 0x1fb   : > { %v1701_v40 = vpop.f32.mrb[5].mxu0  ;;  %2074 = vmatmul.mubr.f32.gmra.mrb[50].mxu0 %v8819_v35  ;;  %v7623_v35 = vld [vmem:[%s6913_s1 + $0x37] sm:$0xff] }
 0x1fc   : > { %2079 = vmatprep.mubr.f32.mxu0 %v8820_v18  ;;  %8825 = vst [vmem:[#allocation32_spill] sm:$0xff] %v7617_v7  ;;  %v8827_v40 = vld [vmem:[#allocation27_spill] sm:$0xff] }
 0x1fd   : > { %5735 = vmatpush1.bf16.msra.mxu1 %v7591_v44  ;;  %v1608_v18 = vld [vmem:[#allocation7 + $0x888] sm:$0xff] }
 0x1fe   : > { %5728 = vmatprep.subr.bf16.mxu1 %v7604_v9  ;;  %v7626_v39 = vpack.c.bf16 %v1610_v60, %v1608_v18  ;;  %v1611_v18 = vld [vmem:[#allocation7 + $0x8a0] sm:$0xff]  ;;  %v1613_v60 = vld [vmem:[#allocation7 + $0x8b0] sm:$0xff] }
 0x1ff   : > { %2080 = vmatmul.mubr.f32.gmra.mrb[52].mxu0 %v8821_v47  ;;  %v1609_v47 = vld [vmem:[#allocation7 + $0x890] sm:$0xff] }
 0x200   : > { %2085 = vmatprep.mubr.f32.mxu0 %v8822_v1  ;;  %8828 = vst [vmem:[#allocation34_spill] sm:$0xff] %v7626_v39  ;;  %v1532_v1 = vld [vmem:[#allocation7 + $0x628] sm:$0xff]  ;;  %v7628_v10 = vpack.c.bf16 %v1609_v47, %v1607_v22  ;;  %v1538_v47 = vld [vmem:[#allocation7 + $0x658] sm:$0xff] }
 0x201   : > { %5736 = vmatpush1.bf16.msra.mxu1 %v7607_v36  ;;  %v5410_v14 = vpack.c.bf16 %v1534_v37, %v1532_v1  ;;  %v1536_v22 = vld [vmem:[#allocation7 + $0x648] sm:$0xff] }
 0x202   : > { %5729 = vmatprep.subr.bf16.mxu1 %v7615_v43  ;;  %8829 = vst [vmem:[#allocation35_spill] sm:$0xff] %v7628_v10  ;;  %v7643_v37 = vld [vmem:[%s6913_s1 + $0x47] sm:$0xff] }
 0x203   : > { %2086 = vmatmul.mubr.f32.gmra.mrb[66].mxu0 %v8823_v50  ;;  %v6249_v50 = vld [vmem:[#allocation2 + $0xe8] sm:$0xff]  ;;  %8834 = vst [vmem:[#allocation22_spill] sm:$0xff] %v7643_v37  ;;  %v1544_v37 = vld [vmem:[#allocation7 + $0x688] sm:$0xff] }
 0x204   : > { %2090 = vmatprep.mubr.f32.mxu0 %v8824_v0  ;;  %v5408_v0 = vpack.c.bf16 %v1529_v63, %v1527_v23  ;;  %v1535_v23 = vld [vmem:[#allocation7 + $0x640] sm:$0xff] }
 0x205   : > { %5737 = vmatpush1.bf16.msra.mxu1 %v7617_v7  ;;  %v6250_v63 = vld [vmem:[#allocation2 + $0x130] sm:$0xff]  ;;  %v1540_v7 = vld [vmem:[#allocation7 + $0x668] sm:$0xff] }
 0x206   : > { %5730 = vmatprep.subr.bf16.mxu1 %v7626_v39  ;;  %v8833_v39 = vld [vmem:[#allocation31_spill] sm:$0xff] }
 0x207   : > { %2091 = vmatmul.mubr.f32.gmra.mrb[68].mxu0 %v8826_v16  ;;  %v1533_v16 = vld [vmem:[#allocation7 + $0x630] sm:$0xff] }
 0x208   : > { %2095 = vmatprep.mubr.f32.mxu0 %v8827_v40  ;;  %v7636_v40 = vpack.c.bf16 %v1614_v53, %v1612_v11  ;;  %v5412_v1 = vpack.c.bf16 %v1533_v16, %v1531_v54  ;;  %v1618_v11 = vld [vmem:[#allocation7 + $0x8d8] sm:$0xff]  ;;  %v5414_v53 = vpack.c.bf16 %v1538_v47, %v1536_v22  ;;  %v1539_v54 = vld [vmem:[#allocation7 + $0x660] sm:$0xff]  ;;  %v6251_v16 = vld [vmem:[#allocation2 + $0x178] sm:$0xff] }
 0x209   : > { %5738 = vmatpush1.bf16.msra.mxu1 %v7628_v10  ;;  %v1537_v10 = vld [vmem:[#allocation7 + $0x650] sm:$0xff]  ;;  %v1620_v47 = vld [vmem:[#allocation7 + $0x8e8] sm:$0xff] }
 0x20a   : > { %8831 = vst [vmem:[#allocation36_spill] sm:$0xff] %v7636_v40  ;;  %5731 = vmatprep.subr.bf16.mxu1 %v7636_v40  ;;  %v1542_v40 = vld [vmem:[#allocation7 + $0x678] sm:$0xff]  ;;  %v7653_v22 = vld [vmem:[%s6913_s1 + $0x4f] sm:$0xff] }
 0x20b   : > { %2096 = vmatmul.mubr.f32.gmra.mrb[70].mxu0 %v8830_v20  ;;  %v7638_v20 = vpack.c.bf16 %v1613_v60, %v1611_v18  ;;  %v1617_v60 = vld [vmem:[#allocation7 + $0x8d0] sm:$0xff] }
 0x20c   : > { %2165 = vmatprep.mubr.f32.mxu0 %v6249_v50  ;;  %v1616_v50 = vld [vmem:[#allocation7 + $0x8c8] sm:$0xff] }
 0x20d   : > { %8832 = vst [vmem:[#allocation24_spill] sm:$0xff] %v7638_v20  ;;  %5739 = vmatpush1.bf16.msra.mxu1 %v7638_v20  ;;  %v7646_v18 = vpack.c.bf16 %v1618_v11, %v1616_v50  ;;  %v1622_v50 = vld [vmem:[#allocation7 + $0x8f8] sm:$0xff]  ;;  %v5418_v11 = vpack.c.bf16 %v1542_v40, %v1540_v7  ;;  %v1541_v20 = vld [vmem:[#allocation7 + $0x670] sm:$0xff] }
 0x20e   : > { %v5420_v7 = vpack.c.bf16 %v1541_v20, %v1539_v54  ;;  %v7663_v40 = vld [vmem:[%s6913_s1 + $0x57] sm:$0xff]  ;;  %v7669_v20 = vld [vmem:[%s6913_s1 + $0x5f] sm:$0xff] }
 0x20f   : > { %2166 = vmatmul.mubr.f32.vlgmr.msra.gmra.mrb[72].mxu0 %v8833_v39  ;;  %8835 = vst [vmem:[#allocation26_spill] sm:$0xff] %v7646_v18  ;;  %v1615_v39 = vld [vmem:[#allocation7 + $0x8c0] sm:$0xff]  ;;  %5732 = vmatprep.subr.bf16.mxu1 %v7646_v18  ;;  %v1546_v18 = vld [vmem:[#allocation7 + $0x698] sm:$0xff] }
 0x210   : > { %5409 = vmatpush1.bf16.msra.mxu0 %v5408_v0  ;;  %2170 = vmatprep.mubr.f32.mxu0 %v6250_v63  ;;  %v7648_v0 = vpack.c.bf16 %v1617_v60, %v1615_v39  ;;  %v8836_v63 = vld [vmem:[#allocation33_spill] sm:$0xff]  ;;  %v7656_v39 = vpack.c.bf16 %v1622_v50, %v1620_v47  ;;  %v1548_v47 = vld [vmem:[#allocation7 + $0x6a8] sm:$0xff] }
 0x211   : > { %5411 = vmatprep.subr.bf16.mxu0 %v5410_v14  ;;  %v5416_v14 = vpack.c.bf16 %v1537_v10, %v1535_v23  ;;  %v1619_v60 = vld [vmem:[#allocation7 + $0x8e0] sm:$0xff]  ;;  %v6252_v10 = vld [vmem:[#allocation2 + $0x1c0] sm:$0xff]  ;;  %v5422_v23 = vpack.c.bf16 %v1546_v18, %v1544_v37  ;;  %v1550_v50 = vld [vmem:[#allocation7 + $0x6b8] sm:$0xff] }
 0x212   : > { %5740 = vmatpush1.bf16.msra.mxu1 %v7648_v0  ;;  %v5426_v54 = vpack.c.bf16 %v1550_v50, %v1548_v47  ;;  %v1547_v37 = vld [vmem:[#allocation7 + $0x6a0] sm:$0xff]  ;;  %v1549_v18 = vld [vmem:[#allocation7 + $0x6b0] sm:$0xff]  ;;  %v1556_v50 = vld [vmem:[#allocation7 + $0x6e8] sm:$0xff] }
 0x213   : > { %2171 = vmatmul.mubr.f32.gmra.mrb[74].mxu0 %v8836_v63  ;;  %v1621_v63 = vld [vmem:[#allocation7 + $0x8f0] sm:$0xff]  ;;  %5733 = vmatprep.subr.bf16.mxu1 %v7656_v39 }
 0x214   : > { %2175 = vmatprep.mubr.f32.mxu0 %v6251_v16  ;;  %5413 = vmatpush1.bf16.msra.mxu0 %v5412_v1  ;;  %v7658_v16 = vpack.c.bf16 %v1621_v63, %v1619_v60  ;;  %v1543_v1 = vld [vmem:[#allocation7 + $0x680] sm:$0xff]  ;;  %v1554_v63 = vld [vmem:[#allocation7 + $0x6d8] sm:$0xff]  ;;  %v1553_v47 = vld [vmem:[#allocation7 + $0x6d0] sm:$0xff] }
 0x215   : > { %5415 = vmatprep.subr.bf16.mxu0 %v5414_v53  ;;  %v1545_v53 = vld [vmem:[#allocation7 + $0x690] sm:$0xff]  ;;  %v1010_v60 = vld [vmem:[%s6913_s1 + $0x59] sm:$0xff] }
 0x216   : > { %8837 = vst [vmem:[#allocation23_spill] sm:$0xff] %v7658_v16  ;;  %5741 = vmatpush1.bf16.msra.mxu1 %v7658_v16  ;;  %v1011_v16 = vld [vmem:[%s6913_s1 + $0x61] sm:$0xff] }
 0x217   : > { %2176 = vmatmul.mubr.f32.gmra.mrb[76].mxu0 %v7413_v31  ;;  %v6253_v31 = vld [vmem:[#allocation2 + $0x208] sm:$0xff] }
 0x218   : > { %2180 = vmatprep.mubr.f32.mxu0 %v6252_v10  ;;  %5417 = vmatpush1.bf16.msra.mxu0 %v5416_v14  ;;  %v5424_v14 = vpack.c.bf16 %v1545_v53, %v1543_v1  ;;  %v8838_v10 = vmov 0.0   ;;  %v7675_v1 = vld [vmem:[%s6913_s1 + $0x67] sm:$0xff] }
 0x219   : > { %5419 = vmatprep.subr.bf16.mxu0 %v5418_v11  ;;  %2671 = vmatmul.mubr.f32.vlgmr.msra.gmra.mrb[0].mxu1 %v1010_v60  ;;  %v1552_v11 = vld [vmem:[#allocation7 + $0x6c8] sm:$0xff]  ;;  %v1551_v53 = vld [vmem:[#allocation7 + $0x6c0] sm:$0xff]  ;;  %v1558_v60 = vld [vmem:[#allocation7 + $0x6f8] sm:$0xff] }
 0x21a   : > { %2676 = vmatprep.mubr.f32.mxu1 %v8838_v10 }
 0x21b   : > { %2181 = vmatmul.mubr.f32.gmra.mrb[6].mxu0 %v7418_v45  ;;  %v6254_v45 = vld [vmem:[#allocation2 + $0x250] sm:$0xff] }
 0x21c   : > { %2186 = vmatprep.mubr.f32.mxu0 %v6253_v31  ;;  %5421 = vmatpush1.bf16.msra.mxu0 %v5420_v7  ;;  %v5428_v7 = vpack.c.bf16 %v1549_v18, %v1547_v37  ;;  %v1012_v31 = vld [vmem:[%s6913_s1 + $0x69] sm:$0xff]  ;;  %v1555_v18 = vld [vmem:[#allocation7 + $0x6e0] sm:$0xff] }
 0x21d   : > { %5423 = vmatprep.subr.bf16.mxu0 %v5422_v23  ;;  %v5430_v23 = vpack.c.bf16 %v1554_v63, %v1552_v11  ;;  %2677 = vmatmul.mubr.f32.gmra.mrb[2].mxu1 %v1011_v16  ;;  %v7681_v37 = vld [vmem:[%s6913_s1 + $0x6f] sm:$0xff]  ;;  %v1562_v63 = vld [vmem:[#allocation7 + $0x718] sm:$0xff] }
 0x21e   : > { %2682 = vmatprep.mubr.f32.mxu1 %v8838_v10  ;;  %v1557_v11 = vld [vmem:[#allocation7 + $0x6f0] sm:$0xff]  ;;  %v1560_v16 = vld [vmem:[#allocation7 + $0x708] sm:$0xff] }
 0x21f   : > { %2187 = vmatmul.mubr.f32.gmra.mrb[8].mxu0 %v7424_v24  ;;  %v6255_v24 = vld [vmem:[#allocation2 + $0x298] sm:$0xff] }
 0x220   : > { %2192 = vmatprep.mubr.f32.mxu0 %v6254_v45  ;;  %5425 = vmatpush1.bf16.msra.mxu0 %v5424_v14  ;;  %v5432_v14 = vpack.c.bf16 %v1553_v47, %v1551_v53  ;;  %v1013_v45 = vld [vmem:[%s6913_s1 + $0x71] sm:$0xff]  ;;  %v1559_v47 = vld [vmem:[#allocation7 + $0x700] sm:$0xff] }
 0x221   : > { %5427 = vmatprep.subr.bf16.mxu0 %v5426_v54  ;;  %v5434_v54 = vpack.c.bf16 %v1558_v60, %v1556_v50  ;;  %2683 = vmatmul.mubr.f32.gmra.mrb[4].mxu1 %v1012_v31  ;;  %v7687_v53 = vld [vmem:[%s6913_s1 + $0x77] sm:$0xff]  ;;  %v1564_v60 = vld [vmem:[#allocation7 + $0x728] sm:$0xff] }
 0x222   : > { %2688 = vmatprep.mubr.f32.mxu1 %v8838_v10  ;;  %v1561_v50 = vld [vmem:[#allocation7 + $0x710] sm:$0xff]  ;;  %v1566_v31 = vld [vmem:[#allocation7 + $0x738] sm:$0xff] }
 0x223   : > { %2193 = vmatmul.mubr.f32.gmra.mrb[10].mxu0 %v7430_v29  ;;  %v6256_v29 = vld [vmem:[#allocation2 + $0x2e0] sm:$0xff] }
 0x224   : > { %2198 = vmatprep.mubr.f32.mxu0 %v6255_v24  ;;  %5429 = vmatpush1.bf16.msra.mxu0 %v5428_v7  ;;  %v5436_v7 = vpack.c.bf16 %v1557_v11, %v1555_v18  ;;  %v1014_v24 = vld [vmem:[%s6913_s1 + $0x79] sm:$0xff] }
 0x225   : > { %5431 = vmatprep.subr.bf16.mxu0 %v5430_v23  ;;  %v5438_v23 = vpack.c.bf16 %v1562_v63, %v1560_v16  ;;  %2689 = vmatmul.mubr.f32.gmra.mrb[6].mxu1 %v1013_v45  ;;  %v7693_v18 = vld [vmem:[%s6913_s1 + $0x7f] sm:$0xff]  ;;  %v1565_v16 = vld [vmem:[#allocation7 + $0x730] sm:$0xff]  ;;  %v1568_v63 = vld [vmem:[#allocation7 + $0x748] sm:$0xff] }
 0x226   : > { %2694 = vmatprep.mubr.f32.mxu1 %v8838_v10  ;;  %v1563_v11 = vld [vmem:[#allocation7 + $0x720] sm:$0xff]  ;;  %v1570_v45 = vld [vmem:[#allocation7 + $0x758] sm:$0xff] }
 0x227   : > { %2199 = vmatmul.mubr.f32.gmra.mrb[12].mxu0 %v7436_v41  ;;  %v6257_v41 = vld [vmem:[#allocation2 + $0x328] sm:$0xff] }
 0x228   : > { %2204 = vmatprep.mubr.f32.mxu0 %v6256_v29  ;;  %5433 = vmatpush1.bf16.msra.mxu0 %v5432_v14  ;;  %v5440_v14 = vpack.c.bf16 %v1561_v50, %v1559_v47  ;;  %v1015_v29 = vld [vmem:[%s6913_s1 + $0x81] sm:$0xff] }
 0x229   : > { %5435 = vmatprep.subr.bf16.mxu0 %v5434_v54  ;;  %v5442_v54 = vpack.c.bf16 %v1566_v31, %v1564_v60  ;;  %2695 = vmatmul.mubr.f32.gmra.mrb[8].mxu1 %v1014_v24  ;;  %v7699_v47 = vld [vmem:[%s6913_s1 + $0x87] sm:$0xff]  ;;  %v1569_v60 = vld [vmem:[#allocation7 + $0x750] sm:$0xff]  ;;  %v1574_v24 = vld [vmem:[#allocation7 + $0x778] sm:$0xff] }
 0x22a   : > { %2700 = vmatprep.mubr.f32.mxu1 %v8838_v10  ;;  %v1567_v50 = vld [vmem:[#allocation7 + $0x740] sm:$0xff]  ;;  %v1572_v31 = vld [vmem:[#allocation7 + $0x768] sm:$0xff] }
 0x22b   : > { %2205 = vmatmul.mubr.f32.gmra.mrb[14].mxu0 %v7442_v51  ;;  %v6258_v51 = vld [vmem:[#allocation2 + $0x370] sm:$0xff] }
 0x22c   : > { %2210 = vmatprep.mubr.f32.mxu0 %v6257_v41  ;;  %5437 = vmatpush1.bf16.msra.mxu0 %v5436_v7  ;;  %v5444_v7 = vpack.c.bf16 %v1565_v16, %v1563_v11  ;;  %v1016_v41 = vld [vmem:[%s6913_s1 + $0x89] sm:$0xff]  ;;  %v1571_v16 = vld [vmem:[#allocation7 + $0x760] sm:$0xff] }
 0x22d   : > { %5439 = vmatprep.subr.bf16.mxu0 %v5438_v23  ;;  %v5446_v23 = vpack.c.bf16 %v1570_v45, %v1568_v63  ;;  %2701 = vmatmul.mubr.f32.gmra.mrb[10].mxu1 %v1015_v29  ;;  %v7705_v11 = vld [vmem:[%s6913_s1 + $0x8f] sm:$0xff]  ;;  %v1578_v29 = vld [vmem:[#allocation7 + $0x798] sm:$0xff] }
 0x22e   : > { %2706 = vmatprep.mubr.f32.mxu1 %v8838_v10  ;;  %v1573_v63 = vld [vmem:[#allocation7 + $0x770] sm:$0xff]  ;;  %v1576_v45 = vld [vmem:[#allocation7 + $0x788] sm:$0xff] }
 0x22f   : > { %2211 = vmatmul.mubr.f32.gmra.mrb[16].mxu0 %v7448_v58  ;;  %v6259_v58 = vld [vmem:[#allocation2 + $0x3b8] sm:$0xff] }
 0x230   : > { %2216 = vmatprep.mubr.f32.mxu0 %v6258_v51  ;;  %5441 = vmatpush1.bf16.msra.mxu0 %v5440_v14  ;;  %v5448_v14 = vpack.c.bf16 %v1569_v60, %v1567_v50  ;;  %v1017_v51 = vld [vmem:[%s6913_s1 + $0x91] sm:$0xff]  ;;  %v1575_v60 = vld [vmem:[#allocation7 + $0x780] sm:$0xff] }
 0x231   : > { %5443 = vmatprep.subr.bf16.mxu0 %v5442_v54  ;;  %v5450_v54 = vpack.c.bf16 %v1574_v24, %v1572_v31  ;;  %2707 = vmatmul.mubr.f32.gmra.mrb[12].mxu1 %v1016_v41  ;;  %v7711_v50 = vld [vmem:[%s6913_s1 + $0x97] sm:$0xff]  ;;  %v1580_v24 = vld [vmem:[#allocation7 + $0x7a8] sm:$0xff] }
 0x232   : > { %2712 = vmatprep.mubr.f32.mxu1 %v8838_v10  ;;  %v1577_v31 = vld [vmem:[#allocation7 + $0x790] sm:$0xff]  ;;  %v1582_v41 = vld [vmem:[#allocation7 + $0x7b8] sm:$0xff] }
 0x233   : > { %2217 = vmatmul.mubr.f32.gmra.mrb[18].mxu0 %v7454_v59  ;;  %v6260_v59 = vld [vmem:[#allocation2 + $0x400] sm:$0xff] }
 0x234   : > { %2222 = vmatprep.mubr.f32.mxu0 %v6259_v58  ;;  %5445 = vmatpush1.bf16.msra.mxu0 %v5444_v7  ;;  %v5452_v7 = vpack.c.bf16 %v1573_v63, %v1571_v16  ;;  %v1018_v58 = vld [vmem:[%s6913_s1 + $0x99] sm:$0xff] }
 0x235   : > { %5447 = vmatprep.subr.bf16.mxu0 %v5446_v23  ;;  %v5454_v23 = vpack.c.bf16 %v1578_v29, %v1576_v45  ;;  %2713 = vmatmul.mubr.f32.gmra.mrb[14].mxu1 %v1017_v51  ;;  %v7717_v16 = vld [vmem:[%s6913_s1 + $0x9f] sm:$0xff]  ;;  %v1581_v45 = vld [vmem:[#allocation7 + $0x7b0] sm:$0xff]  ;;  %v1584_v29 = vld [vmem:[#allocation7 + $0x7c8] sm:$0xff] }
 0x236   : > { %2718 = vmatprep.mubr.f32.mxu1 %v8838_v10  ;;  %v1579_v63 = vld [vmem:[#allocation7 + $0x7a0] sm:$0xff]  ;;  %v1586_v51 = vld [vmem:[#allocation7 + $0x7d8] sm:$0xff] }
 0x237   : > { %2223 = vmatmul.mubr.f32.gmra.mrb[20].mxu0 %v7460_v2  ;;  %v6261_v2 = vld [vmem:[#allocation2 + $0x448] sm:$0xff] }
 0x238   : > { %2228 = vmatprep.mubr.f32.mxu0 %v6260_v59  ;;  %5449 = vmatpush1.bf16.msra.mxu0 %v5448_v14  ;;  %v5456_v14 = vpack.c.bf16 %v1577_v31, %v1575_v60  ;;  %v1019_v59 = vld [vmem:[%s6913_s1 + $0xa1] sm:$0xff] }
 0x239   : > { %5451 = vmatprep.subr.bf16.mxu0 %v5450_v54  ;;  %v5458_v54 = vpack.c.bf16 %v1582_v41, %v1580_v24  ;;  %2719 = vmatmul.mubr.f32.gmra.mrb[16].mxu1 %v1018_v58  ;;  %v7723_v60 = vld [vmem:[%s6913_s1 + $0xa7] sm:$0xff]  ;;  %v1585_v24 = vld [vmem:[#allocation7 + $0x7d0] sm:$0xff]  ;;  %v1590_v58 = vld [vmem:[#allocation7 + $0x7f8] sm:$0xff] }
 0x23a   : > { %2724 = vmatprep.mubr.f32.mxu1 %v8838_v10  ;;  %v1583_v31 = vld [vmem:[#allocation7 + $0x7c0] sm:$0xff]  ;;  %v1588_v41 = vld [vmem:[#allocation7 + $0x7e8] sm:$0xff] }
 0x23b   : > { %2229 = vmatmul.mubr.f32.gmra.mrb[22].mxu0 %v7466_v3  ;;  %v6262_v3 = vld [vmem:[#allocation2 + $0x490] sm:$0xff] }
 0x23c   : > { %2234 = vmatprep.mubr.f32.mxu0 %v6261_v2  ;;  %5453 = vmatpush1.bf16.msra.mxu0 %v5452_v7  ;;  %v5460_v7 = vpack.c.bf16 %v1581_v45, %v1579_v63  ;;  %v1020_v2 = vld [vmem:[%s6913_s1 + $0xa9] sm:$0xff]  ;;  %v1587_v45 = vld [vmem:[#allocation7 + $0x7e0] sm:$0xff] }
 0x23d   : > { %5455 = vmatprep.subr.bf16.mxu0 %v5454_v23  ;;  %v5462_v23 = vpack.c.bf16 %v1586_v51, %v1584_v29  ;;  %2725 = vmatmul.mubr.f32.gmra.mrb[18].mxu1 %v1019_v59  ;;  %v7729_v63 = vld [vmem:[%s6913_s1 + $0xaf] sm:$0xff] }
 0x23e   : > { %2730 = vmatprep.mubr.f32.mxu1 %v8838_v10  ;;  %v1589_v29 = vld [vmem:[#allocation7 + $0x7f0] sm:$0xff] }
 0x23f   : > { %2235 = vmatmul.mubr.f32.gmra.mrb[24].mxu0 %v7472_v12  ;;  %v6263_v12 = vld [vmem:[#allocation2 + $0x4d8] sm:$0xff]  ;;  %v1021_v51 = vld [vmem:[%s6913_s1 + $0xb1] sm:$0xff]  ;;  %v5468_v59 = vpack.c.bf16 %v1589_v29, %v1587_v45 }
 0x240   : > { %2240 = vmatprep.mubr.f32.mxu0 %v6262_v3  ;;  %5457 = vmatpush1.bf16.msra.mxu0 %v5456_v14  ;;  %v5464_v14 = vpack.c.bf16 %v1585_v24, %v1583_v31  ;;  %v7735_v3 = vld [vmem:[%s6913_s1 + $0xb7] sm:$0xff]  ;;  %v1023_v31 = vld [vmem:[%s6913_s1 + $0xc1] sm:$0xff] }
 0x241   : > { %5459 = vmatprep.subr.bf16.mxu0 %v5458_v54  ;;  %v5466_v54 = vpack.c.bf16 %v1590_v58, %v1588_v41  ;;  %2731 = vmatmul.mubr.f32.gmra.mrb[20].mxu1 %v1020_v2  ;;  %v6266_v24 = vld [vmem:[#allocation2 + $0x5b0] sm:$0xff]  ;;  %v7755_v58 = vld [vmem:[%s6913_s1 + $0xcf] sm:$0xff] }
 0x242   : > { %2736 = vmatprep.mubr.f32.mxu1 %v8838_v10  ;;  %v7748_v41 = vld [vmem:[%s6913_s1 + $0xc7] sm:$0xff]  ;;  %v6268_v2 = vld [vmem:[#allocation2 + $0x640] sm:$0xff] }
 0x243   : > { %2241 = vmatmul.mubr.f32.gmra.mrb[26].mxu0 %v7478_v13  ;;  %v6264_v13 = vld [vmem:[#allocation2 + $0x520] sm:$0xff]  ;;  %v1027_v45 = vld [vmem:[%s6913_s1 + $0xe1] sm:$0xff] }
 0x244   : > { %2246 = vmatprep.mubr.f32.mxu0 %v6263_v12  ;;  %5461 = vmatpush1.bf16.msra.mxu0 %v5460_v7  ;;  %v1022_v7 = vld [vmem:[%s6913_s1 + $0xb9] sm:$0xff] }
 0x245   : > { %5463 = vmatprep.subr.bf16.mxu0 %v5462_v23  ;;  %2737 = vmatmul.mubr.f32.gmra.mrb[22].mxu1 %v1021_v51  ;;  %v6265_v23 = vld [vmem:[#allocation2 + $0x568] sm:$0xff]  ;;  %v6270_v51 = vld [vmem:[#allocation2 + $0x6d0] sm:$0xff] }
 0x246   : > { %2742 = vmatprep.mubr.f32.mxu1 %v8838_v10  ;;  %v7761_v12 = vld [vmem:[%s6913_s1 + $0xd7] sm:$0xff] }
 0x247   : > { %2247 = vmatmul.mubr.f32.gmra.mrb[28].mxu0 %v7484_v19  ;;  %v7741_v19 = vld [vmem:[%s6913_s1 + $0xbf] sm:$0xff] }
 0x248   : > { %2252 = vmatprep.mubr.f32.mxu0 %v6264_v13  ;;  %5465 = vmatpush1.bf16.msra.mxu0 %v5464_v14  ;;  %v6269_v14 = vld [vmem:[#allocation2 + $0x688] sm:$0xff]  ;;  %v7777_v13 = vld [vmem:[%s6913_s1 + $0xe7] sm:$0xff] }
 0x249   : > { %5467 = vmatprep.subr.bf16.mxu0 %v5466_v54  ;;  %2743 = vmatmul.mubr.f32.gmra.mrb[24].mxu1 %v1022_v7 }
 0x24a   : > { %2748 = vmatprep.mubr.f32.mxu1 %v8838_v10 }
 0x24b   : > { %2253 = vmatmul.mubr.f32.gmra.mrb[30].mxu0 %v7490_v25  ;;  %v1024_v25 = vld [vmem:[%s6913_s1 + $0xc9] sm:$0xff] }
 0x24c   : > { %2258 = vmatprep.mubr.f32.mxu0 %v6265_v23  ;;  %5469 = vmatpush1.bf16.msra.mxu0 %v5468_v59  ;;  %v1028_v59 = vld [vmem:[%s6913_s1 + $0xe9] sm:$0xff] }
 0x24d   : > { %5471 = vmatprep.subr.bf16.mxu0 %v7574_v26  ;;  %2749 = vmatmul.mubr.f32.gmra.mrb[26].mxu1 %v1023_v31  ;;  %v6267_v26 = vld [vmem:[#allocation2 + $0x5f8] sm:$0xff] }
 0x24e   : > { %2754 = vmatprep.mubr.f32.mxu1 %v8838_v10  ;;  %v6271_v23 = vld [vmem:[#allocation2 + $0x718] sm:$0xff] }
 0x24f   : > { %2259 = vmatmul.mubr.f32.gmra.mrb[32].mxu0 %v7496_v30  ;;  %v1025_v30 = vld [vmem:[%s6913_s1 + $0xd1] sm:$0xff] }
 0x250   : > { %2264 = vmatprep.mubr.f32.mxu0 %v6266_v24  ;;  %v7786_v31 = vld [vmem:[%s6913_s1 + $0xef] sm:$0xff] }
 0x251   : > { %2755 = vmatmul.mubr.f32.gmra.mrb[28].mxu1 %v1024_v25  ;;  %v6272_v25 = vld [vmem:[#allocation2 + $0x760] sm:$0xff] }
 0x252   : > { %2760 = vmatprep.mubr.f32.mxu1 %v8838_v10 }
 0x253   : > { %2265 = vmatmul.mubr.f32.gmra.mrb[34].mxu0 %v7502_v32  ;;  %v1026_v32 = vld [vmem:[%s6913_s1 + $0xd9] sm:$0xff] }
 0x254   : > { %2270 = vmatprep.mubr.f32.mxu0 %v6267_v26  ;;  %v7793_v26 = vld [vmem:[%s6913_s1 + $0xf7] sm:$0xff] }
 0x255   : > { %2761 = vmatmul.mubr.f32.gmra.mrb[30].mxu1 %v1025_v30 }
 0x256   : > { %2766 = vmatprep.mubr.f32.mxu1 %v8838_v10 }
 0x257   : > { %2271 = vmatmul.mubr.f32.gmra.mrb[36].mxu0 %v7508_v55  ;;  %v7769_v55 = vld [vmem:[%s6913_s1 + $0xdf] sm:$0xff] }
 0x258   : > { %2276 = vmatprep.mubr.f32.mxu0 %v6268_v2 }
 0x259   : > { %2767 = vmatmul.mubr.f32.gmra.mrb[32].mxu1 %v1026_v32  ;;  %v6597_v32 = vmov 0  }
 0x25a   : > { %2772 = vmatprep.mubr.f32.mxu1 %v8838_v10  ;;  %6248 = vset.pattern.permute.xlu1 %v6597_v32 }
 0x25b   : > { %2277 = vmatmul.mubr.f32.gmra.mrb[38].mxu0 %v7514_v17  ;;  %6247 = vset.pattern.permute.xlu0 %v6597_v32  ;;  %v1032_v32 = vld [vmem:[%s6913_s1 + $0x109] sm:$0xff] }
 0x25c   : > { %2282 = vmatprep.mubr.f32.mxu0 %v6269_v14  ;;  %v2918_v14 = vld [vmem:[%s7802_s28 + $0x10] sm:$0xff] }
 0x25d   : > { %2773 = vmatmul.mubr.f32.gmra.mrb[34].mxu1 %v1027_v45  ;;  %v7807_v45 = vld [vmem:[%s6913_s1 + $0xff] sm:$0xff]  ;;  %2958 = vperm.xlu1 %6248, %v2918_v14   ;;  %v6275_v14 = vld [vmem:[#allocation2 + $0x838] sm:$0xff] }
 0x25e   : > { %v7765_v54 = vpop.f32.mrb[54].mxu0  ;;  %2778 = vmatprep.mubr.f32.mxu1 %v8838_v10 }
 0x25f   : > { %v1850_v29 = vpop.f32.mrb[55].mxu0  ;;  %2283 = vmatmul.mubr.f32.gmra.mrb[40].mxu0 %v7520_v38 }
 0x260   : > { %2288 = vmatprep.mubr.f32.mxu0 %v6270_v51 }
 0x261   : > { %2779 = vmatmul.mubr.f32.gmra.mrb[36].mxu1 %v1028_v59  ;;  %v2919_v59 = vld [vmem:[%s7802_s28 + $0x18] sm:$0xff] }
 0x262   : > { %v7773_v17 = vpop.f32.mrb[56].mxu0  ;;  %2784 = vmatprep.mubr.f32.mxu1 %v8838_v10  ;;  %2963 = vperm.xlu1 %6248, %v2919_v59   ;;  %v7844_v59 = vld [vmem:[%s6913_s1 + $0x118] sm:$0xff] }
 0x263   : > { %v1855_v7 = vpop.f32.mrb[57].mxu0  ;;  %2289 = vmatmul.mubr.f32.gmra.mrb[42].mxu0 %v7526_v21 }
 0x264   : > { %2294 = vmatprep.mubr.f32.mxu0 %v6271_v23  ;;  %v2917_v7 = vld [vmem:[%s7802_s28 + $0x8] sm:$0xff]  ;;  %v7818_v23 = vld [vmem:[%s6913_s1 + $0x108] sm:$0xff] }
 0x265   : > { %2785 = vmatmul.mubr.f32.gmra.mrb[38].mxu1 %v7566_v6 }
 0x266   : > { %v7782_v38 = vpop.f32.mrb[58].mxu0  ;;  %2790 = vmatprep.mubr.f32.mxu1 %v8838_v10 }
 0x267   : > { %v1860_v24 = vpop.f32.mrb[59].mxu0  ;;  %2295 = vmatmul.mubr.f32.gmra.mrb[44].mxu0 %v7532_v48  ;;  %v6273_v48 = vld [vmem:[#allocation2 + $0x7a8] sm:$0xff] }
 0x268   : > { %2300 = vmatprep.mubr.f32.mxu0 %v6272_v25  ;;  %v6274_v24 = vld [vmem:[#allocation2 + $0x7f0] sm:$0xff] }
 0x269   : > { %2791 = vmatmul.mubr.f32.gmra.mrb[40].mxu1 %v7580_v5  ;;  %v7821_v25 = vld [vmem:[%s6913_s1 + $0x107] sm:$0xff] }
 0x26a   : > { %v1928_v21 = vpop.f32.mrb[60].mxu0  ;;  %2796 = vmatprep.mubr.f32.mxu1 %v8838_v10 }
 0x26b   : > { %v7796_v30 = vadd.f32 %v1928_v21, %v7549_v33  ;;  %v1930_v2 = vpop.f32.mrb[61].mxu0  ;;  %2301 = vmatmul.mubr.f32.gmra.mrb[46].mxu0 %v7538_v27  ;;  %v2916_v33 = vld [vmem:[%s7802_s28] sm:$0xff] }
 0x26c   : > { %2306 = vmatprep.mubr.f32.mxu0 %v6273_v48  ;;  %2948 = vperm.xlu0 %6247, %v2916_v33   ;;  %v2921_v2 = vld [vmem:[%s7802_s28 + $0x28] sm:$0xff]  ;;  %v2920_v48 = vld [vmem:[%s7802_s28 + $0x20] sm:$0xff] }
 0x26d   : > { %2797 = vmatmul.mubr.f32.gmra.mrb[42].mxu1 %v7597_v57  ;;  %v7833_v33 = vld [vmem:[%s6913_s1 + $0x110] sm:$0xff]  ;;  %2973 = vperm.xlu1 %6248, %v2921_v2   ;;  %v7866_v2 = vld [vmem:[%s6913_s1 + $0x41] sm:$0xff] }
 0x26e   : > { %v1933_v27 = vpop.f32.mrb[62].mxu0  ;;  %2802 = vmatprep.mubr.f32.mxu1 %v8838_v10 }
 0x26f   : > { %v7811_v29 = vadd.f32 %v1933_v27, %v7561_v62  ;;  %v1935_v51 = vpop.f32.mrb[63].mxu0  ;;  %2307 = vmatmul.mubr.f32.gmra.mrb[48].mxu0 %v7544_v42  ;;  %v7836_v27 = vld [vmem:[%s6913_s1 + $0x10f] sm:$0xff] }
 0x270   : > { %2312 = vmatprep.mubr.f32.mxu0 %v6274_v24  ;;  %2953 = vperm.xlu0 %6247, %v2917_v7   ;;  %v1033_v51 = vld [vmem:[%s6913_s1 + $0x111] sm:$0xff] }
 0x271   : > { %2803 = vmatmul.mubr.f32.gmra.mrb[44].mxu1 %v1032_v32  ;;  %v7848_v7 = vld [vmem:[%s6913_s1 + $0x117] sm:$0xff] }
 0x272   : > { %v1938_v62 = vpop.f32.mrb[64].mxu0  ;;  %2807 = vmatprep.mubr.f32.mxu1 %v8838_v10  ;;  %v6278_v32 = vld [vmem:[#allocation2 + $0x188] sm:$0xff] }
 0x273   : > { %v7825_v42 = vadd.f32 %v1938_v62, %v7572_v8  ;;  %v1940_v21 = vpop.f32.mrb[65].mxu0  ;;  %2313 = vmatmul.mubr.f32.gmra.mrb[50].mxu0 %v7552_v61  ;;  %v1034_v8 = vld [vmem:[%s6913_s1 + $0x119] sm:$0x7f]  ;;  %v2922_v61 = vld [vmem:[%s7802_s28 + $0x30] sm:$0xff]  ;;  %v7855_v62 = vld [vmem:[%s6913_s1 + $0x31] sm:$0xff] }
 0x274   : > { %2318 = vmatprep.mubr.f32.mxu0 %v6275_v14  ;;  %1064 = vst [vmem:[#allocation2 + $0x868] sm:$0x7f] %v1034_v8  ;;  %2968 = vperm.xlu0 %6247, %v2920_v48   ;;  %v7861_v21 = vld [vmem:[%s6913_s1 + $0x39] sm:$0xff]  ;;  %v7872_v48 = vld [vmem:[%s6913_s1 + $0x49] sm:$0xff] }
 0x275   : > { %2808 = vmatmul.mubr.f32.gmra.mrb[46].mxu1 %v1033_v51  ;;  %v2929_v14 = vld [vmem:[%s7802_s28 + $0x68] sm:$0xff]  ;;  %v2931_v8 = vld [vmem:[%s7802_s28 + $0x78] sm:$0xff]  ;;  %v2932_v51 = vld [vmem:[%s7802_s28 + $0x80] sm:$0xff] }
 0x276   : > { %2812 = vmatprep.mubr.f32.mxu1 %v8838_v10 }
 0x277   : > { %2319 = vmatmul.mubr.f32.gmra.mrb[52].mxu0 %v7558_v52  ;;  %v2923_v52 = vld [vmem:[%s7802_s28 + $0x38] sm:$0xff] }
 0x278   : > { %2324 = vmatprep.mubr.f32.mxu0 %v7566_v6  ;;  %2978 = vperm.xlu0 %6247, %v2922_v61   ;;  %v2924_v6 = vld [vmem:[%s7802_s28 + $0x40] sm:$0xff]  ;;  %v8841_v61 = vld [vmem:[#allocation34_spill] sm:$0xff] }
 0x279   : > { %2983 = vperm.xlu1 %6248, %v2923_v52   ;;  %v8842_v52 = vld [vmem:[#allocation35_spill] sm:$0xff] }
 0x27b   : > { %2325 = vmatmul.mubr.f32.gmra.mrb[78].mxu0 %v7569_v56  ;;  %v1334_v24 = vld [vmem:[#allocation2 + $0x868] sm:$0xff] }
 0x27c   : > { %2329 = vmatprep.mubr.f32.mxu0 %v7580_v5  ;;  %2813 = vmatmul.mubr.f32.gmra.mrb[48].mxu1 %v1334_v24  ;;  %v2925_v56 = vld [vmem:[%s7802_s28 + $0x48] sm:$0xff]  ;;  %v6276_v5 = vld [vmem:[#allocation2 + $0xf8] sm:$0xff] }
 0x27d   : > { %2988 = vperm.xlu0 %6247, %v2924_v6   ;;  %2993 = vperm.xlu1 %6248, %v2925_v56   ;;  %v8843_v24 = vld [vmem:[#allocation36_spill] sm:$0xff]  ;;  %v2934_v6 = vld [vmem:[%s7802_s28 + $0x90] sm:$0xff]  ;;  %v2935_v56 = vld [vmem:[%s7802_s28 + $0x98] sm:$0xff] }
 0x27f   : > { %2330 = vmatmul.mubr.f32.gmra.mrb[80].mxu0 %v7585_v46  ;;  %v2926_v46 = vld [vmem:[%s7802_s28 + $0x50] sm:$0xff] }
 0x280   : > { %2334 = vmatprep.mubr.f32.mxu0 %v7597_v57  ;;  %v6277_v57 = vld [vmem:[#allocation2 + $0x140] sm:$0xff] }
 0x281   : > { %2998 = vperm.xlu0 %6247, %v2926_v46   ;;  %v8844_v46 = vld [vmem:[#allocation24_spill] sm:$0xff] }
 0x283   : > { %2335 = vmatmul.mubr.f32.gmra.mrb[82].mxu0 %v7600_v4  ;;  %v2927_v4 = vld [vmem:[%s7802_s28 + $0x58] sm:$0xff] }
 0x284   : > { %2404 = vmatprep.mubr.f32.mxu0 %v6276_v5  ;;  %3003 = vperm.xlu1 %6248, %v2927_v4   ;;  %v6282_v5 = vld [vmem:[#allocation2 + $0x2a8] sm:$0xff] }
 0x285   : > { %v2937_v4 = vld [vmem:[%s7802_s28 + $0xa8] sm:$0xff] }
 0x287   : > { %2405 = vmatmul.mubr.f32.vlgmr.msra.gmra.mrb[84].mxu0 %v7612_v34  ;;  %v7879_v34 = vld [vmem:[%s6913_s1 + $0x51] sm:$0xff]  ;;  %s8871_s1 = sld [smem:[#allocation41_spill]] }
 0x288   : > { %5473 = vmatpush1.bf16.msra.mxu0 %v7577_v28  ;;  %2409 = vmatprep.mubr.f32.mxu0 %v6277_v57  ;;  %v2928_v28 = vld [vmem:[%s7802_s28 + $0x60] sm:$0xff] }
 0x289   : > { %5475 = vmatprep.subr.bf16.mxu0 %v7589_v49  ;;  %v6279_v49 = vld [vmem:[#allocation2 + $0x1d0] sm:$0xff]  ;;  %3008 = vperm.xlu0 %6247, %v2928_v28   ;;  %v2936_v57 = vld [vmem:[%s7802_s28 + $0xa0] sm:$0xff]  ;;  %v2939_v28 = vld [vmem:[%s7802_s28 + $0xb8] sm:$0xff] }
 0x28a   : > { %3013 = vperm.xlu1 %6248, %v2929_v14   ;;  %v6284_v14 = vld [vmem:[#allocation2 + $0x338] sm:$0xff] }
 0x28b   : > { %2410 = vmatmul.mubr.f32.gmra.mrb[86].mxu0 %v7623_v35  ;;  %v8839_v35 = vld [vmem:[#allocation22_spill] sm:$0xff] }
 0x28c   : > { %2414 = vmatprep.mubr.f32.mxu0 %v6278_v32  ;;  %5477 = vmatpush1.bf16.msra.mxu0 %v7591_v44  ;;  %v2930_v44 = vld [vmem:[%s7802_s28 + $0x70] sm:$0xff] }
 0x28d   : > { %5479 = vmatprep.subr.bf16.mxu0 %v7604_v9  ;;  %v6280_v9 = vld [vmem:[#allocation2 + $0x218] sm:$0xff]  ;;  %3018 = vperm.xlu0 %6247, %v2930_v44   ;;  %v6283_v32 = vld [vmem:[#allocation2 + $0x2f0] sm:$0xff]  ;;  %v2941_v44 = vld [vmem:[%s7802_s28 + $0xc8] sm:$0xff]  ;;  %s8658_s2 = scalar_lea.hbm %s8871_s1, %s5103_s19 }
 0x28e   : > { %3023 = vperm.xlu1 %6248, %v2931_v8   ;;  %v6288_v8 = vld [vmem:[#allocation2 + $0x458] sm:$0xff] }
 0x28f   : > { %2415 = vmatmul.mubr.f32.gmra.mrb[88].mxu0 %v7633_v15  ;;  %v8840_v15 = vld [vmem:[#allocation32_spill] sm:$0xff] }
 0x290   : > { %2419 = vmatprep.mubr.f32.mxu0 %v6279_v49  ;;  %5481 = vmatpush1.bf16.msra.mxu0 %v7607_v36  ;;  %v2933_v36 = vld [vmem:[%s7802_s28 + $0x88] sm:$0xff]  ;;  %v8846_v49 = vld [vmem:[#allocation23_spill] sm:$0xff] }
 0x291   : > { %5483 = vmatprep.subr.bf16.mxu0 %v7615_v43  ;;  %v6281_v43 = vld [vmem:[#allocation2 + $0x260] sm:$0xff]  ;;  %3028 = vperm.xlu0 %6247, %v2932_v51  }
 0x292   : > { %3033 = vperm.xlu1 %6248, %v2933_v36   ;;  %v6297_v36 = vld [vmem:[#allocation2 + $0x6e0] sm:$0xff] }
 0x293   : > { %2420 = vmatmul.mubr.f32.gmra.mrb[6].mxu0 %v8839_v35  ;;  %v6286_v35 = vld [vmem:[#allocation2 + $0x3c8] sm:$0xff] }
 0x294   : > { %2425 = vmatprep.mubr.f32.mxu0 %v6280_v9  ;;  %5485 = vmatpush1.bf16.msra.mxu0 %v8840_v15  ;;  %v6290_v9 = vld [vmem:[#allocation2 + $0x4e8] sm:$0xff]  ;;  %v2944_v15 = vld [vmem:[%s7802_s28 + $0xe0] sm:$0xff] }
 0x295   : > { %5487 = vmatprep.subr.bf16.mxu0 %v8841_v61  ;;  %3038 = vperm.xlu0 %6247, %v2934_v6   ;;  %v2945_v61 = vld [vmem:[%s7802_s28 + $0xe8] sm:$0xff] }
 0x296   : > { %3043 = vperm.xlu1 %6248, %v2935_v56  }
 0x297   : > { %2426 = vmatmul.mubr.f32.gmra.mrb[8].mxu0 %v7653_v22  ;;  %v8845_v22 = vld [vmem:[#allocation26_spill] sm:$0xff] }
 0x298   : > { %2431 = vmatprep.mubr.f32.mxu0 %v6281_v43  ;;  %5489 = vmatpush1.bf16.msra.mxu0 %v8842_v52 }
 0x299   : > { %5491 = vmatprep.subr.bf16.mxu0 %v8843_v24  ;;  %3048 = vperm.xlu0 %6247, %v2936_v57   ;;  %v6301_v57 = vld [vmem:[#allocation2 + $0x800] sm:$0xff] }
 0x29a   : > { %3053 = vperm.xlu1 %6248, %v2937_v4  }
 0x29b   : > { %2432 = vmatmul.mubr.f32.gmra.mrb[10].mxu0 %v7663_v40  ;;  %v2938_v40 = vld [vmem:[%s7802_s28 + $0xb0] sm:$0xff] }
 0x29c   : > { %2437 = vmatprep.mubr.f32.mxu0 %v6282_v5  ;;  %5493 = vmatpush1.bf16.msra.mxu0 %v8844_v46  ;;  %v6300_v46 = vld [vmem:[#allocation2 + $0x7b8] sm:$0xff] }
 0x29d   : > { %5495 = vmatprep.subr.bf16.mxu0 %v8845_v22  ;;  %3058 = vperm.xlu0 %6247, %v2938_v40   ;;  %v3769_v40 = vld [vmem:[#allocation10] sm:$0xff] }
 0x29e   : > { %3063 = vperm.xlu1 %6248, %v2939_v28   ;;  %v3770_v28 = vld [vmem:[#allocation10 + $0x8] sm:$0xff] }
 0x29f   : > { %2438 = vmatmul.mubr.f32.gmra.mrb[12].mxu0 %v7669_v20  ;;  %v2940_v20 = vld [vmem:[%s7802_s28 + $0xc0] sm:$0xff] }
 0x2a0   : > { %2443 = vmatprep.mubr.f32.mxu0 %v6283_v32  ;;  %5497 = vmatpush1.bf16.msra.mxu0 %v7648_v0  ;;  %v6285_v0 = vld [vmem:[#allocation2 + $0x380] sm:$0xff]  ;;  %v6302_v32 = vld [vmem:[#allocation2 + $0x848] sm:$0xff] }
 0x2a1   : > { %5499 = vmatprep.subr.bf16.mxu0 %v7656_v39  ;;  %3068 = vperm.xlu0 %6247, %v2940_v20   ;;  %v2942_v39 = vld [vmem:[%s7802_s28 + $0xd0] sm:$0xff] }
 0x2a2   : > { %3073 = vperm.xlu1 %6248, %v2941_v44   ;;  %v3771_v44 = vld [vmem:[#allocation10 + $0x10] sm:$0xff] }
 0x2a3   : > { %2444 = vmatmul.mubr.f32.gmra.mrb[14].mxu0 %v7675_v1  ;;  %v6287_v1 = vld [vmem:[#allocation2 + $0x410] sm:$0xff] }
 0x2a4   : > { %2449 = vmatprep.mubr.f32.mxu0 %v6284_v14  ;;  %5501 = vmatpush1.bf16.msra.mxu0 %v8846_v49  ;;  %v8750_v14 = vmov 0.0|0.0  }
 0x2a5   : > { %3078 = vperm.xlu0 %6247, %v2942_v39   ;;  %5502 = vmatprep.subr.bf16.mxu1 %v8750_v14 }
 0x2a7   : > { %2450 = vmatmul.mubr.f32.gmra.mrb[16].mxu0 %v7681_v37  ;;  %v6289_v37 = vld [vmem:[#allocation2 + $0x4a0] sm:$0xff] }
 0x2a8   : > { %2455 = vmatprep.mubr.f32.mxu0 %v6285_v0  ;;  %v3772_v0 = vld [vmem:[#allocation10 + $0x18] sm:$0xff] }
 0x2a9   : > { %3088 = vperm.xlu0 %6247, %v2944_v15   ;;  %v5506_v39 = vpack.c.bf16 %v3772_v0, %v3771_v44 }
 0x2ab   : > { %2456 = vmatmul.mubr.f32.gmra.mrb[18].mxu0 %v7687_v53  ;;  %v6291_v53 = vld [vmem:[#allocation2 + $0x530] sm:$0xff] }
 0x2ac   : > { %2461 = vmatprep.mubr.f32.mxu0 %v6286_v35 }
 0x2af   : > { %2462 = vmatmul.mubr.f32.gmra.mrb[20].mxu0 %v7693_v18  ;;  %v6292_v18 = vld [vmem:[#allocation2 + $0x578] sm:$0xff] }
 0x2b0   : > { %2467 = vmatprep.mubr.f32.mxu0 %v6287_v1 }
 0x2b3   : > { %2468 = vmatmul.mubr.f32.gmra.mrb[22].mxu0 %v7699_v47  ;;  %v6293_v47 = vld [vmem:[#allocation2 + $0x5c0] sm:$0xff] }
 0x2b4   : > { %2473 = vmatprep.mubr.f32.mxu0 %v6288_v8 }
 0x2b7   : > { %2474 = vmatmul.mubr.f32.gmra.mrb[24].mxu0 %v7705_v11  ;;  %v6294_v11 = vld [vmem:[#allocation2 + $0x608] sm:$0xff] }
 0x2b8   : > { %2479 = vmatprep.mubr.f32.mxu0 %v6289_v37  ;;  %v3774_v37 = vld [vmem:[#allocation10 + $0x28] sm:$0xff] }
 0x2bb   : > { %2480 = vmatmul.mubr.f32.gmra.mrb[26].mxu0 %v7711_v50  ;;  %v2943_v50 = vld [vmem:[%s7802_s28 + $0xd8] sm:$0xff]  ;;  %s6478_s28 = sshll.u32 %s6599_s11, 4  ;;  %s6479_s28 = int_to_ptr.vmem [resolvable:$false] %s6478_s28 }
 0x2bc   : > { %2485 = vmatprep.mubr.f32.mxu0 %v6290_v9  ;;  %3083 = vperm.xlu1 %6248, %v2943_v50   ;;  %s6480_s16 = scalar_lea.vmem %s6479_s28, 6144  ;;  %p6481_p2 = scmp.lt.s32.totalorder %s8653_s13, %s6479_s28 }
 0x2bd   : > { %p6482_p4 = scmp.lt.s32.totalorder %s6480_s16, %s6474_s10 }
 0x2bf   : > { %2486 = vmatmul.mubr.f32.gmra.mrb[28].mxu0 %v7717_v16  ;;  %v6295_v16 = vld [vmem:[#allocation2 + $0x650] sm:$0xff]  ;;  %p6483_p6 = por %p6482_p4, %p6481_p2 }
 0x2c0   : > { %2491 = vmatprep.mubr.f32.mxu0 %v6291_v53  ;;  %3093 = vperm.xlu1 %6248, %v2945_v61   ;;  %v3778_v61 = vld [vmem:[#allocation10 + $0x48] sm:$0xff] }
 0x2c1   : > { %p6484_p3 = pnand %p6483_p6, %p6477_p0 }
 0x2c3   : > { %2492 = vmatmul.mubr.f32.gmra.mrb[30].mxu0 %v7723_v60  ;;  %v6296_v60 = vld [vmem:[#allocation2 + $0x698] sm:$0xff] }
 0x2c4   : > { %2497 = vmatprep.mubr.f32.mxu0 %v6292_v18 }
 0x2c7   : > { %2498 = vmatmul.mubr.f32.gmra.mrb[32].mxu0 %v7729_v63 }
 0x2c8   : > { %2503 = vmatprep.mubr.f32.mxu0 %v6293_v47  ;;  %v3776_v47 = vld [vmem:[#allocation10 + $0x38] sm:$0xff] }
 0x2cb   : > { %2504 = vmatmul.mubr.f32.gmra.mrb[34].mxu0 %v7735_v3 }
 0x2cc   : > { %2509 = vmatprep.mubr.f32.mxu0 %v6294_v11 }
 0x2cf   : > { %2510 = vmatmul.mubr.f32.gmra.mrb[36].mxu0 %v7741_v19 }
 0x2d0   : > { %2515 = vmatprep.mubr.f32.mxu0 %v6295_v16 }
 0x2d3   : > { %2516 = vmatmul.mubr.f32.gmra.mrb[38].mxu0 %v7748_v41  ;;  %v6298_v41 = vld [vmem:[#allocation2 + $0x728] sm:$0xff] }
 0x2d4   : > { %2521 = vmatprep.mubr.f32.mxu0 %v6296_v60 }
 0x2d6   : > { %v2087_v63 = vpop.f32.mrb[66].mxu0 }
 0x2d7   : > { %v7930_v51 = vadd.f32 %v2087_v63, %v7765_v54  ;;  %v2089_v3 = vpop.f32.mrb[67].mxu0  ;;  %2522 = vmatmul.mubr.f32.gmra.mrb[40].mxu0 %v7755_v58  ;;  %v6299_v58 = vld [vmem:[#allocation2 + $0x770] sm:$0xff] }
 0x2d8   : > { %2527 = vmatprep.mubr.f32.mxu0 %v6297_v36  ;;  %v3777_v63 = vld [vmem:[#allocation10 + $0x40] sm:$0xff] }
 0x2d9   : > { %v5515_v3 = vpack.c.bf16 %v3778_v61, %v3777_v63  ;;  %v3787_v63 = vld [vmem:[#allocation10 + $0x90] sm:$0xff]  ;;  %v3788_v61 = vld [vmem:[#allocation10 + $0x98] sm:$0xff] }
 0x2da   : > { %v2092_v19 = vpop.f32.mrb[68].mxu0 }
 0x2db   : > { %v7934_v43 = vadd.f32 %v2092_v19, %v7773_v17  ;;  %v2094_v52 = vpop.f32.mrb[69].mxu0  ;;  %2528 = vmatmul.mubr.f32.gmra.mrb[42].mxu0 %v7761_v12 }
 0x2dc   : > { %2533 = vmatprep.mubr.f32.mxu0 %v6298_v41  ;;  %v3779_v52 = vld [vmem:[#allocation10 + $0x50] sm:$0xff]  ;;  %v3780_v41 = vld [vmem:[#allocation10 + $0x58] sm:$0xff] }
 0x2de   : > { %v2097_v24 = vpop.f32.mrb[70].mxu0 }
 0x2df   : > { %v7938_v6 = vadd.f32 %v2097_v24, %v7782_v38  ;;  %v2099_v54 = vpop.f32.mrb[71].mxu0  ;;  %2534 = vmatmul.mubr.f32.gmra.mrb[44].mxu0 %v7769_v55  ;;  %v5518_v24 = vpack.c.bf16 %v3780_v41, %v3779_v52 }
 0x2e0   : > { %2539 = vmatprep.mubr.f32.mxu0 %v6299_v58 }
 0x2e2   : > { %v2167_v56 = vpop.f32.mrb[72].mxu0 }
 0x2e3   : > { %v7942_v5 = vadd.f32 %v2167_v56, %v7796_v30  ;;  %v2169_v17 = vpop.f32.mrb[73].mxu0  ;;  %2540 = vmatmul.mubr.f32.gmra.mrb[46].mxu0 %v7777_v13 }
 0x2e4   : > { %2545 = vmatprep.mubr.f32.mxu0 %v6300_v46  ;;  %v3781_v46 = vld [vmem:[#allocation10 + $0x60] sm:$0xff] }
 0x2e6   : > { %v2172_v12 = vpop.f32.mrb[74].mxu0 }
 0x2e7   : > { %v7946_v22 = vadd.f32 %v2172_v12, %v7811_v29  ;;  %v2174_v38 = vpop.f32.mrb[75].mxu0  ;;  %2546 = vmatmul.mubr.f32.gmra.mrb[48].mxu0 %v7786_v31  ;;  %v3782_v12 = vld [vmem:[#allocation10 + $0x68] sm:$0xff] }
 0x2e8   : > { %2551 = vmatprep.mubr.f32.mxu0 %v6301_v57  ;;  %v5521_v38 = vpack.c.bf16 %v3782_v12, %v3781_v46  ;;  %v3790_v46 = vld [vmem:[#allocation10 + $0xa8] sm:$0xff] }
 0x2ea   : > { %v2177_v55 = vpop.f32.mrb[76].mxu0 }
 0x2eb   : > { %v7950_v4 = vadd.f32 %v2177_v55, %v7825_v42  ;;  %v2179_v30 = vpop.f32.mrb[77].mxu0  ;;  %2552 = vmatmul.mubr.f32.gmra.mrb[50].mxu0 %v7793_v26 }
 0x2ec   : > { %2557 = vmatprep.mubr.f32.mxu0 %v6302_v32  ;;  %v7955_v13 = vpop.f32.mrb[0].mxu1  ;;  %v3783_v30 = vld [vmem:[#allocation10 + $0x70] sm:$0xff]  ;;  %v3784_v32 = vld [vmem:[#allocation10 + $0x78] sm:$0xff] }
 0x2ed   : > { %v7957_v29 = vpop.f32.mrb[1].mxu1 }
 0x2ef   : > { %2558 = vmatmul.mubr.f32.gmra.mrb[52].mxu0 %v7807_v45 }
 0x2f0   : > { %2563 = vmatprep.mubr.f32.mxu0 %v7818_v23  ;;  %v7961_v31 = vpop.f32.mrb[2].mxu1 }
 0x2f1   : > { %v7963_v42 = vpop.f32.mrb[3].mxu1 }
 0x2f3   : > { %2564 = vmatmul.mubr.f32.gmra.mrb[90].mxu0 %v7821_v25 }
 0x2f4   : > { %2568 = vmatprep.mubr.f32.mxu0 %v7833_v33  ;;  %v7967_v26 = vpop.f32.mrb[4].mxu1 }
 0x2f5   : > { %v7969_v45 = vpop.f32.mrb[5].mxu1 }
 0x2f7   : > { %2569 = vmatmul.mubr.f32.gmra.mrb[92].mxu0 %v7836_v27 }
 0x2f8   : > { %2573 = vmatprep.mubr.f32.mxu0 %v7844_v59  ;;  %v7973_v23 = vpop.f32.mrb[6].mxu1 }
 0x2f9   : > { %v7975_v25 = vpop.f32.mrb[7].mxu1 }
 0x2fb   : > { %2574 = vmatmul.mubr.f32.gmra.mrb[94].mxu0 %v7848_v7 }
 0x2fc   : > { %2643 = vmatprep.mubr.f32.mxu0 %v8838_v10  ;;  %v7979_v33 = vpop.f32.mrb[8].mxu1 }
 0x2fd   : > { %v7981_v27 = vpop.f32.mrb[9].mxu1 }
 0x2ff   : > { %2644 = vmatmul.mubr.f32.vlgmr.msra.gmra.mrb[96].mxu0 %v7855_v62  ;;  %v5503_v62 = vpack.c.bf16 %v3770_v28, %v3769_v40  ;;  %v5524_v40 = vpack.c.bf16 %v3784_v32, %v3783_v30 }
 0x300   : > { %2648 = vmatprep.mubr.f32.mxu0 %v8838_v10  ;;  %v7985_v59 = vpop.f32.mrb[10].mxu1 }
 0x301   : > { %v7987_v7 = vpop.f32.mrb[11].mxu1  ;;  %5504 = vmatpush1.bf16.msra.mxu1 %v5503_v62 }
 0x302   : > { %5505 = vmatprep.subr.bf16.mxu1 %v8750_v14 }
 0x303   : > { %2649 = vmatmul.mubr.f32.gmra.mrb[98].mxu0 %v7861_v21 }
 0x304   : > { %2653 = vmatprep.mubr.f32.mxu0 %v8838_v10  ;;  %v7992_v49 = vpop.f32.mrb[12].mxu1 }
 0x305   : > { %v7994_v21 = vpop.f32.mrb[13].mxu1  ;;  %5507 = vmatpush1.bf16.msra.mxu1 %v5506_v39  ;;  %v3785_v39 = vld [vmem:[#allocation10 + $0x80] sm:$0xff] }
 0x306   : > { %5508 = vmatprep.subr.bf16.mxu1 %v8750_v14 }
 0x307   : > { %2654 = vmatmul.mubr.f32.gmra.mrb[100].mxu0 %v7866_v2 }
 0x308   : > { %2658 = vmatprep.mubr.f32.mxu0 %v8838_v10  ;;  %v7999_v20 = vpop.f32.mrb[14].mxu1 }
 0x309   : > { %v8001_v2 = vpop.f32.mrb[15].mxu1 }
 0x30b   : > { %2659 = vmatmul.mubr.f32.gmra.mrb[6].mxu0 %v7872_v48 }
 0x30c   : > { %2664 = vmatprep.mubr.f32.mxu0 %v8838_v10  ;;  %v8004_v35 = vpop.f32.mrb[16].mxu1  ;;  %v3773_v10 = vld [vmem:[#allocation10 + $0x20] sm:$0xff] }
 0x30d   : > { %v8006_v1 = vpop.f32.mrb[17].mxu1  ;;  %v5509_v9 = vpack.c.bf16 %v3774_v37, %v3773_v10  ;;  %v3786_v10 = vld [vmem:[#allocation10 + $0x88] sm:$0xff] }
 0x30e   : > { %v5527_v37 = vpack.c.bf16 %v3786_v10, %v3785_v39  ;;  %v3791_v10 = vld [vmem:[#allocation10 + $0xb0] sm:$0xff] }
 0x30f   : > { %2665 = vmatmul.mubr.f32.gmra.mrb[8].mxu0 %v7879_v34  ;;  %5510 = vmatpush1.bf16.msra.mxu1 %v5509_v9  ;;  %v3775_v34 = vld [vmem:[#allocation10 + $0x30] sm:$0xff] }
 0x310   : > { %v8009_v8 = vpop.f32.mrb[18].mxu1  ;;  %5511 = vmatprep.subr.bf16.mxu1 %v8750_v14  ;;  %v5512_v11 = vpack.c.bf16 %v3776_v47, %v3775_v34 }
 0x311   : > { %v8011_v48 = vpop.f32.mrb[19].mxu1 }
 0x313   : > { %5513 = vmatpush1.bf16.msra.mxu1 %v5512_v11 }
 0x314   : > { %v8013_v53 = vpop.f32.mrb[20].mxu1  ;;  %5514 = vmatprep.subr.bf16.mxu1 %v8750_v14 }
 0x315   : > { %v8015_v18 = vpop.f32.mrb[21].mxu1 }
 0x317   : > { %5516 = vmatpush1.bf16.msra.mxu1 %v5515_v3  ;;  %v5530_v3 = vpack.c.bf16 %v3788_v61, %v3787_v63 }
 0x318   : > { %v8018_v50 = vpop.f32.mrb[22].mxu1  ;;  %5517 = vmatprep.subr.bf16.mxu1 %v8750_v14 }
 0x319   : > { %v8020_v16 = vpop.f32.mrb[23].mxu1 }
 0x31b   : > { %5519 = vmatpush1.bf16.msra.mxu1 %v5518_v24  ;;  %v3789_v24 = vld [vmem:[#allocation10 + $0xa0] sm:$0xff] }
 0x31c   : > { %v8023_v15 = vpop.f32.mrb[24].mxu1  ;;  %5520 = vmatprep.subr.bf16.mxu1 %v8750_v14  ;;  %v5533_v12 = vpack.c.bf16 %v3790_v46, %v3789_v24 }
 0x31d   : > { %v8025_v60 = vpop.f32.mrb[25].mxu1 }
 0x31f   : > { %5522 = vmatpush1.bf16.msra.mxu1 %v5521_v38 }
 0x320   : > { %v8027_v36 = vpop.f32.mrb[26].mxu1  ;;  %5523 = vmatprep.subr.bf16.mxu1 %v8750_v14 }
 0x321   : > { %v8029_v19 = vpop.f32.mrb[27].mxu1 }
 0x323   : > { %5525 = vmatpush1.bf16.msra.mxu1 %v5524_v40 }
 0x324   : > { %v8032_v54 = vpop.f32.mrb[28].mxu1  ;;  %5526 = vmatprep.subr.bf16.mxu1 %v8750_v14 }
 0x325   : > { %v8034_v58 = vpop.f32.mrb[29].mxu1 }
 0x327   : > { %5528 = vmatpush1.bf16.msra.mxu1 %v5527_v37  ;;  %v3792_v37 = vld [vmem:[#allocation10 + $0xb8] sm:$0xff] }
 0x328   : > { %v8037_v56 = vpop.f32.mrb[30].mxu1  ;;  %5529 = vmatprep.subr.bf16.mxu1 %v8750_v14 }
 0x329   : > { %v8039_v17 = vpop.f32.mrb[31].mxu1 }
 0x32b   : > { %5531 = vmatpush1.bf16.msra.mxu1 %v5530_v3  ;;  %v5536_v3 = vpack.c.bf16 %v3792_v37, %v3791_v10  ;;  %v3795_v10 = vld [vmem:[#allocation10 + $0xd0] sm:$0xff]  ;;  %v3796_v37 = vld [vmem:[#allocation10 + $0xd8] sm:$0xff] }
 0x32c   : > { %v8041_v57 = vpop.f32.mrb[32].mxu1  ;;  %5532 = vmatprep.subr.bf16.mxu1 %v8750_v14 }
 0x32d   : > { %v8043_v55 = vpop.f32.mrb[33].mxu1 }
 0x32f   : > { %5534 = vmatpush1.bf16.msra.mxu1 %v5533_v12 }
 0x330   : > { %v8046_v28 = vpop.f32.mrb[34].mxu1  ;;  %5535 = vmatprep.subr.bf16.mxu1 %v8750_v14 }
 0x331   : > { %v8048_v62 = vpop.f32.mrb[35].mxu1 }
 0x333   : > { %5537 = vmatpush1.bf16.msra.mxu1 %v5536_v3 }
 0x334   : > { %v8051_v44 = vpop.f32.mrb[36].mxu1  ;;  %5538 = vmatprep.subr.bf16.mxu1 %v8750_v14 }
 0x335   : > { %v8053_v0 = vpop.f32.mrb[37].mxu1 }
 0x338   : > { %v8055_v9 = vpop.f32.mrb[38].mxu1 }
 0x339   : > { %v8057_v34 = vpop.f32.mrb[39].mxu1 }
 0x33c   : > { %v8060_v47 = vpop.f32.mrb[40].mxu1 }
 0x33d   : > { %v8062_v11 = vpop.f32.mrb[41].mxu1 }
 0x340   : > { %v8064_v52 = vpop.f32.mrb[42].mxu1 }
 0x341   : > { %8847 = vst [vmem:[#allocation28_spill] sm:$0xff] %v8064_v52  ;;  %v8066_v41 = vpop.f32.mrb[43].mxu1 }
 0x342   : > { %8848 = vst [vmem:[#allocation25_spill] sm:$0xff] %v8066_v41 }
 0x344   : > { %v8069_v38 = vpop.f32.mrb[44].mxu1 }
 0x345   : > { %8849 = vst [vmem:[#allocation30_spill] sm:$0xff] %v8069_v38  ;;  %v2806_v30 = vpop.f32.mrb[45].mxu1 }
 0x348   : > { %v8072_v32 = vpop.f32.mrb[46].mxu1 }
 0x349   : > { %8850 = vst [vmem:[#allocation27_spill] sm:$0xff] %v8072_v32  ;;  %v2811_v40 = vpop.f32.mrb[47].mxu1  ;;  %v3794_v32 = vld [vmem:[#allocation10 + $0xc8] sm:$0xff] }
 0x34a   : > { %v3793_v40 = vld [vmem:[#allocation10 + $0xc0] sm:$0xff] }
 0x34b   : > { %v5539_v38 = vpack.c.bf16 %v3794_v32, %v3793_v40  ;;  %v3797_v32 = vld [vmem:[#allocation10 + $0xe0] sm:$0xff]  ;;  %v3799_v40 = vld [vmem:[#allocation10 + $0xf0] sm:$0xff] }
 0x34d   : > { %5540 = vmatpush1.bf16.msra.mxu1 %v5539_v38 }
 0x34e   : > { %v2326_v39 = vpop.f32.mrb[78].mxu0  ;;  %5541 = vmatprep.subr.bf16.mxu1 %v8750_v14 }
 0x34f   : > { %v8075_v63 = vadd.f32 %v2326_v39, %v7930_v51  ;;  %v2328_v61 = vpop.f32.mrb[79].mxu0  ;;  %v8077_v41 = vpop.f32.mrb[48].mxu1 }
 0x350   : > { %v2816_v24 = vpop.f32.mrb[49].mxu1  ;;  %v5542_v61 = vpack.c.bf16 %v3796_v37, %v3795_v10 }
 0x352   : > { %v2331_v46 = vpop.f32.mrb[80].mxu0  ;;  %5543 = vmatpush1.bf16.msra.mxu1 %v5542_v61 }
 0x353   : > { %v8081_v12 = vadd.f32 %v2331_v46, %v7934_v43  ;;  %v2333_v30 = vpop.f32.mrb[81].mxu0  ;;  %5544 = vmatprep.subr.bf16.mxu1 %v8750_v14  ;;  %v3798_v46 = vld [vmem:[#allocation10 + $0xe8] sm:$0xff] }
 0x354   : > { %v5545_v38 = vpack.c.bf16 %v3798_v46, %v3797_v32 }
 0x356   : > { %v2336_v52 = vpop.f32.mrb[82].mxu0  ;;  %5546 = vmatpush1.bf16.msra.mxu1 %v5545_v38  ;;  %v8107_v38 = vld [vmem:[#allocation9] ss:$0 sm:$0xff] }
 0x357   : > { %v8084_v51 = vadd.f32 %v2336_v52, %v7938_v6  ;;  %v2338_v39 = vpop.f32.mrb[83].mxu0  ;;  %5547 = vmatprep.subr.bf16.mxu1 %v8750_v14 }
 0x358   : > { %v3800_v39 = vld [vmem:[#allocation10 + $0xf8] sm:$0xff] }
 0x359   : > { %v5548_v10 = vpack.c.bf16 %v3800_v39, %v3799_v40 }
 0x35a   : > { %v2406_v3 = vpop.f32.mrb[84].mxu0 }
 0x35b   : > { %v8088_v24 = vadd.f32 %v2406_v3, %v7942_v5  ;;  %v2408_v43 = vpop.f32.mrb[85].mxu0  ;;  %5549 = vmatpush1.bf16.msra.mxu1 %v5548_v10  ;;  %v8098_v3 = vpop.permute.xlu0 %2948 }
 0x35c   : > { %5550 = vmatprep.subr.bf16.mxu1 %v8750_v14  ;;  %v8101_v43 = vpop.permute.xlu1 %2958 }
 0x35d   : > { %8851 = vst [vmem:[#allocation29_spill] sm:$0xff] %v8101_v43 }
 0x35e   : > { %v2411_v30 = vpop.f32.mrb[86].mxu0 }
 0x35f   : > { %v8092_v6 = vadd.f32 %v2411_v30, %v7946_v22  ;;  %v2413_v52 = vpop.f32.mrb[87].mxu0  ;;  %v8103_v22 = vpop.permute.xlu0 %2953 }
 0x360   : > { %8852 = vst [vmem:[#allocation31_spill] sm:$0xff] %v8103_v22  ;;  %v8105_v32 = vpop.permute.xlu1 %2963 }
 0x361   : > { %8853 = vst [vmem:[#allocation33_spill] sm:$0xff] %v8105_v32 }
 0x362   : > { %v2416_v5 = vpop.f32.mrb[88].mxu0 }
 0x363   : > { %v8096_v37 = vadd.f32 %v2416_v5, %v7950_v4  ;;  %v2418_v61 = vpop.f32.mrb[89].mxu0  ;;  %v8113_v40 = vpop.permute.xlu0 %2968 }
 0x364   : > { %v2974_v5 = vpop.permute.xlu1 %2973 }
 0x36e   : > { %v2433_v46 = vpop.f32.mrb[10].mxu0 }
 0x36f   : > { %v5742_v30 = vadd.f32 %v7955_v13, %v2433_v46  ;;  %v2435_v52 = vpop.f32.mrb[11].mxu0 }
 0x370   : > { %v8111_v4 = vadd.f32 %v7957_v29, %v2435_v52  ;;  %v2979_v29 = vpop.permute.xlu0 %2978 }
 0x371   : > { %v2861_v39 = vadd.f32 %v5742_v30, %v8107_v38 }
 0x372   : > { %8854 = vst [vmem:[#allocation22_spill] sm:$0xff] %v8111_v4  ;;  %v2439_v10 = vpop.f32.mrb[12].mxu0 }
 0x373   : > { %v5744_v61 = vadd.f32 %v7961_v31, %v2439_v10  ;;  %v2441_v14 = vpop.f32.mrb[13].mxu0  ;;  %v2891_v43 = vmax.f32 %v2861_v39, 0.0 }
 0x374   : > { %v8118_v32 = vadd.f32 %v7963_v42, %v2441_v14 }
 0x375   : > { %v2862_v22 = vadd.f32 %v5744_v61, %v8107_v38  ;;  %v8121_v13 = vmul.f32 %v2974_v5, %v2891_v43  ;;  %v2984_v5 = vpop.permute.xlu1 %2983 }
 0x376   : > { %8855 = vst [vmem:[#allocation32_spill] sm:$0xff] %v8118_v32  ;;  %v2445_v46 = vpop.f32.mrb[14].mxu0 }
 0x377   : > { %3251 = vst [vmem:[#allocation3 + $0x170] sm:$0xff] %v8121_v13  ;;  %3406 = vst [vmem:[#allocation3 + $0xb0] sm:$0xff] %v8121_v13  ;;  %v5746_v30 = vadd.f32 %v7967_v26, %v2445_v46  ;;  %v2447_v52 = vpop.f32.mrb[15].mxu0  ;;  %v2892_v4 = vmax.f32 %v2862_v22, 0.0  ;;  %v8752_v39 = vrot.slane %v8121_v13, 7  ;;  %v8753_v43 = vrot.slane %v8121_v13, 1 }
 0x378   : > { %v8127_v31 = vadd.f32 %v7969_v45, %v2447_v52 }
 0x379   : > { %v2863_v42 = vadd.f32 %v5746_v30, %v8107_v38  ;;  %v3102_v14 = vmul.f32 %v2979_v29, %v2892_v4 }
 0x37a   : > { %v2451_v10 = vpop.f32.mrb[16].mxu0 }
 0x37b   : > { %v3162_v61 = vrot.slane %v3102_v14, 7  ;;  %3252 = vst [vmem:[#allocation3 + $0x1b8] sm:$0xff] %v3102_v14  ;;  %v3283_v32 = vrot.slane %v3102_v14, 1  ;;  %3407 = vst [vmem:[#allocation3 + $0xf8] sm:$0xff] %v3102_v14  ;;  %v5748_v26 = vadd.f32 %v7973_v23, %v2451_v10  ;;  %v2453_v22 = vpop.f32.mrb[17].mxu0  ;;  %v2893_v45 = vmax.f32 %v2863_v42, 0.0  ;;  %v2989_v42 = vpop.permute.xlu0 %2988 }
 0x37c   : > { %3497 = vst [vmem:[#allocation3 + $0x38] sm:$0xff] %v3102_v14  ;;  %v8134_v46 = vadd.f32 %v7975_v25, %v2453_v22 }
 0x37d   : > { %v3163_v4 = vsel %vm464_vm0, %v8752_v39, %v3162_v61  ;;  %v3284_v29 = vsel %vm3271_vm1, %v8753_v43, %v3283_v32  ;;  %v2864_v30 = vadd.f32 %v5748_v26, %v8107_v38  ;;  %v3103_v52 = vmul.f32 %v2984_v5, %v2893_v45 }
 0x37e   : > { %3228 = vst [vmem:[#allocation3 + $0x1b0] sm:$0xff] %v3163_v4  ;;  %3350 = vst [vmem:[#allocation3 + $0x178] sm:$0xff] %v3284_v29  ;;  %v2457_v23 = vpop.f32.mrb[18].mxu0 }
 0x37f   : > { %3383 = vst [vmem:[#allocation3 + $0xf0] sm:$0xff] %v3163_v4  ;;  %3440 = vst [vmem:[#allocation3 + $0xb8] sm:$0xff] %v3284_v29  ;;  %v3164_v25 = vrot.slane %v3103_v52, 7  ;;  %v3285_v14 = vrot.slane %v3103_v52, 1  ;;  %v5750_v10 = vadd.f32 %v7979_v33, %v2457_v23  ;;  %v2459_v22 = vpop.f32.mrb[19].mxu0  ;;  %v2894_v39 = vmax.f32 %v2864_v30, 0.0  ;;  %v2994_v33 = vpop.permute.xlu1 %2993 }
 0x380   : > { %3473 = vst [vmem:[#allocation3 + $0x30] sm:$0xff] %v3163_v4  ;;  %3253 = vst [vmem:[#allocation3 + $0x200] sm:$0xff] %v3103_v52  ;;  %v8145_v43 = vadd.f32 %v7981_v27, %v2459_v22 }
 0x381   : > { %3408 = vst [vmem:[#allocation3 + $0x140] sm:$0xff] %v3103_v52  ;;  %3498 = vst [vmem:[#allocation3 + $0x80] sm:$0xff] %v3103_v52  ;;  %v3165_v5 = vsel %vm464_vm0, %v3162_v61, %v3164_v25  ;;  %v3286_v26 = vsel %vm3271_vm1, %v3283_v32, %v3285_v14  ;;  %v2865_v45 = vadd.f32 %v5750_v10, %v8107_v38 }
 0x382   : > { %v3104_v4 = vmul.f32 %v2989_v42, %v2894_v39  ;;  %3229 = vst [vmem:[#allocation3 + $0x1f8] sm:$0xff] %v3165_v5  ;;  %3351 = vst [vmem:[#allocation3 + $0x1c0] sm:$0xff] %v3286_v26  ;;  %v2463_v29 = vpop.f32.mrb[20].mxu0 }
 0x383   : > { %3384 = vst [vmem:[#allocation3 + $0x138] sm:$0xff] %v3165_v5  ;;  %3441 = vst [vmem:[#allocation3 + $0x100] sm:$0xff] %v3286_v26  ;;  %v5752_v27 = vadd.f32 %v7985_v59, %v2463_v29  ;;  %v2465_v61 = vpop.f32.mrb[21].mxu0  ;;  %v2895_v32 = vmax.f32 %v2865_v45, 0.0  ;;  %v2999_v59 = vpop.permute.xlu0 %2998 }
 0x384   : > { %3474 = vst [vmem:[#allocation3 + $0x78] sm:$0xff] %v3165_v5  ;;  %3529 = vst [vmem:[#allocation3 + $0x40] sm:$0xff] %v3286_v26  ;;  %v3166_v52 = vrot.slane %v3104_v4, 7  ;;  %v3287_v30 = vrot.slane %v3104_v4, 1  ;;  %v8152_v23 = vadd.f32 %v7987_v7, %v2465_v61 }
 0x385   : > { %3254 = vst [vmem:[#allocation3 + $0x248] sm:$0xff] %v3104_v4  ;;  %3409 = vst [vmem:[#allocation3 + $0x188] sm:$0xff] %v3104_v4  ;;  %v2866_v10 = vadd.f32 %v5752_v27, %v8107_v38  ;;  %v3105_v22 = vmul.f32 %v2994_v33, %v2895_v32 }
 0x386   : > { %3499 = vst [vmem:[#allocation3 + $0xc8] sm:$0xff] %v3104_v4  ;;  %v3167_v39 = vsel %vm464_vm0, %v3164_v25, %v3166_v52  ;;  %v3288_v42 = vsel %vm3271_vm1, %v3285_v14, %v3287_v30  ;;  %v2469_v5 = vpop.f32.mrb[22].mxu0 }
 0x387   : > { %3230 = vst [vmem:[#allocation3 + $0x240] sm:$0xff] %v3167_v39  ;;  %3352 = vst [vmem:[#allocation3 + $0x208] sm:$0xff] %v3288_v42  ;;  %v3168_v26 = vrot.slane %v3105_v22, 7  ;;  %v3289_v45 = vrot.slane %v3105_v22, 1  ;;  %v5754_v7 = vadd.f32 %v7992_v49, %v2469_v5  ;;  %v2471_v25 = vpop.f32.mrb[23].mxu0  ;;  %v2896_v14 = vmax.f32 %v2866_v10, 0.0  ;;  %v3004_v49 = vpop.permute.xlu1 %3003 }
 0x388   : > { %3385 = vst [vmem:[#allocation3 + $0x180] sm:$0xff] %v3167_v39  ;;  %3442 = vst [vmem:[#allocation3 + $0x148] sm:$0xff] %v3288_v42  ;;  %v8159_v4 = vadd.f32 %v7994_v21, %v2471_v25 }
 0x389   : > { %3475 = vst [vmem:[#allocation3 + $0xc0] sm:$0xff] %v3167_v39  ;;  %3530 = vst [vmem:[#allocation3 + $0x88] sm:$0xff] %v3288_v42  ;;  %v3169_v29 = vsel %vm464_vm0, %v3166_v52, %v3168_v26  ;;  %v3290_v33 = vsel %vm3271_vm1, %v3287_v30, %v3289_v45  ;;  %v2867_v27 = vadd.f32 %v5754_v7, %v8107_v38 }
 0x38a   : > { %3255 = vst [vmem:[#allocation3 + $0x290] sm:$0xff] %v3105_v22  ;;  %3410 = vst [vmem:[#allocation3 + $0x1d0] sm:$0xff] %v3105_v22  ;;  %v3106_v61 = vmul.f32 %v2999_v59, %v2896_v14  ;;  %v2475_v32 = vpop.f32.mrb[24].mxu0 }
 0x38b   : > { %3500 = vst [vmem:[#allocation3 + $0x110] sm:$0xff] %v3105_v22  ;;  %3231 = vst [vmem:[#allocation3 + $0x288] sm:$0xff] %v3169_v29  ;;  %v5756_v21 = vadd.f32 %v7999_v20, %v2475_v32  ;;  %v2477_v52 = vpop.f32.mrb[25].mxu0  ;;  %v2897_v30 = vmax.f32 %v2867_v27, 0.0  ;;  %v3009_v20 = vpop.permute.xlu0 %3008 }
 0x38c   : > { %3353 = vst [vmem:[#allocation3 + $0x250] sm:$0xff] %v3290_v33  ;;  %3386 = vst [vmem:[#allocation3 + $0x1c8] sm:$0xff] %v3169_v29  ;;  %v3170_v39 = vrot.slane %v3106_v61, 7  ;;  %v3291_v42 = vrot.slane %v3106_v61, 1  ;;  %v8166_v10 = vadd.f32 %v8001_v2, %v2477_v52 }
 0x38d   : > { %3443 = vst [vmem:[#allocation3 + $0x190] sm:$0xff] %v3290_v33  ;;  %3476 = vst [vmem:[#allocation3 + $0x108] sm:$0xff] %v3169_v29  ;;  %v2868_v59 = vadd.f32 %v5756_v21, %v8107_v38  ;;  %v3107_v7 = vmul.f32 %v3004_v49, %v2897_v30 }
 0x38e   : > { %3531 = vst [vmem:[#allocation3 + $0xd0] sm:$0xff] %v3290_v33  ;;  %3256 = vst [vmem:[#allocation3 + $0x2d8] sm:$0xff] %v3106_v61  ;;  %v3171_v22 = vsel %vm464_vm0, %v3168_v26, %v3170_v39  ;;  %v3292_v5 = vsel %vm3271_vm1, %v3289_v45, %v3291_v42  ;;  %v2481_v25 = vpop.f32.mrb[26].mxu0 }
 0x38f   : > { %3411 = vst [vmem:[#allocation3 + $0x218] sm:$0xff] %v3106_v61  ;;  %3501 = vst [vmem:[#allocation3 + $0x158] sm:$0xff] %v3106_v61  ;;  %v3172_v14 = vrot.slane %v3107_v7, 7  ;;  %v3293_v29 = vrot.slane %v3107_v7, 1  ;;  %v5758_v2 = vadd.f32 %v8004_v35, %v2481_v25  ;;  %v2483_v26 = vpop.f32.mrb[27].mxu0  ;;  %v2898_v45 = vmax.f32 %v2868_v59, 0.0  ;;  %v3014_v35 = vpop.permute.xlu1 %3013 }
 0x390   : > { %3232 = vst [vmem:[#allocation3 + $0x2d0] sm:$0xff] %v3171_v22  ;;  %3354 = vst [vmem:[#allocation3 + $0x298] sm:$0xff] %v3292_v5  ;;  %v8173_v33 = vadd.f32 %v8006_v1, %v2483_v26 }
 0x391   : > { %3387 = vst [vmem:[#allocation3 + $0x210] sm:$0xff] %v3171_v22  ;;  %3444 = vst [vmem:[#allocation3 + $0x1d8] sm:$0xff] %v3292_v5  ;;  %v3173_v27 = vsel %vm464_vm0, %v3170_v39, %v3172_v14  ;;  %v3294_v61 = vsel %vm3271_vm1, %v3291_v42, %v3293_v29  ;;  %v2869_v32 = vadd.f32 %v5758_v2, %v8107_v38 }
 0x392   : > { %3477 = vst [vmem:[#allocation3 + $0x150] sm:$0xff] %v3171_v22  ;;  %3532 = vst [vmem:[#allocation3 + $0x118] sm:$0xff] %v3292_v5  ;;  %v3108_v49 = vmul.f32 %v3009_v20, %v2898_v45  ;;  %v2487_v21 = vpop.f32.mrb[28].mxu0 }
 0x393   : > { %3257 = vst [vmem:[#allocation3 + $0x320] sm:$0xff] %v3107_v7  ;;  %3412 = vst [vmem:[#allocation3 + $0x260] sm:$0xff] %v3107_v7  ;;  %v5760_v1 = vadd.f32 %v8009_v8, %v2487_v21  ;;  %v2489_v39 = vpop.f32.mrb[29].mxu0  ;;  %v2899_v42 = vmax.f32 %v2869_v32, 0.0  ;;  %v3019_v8 = vpop.permute.xlu0 %3018 }
 0x394   : > { %3502 = vst [vmem:[#allocation3 + $0x1a0] sm:$0xff] %v3107_v7  ;;  %3233 = vst [vmem:[#allocation3 + $0x318] sm:$0xff] %v3173_v27  ;;  %v3174_v52 = vrot.slane %v3108_v49, 7  ;;  %v3295_v30 = vrot.slane %v3108_v49, 1  ;;  %v8180_v22 = vadd.f32 %v8011_v48, %v2489_v39 }
 0x395   : > { %3355 = vst [vmem:[#allocation3 + $0x2e0] sm:$0xff] %v3294_v61  ;;  %3388 = vst [vmem:[#allocation3 + $0x258] sm:$0xff] %v3173_v27  ;;  %v2870_v7 = vadd.f32 %v5760_v1, %v8107_v38  ;;  %v3109_v25 = vmul.f32 %v3014_v35, %v2899_v42 }
 0x396   : > { %3445 = vst [vmem:[#allocation3 + $0x220] sm:$0xff] %v3294_v61  ;;  %3478 = vst [vmem:[#allocation3 + $0x198] sm:$0xff] %v3173_v27  ;;  %v3175_v5 = vsel %vm464_vm0, %v3172_v14, %v3174_v52  ;;  %v3296_v59 = vsel %vm3271_vm1, %v3293_v29, %v3295_v30  ;;  %v2493_v20 = vpop.f32.mrb[30].mxu0 }
 0x397   : > { %3533 = vst [vmem:[#allocation3 + $0x160] sm:$0xff] %v3294_v61  ;;  %3258 = vst [vmem:[#allocation3 + $0x368] sm:$0xff] %v3108_v49  ;;  %v3176_v2 = vrot.slane %v3109_v25, 7  ;;  %v3297_v26 = vrot.slane %v3109_v25, 1  ;;  %v5762_v48 = vadd.f32 %v8013_v53, %v2493_v20  ;;  %v2495_v14 = vpop.f32.mrb[31].mxu0  ;;  %v2900_v29 = vmax.f32 %v2870_v7, 0.0  ;;  %v3024_v53 = vpop.permute.xlu1 %3023 }
 0x398   : > { %3413 = vst [vmem:[#allocation3 + $0x2a8] sm:$0xff] %v3108_v49  ;;  %3503 = vst [vmem:[#allocation3 + $0x1e8] sm:$0xff] %v3108_v49  ;;  %v8187_v45 = vadd.f32 %v8015_v18, %v2495_v14 }
 0x399   : > { %3234 = vst [vmem:[#allocation3 + $0x360] sm:$0xff] %v3175_v5  ;;  %3356 = vst [vmem:[#allocation3 + $0x328] sm:$0xff] %v3296_v59  ;;  %v3177_v27 = vsel %vm464_vm0, %v3174_v52, %v3176_v2  ;;  %v3298_v61 = vsel %vm3271_vm1, %v3295_v30, %v3297_v26  ;;  %v2871_v32 = vadd.f32 %v5762_v48, %v8107_v38 }
 0x39a   : > { %3389 = vst [vmem:[#allocation3 + $0x2a0] sm:$0xff] %v3175_v5  ;;  %3446 = vst [vmem:[#allocation3 + $0x268] sm:$0xff] %v3296_v59  ;;  %v3110_v49 = vmul.f32 %v3019_v8, %v2900_v29  ;;  %v2499_v21 = vpop.f32.mrb[32].mxu0 }
 0x39b   : > { %3479 = vst [vmem:[#allocation3 + $0x1e0] sm:$0xff] %v3175_v5  ;;  %3534 = vst [vmem:[#allocation3 + $0x1a8] sm:$0xff] %v3296_v59  ;;  %v5764_v18 = vadd.f32 %v8018_v50, %v2499_v21  ;;  %v2501_v52 = vpop.f32.mrb[33].mxu0  ;;  %v2901_v30 = vmax.f32 %v2871_v32, 0.0  ;;  %v3029_v50 = vpop.permute.xlu0 %3028 }
 0x39c   : > { %3259 = vst [vmem:[#allocation3 + $0x3b0] sm:$0xff] %v3109_v25  ;;  %3414 = vst [vmem:[#allocation3 + $0x2f0] sm:$0xff] %v3109_v25  ;;  %v3178_v35 = vrot.slane %v3110_v49, 7  ;;  %v3299_v1 = vrot.slane %v3110_v49, 1  ;;  %v8194_v39 = vadd.f32 %v8020_v16, %v2501_v52 }
 0x39d   : > { %3504 = vst [vmem:[#allocation3 + $0x230] sm:$0xff] %v3109_v25  ;;  %3235 = vst [vmem:[#allocation3 + $0x3a8] sm:$0xff] %v3177_v27  ;;  %v2872_v59 = vadd.f32 %v5764_v18, %v8107_v38  ;;  %v3111_v7 = vmul.f32 %v3024_v53, %v2901_v30 }
 0x39e   : > { %3357 = vst [vmem:[#allocation3 + $0x370] sm:$0xff] %v3298_v61  ;;  %3390 = vst [vmem:[#allocation3 + $0x2e8] sm:$0xff] %v3177_v27  ;;  %v3179_v42 = vsel %vm464_vm0, %v3176_v2, %v3178_v35  ;;  %v3300_v5 = vsel %vm3271_vm1, %v3297_v26, %v3299_v1  ;;  %v2505_v25 = vpop.f32.mrb[34].mxu0 }
 0x39f   : > { %3447 = vst [vmem:[#allocation3 + $0x2b0] sm:$0xff] %v3298_v61  ;;  %3480 = vst [vmem:[#allocation3 + $0x228] sm:$0xff] %v3177_v27  ;;  %v3180_v20 = vrot.slane %v3111_v7, 7  ;;  %v3301_v8 = vrot.slane %v3111_v7, 1  ;;  %v5766_v16 = vadd.f32 %v8023_v15, %v2505_v25  ;;  %v2507_v2 = vpop.f32.mrb[35].mxu0  ;;  %v2902_v26 = vmax.f32 %v2872_v59, 0.0  ;;  %v3034_v15 = vpop.permute.xlu1 %3033 }
 0x3a0   : > { %3535 = vst [vmem:[#allocation3 + $0x1f0] sm:$0xff] %v3298_v61  ;;  %3260 = vst [vmem:[#allocation3 + $0x3f8] sm:$0xff] %v3110_v49  ;;  %v8201_v48 = vadd.f32 %v8025_v60, %v2507_v2 }
 0x3a1   : > { %3415 = vst [vmem:[#allocation3 + $0x338] sm:$0xff] %v3110_v49  ;;  %3505 = vst [vmem:[#allocation3 + $0x278] sm:$0xff] %v3110_v49  ;;  %v3181_v14 = vsel %vm464_vm0, %v3178_v35, %v3180_v20  ;;  %v3302_v29 = vsel %vm3271_vm1, %v3299_v1, %v3301_v8  ;;  %v2873_v27 = vadd.f32 %v5766_v16, %v8107_v38 }
 0x3a2   : > { %3236 = vst [vmem:[#allocation3 + $0x3f0] sm:$0xff] %v3179_v42  ;;  %3358 = vst [vmem:[#allocation3 + $0x3b8] sm:$0xff] %v3300_v5  ;;  %v3112_v61 = vmul.f32 %v3029_v50, %v2902_v26  ;;  %v2511_v32 = vpop.f32.mrb[36].mxu0 }
 0x3a3   : > { %3391 = vst [vmem:[#allocation3 + $0x330] sm:$0xff] %v3179_v42  ;;  %3448 = vst [vmem:[#allocation3 + $0x2f8] sm:$0xff] %v3300_v5  ;;  %v5768_v60 = vadd.f32 %v8027_v36, %v2511_v32  ;;  %v2513_v53 = vpop.f32.mrb[37].mxu0  ;;  %v2903_v35 = vmax.f32 %v2873_v27, 0.0 }
 0x3a4   : > { %3481 = vst [vmem:[#allocation3 + $0x270] sm:$0xff] %v3179_v42  ;;  %3536 = vst [vmem:[#allocation3 + $0x238] sm:$0xff] %v3300_v5  ;;  %v3182_v49 = vrot.slane %v3112_v61, 7  ;;  %v3303_v21 = vrot.slane %v3112_v61, 1  ;;  %v8208_v1 = vadd.f32 %v8029_v19, %v2513_v53  ;;  %v3039_v5 = vpop.permute.xlu0 %3038 }
 0x3a5   : > { %3261 = vst [vmem:[#allocation3 + $0x440] sm:$0xff] %v3111_v7  ;;  %3416 = vst [vmem:[#allocation3 + $0x380] sm:$0xff] %v3111_v7  ;;  %v2874_v30 = vadd.f32 %v5768_v60, %v8107_v38  ;;  %v8213_v42 = vmul.f32 %v3034_v15, %v2903_v35 }
 0x3a6   : > { %3506 = vst [vmem:[#allocation3 + $0x2c0] sm:$0xff] %v3111_v7  ;;  %3237 = vst [vmem:[#allocation3 + $0x438] sm:$0xff] %v3181_v14  ;;  %v3183_v18 = vsel %vm464_vm0, %v3180_v20, %v3182_v49  ;;  %v3304_v52 = vsel %vm3271_vm1, %v3301_v8, %v3303_v21  ;;  %v2517_v36 = vpop.f32.mrb[38].mxu0 }
 0x3a7   : > { %3359 = vst [vmem:[#allocation3 + $0x400] sm:$0xff] %v3302_v29  ;;  %3392 = vst [vmem:[#allocation3 + $0x378] sm:$0xff] %v3181_v14  ;;  %v3184_v59 = vrot.slane %v8213_v42, 7  ;;  %v3305_v19 = vrot.slane %v8213_v42, 1  ;;  %v5770_v7 = vadd.f32 %v8032_v54, %v2517_v36  ;;  %v2519_v25 = vpop.f32.mrb[39].mxu0  ;;  %v2904_v50 = vmax.f32 %v2874_v30, 0.0 }
 0x3a8   : > { %3449 = vst [vmem:[#allocation3 + $0x340] sm:$0xff] %v3302_v29  ;;  %3482 = vst [vmem:[#allocation3 + $0x2b8] sm:$0xff] %v3181_v14  ;;  %v8221_v20 = vadd.f32 %v8034_v58, %v2519_v25  ;;  %v3044_v14 = vpop.permute.xlu1 %3043  ;;  %v3049_v35 = vpop.permute.xlu0 %3048 }
 0x3a9   : > { %3537 = vst [vmem:[#allocation3 + $0x280] sm:$0xff] %v3302_v29  ;;  %3262 = vst [vmem:[#allocation3 + $0x488] sm:$0xff] %v3112_v61  ;;  %v3185_v8 = vsel %vm464_vm0, %v3182_v49, %v3184_v59  ;;  %v3306_v16 = vsel %vm3271_vm1, %v3303_v21, %v3305_v19  ;;  %v2875_v2 = vadd.f32 %v5770_v7, %v8107_v38 }
 0x3aa   : > { %3417 = vst [vmem:[#allocation3 + $0x3c8] sm:$0xff] %v3112_v61  ;;  %3507 = vst [vmem:[#allocation3 + $0x308] sm:$0xff] %v3112_v61  ;;  %v8226_v26 = vmul.f32 %v3039_v5, %v2904_v50  ;;  %v2523_v54 = vpop.f32.mrb[40].mxu0 }
 0x3ab   : > { %3238 = vst [vmem:[#allocation3 + $0x480] sm:$0xff] %v3183_v18  ;;  %3360 = vst [vmem:[#allocation3 + $0x448] sm:$0xff] %v3304_v52  ;;  %v5772_v27 = vadd.f32 %v8037_v56, %v2523_v54  ;;  %v2525_v61 = vpop.f32.mrb[41].mxu0  ;;  %v2905_v32 = vmax.f32 %v2875_v2, 0.0 }
 0x3ac   : > { %3393 = vst [vmem:[#allocation3 + $0x3c0] sm:$0xff] %v3183_v18  ;;  %3450 = vst [vmem:[#allocation3 + $0x388] sm:$0xff] %v3304_v52  ;;  %v3186_v29 = vrot.slane %v8226_v26, 7  ;;  %v3307_v58 = vrot.slane %v8226_v26, 1  ;;  %v8234_v15 = vadd.f32 %v8039_v17, %v2525_v61  ;;  %v3054_v50 = vpop.permute.xlu1 %3053 }
 0x3ad   : > { %3483 = vst [vmem:[#allocation3 + $0x300] sm:$0xff] %v3183_v18  ;;  %3538 = vst [vmem:[#allocation3 + $0x2c8] sm:$0xff] %v3304_v52  ;;  %v2876_v60 = vadd.f32 %v5772_v27, %v8107_v38  ;;  %v8241_v53 = vmul.f32 %v3044_v14, %v2905_v32  ;;  %v3059_v32 = vpop.permute.xlu0 %3058 }
 0x3ae   : > { %3418 = vst [vmem:[#allocation3 + $0x410] sm:$0xff] %v8213_v42  ;;  %3508 = vst [vmem:[#allocation3 + $0x350] sm:$0xff] %v8213_v42  ;;  %v8237_v49 = vsel %vm464_vm0, %v3184_v59, %v3186_v29  ;;  %v3308_v21 = vsel %vm3271_vm1, %v3305_v19, %v3307_v58  ;;  %v2529_v56 = vpop.f32.mrb[42].mxu0 }
 0x3af   : > { %3239 = vst [vmem:[#allocation3 + $0x4c8] sm:$0xff] %v3185_v8  ;;  %3361 = vst [vmem:[#allocation3 + $0x490] sm:$0xff] %v3306_v16  ;;  %v3188_v17 = vrot.slane %v8241_v53, 7  ;;  %v3309_v18 = vrot.slane %v8241_v53, 1  ;;  %v5774_v52 = vadd.f32 %v8041_v57, %v2529_v56  ;;  %v2531_v30 = vpop.f32.mrb[43].mxu0  ;;  %v2906_v36 = vmax.f32 %v2876_v60, 0.0 }
 0x3b0   : > { %3394 = vst [vmem:[#allocation3 + $0x408] sm:$0xff] %v3185_v8  ;;  %3451 = vst [vmem:[#allocation3 + $0x3d0] sm:$0xff] %v3306_v16  ;;  %v8251_v5 = vadd.f32 %v8043_v55, %v2531_v30 }
 0x3b1   : > { %3484 = vst [vmem:[#allocation3 + $0x348] sm:$0xff] %v3185_v8  ;;  %3539 = vst [vmem:[#allocation3 + $0x310] sm:$0xff] %v3306_v16  ;;  %v8254_v59 = vsel %vm464_vm0, %v3186_v29, %v3188_v17  ;;  %v3310_v19 = vsel %vm3271_vm1, %v3307_v58, %v3309_v18  ;;  %v2877_v7 = vadd.f32 %v5774_v52, %v8107_v38 }
 0x3b2   : > { %3419 = vst [vmem:[#allocation3 + $0x458] sm:$0xff] %v8226_v26  ;;  %3509 = vst [vmem:[#allocation3 + $0x398] sm:$0xff] %v8226_v26  ;;  %v8258_v25 = vmul.f32 %v3049_v35, %v2906_v36  ;;  %v2535_v57 = vpop.f32.mrb[44].mxu0 }
 0x3b3   : > { %3362 = vst [vmem:[#allocation3 + $0x4d8] sm:$0xff] %v3308_v21  ;;  %3395 = vst [vmem:[#allocation3 + $0x450] sm:$0xff] %v8237_v49  ;;  %v5776_v16 = vadd.f32 %v8046_v28, %v2535_v57  ;;  %v2537_v2 = vpop.f32.mrb[45].mxu0  ;;  %v2907_v54 = vmax.f32 %v2877_v7, 0.0 }
 0x3b4   : > { %3452 = vst [vmem:[#allocation3 + $0x418] sm:$0xff] %v3308_v21  ;;  %3485 = vst [vmem:[#allocation3 + $0x390] sm:$0xff] %v8237_v49  ;;  %v3190_v55 = vrot.slane %v8258_v25, 7  ;;  %v3311_v8 = vrot.slane %v8258_v25, 1  ;;  %v8268_v14 = vadd.f32 %v8048_v62, %v2537_v2 }
 0x3b5   : > { %3540 = vst [vmem:[#allocation3 + $0x358] sm:$0xff] %v3308_v21  ;;  %3420 = vst [vmem:[#allocation3 + $0x4a0] sm:$0xff] %v8241_v53  ;;  %v2878_v27 = vadd.f32 %v5776_v16, %v8107_v38  ;;  %v8275_v61 = vmul.f32 %v3054_v50, %v2907_v54 }
 0x3b6   : > { %3510 = vst [vmem:[#allocation3 + $0x3e0] sm:$0xff] %v8241_v53  ;;  %3363 = vst [vmem:[#allocation3 + $0x520] sm:$0xff] %v3310_v19  ;;  %v8271_v29 = vsel %vm464_vm0, %v3188_v17, %v3190_v55  ;;  %v3312_v58 = vsel %vm3271_vm1, %v3309_v18, %v3311_v8  ;;  %v2541_v28 = vpop.f32.mrb[46].mxu0 }
 0x3b7   : > { %3396 = vst [vmem:[#allocation3 + $0x498] sm:$0xff] %v8254_v59  ;;  %3453 = vst [vmem:[#allocation3 + $0x460] sm:$0xff] %v3310_v19  ;;  %v3192_v62 = vrot.slane %v8275_v61, 7  ;;  %v3313_v21 = vrot.slane %v8275_v61, 1  ;;  %v5778_v60 = vadd.f32 %v8051_v44, %v2541_v28  ;;  %v2543_v56 = vpop.f32.mrb[47].mxu0  ;;  %v2908_v35 = vmax.f32 %v2878_v27, 0.0  ;;  %v3069_v27 = vpop.permute.xlu0 %3068 }
 0x3b8   : > { %3486 = vst [vmem:[#allocation3 + $0x3d8] sm:$0xff] %v8254_v59  ;;  %3541 = vst [vmem:[#allocation3 + $0x3a0] sm:$0xff] %v3310_v19  ;;  %v8285_v17 = vadd.f32 %v8053_v0, %v2543_v56  ;;  %v3064_v19 = vpop.permute.xlu1 %3063 }
 0x3b9   : > { %3421 = vst [vmem:[#allocation3 + $0x4e8] sm:$0xff] %v8258_v25  ;;  %3511 = vst [vmem:[#allocation3 + $0x428] sm:$0xff] %v8258_v25  ;;  %v8288_v18 = vsel %vm464_vm0, %v3190_v55, %v3192_v62  ;;  %v3314_v52 = vsel %vm3271_vm1, %v3311_v8, %v3313_v21  ;;  %v2879_v30 = vadd.f32 %v5778_v60, %v8107_v38 }
 0x3ba   : > { %3364 = vst [vmem:[#allocation3 + $0x568] sm:$0xff] %v3312_v58  ;;  %3397 = vst [vmem:[#allocation3 + $0x4e0] sm:$0xff] %v8271_v29  ;;  %v8292_v36 = vmul.f32 %v3059_v32, %v2908_v35  ;;  %v2547_v44 = vpop.f32.mrb[48].mxu0 }
 0x3bb   : > { %3454 = vst [vmem:[#allocation3 + $0x4a8] sm:$0xff] %v3312_v58  ;;  %3487 = vst [vmem:[#allocation3 + $0x420] sm:$0xff] %v8271_v29  ;;  %v5780_v57 = vadd.f32 %v8055_v9, %v2547_v44  ;;  %v2549_v50 = vpop.f32.mrb[49].mxu0  ;;  %v2909_v55 = vmax.f32 %v2879_v30, 0.0 }
 0x3bc   : > { %3542 = vst [vmem:[#allocation3 + $0x3e8] sm:$0xff] %v3312_v58  ;;  %3422 = vst [vmem:[#allocation3 + $0x530] sm:$0xff] %v8275_v61  ;;  %v3194_v0 = vrot.slane %v8292_v36, 7  ;;  %v3315_v7 = vrot.slane %v8292_v36, 1  ;;  %v8302_v8 = vadd.f32 %v8057_v34, %v2549_v50  ;;  %v3074_v44 = vpop.permute.xlu1 %3073 }
 0x3bd   : > { %3512 = vst [vmem:[#allocation3 + $0x470] sm:$0xff] %v8275_v61  ;;  %3365 = vst [vmem:[#allocation3 + $0x5b0] sm:$0xff] %v3314_v52  ;;  %v2880_v54 = vadd.f32 %v5780_v57, %v8107_v38  ;;  %v8309_v58 = vmul.f32 %v3064_v19, %v2909_v55  ;;  %v8858_v55 = vld [vmem:[#allocation25_spill] sm:$0xff] }
 0x3be   : > { %3398 = vst [vmem:[#allocation3 + $0x528] sm:$0xff] %v8288_v18  ;;  %3455 = vst [vmem:[#allocation3 + $0x4f0] sm:$0xff] %v3314_v52  ;;  %v8305_v16 = vsel %vm464_vm0, %v3192_v62, %v3194_v0  ;;  %v3316_v2 = vsel %vm3271_vm1, %v3313_v21, %v3315_v7  ;;  %v2553_v9 = vpop.f32.mrb[50].mxu0 }
 0x3bf   : > { %3488 = vst [vmem:[#allocation3 + $0x468] sm:$0xff] %v8288_v18  ;;  %3543 = vst [vmem:[#allocation3 + $0x430] sm:$0xff] %v3314_v52  ;;  %v3196_v34 = vrot.slane %v8309_v58, 7  ;;  %v3317_v28 = vrot.slane %v8309_v58, 1  ;;  %v5782_v32 = vadd.f32 %v8060_v47, %v2553_v9  ;;  %v2555_v62 = vpop.f32.mrb[51].mxu0  ;;  %v2910_v21 = vmax.f32 %v2880_v54, 0.0 }
 0x3c0   : > { %3423 = vst [vmem:[#allocation3 + $0x578] sm:$0xff] %v8292_v36  ;;  %3513 = vst [vmem:[#allocation3 + $0x4b8] sm:$0xff] %v8292_v36  ;;  %v8319_v60 = vadd.f32 %v8062_v11, %v2555_v62 }
 0x3c1   : > { %3366 = vst [vmem:[#allocation3 + $0x5f8] sm:$0xff] %v3316_v2  ;;  %3399 = vst [vmem:[#allocation3 + $0x570] sm:$0xff] %v8305_v16  ;;  %v8322_v56 = vsel %vm464_vm0, %v3194_v0, %v3196_v34  ;;  %v3318_v35 = vsel %vm3271_vm1, %v3315_v7, %v3317_v28  ;;  %v2881_v52 = vadd.f32 %v5782_v32, %v8107_v38  ;;  %v8857_v0 = vld [vmem:[#allocation28_spill] sm:$0xff] }
 0x3c2   : > { %3456 = vst [vmem:[#allocation3 + $0x538] sm:$0xff] %v3316_v2  ;;  %3489 = vst [vmem:[#allocation3 + $0x4b0] sm:$0xff] %v8305_v16  ;;  %v3120_v30 = vmul.f32 %v3069_v27, %v2910_v21  ;;  %v2559_v47 = vpop.f32.mrb[52].mxu0  ;;  %v3079_v21 = vpop.permute.xlu0 %3078 }
 0x3c3   : > { %3544 = vst [vmem:[#allocation3 + $0x478] sm:$0xff] %v3316_v2  ;;  %3424 = vst [vmem:[#allocation3 + $0x5c0] sm:$0xff] %v8309_v58  ;;  %v5784_v57 = vadd.f32 %v8857_v0, %v2559_v47  ;;  %v2561_v50 = vpop.f32.mrb[53].mxu0  ;;  %v2911_v7 = vmax.f32 %v2881_v52, 0.0 }
 0x3c4   : > { %3514 = vst [vmem:[#allocation3 + $0x500] sm:$0xff] %v8309_v58  ;;  %8856 = vst [vmem:[#allocation34_spill] sm:$0xff] %v8319_v60  ;;  %v3319_v19 = vrot.slane %v3120_v30, 1  ;;  %v3371_v11 = vrot.slane %v3120_v30, 7  ;;  %v8330_v2 = vadd.f32 %v8858_v55, %v2561_v50 }
 0x3c5   : > { %3367 = vst [vmem:[#allocation3 + $0x640] sm:$0xff] %v3318_v35  ;;  %3400 = vst [vmem:[#allocation3 + $0x5b8] sm:$0xff] %v8322_v56  ;;  %v2882_v27 = vadd.f32 %v5784_v57, %v8107_v38  ;;  %v3121_v32 = vmul.f32 %v3074_v44, %v2911_v7  ;;  %v8859_v57 = vld [vmem:[#allocation30_spill] sm:$0xff] }
 0x3c6   : > { %3457 = vst [vmem:[#allocation3 + $0x580] sm:$0xff] %v3318_v35  ;;  %3490 = vst [vmem:[#allocation3 + $0x4f8] sm:$0xff] %v8322_v56  ;;  %v3320_v54 = vsel %vm3271_vm1, %v3317_v28, %v3319_v19  ;;  %v3372_v9 = vsel %vm464_vm0, %v3196_v34, %v3371_v11  ;;  %v2565_v62 = vpop.f32.mrb[90].mxu0 }
 0x3c7   : > { %3545 = vst [vmem:[#allocation3 + $0x4c0] sm:$0xff] %v3318_v35  ;;  %3425 = vst [vmem:[#allocation3 + $0x608] sm:$0xff] %v3120_v30  ;;  %v3373_v35 = vrot.slane %v3121_v32, 7  ;;  %v3429_v52 = vrot.slane %v3121_v32, 1  ;;  %v2567_v47 = vpop.f32.mrb[91].mxu0  ;;  %v2912_v28 = vmax.f32 %v2882_v27, 0.0  ;;  %v3084_v27 = vpop.permute.xlu1 %3083 }
 0x3c8   : > { %3515 = vst [vmem:[#allocation3 + $0x548] sm:$0xff] %v3120_v30  ;;  %3368 = vst [vmem:[#allocation3 + $0x688] sm:$0xff] %v3320_v54  ;;  %v2566_v30 = vadd.f32 %v2565_v62, %v8075_v63  ;;  %v8860_v62 = vld [vmem:[#allocation27_spill] sm:$0xff] }
 0x3c9   : > { %3401 = vst [vmem:[#allocation3 + $0x600] sm:$0xff] %v3372_v9  ;;  %3458 = vst [vmem:[#allocation3 + $0x5c8] sm:$0xff] %v3320_v54  ;;  %v8337_v34 = vsel %vm464_vm0, %v3371_v11, %v3373_v35  ;;  %v3430_v44 = vsel %vm3271_vm1, %v3319_v19, %v3429_v52  ;;  %v3122_v0 = vmul.f32 %v3079_v21, %v2912_v28 }
 0x3ca   : > { %3491 = vst [vmem:[#allocation3 + $0x540] sm:$0xff] %v3372_v9  ;;  %3546 = vst [vmem:[#allocation3 + $0x508] sm:$0xff] %v3320_v54  ;;  %v2805_v50 = vadd.f32 %v8859_v57, %v2566_v30  ;;  %v2570_v7 = vpop.f32.mrb[92].mxu0  ;;  %v3089_v57 = vpop.permute.xlu0 %3088 }
 0x3cb   : > { %3426 = vst [vmem:[#allocation3 + $0x650] sm:$0xff] %v3121_v32  ;;  %3516 = vst [vmem:[#allocation3 + $0x590] sm:$0xff] %v3121_v32  ;;  %v3375_v55 = vrot.slane %v3122_v0, 7  ;;  %v3431_v54 = vrot.slane %v3122_v0, 1  ;;  %v2571_v9 = vadd.f32 %v2570_v7, %v8081_v12  ;;  %v2572_v11 = vpop.f32.mrb[93].mxu0 }
 0x3cc   : > { %3459 = vst [vmem:[#allocation3 + $0x610] sm:$0xff] %v3430_v44  ;;  %3492 = vst [vmem:[#allocation3 + $0x588] sm:$0xff] %v8337_v34  ;;  %v2883_v63 = vadd.f32 %v8107_v38, %v2805_v50 }
 0x3cd   : > { %3547 = vst [vmem:[#allocation3 + $0x550] sm:$0xff] %v3430_v44  ;;  %3427 = vst [vmem:[#allocation3 + $0x698] sm:$0xff] %v3122_v0  ;;  %v8345_v19 = vsel %vm464_vm0, %v3373_v35, %v3375_v55  ;;  %v3432_v32 = vsel %vm3271_vm1, %v3429_v52, %v3431_v54  ;;  %v2810_v21 = vadd.f32 %v8860_v62, %v2571_v9 }
 0x3ce   : > { %3517 = vst [vmem:[#allocation3 + $0x5d8] sm:$0xff] %v3122_v0  ;;  %v2913_v30 = vmax.f32 %v2883_v63, 0.0  ;;  %3460 = vst [vmem:[#allocation3 + $0x658] sm:$0xff] %v3432_v32  ;;  %v2575_v47 = vpop.f32.mrb[94].mxu0 }
 0x3cf   : > { %3493 = vst [vmem:[#allocation3 + $0x5d0] sm:$0xff] %v8345_v19  ;;  %3548 = vst [vmem:[#allocation3 + $0x598] sm:$0xff] %v3432_v32  ;;  %v2884_v28 = vadd.f32 %v8107_v38, %v2810_v21  ;;  %v2576_v12 = vadd.f32 %v2575_v47, %v8084_v51  ;;  %v2577_v0 = vpop.f32.mrb[95].mxu0 }
 0x3d0   : > { %v3123_v44 = vmul.f32 %v3084_v27, %v2913_v30  ;;  %v3094_v27 = vpop.permute.xlu1 %3093 }
 0x3d1   : > { %v2815_v52 = vadd.f32 %v8077_v41, %v2576_v12  ;;  %v2914_v7 = vmax.f32 %v2884_v28, 0.0 }
 0x3d2   : > { %v3433_v50 = vrot.slane %v3123_v44, 1  ;;  %v3464_v35 = vrot.slane %v3123_v44, 7  ;;  %3518 = vst [vmem:[#allocation3 + $0x620] sm:$0xff] %v3123_v44  ;;  %v2645_v9 = vpop.f32.mrb[96].mxu0 }
 0x3d3   : > { %v2885_v32 = vadd.f32 %v8107_v38, %v2815_v52  ;;  %v3124_v62 = vmul.f32 %v3089_v57, %v2914_v7  ;;  %v2647_v21 = vpop.f32.mrb[97].mxu0  ;;  %v2646_v51 = vadd.f32 %v2645_v9, %v8088_v24 }
 0x3d4   : > { %v3434_v63 = vsel %vm3271_vm1, %v3431_v54, %v3433_v50  ;;  %v3465_v11 = vsel %vm464_vm0, %v3375_v55, %v3464_v35 }
 0x3d5   : > { %3461 = vst [vmem:[#allocation3 + $0x6a0] sm:$0xff] %v3434_v63  ;;  %3494 = vst [vmem:[#allocation3 + $0x618] sm:$0xff] %v3465_v11  ;;  %v3466_v30 = vrot.slane %v3124_v62, 7  ;;  %v3522_v47 = vrot.slane %v3124_v62, 1  ;;  %v2915_v41 = vmax.f32 %v2885_v32, 0.0  ;;  %v2856_v28 = vadd.f32 %v8107_v38, %v2646_v51  ;;  %v8861_v51 = vld [vmem:[#allocation31_spill] sm:$0xff] }
 0x3d6   : > { %3549 = vst [vmem:[#allocation3 + $0x5e0] sm:$0xff] %v3434_v63  ;;  %3519 = vst [vmem:[#allocation3 + $0x668] sm:$0xff] %v3124_v62  ;;  %v2650_v44 = vpop.f32.mrb[98].mxu0 }
 0x3d7   : > { %v3467_v54 = vsel %vm464_vm0, %v3464_v35, %v3466_v30  ;;  %v3523_v55 = vsel %vm3271_vm1, %v3433_v50, %v3522_v47  ;;  %v3125_v12 = vmul.f32 %v3094_v27, %v2915_v41  ;;  %v2651_v0 = vadd.f32 %v2650_v44, %v8092_v6  ;;  %v2652_v57 = vpop.f32.mrb[99].mxu0 }
 0x3d8   : > { %3495 = vst [vmem:[#allocation3 + $0x660] sm:$0xff] %v3467_v54  ;;  %3550 = vst [vmem:[#allocation3 + $0x628] sm:$0xff] %v3523_v55  ;;  %v2886_v52 = vmax.f32 %v2856_v28, 0.0 }
 0x3d9   : > { %v3468_v24 = vrot.slane %v3125_v12, 7  ;;  %3520 = vst [vmem:[#allocation3 + $0x6b0] sm:$0xff] %v3125_v12  ;;  %v3524_v7 = vrot.slane %v3125_v12, 1  ;;  %v2857_v9 = vadd.f32 %v8107_v38, %v2651_v0  ;;  %v3802_v0 = vld [vmem:[#allocation10 + $0x108] sm:$0xff] }
 0x3da   : > { %v3096_v63 = vmul.f32 %v8098_v3, %v2886_v52  ;;  %v2655_v11 = vpop.f32.mrb[100].mxu0 }
 0x3db   : > { %v3469_v32 = vsel %vm464_vm0, %v3466_v30, %v3468_v24  ;;  %v3525_v35 = vsel %vm3271_vm1, %v3522_v47, %v3524_v7  ;;  %3552 = vst [vmem:[#allocation3 + $0x6b8] sm:$0x7f] %v3524_v7  ;;  %v2887_v50 = vmax.f32 %v2857_v9, 0.0  ;;  %v2656_v6 = vadd.f32 %v2655_v11, %v8096_v37  ;;  %v2657_v62 = vpop.f32.mrb[101].mxu0  ;;  %v6303_v47 = vld [vmem:[#allocation9] ss:$0 sm:$0xff] }
 0x3dc   : > { %v3151_v21 = vrot.slane %v3096_v63, 7  ;;  %3496 = vst [vmem:[#allocation3 + $0x6a8] sm:$0xff] %v3469_v32  ;;  %3551 = vst [vmem:[#allocation3 + $0x670] sm:$0xff] %v3525_v35  ;;  %3984 = vmatprep.mubr.f32.mxu1 %v3096_v63  ;;  %v3272_v3 = vrot.slane %v3096_v63, 1  ;;  %v3801_v37 = vld [vmem:[#allocation10 + $0x100] sm:$0xff] }
 0x3dd   : > { %v3097_v27 = vmul.f32 %v8861_v51, %v2887_v50  ;;  %v2858_v41 = vadd.f32 %v8107_v38, %v2656_v6  ;;  %v8862_v24 = vld [vmem:[#allocation29_spill] sm:$0xff]  ;;  %v5551_v63 = vpack.c.bf16 %v3802_v0, %v3801_v37  ;;  %v3803_v51 = vld [vmem:[#allocation10 + $0x110] sm:$0xff] }
 0x3de   : > { %3222 = vst [vmem:[#allocation3] sm:$0xfe] %v3151_v21  ;;  %v2660_v28 = vpop.f32.mrb[6].mxu0  ;;  %v8863_v35 = vld [vmem:[#allocation33_spill] sm:$0xff] }
 0x3df   : > { %v3152_v44 = vrot.slane %v3097_v27, 7  ;;  %v3273_v30 = vrot.slane %v3097_v27, 1  ;;  %v2888_v54 = vmax.f32 %v2858_v41, 0.0  ;;  %v2859_v55 = vadd.f32 %v6303_v47, %v2660_v28  ;;  %v8368_v12 = vpop.f32.mrb[7].mxu0  ;;  %v3804_v41 = vld [vmem:[#allocation10 + $0x118] sm:$0xff] }
 0x3e1   : > { %v3153_v57 = vsel %vm464_vm0, %v3151_v21, %v3152_v44  ;;  %v8372_v52 = vsel %vm3271_vm1, %v3272_v3, %v3273_v30  ;;  %v3098_v7 = vmul.f32 %v8862_v24, %v2888_v54  ;;  %v2889_v38 = vmax.f32 %v2859_v55, 0.0 }
 0x3e2   : > { %v2666_v9 = vpop.f32.mrb[8].mxu0  ;;  %v5554_v24 = vpack.c.bf16 %v3804_v41, %v3803_v51  ;;  %v8866_v51 = vrot.slane %v8121_v13, 1 }
 0x3e3   : > { %v3154_v11 = vrot.slane %v3098_v7, 7  ;;  %v3275_v32 = vrot.slane %v3098_v7, 1  ;;  %v8376_v50 = vmul.f32 %v8863_v35, %v2889_v38  ;;  %v2860_v6 = vadd.f32 %v6303_v47, %v2666_v9  ;;  %v8378_v62 = vpop.f32.mrb[9].mxu0  ;;  %v3805_v38 = vld [vmem:[#allocation10 + $0x120] sm:$0xff]  ;;  %v3806_v9 = vld [vmem:[#allocation10 + $0x128] sm:$0xff] }
 0x3e5   : > { %v3155_v21 = vsel %vm464_vm0, %v3152_v44, %v3154_v11  ;;  %v8382_v3 = vsel %vm3271_vm1, %v3273_v30, %v3275_v32  ;;  %v3156_v28 = vrot.slane %v8376_v50, 7  ;;  %v3277_v54 = vrot.slane %v8376_v50, 1  ;;  %v3553_v55 = vld [vmem:[#allocation3] sm:$0xff] }
 0x3e6   : > { %v2890_v37 = vmax.f32 %v2860_v6, 0.0  ;;  %3985 = vmatmul.mubr.f32.vlgmr.msra.gmra.mrb[50].mxu1 %v3553_v55  ;;  %v8864_v30 = vmov 0.0|0.0   ;;  %v3809_v55 = vld [vmem:[#allocation10 + $0x140] sm:$0xff] }
 0x3e7   : > { %v8387_v0 = vsel %vm464_vm0, %v3154_v11, %v3156_v28  ;;  %v8390_v47 = vsel %vm3271_vm1, %v3275_v32, %v3277_v54  ;;  %3989 = vmatprep.mubr.f32.mxu1 %v3097_v27  ;;  %5552 = vmatpush1.bf16.msra.mxu1 %v5551_v63  ;;  %v5557_v11 = vpack.c.bf16 %v3806_v9, %v3805_v38  ;;  %v8865_v27 = vrot.slane %v8121_v13, 7  ;;  %v3813_v9 = vld [vmem:[#allocation10 + $0x160] sm:$0xff] }
 0x3e8   : > { %v8393_v44 = vmul.f32 %v8113_v40, %v2890_v37  ;;  %5553 = vmatprep.subr.bf16.mxu1 %v8864_v30  ;;  %v3810_v37 = vld [vmem:[#allocation10 + $0x148] sm:$0xff] }
 0x3e9   : > { %v5563_v13 = vpack.c.bf16 %v3810_v37, %v3809_v55  ;;  %v3817_v55 = vld [vmem:[#allocation10 + $0x180] sm:$0xff]  ;;  %v3818_v37 = vld [vmem:[#allocation10 + $0x188] sm:$0xff] }
 0x3ea   : > { %v3158_v35 = vrot.slane %v8393_v44, 7  ;;  %v3279_v6 = vrot.slane %v8393_v44, 1  ;;  %3990 = vmatmul.mubr.f32.gmra.mrb[52].mxu1 %v3153_v57  ;;  %v3807_v57 = vld [vmem:[#allocation10 + $0x130] sm:$0xff] }
 0x3eb   : > { %3994 = vmatprep.mubr.f32.mxu1 %v3098_v7  ;;  %5555 = vmatpush1.bf16.msra.mxu1 %v5554_v24  ;;  %v3808_v7 = vld [vmem:[#allocation10 + $0x138] sm:$0xff] }
 0x3ec   : > { %v8399_v32 = vsel %vm464_vm0, %v3156_v28, %v3158_v35  ;;  %v8404_v40 = vsel %vm464_vm0, %v3158_v35, %v8865_v27  ;;  %v8407_v63 = vsel %vm3271_vm1, %v3277_v54, %v3279_v6  ;;  %v8412_v41 = vsel %vm3271_vm1, %v3279_v6, %v8866_v51  ;;  %5556 = vmatprep.subr.bf16.mxu1 %v8864_v30  ;;  %v3811_v54 = vld [vmem:[#allocation10 + $0x150] sm:$0xff]  ;;  %v3812_v24 = vld [vmem:[#allocation10 + $0x158] sm:$0xff]  ;;  %v3814_v35 = vld [vmem:[#allocation10 + $0x168] sm:$0xff] }
 0x3ed   : > { %v5560_v28 = vpack.c.bf16 %v3808_v7, %v3807_v57  ;;  %v5566_v38 = vpack.c.bf16 %v3812_v24, %v3811_v54  ;;  %v3608_v6 = vld [vmem:[#allocation3 + $0x1b8] sm:$0xff]  ;;  %v3607_v57 = vld [vmem:[#allocation3 + $0x1b0] sm:$0xff]  ;;  %v3617_v7 = vld [vmem:[#allocation3 + $0x200] sm:$0xff]  ;;  %v5575_v24 = vpack.c.bf16 %v3818_v37, %v3817_v55 }
 0x3ee   : > { %3995 = vmatmul.mubr.f32.gmra.mrb[54].mxu1 %v3155_v21  ;;  %v3599_v21 = vld [vmem:[#allocation3 + $0x170] sm:$0xff]  ;;  %v3816_v51 = vld [vmem:[#allocation10 + $0x178] sm:$0xff]  ;;  %v3626_v54 = vld [vmem:[#allocation3 + $0x248] sm:$0xff] }
 0x3ef   : > { %3999 = vmatprep.mubr.f32.mxu1 %v8376_v50  ;;  %5558 = vmatpush1.bf16.msra.mxu1 %v5557_v11  ;;  %v5569_v11 = vpack.c.bf16 %v3814_v35, %v3813_v9  ;;  %v3815_v27 = vld [vmem:[#allocation10 + $0x170] sm:$0xff]  ;;  %v3625_v9 = vld [vmem:[#allocation3 + $0x240] sm:$0xff] }
 0x3f0   : > { %5559 = vmatprep.subr.bf16.mxu1 %v8864_v30  ;;  %v3635_v35 = vld [vmem:[#allocation3 + $0x290] sm:$0xff]  ;;  %v3824_v55 = vld [vmem:[#allocation10 + $0x1b8] sm:$0xff] }
 0x3f1   : > { %v3643_v37 = vld [vmem:[#allocation3 + $0x2d0] sm:$0xff] }
 0x3f2   : > { %4000 = vmatmul.mubr.f32.gmra.mrb[56].mxu1 %v8387_v0 }
 0x3f3   : > { %4004 = vmatprep.mubr.f32.mxu1 %v8393_v44  ;;  %5561 = vmatpush1.bf16.msra.mxu1 %v5560_v28  ;;  %v5572_v28 = vpack.c.bf16 %v3816_v51, %v3815_v27  ;;  %v3822_v27 = vld [vmem:[#allocation10 + $0x1a8] sm:$0xff] }
 0x3f4   : > { %5562 = vmatprep.subr.bf16.mxu1 %v8864_v30  ;;  %v3634_v51 = vld [vmem:[#allocation3 + $0x288] sm:$0xff] }
 0x3f6   : > { %4005 = vmatmul.mubr.f32.gmra.mrb[58].mxu1 %v8399_v32 }
 0x3f7   : > { %4009 = vmatprep.mubr.f32.mxu1 %v3599_v21  ;;  %5564 = vmatpush1.bf16.msra.mxu1 %v5563_v13  ;;  %v3616_v13 = vld [vmem:[#allocation3 + $0x1f8] sm:$0xff] }
 0x3f8   : > { %5565 = vmatprep.subr.bf16.mxu1 %v8864_v30  ;;  %v3819_v21 = vld [vmem:[#allocation10 + $0x190] sm:$0xff] }
 0x3fa   : > { %4010 = vmatmul.mubr.f32.gmra.mrb[60].mxu1 %v8404_v40 }
 0x3fb   : > { %4014 = vmatprep.mubr.f32.mxu1 %v3608_v6  ;;  %5567 = vmatpush1.bf16.msra.mxu1 %v5566_v38  ;;  %v3820_v38 = vld [vmem:[#allocation10 + $0x198] sm:$0xff] }
 0x3fc   : > { %5568 = vmatprep.subr.bf16.mxu1 %v8864_v30  ;;  %v5578_v6 = vpack.c.bf16 %v3820_v38, %v3819_v21  ;;  %v3826_v21 = vld [vmem:[#allocation10 + $0x1c8] sm:$0xff]  ;;  %v3652_v38 = vld [vmem:[#allocation3 + $0x318] sm:$0xff] }
 0x3fe   : > { %4015 = vmatmul.mubr.f32.gmra.mrb[62].mxu1 %v3607_v57  ;;  %v3644_v57 = vld [vmem:[#allocation3 + $0x2d8] sm:$0xff] }
 0x3ff   : > { %4019 = vmatprep.mubr.f32.mxu1 %v3617_v7  ;;  %5570 = vmatpush1.bf16.msra.mxu1 %v5569_v11  ;;  %v3821_v11 = vld [vmem:[#allocation10 + $0x1a0] sm:$0xff] }
 0x400   : > { %5571 = vmatprep.subr.bf16.mxu1 %v8864_v30  ;;  %v5581_v7 = vpack.c.bf16 %v3822_v27, %v3821_v11  ;;  %v3828_v11 = vld [vmem:[#allocation10 + $0x1d8] sm:$0xff] }
 0x401   : > { %v3661_v27 = vld [vmem:[#allocation3 + $0x360] sm:$0xff] }
 0x402   : > { %4020 = vmatmul.mubr.f32.gmra.mrb[64].mxu1 %v3616_v13  ;;  %v3653_v13 = vld [vmem:[#allocation3 + $0x320] sm:$0xff] }
 0x403   : > { %4024 = vmatprep.mubr.f32.mxu1 %v3626_v54  ;;  %5573 = vmatpush1.bf16.msra.mxu1 %v5572_v28  ;;  %v3823_v28 = vld [vmem:[#allocation10 + $0x1b0] sm:$0xff] }
 0x404   : > { %5574 = vmatprep.subr.bf16.mxu1 %v8864_v30  ;;  %v5584_v54 = vpack.c.bf16 %v3824_v55, %v3823_v28  ;;  %v3830_v28 = vld [vmem:[#allocation10 + $0x1e8] sm:$0xff] }
 0x405   : > { %v3670_v55 = vld [vmem:[#allocation3 + $0x3a8] sm:$0xff] }
 0x406   : > { %4025 = vmatmul.mubr.f32.gmra.mrb[66].mxu1 %v3625_v9  ;;  %v3662_v9 = vld [vmem:[#allocation3 + $0x368] sm:$0xff] }
 0x407   : > { %4029 = vmatprep.mubr.f32.mxu1 %v3635_v35  ;;  %5576 = vmatpush1.bf16.msra.mxu1 %v5575_v24  ;;  %v3825_v24 = vld [vmem:[#allocation10 + $0x1c0] sm:$0xff] }
 0x408   : > { %5577 = vmatprep.subr.bf16.mxu1 %v8864_v30  ;;  %v5587_v35 = vpack.c.bf16 %v3826_v21, %v3825_v24  ;;  %v3832_v24 = vld [vmem:[#allocation10 + $0x1f8] sm:$0xff]  ;;  %v3679_v21 = vld [vmem:[#allocation3 + $0x3f0] sm:$0xff] }
 0x40a   : > { %4030 = vmatmul.mubr.f32.gmra.mrb[68].mxu1 %v3634_v51  ;;  %v3671_v51 = vld [vmem:[#allocation3 + $0x3b0] sm:$0xff] }
 0x40b   : > { %4034 = vmatprep.mubr.f32.mxu1 %v3644_v57  ;;  %5579 = vmatpush1.bf16.msra.mxu1 %v5578_v6  ;;  %v3827_v6 = vld [vmem:[#allocation10 + $0x1d0] sm:$0xff] }
 0x40c   : > { %5580 = vmatprep.subr.bf16.mxu1 %v8864_v30  ;;  %v5590_v57 = vpack.c.bf16 %v3828_v11, %v3827_v6  ;;  %v3698_v6 = vld [vmem:[#allocation3 + $0x488] sm:$0xff]  ;;  %v3697_v11 = vld [vmem:[#allocation3 + $0x480] sm:$0xff] }
 0x40e   : > { %4035 = vmatmul.mubr.f32.gmra.mrb[70].mxu1 %v3643_v37  ;;  %v3680_v37 = vld [vmem:[#allocation3 + $0x3f8] sm:$0xff] }
 0x40f   : > { %4039 = vmatprep.mubr.f32.mxu1 %v3653_v13  ;;  %5582 = vmatpush1.bf16.msra.mxu1 %v5581_v7  ;;  %v3829_v7 = vld [vmem:[#allocation10 + $0x1e0] sm:$0xff] }
 0x410   : > { %5583 = vmatprep.subr.bf16.mxu1 %v8864_v30  ;;  %v5593_v13 = vpack.c.bf16 %v3830_v28, %v3829_v7  ;;  %v3845_v7 = vld [vmem:[#allocation10 + $0x260] sm:$0xff]  ;;  %v3846_v28 = vld [vmem:[#allocation10 + $0x268] sm:$0xff] }
 0x412   : > { %4040 = vmatmul.mubr.f32.gmra.mrb[72].mxu1 %v3652_v38  ;;  %v3689_v38 = vld [vmem:[#allocation3 + $0x440] sm:$0xff] }
 0x413   : > { %4044 = vmatprep.mubr.f32.mxu1 %v3662_v9  ;;  %5585 = vmatpush1.bf16.msra.mxu1 %v5584_v54  ;;  %v3831_v54 = vld [vmem:[#allocation10 + $0x1f0] sm:$0xff] }
 0x414   : > { %5586 = vmatprep.subr.bf16.mxu1 %v8864_v30  ;;  %v5596_v9 = vpack.c.bf16 %v3832_v24, %v3831_v54  ;;  %v3847_v54 = vld [vmem:[#allocation10 + $0x270] sm:$0xff]  ;;  %v3848_v24 = vld [vmem:[#allocation10 + $0x278] sm:$0xff] }
 0x416   : > { %4045 = vmatmul.mubr.f32.gmra.mrb[74].mxu1 %v3661_v27  ;;  %v3706_v27 = vld [vmem:[#allocation3 + $0x4c8] sm:$0xff] }
 0x417   : > { %4049 = vmatprep.mubr.f32.mxu1 %v3671_v51  ;;  %5588 = vmatpush1.bf16.msra.mxu1 %v5587_v35  ;;  %v3688_v35 = vld [vmem:[#allocation3 + $0x438] sm:$0xff] }
 0x418   : > { %5589 = vmatprep.subr.bf16.mxu1 %v8864_v30  ;;  %v3844_v51 = vld [vmem:[#allocation10 + $0x258] sm:$0xff] }
 0x41a   : > { %4050 = vmatmul.mubr.f32.gmra.mrb[76].mxu1 %v3670_v55  ;;  %v3600_v55 = vld [vmem:[#allocation3 + $0x178] sm:$0xff] }
 0x41b   : > { %4054 = vmatprep.mubr.f32.mxu1 %v3680_v37  ;;  %5591 = vmatpush1.bf16.msra.mxu1 %v5590_v57  ;;  %v3610_v37 = vld [vmem:[#allocation3 + $0x1c8] sm:$0xff] }
 0x41c   : > { %5592 = vmatprep.subr.bf16.mxu1 %v8864_v30 }
 0x41e   : > { %4055 = vmatmul.mubr.f32.gmra.mrb[78].mxu1 %v3679_v21  ;;  %v3609_v21 = vld [vmem:[#allocation3 + $0x1c0] sm:$0xff] }
 0x41f   : > { %4059 = vmatprep.mubr.f32.mxu1 %v3689_v38  ;;  %5594 = vmatpush1.bf16.msra.mxu1 %v5593_v13  ;;  %v5617_v13 = vpack.c.bf16 %v3846_v28, %v3845_v7  ;;  %v3619_v38 = vld [vmem:[#allocation3 + $0x210] sm:$0xff]  ;;  %v3860_v28 = vld [vmem:[#allocation10 + $0x2d8] sm:$0xff] }
 0x420   : > { %5595 = vmatprep.subr.bf16.mxu1 %v8864_v30  ;;  %v3859_v7 = vld [vmem:[#allocation10 + $0x2d0] sm:$0xff] }
 0x422   : > { %4060 = vmatmul.mubr.f32.gmra.mrb[80].mxu1 %v3688_v35  ;;  %v3849_v35 = vld [vmem:[#allocation10 + $0x280] sm:$0xff] }
 0x423   : > { %4064 = vmatprep.mubr.f32.mxu1 %v3698_v6  ;;  %5597 = vmatpush1.bf16.msra.mxu1 %v5596_v9  ;;  %v5620_v9 = vpack.c.bf16 %v3848_v24, %v3847_v54  ;;  %v3850_v6 = vld [vmem:[#allocation10 + $0x288] sm:$0xff]  ;;  %v3861_v54 = vld [vmem:[#allocation10 + $0x2e0] sm:$0xff] }
 0x424   : > { %5598 = vmatprep.subr.bf16.mxu1 %v8864_v30  ;;  %v3862_v24 = vld [vmem:[#allocation10 + $0x2e8] sm:$0xff] }
 0x426   : > { %4065 = vmatmul.mubr.f32.gmra.mrb[82].mxu1 %v3697_v11  ;;  %v3618_v11 = vld [vmem:[#allocation3 + $0x208] sm:$0xff] }
 0x427   : > { %4069 = vmatprep.mubr.f32.mxu1 %v8213_v42  ;;  %v3833_v42 = vld [vmem:[#allocation10 + $0x200] sm:$0xff] }
 0x42a   : > { %4070 = vmatmul.mubr.f32.gmra.mrb[84].mxu1 %v3706_v27  ;;  %v3628_v27 = vld [vmem:[#allocation3 + $0x258] sm:$0xff] }
 0x42b   : > { %4074 = vmatprep.mubr.f32.mxu1 %v8226_v26  ;;  %v3834_v26 = vld [vmem:[#allocation10 + $0x208] sm:$0xff] }
 0x42e   : > { %4075 = vmatmul.mubr.f32.gmra.mrb[86].mxu1 %v8237_v49  ;;  %v5599_v49 = vpack.c.bf16 %v3834_v26, %v3833_v42  ;;  %v5623_v42 = vpack.c.bf16 %v3850_v6, %v3849_v35  ;;  %v3851_v26 = vld [vmem:[#allocation10 + $0x290] sm:$0xff]  ;;  %v3864_v6 = vld [vmem:[#allocation10 + $0x2f8] sm:$0xff] }
 0x42f   : > { %4079 = vmatprep.mubr.f32.mxu1 %v8241_v53  ;;  %v3835_v53 = vld [vmem:[#allocation10 + $0x210] sm:$0xff] }
 0x430   : > { %v3863_v35 = vld [vmem:[#allocation10 + $0x2f0] sm:$0xff] }
 0x432   : > { %4080 = vmatmul.mubr.f32.gmra.mrb[88].mxu1 %v8254_v59  ;;  %v3836_v59 = vld [vmem:[#allocation10 + $0x218] sm:$0xff] }
 0x433   : > { %4084 = vmatprep.mubr.f32.mxu1 %v8258_v25  ;;  %v5602_v25 = vpack.c.bf16 %v3836_v59, %v3835_v53  ;;  %v3627_v53 = vld [vmem:[#allocation3 + $0x250] sm:$0xff]  ;;  %v3637_v59 = vld [vmem:[#allocation3 + $0x2a0] sm:$0xff] }
 0x436   : > { %4085 = vmatmul.mubr.f32.gmra.mrb[90].mxu1 %v8271_v29  ;;  %v3837_v29 = vld [vmem:[#allocation10 + $0x220] sm:$0xff] }
 0x437   : > { %4089 = vmatprep.mubr.f32.mxu1 %v8275_v61  ;;  %v3838_v61 = vld [vmem:[#allocation10 + $0x228] sm:$0xff] }
 0x43a   : > { %4090 = vmatmul.mubr.f32.gmra.mrb[92].mxu1 %v8288_v18  ;;  %v5605_v18 = vpack.c.bf16 %v3838_v61, %v3837_v29  ;;  %v3853_v29 = vld [vmem:[#allocation10 + $0x2a0] sm:$0xff]  ;;  %v3854_v61 = vld [vmem:[#allocation10 + $0x2a8] sm:$0xff] }
 0x43b   : > { %4094 = vmatprep.mubr.f32.mxu1 %v8292_v36  ;;  %v3839_v36 = vld [vmem:[#allocation10 + $0x230] sm:$0xff] }
 0x43e   : > { %4095 = vmatmul.mubr.f32.gmra.mrb[94].mxu1 %v8305_v16  ;;  %v3840_v16 = vld [vmem:[#allocation10 + $0x238] sm:$0xff] }
 0x43f   : > { %4099 = vmatprep.mubr.f32.mxu1 %v8309_v58  ;;  %v3583_v58 = vld [vmem:[#allocation3 + $0xf0] sm:$0xff] }
 0x442   : > { %4100 = vmatmul.mubr.f32.gmra.mrb[96].mxu1 %v8322_v56  ;;  %v5608_v56 = vpack.c.bf16 %v3840_v16, %v3839_v36  ;;  %v3646_v36 = vld [vmem:[#allocation3 + $0x2e8] sm:$0xff]  ;;  %v5629_v16 = vpack.c.bf16 %v3854_v61, %v3853_v29  ;;  %v3717_v61 = vld [vmem:[#allocation3 + $0x520] sm:$0xff] }
 0x443   : > { %4169 = vmatprep.mubr.f32.mxu1 %v8387_v0  ;;  %v3842_v0 = vld [vmem:[#allocation10 + $0x248] sm:$0xff] }
 0x444   : > { %v3718_v29 = vld [vmem:[#allocation3 + $0x528] sm:$0xff] }
 0x446   : > { %4170 = vmatmul.mubr.f32.vlgmr.msra.gmra.mrb[50].mxu1 %v8372_v52  ;;  %v3841_v52 = vld [vmem:[#allocation10 + $0x240] sm:$0xff] }
 0x447   : > { %4174 = vmatprep.mubr.f32.mxu1 %v8399_v32  ;;  %5600 = vmatpush1.bf16.msra.mxu1 %v5599_v49  ;;  %v5611_v32 = vpack.c.bf16 %v3842_v0, %v3841_v52  ;;  %v3852_v49 = vld [vmem:[#allocation10 + $0x298] sm:$0xff]  ;;  %v3655_v0 = vld [vmem:[#allocation3 + $0x330] sm:$0xff] }
 0x448   : > { %5601 = vmatprep.subr.bf16.mxu1 %v8864_v30  ;;  %v3645_v52 = vld [vmem:[#allocation3 + $0x2e0] sm:$0xff] }
 0x44a   : > { %4175 = vmatmul.mubr.f32.gmra.mrb[52].mxu1 %v8382_v3  ;;  %v3592_v3 = vld [vmem:[#allocation3 + $0x138] sm:$0xff] }
 0x44b   : > { %4179 = vmatprep.mubr.f32.mxu1 %v8404_v40  ;;  %5603 = vmatpush1.bf16.msra.mxu1 %v5602_v25  ;;  %v3843_v40 = vld [vmem:[#allocation10 + $0x250] sm:$0xff]  ;;  %v5626_v25 = vpack.c.bf16 %v3852_v49, %v3851_v26  ;;  %v3690_v26 = vld [vmem:[#allocation3 + $0x448] sm:$0xff] }
 0x44c   : > { %5604 = vmatprep.subr.bf16.mxu1 %v8864_v30  ;;  %v5614_v57 = vpack.c.bf16 %v3844_v51, %v3843_v40  ;;  %v3858_v40 = vld [vmem:[#allocation10 + $0x2c8] sm:$0xff]  ;;  %v3700_v49 = vld [vmem:[#allocation3 + $0x498] sm:$0xff] }
 0x44d   : > { %v3654_v51 = vld [vmem:[#allocation3 + $0x328] sm:$0xff] }
 0x44e   : > { %4180 = vmatmul.mubr.f32.gmra.mrb[54].mxu1 %v8390_v47  ;;  %v3601_v47 = vld [vmem:[#allocation3 + $0x180] sm:$0xff] }
 0x44f   : > { %4184 = vmatprep.mubr.f32.mxu1 %v3583_v58  ;;  %5606 = vmatpush1.bf16.msra.mxu1 %v5605_v18  ;;  %v3636_v18 = vld [vmem:[#allocation3 + $0x298] sm:$0xff] }
 0x450   : > { %5607 = vmatprep.subr.bf16.mxu1 %v8864_v30  ;;  %v3855_v58 = vld [vmem:[#allocation10 + $0x2b0] sm:$0xff] }
 0x452   : > { %4185 = vmatmul.mubr.f32.gmra.mrb[56].mxu1 %v8407_v63 }
 0x453   : > { %4189 = vmatprep.mubr.f32.mxu1 %v3592_v3  ;;  %5609 = vmatpush1.bf16.msra.mxu1 %v5608_v56  ;;  %v3856_v56 = vld [vmem:[#allocation10 + $0x2b8] sm:$0xff] }
 0x454   : > { %5610 = vmatprep.subr.bf16.mxu1 %v8864_v30  ;;  %v5632_v3 = vpack.c.bf16 %v3856_v56, %v3855_v58  ;;  %v3735_v58 = vld [vmem:[#allocation3 + $0x5b0] sm:$0xff]  ;;  %v3745_v56 = vld [vmem:[#allocation3 + $0x600] sm:$0xff] }
 0x456   : > { %4190 = vmatmul.mubr.f32.gmra.mrb[58].mxu1 %v8412_v41 }
 0x457   : > { %4194 = vmatprep.mubr.f32.mxu1 %v3601_v47  ;;  %5612 = vmatpush1.bf16.msra.mxu1 %v5611_v32  ;;  %v3857_v32 = vld [vmem:[#allocation10 + $0x2c0] sm:$0xff]  ;;  %v3664_v47 = vld [vmem:[#allocation3 + $0x378] sm:$0xff] }
 0x458   : > { %5613 = vmatprep.subr.bf16.mxu1 %v8864_v30 }
 0x45a   : > { %4195 = vmatmul.mubr.f32.gmra.mrb[60].mxu1 %v3600_v55  ;;  %v3663_v55 = vld [vmem:[#allocation3 + $0x370] sm:$0xff] }
 0x45b   : > { %4199 = vmatprep.mubr.f32.mxu1 %v3610_v37  ;;  %5615 = vmatpush1.bf16.msra.mxu1 %v5614_v57  ;;  %v5635_v57 = vpack.c.bf16 %v3858_v40, %v3857_v32  ;;  %v3673_v37 = vld [vmem:[#allocation3 + $0x3c0] sm:$0xff]  ;;  %v3866_v32 = vld [vmem:[#allocation10 + $0x308] sm:$0xff] }
 0x45c   : > { %5616 = vmatprep.subr.bf16.mxu1 %v8864_v30  ;;  %v3762_v40 = vld [vmem:[#allocation3 + $0x688] sm:$0xff] }
 0x45e   : > { %4200 = vmatmul.mubr.f32.gmra.mrb[62].mxu1 %v3609_v21  ;;  %v3672_v21 = vld [vmem:[#allocation3 + $0x3b8] sm:$0xff] }
 0x45f   : > { %4204 = vmatprep.mubr.f32.mxu1 %v3619_v38  ;;  %5618 = vmatpush1.bf16.msra.mxu1 %v5617_v13  ;;  %v5638_v13 = vpack.c.bf16 %v3860_v28, %v3859_v7  ;;  %v3682_v38 = vld [vmem:[#allocation3 + $0x408] sm:$0xff] }
 0x460   : > { %5619 = vmatprep.subr.bf16.mxu1 %v8864_v30  ;;  %v3870_v28 = vld [vmem:[#allocation10 + $0x328] sm:$0xff] }
 0x462   : > { %4205 = vmatmul.mubr.f32.gmra.mrb[64].mxu1 %v3618_v11  ;;  %v3681_v11 = vld [vmem:[#allocation3 + $0x400] sm:$0xff] }
 0x463   : > { %4209 = vmatprep.mubr.f32.mxu1 %v3628_v27  ;;  %5621 = vmatpush1.bf16.msra.mxu1 %v5620_v9  ;;  %v5641_v9 = vpack.c.bf16 %v3862_v24, %v3861_v54  ;;  %v3691_v27 = vld [vmem:[#allocation3 + $0x450] sm:$0xff]  ;;  %v3873_v54 = vld [vmem:[#allocation10 + $0x340] sm:$0xff] }
 0x464   : > { %5622 = vmatprep.subr.bf16.mxu1 %v8864_v30  ;;  %v3874_v24 = vld [vmem:[#allocation10 + $0x348] sm:$0xff] }
 0x466   : > { %4210 = vmatmul.mubr.f32.gmra.mrb[66].mxu1 %v3627_v53  ;;  %v3699_v53 = vld [vmem:[#allocation3 + $0x490] sm:$0xff] }
 0x467   : > { %4214 = vmatprep.mubr.f32.mxu1 %v3637_v59  ;;  %5624 = vmatpush1.bf16.msra.mxu1 %v5623_v42  ;;  %v5644_v42 = vpack.c.bf16 %v3864_v6, %v3863_v35  ;;  %v3709_v59 = vld [vmem:[#allocation3 + $0x4e0] sm:$0xff] }
 0x468   : > { %5625 = vmatprep.subr.bf16.mxu1 %v8864_v30  ;;  %v3876_v35 = vld [vmem:[#allocation10 + $0x358] sm:$0xff] }
 0x469   : > { %v3593_v6 = vld [vmem:[#allocation3 + $0x140] sm:$0xff] }
 0x46a   : > { %4215 = vmatmul.mubr.f32.gmra.mrb[68].mxu1 %v3636_v18  ;;  %v3727_v18 = vld [vmem:[#allocation3 + $0x570] sm:$0xff] }
 0x46b   : > { %4219 = vmatprep.mubr.f32.mxu1 %v3646_v36  ;;  %5627 = vmatpush1.bf16.msra.mxu1 %v5626_v25  ;;  %v3708_v25 = vld [vmem:[#allocation3 + $0x4d8] sm:$0xff]  ;;  %v3726_v36 = vld [vmem:[#allocation3 + $0x568] sm:$0xff] }
 0x46c   : > { %5628 = vmatprep.subr.bf16.mxu1 %v8864_v30 }
 0x46e   : > { %4220 = vmatmul.mubr.f32.gmra.mrb[70].mxu1 %v3645_v52  ;;  %v3744_v52 = vld [vmem:[#allocation3 + $0x5f8] sm:$0xff] }
 0x46f   : > { %4224 = vmatprep.mubr.f32.mxu1 %v3655_v0  ;;  %5630 = vmatpush1.bf16.msra.mxu1 %v5629_v16  ;;  %v3736_v16 = vld [vmem:[#allocation3 + $0x5b8] sm:$0xff]  ;;  %v3753_v0 = vld [vmem:[#allocation3 + $0x640] sm:$0xff] }
 0x470   : > { %5631 = vmatprep.subr.bf16.mxu1 %v8864_v30 }
 0x472   : > { %4225 = vmatmul.mubr.f32.gmra.mrb[72].mxu1 %v3654_v51 }
 0x473   : > { %4229 = vmatprep.mubr.f32.mxu1 %v3664_v47  ;;  %5633 = vmatpush1.bf16.msra.mxu1 %v5632_v3  ;;  %v3865_v3 = vld [vmem:[#allocation10 + $0x300] sm:$0xff]  ;;  %v3867_v47 = vld [vmem:[#allocation10 + $0x310] sm:$0xff] }
 0x474   : > { %5634 = vmatprep.subr.bf16.mxu1 %v8864_v30  ;;  %v5647_v51 = vpack.c.bf16 %v3866_v32, %v3865_v3  ;;  %v3883_v3 = vld [vmem:[#allocation10 + $0x390] sm:$0xff]  ;;  %v3884_v32 = vld [vmem:[#allocation10 + $0x398] sm:$0xff] }
 0x476   : > { %4230 = vmatmul.mubr.f32.gmra.mrb[74].mxu1 %v3663_v55 }
 0x477   : > { %4234 = vmatprep.mubr.f32.mxu1 %v3673_v37  ;;  %5636 = vmatpush1.bf16.msra.mxu1 %v5635_v57  ;;  %v3868_v57 = vld [vmem:[#allocation10 + $0x318] sm:$0xff] }
 0x478   : > { %5637 = vmatprep.subr.bf16.mxu1 %v8864_v30  ;;  %v5650_v7 = vpack.c.bf16 %v3868_v57, %v3867_v47  ;;  %v3872_v37 = vld [vmem:[#allocation10 + $0x338] sm:$0xff]  ;;  %v5674_v47 = vpack.c.bf16 %v3884_v32, %v3883_v3  ;;  %v3885_v57 = vld [vmem:[#allocation10 + $0x3a0] sm:$0xff]  ;;  %v3711_v3 = vld [vmem:[#allocation3 + $0x4f0] sm:$0xff] }
 0x479   : > { %v3710_v32 = vld [vmem:[#allocation3 + $0x4e8] sm:$0xff] }
 0x47a   : > { %4235 = vmatmul.mubr.f32.gmra.mrb[76].mxu1 %v3672_v21  ;;  %v3584_v21 = vld [vmem:[#allocation3 + $0xf8] sm:$0xff] }
 0x47b   : > { %4239 = vmatprep.mubr.f32.mxu1 %v3682_v38  ;;  %5639 = vmatpush1.bf16.msra.mxu1 %v5638_v13  ;;  %v3575_v13 = vld [vmem:[#allocation3 + $0xb0] sm:$0xff]  ;;  %v5659_v38 = vpack.c.bf16 %v3874_v24, %v3873_v54  ;;  %v3656_v24 = vld [vmem:[#allocation3 + $0x338] sm:$0xff] }
 0x47c   : > { %5640 = vmatprep.subr.bf16.mxu1 %v8864_v30  ;;  %v3890_v54 = vld [vmem:[#allocation10 + $0x3c8] sm:$0xff] }
 0x47e   : > { %4240 = vmatmul.mubr.f32.gmra.mrb[78].mxu1 %v3681_v11  ;;  %v3603_v11 = vld [vmem:[#allocation3 + $0x190] sm:$0xff] }
 0x47f   : > { %4244 = vmatprep.mubr.f32.mxu1 %v3691_v27  ;;  %5642 = vmatpush1.bf16.msra.mxu1 %v5641_v9  ;;  %v3875_v9 = vld [vmem:[#allocation10 + $0x350] sm:$0xff] }
 0x480   : > { %5643 = vmatprep.subr.bf16.mxu1 %v8864_v30  ;;  %v5662_v27 = vpack.c.bf16 %v3876_v35, %v3875_v9  ;;  %v3892_v9 = vld [vmem:[#allocation10 + $0x3d8] sm:$0xff] }
 0x481   : > { %v3665_v35 = vld [vmem:[#allocation3 + $0x380] sm:$0xff] }
 0x482   : > { %4245 = vmatmul.mubr.f32.gmra.mrb[80].mxu1 %v3690_v26  ;;  %v3878_v26 = vld [vmem:[#allocation10 + $0x368] sm:$0xff] }
 0x483   : > { %4249 = vmatprep.mubr.f32.mxu1 %v3700_v49  ;;  %5645 = vmatpush1.bf16.msra.mxu1 %v5644_v42  ;;  %v3877_v42 = vld [vmem:[#allocation10 + $0x360] sm:$0xff] }
 0x484   : > { %5646 = vmatprep.subr.bf16.mxu1 %v8864_v30  ;;  %v3602_v49 = vld [vmem:[#allocation3 + $0x188] sm:$0xff] }
 0x486   : > { %4250 = vmatmul.mubr.f32.gmra.mrb[82].mxu1 %v3699_v53  ;;  %v3612_v53 = vld [vmem:[#allocation3 + $0x1d8] sm:$0xff] }
 0x487   : > { %4254 = vmatprep.mubr.f32.mxu1 %v3709_v59  ;;  %v5665_v59 = vpack.c.bf16 %v3878_v26, %v3877_v42  ;;  %v3894_v42 = vld [vmem:[#allocation10 + $0x3e8] sm:$0xff] }
 0x488   : > { %v3674_v26 = vld [vmem:[#allocation3 + $0x3c8] sm:$0xff] }
 0x48a   : > { %4255 = vmatmul.mubr.f32.gmra.mrb[84].mxu1 %v3708_v25  ;;  %v3879_v25 = vld [vmem:[#allocation10 + $0x370] sm:$0xff] }
 0x48b   : > { %4259 = vmatprep.mubr.f32.mxu1 %v3718_v29  ;;  %v3880_v29 = vld [vmem:[#allocation10 + $0x378] sm:$0xff] }
 0x48e   : > { %4260 = vmatmul.mubr.f32.gmra.mrb[86].mxu1 %v3717_v61  ;;  %v3611_v61 = vld [vmem:[#allocation3 + $0x1d0] sm:$0xff] }
 0x48f   : > { %4264 = vmatprep.mubr.f32.mxu1 %v3727_v18  ;;  %v3621_v18 = vld [vmem:[#allocation3 + $0x220] sm:$0xff] }
 0x492   : > { %4265 = vmatmul.mubr.f32.gmra.mrb[88].mxu1 %v3726_v36  ;;  %v5668_v36 = vpack.c.bf16 %v3880_v29, %v3879_v25  ;;  %v3896_v25 = vld [vmem:[#allocation10 + $0x3f8] sm:$0xff]  ;;  %v3683_v29 = vld [vmem:[#allocation3 + $0x410] sm:$0xff] }
 0x493   : > { %4269 = vmatprep.mubr.f32.mxu1 %v3736_v16  ;;  %v3881_v16 = vld [vmem:[#allocation10 + $0x380] sm:$0xff] }
 0x496   : > { %4270 = vmatmul.mubr.f32.gmra.mrb[90].mxu1 %v3735_v58  ;;  %v3882_v58 = vld [vmem:[#allocation10 + $0x388] sm:$0xff] }
 0x497   : > { %4274 = vmatprep.mubr.f32.mxu1 %v3745_v56  ;;  %v3620_v56 = vld [vmem:[#allocation3 + $0x218] sm:$0xff] }
 0x49a   : > { %4275 = vmatmul.mubr.f32.gmra.mrb[92].mxu1 %v3744_v52  ;;  %v3630_v52 = vld [vmem:[#allocation3 + $0x268] sm:$0xff] }
 0x49b   : > { %4279 = vmatprep.mubr.f32.mxu1 %v8337_v34  ;;  %v3869_v34 = vld [vmem:[#allocation10 + $0x320] sm:$0xff] }
 0x49c   : > { %v5653_v55 = vpack.c.bf16 %v3870_v28, %v3869_v34  ;;  %v3638_v34 = vld [vmem:[#allocation3 + $0x2a8] sm:$0xff]  ;;  %v3648_v28 = vld [vmem:[#allocation3 + $0x2f8] sm:$0xff] }
 0x49e   : > { %4280 = vmatmul.mubr.f32.gmra.mrb[94].mxu1 %v3753_v0  ;;  %v5671_v0 = vpack.c.bf16 %v3882_v58, %v3881_v16 }
 0x49f   : > { %4284 = vmatprep.mubr.f32.mxu1 %v8345_v19  ;;  %v3576_v19 = vld [vmem:[#allocation3 + $0xb8] sm:$0xff] }
 0x4a2   : > { %4285 = vmatmul.mubr.f32.gmra.mrb[96].mxu1 %v3762_v40  ;;  %v3629_v40 = vld [vmem:[#allocation3 + $0x260] sm:$0xff] }
 0x4a3   : > { %4354 = vmatprep.mubr.f32.mxu1 %v8407_v63  ;;  %v3871_v63 = vld [vmem:[#allocation10 + $0x330] sm:$0xff] }
 0x4a6   : > { %4355 = vmatmul.mubr.f32.vlgmr.msra.gmra.mrb[50].mxu1 %v8376_v50  ;;  %v3585_v50 = vld [vmem:[#allocation3 + $0x100] sm:$0xff] }
 0x4a7   : > { %4359 = vmatprep.mubr.f32.mxu1 %v8412_v41  ;;  %5648 = vmatpush1.bf16.msra.mxu1 %v5647_v51  ;;  %v5656_v41 = vpack.c.bf16 %v3872_v37, %v3871_v63  ;;  %v3639_v51 = vld [vmem:[#allocation3 + $0x2b0] sm:$0xff]  ;;  %v3888_v63 = vld [vmem:[#allocation10 + $0x3b8] sm:$0xff] }
 0x4a8   : > { %5649 = vmatprep.subr.bf16.mxu1 %v8864_v30  ;;  %v3647_v37 = vld [vmem:[#allocation3 + $0x2f0] sm:$0xff] }
 0x4aa   : > { %4360 = vmatmul.mubr.f32.gmra.mrb[52].mxu1 %v8393_v44  ;;  %v3594_v44 = vld [vmem:[#allocation3 + $0x148] sm:$0xff] }
 0x4ab   : > { %4364 = vmatprep.mubr.f32.mxu1 %v3576_v19  ;;  %5651 = vmatpush1.bf16.msra.mxu1 %v5650_v7  ;;  %v3886_v7 = vld [vmem:[#allocation10 + $0x3a8] sm:$0xff] }
 0x4ac   : > { %5652 = vmatprep.subr.bf16.mxu1 %v8864_v30  ;;  %v5677_v19 = vpack.c.bf16 %v3886_v7, %v3885_v57  ;;  %v3738_v57 = vld [vmem:[#allocation3 + $0x5c8] sm:$0xff]  ;;  %v3737_v7 = vld [vmem:[#allocation3 + $0x5c0] sm:$0xff] }
 0x4ae   : > { %4365 = vmatmul.mubr.f32.gmra.mrb[54].mxu1 %v3575_v13  ;;  %v3657_v13 = vld [vmem:[#allocation3 + $0x340] sm:$0xff] }
 0x4af   : > { %4369 = vmatprep.mubr.f32.mxu1 %v3585_v50  ;;  %5654 = vmatpush1.bf16.msra.mxu1 %v5653_v55  ;;  %v3887_v55 = vld [vmem:[#allocation10 + $0x3b0] sm:$0xff] }
 0x4b0   : > { %5655 = vmatprep.subr.bf16.mxu1 %v8864_v30  ;;  %v5680_v50 = vpack.c.bf16 %v3888_v63, %v3887_v55  ;;  %v3755_v55 = vld [vmem:[#allocation3 + $0x650] sm:$0xff]  ;;  %v3765_v63 = vld [vmem:[#allocation3 + $0x6a0] sm:$0xff] }
 0x4b2   : > { %4370 = vmatmul.mubr.f32.gmra.mrb[56].mxu1 %v3584_v21  ;;  %v3666_v21 = vld [vmem:[#allocation3 + $0x388] sm:$0xff] }
 0x4b3   : > { %4374 = vmatprep.mubr.f32.mxu1 %v3594_v44  ;;  %5657 = vmatpush1.bf16.msra.mxu1 %v5656_v41  ;;  %v3889_v41 = vld [vmem:[#allocation10 + $0x3c0] sm:$0xff] }
 0x4b4   : > { %5658 = vmatprep.subr.bf16.mxu1 %v8864_v30  ;;  %v5683_v44 = vpack.c.bf16 %v3890_v54, %v3889_v41  ;;  %v3560_v41 = vld [vmem:[#allocation3 + $0x38] sm:$0xff] }
 0x4b6   : > { %4375 = vmatmul.mubr.f32.gmra.mrb[58].mxu1 %v3593_v6  ;;  %v3675_v6 = vld [vmem:[#allocation3 + $0x3d0] sm:$0xff] }
 0x4b7   : > { %4379 = vmatprep.mubr.f32.mxu1 %v3603_v11  ;;  %5660 = vmatpush1.bf16.msra.mxu1 %v5659_v38  ;;  %v3891_v38 = vld [vmem:[#allocation10 + $0x3d0] sm:$0xff] }
 0x4b8   : > { %5661 = vmatprep.subr.bf16.mxu1 %v8864_v30  ;;  %v5686_v11 = vpack.c.bf16 %v3892_v9, %v3891_v38  ;;  %v3569_v38 = vld [vmem:[#allocation3 + $0x80] sm:$0xff] }
 0x4ba   : > { %4380 = vmatmul.mubr.f32.gmra.mrb[60].mxu1 %v3602_v49  ;;  %v3684_v49 = vld [vmem:[#allocation3 + $0x418] sm:$0xff] }
 0x4bb   : > { %4384 = vmatprep.mubr.f32.mxu1 %v3612_v53  ;;  %5663 = vmatpush1.bf16.msra.mxu1 %v5662_v27  ;;  %v3893_v27 = vld [vmem:[#allocation10 + $0x3e0] sm:$0xff] }
 0x4bc   : > { %5664 = vmatprep.subr.bf16.mxu1 %v8864_v30  ;;  %v5689_v53 = vpack.c.bf16 %v3894_v42, %v3893_v27  ;;  %v3578_v27 = vld [vmem:[#allocation3 + $0xc8] sm:$0xff] }
 0x4be   : > { %4385 = vmatmul.mubr.f32.gmra.mrb[62].mxu1 %v3611_v61  ;;  %v3897_v61 = vld [vmem:[#allocation10 + $0x400] sm:$0xff] }
 0x4bf   : > { %4389 = vmatprep.mubr.f32.mxu1 %v3621_v18  ;;  %5666 = vmatpush1.bf16.msra.mxu1 %v5665_v59  ;;  %v3895_v59 = vld [vmem:[#allocation10 + $0x3f0] sm:$0xff]  ;;  %v3898_v18 = vld [vmem:[#allocation10 + $0x408] sm:$0xff] }
 0x4c0   : > { %5667 = vmatprep.subr.bf16.mxu1 %v8864_v30  ;;  %v5692_v16 = vpack.c.bf16 %v3896_v25, %v3895_v59  ;;  %v5694_v58 = vpack.c.bf16 %v3898_v18, %v3897_v61  ;;  %v3587_v59 = vld [vmem:[#allocation3 + $0x110] sm:$0xff]  ;;  %v3908_v18 = vld [vmem:[#allocation10 + $0x458] sm:$0xff] }
 0x4c1   : > { %v3907_v61 = vld [vmem:[#allocation10 + $0x450] sm:$0xff] }
 0x4c2   : > { %4390 = vmatmul.mubr.f32.gmra.mrb[64].mxu1 %v3620_v56  ;;  %v3692_v56 = vld [vmem:[#allocation3 + $0x458] sm:$0xff] }
 0x4c3   : > { %4394 = vmatprep.mubr.f32.mxu1 %v3630_v52  ;;  %5669 = vmatpush1.bf16.msra.mxu1 %v5668_v36  ;;  %v3693_v36 = vld [vmem:[#allocation3 + $0x460] sm:$0xff]  ;;  %v3702_v52 = vld [vmem:[#allocation3 + $0x4a8] sm:$0xff] }
 0x4c4   : > { %5670 = vmatprep.subr.bf16.mxu1 %v8864_v30 }
 0x4c6   : > { %4395 = vmatmul.mubr.f32.gmra.mrb[66].mxu1 %v3629_v40  ;;  %v3720_v40 = vld [vmem:[#allocation3 + $0x538] sm:$0xff] }
 0x4c7   : > { %4399 = vmatprep.mubr.f32.mxu1 %v3639_v51  ;;  %5672 = vmatpush1.bf16.msra.mxu1 %v5671_v0  ;;  %v3701_v0 = vld [vmem:[#allocation3 + $0x4a0] sm:$0xff]  ;;  %v3719_v51 = vld [vmem:[#allocation3 + $0x530] sm:$0xff] }
 0x4c8   : > { %5673 = vmatprep.subr.bf16.mxu1 %v8864_v30 }
 0x4ca   : > { %4400 = vmatmul.mubr.f32.gmra.mrb[68].mxu1 %v3638_v34  ;;  %v3747_v34 = vld [vmem:[#allocation3 + $0x610] sm:$0xff] }
 0x4cb   : > { %4404 = vmatprep.mubr.f32.mxu1 %v3648_v28  ;;  %5675 = vmatpush1.bf16.msra.mxu1 %v5674_v47  ;;  %v3729_v47 = vld [vmem:[#allocation3 + $0x580] sm:$0xff]  ;;  %v3746_v28 = vld [vmem:[#allocation3 + $0x608] sm:$0xff] }
 0x4cc   : > { %5676 = vmatprep.subr.bf16.mxu1 %v8864_v30 }
 0x4ce   : > { %4405 = vmatmul.mubr.f32.gmra.mrb[70].mxu1 %v3647_v37  ;;  %v3764_v37 = vld [vmem:[#allocation3 + $0x698] sm:$0xff] }
 0x4cf   : > { %4409 = vmatprep.mubr.f32.mxu1 %v3657_v13  ;;  %5678 = vmatpush1.bf16.msra.mxu1 %v5677_v19  ;;  %v3756_v19 = vld [vmem:[#allocation3 + $0x658] sm:$0xff] }
 0x4d0   : > { %5679 = vmatprep.subr.bf16.mxu1 %v8864_v30  ;;  %v3899_v13 = vld [vmem:[#allocation10 + $0x410] sm:$0xff] }
 0x4d2   : > { %4410 = vmatmul.mubr.f32.gmra.mrb[72].mxu1 %v3656_v24  ;;  %v3559_v24 = vld [vmem:[#allocation3 + $0x30] sm:$0xff] }
 0x4d3   : > { %4414 = vmatprep.mubr.f32.mxu1 %v3666_v21  ;;  %5681 = vmatpush1.bf16.msra.mxu1 %v5680_v50  ;;  %v3900_v50 = vld [vmem:[#allocation10 + $0x418] sm:$0xff]  ;;  %v3901_v21 = vld [vmem:[#allocation10 + $0x420] sm:$0xff] }
 0x4d4   : > { %5682 = vmatprep.subr.bf16.mxu1 %v8864_v30  ;;  %v5698_v54 = vpack.c.bf16 %v3900_v50, %v3899_v13  ;;  %v3649_v13 = vld [vmem:[#allocation3 + $0x300] sm:$0xff]  ;;  %v3659_v50 = vld [vmem:[#allocation3 + $0x350] sm:$0xff] }
 0x4d6   : > { %4415 = vmatmul.mubr.f32.gmra.mrb[74].mxu1 %v3665_v35  ;;  %v3568_v35 = vld [vmem:[#allocation3 + $0x78] sm:$0xff] }
 0x4d7   : > { %4419 = vmatprep.mubr.f32.mxu1 %v3675_v6  ;;  %5684 = vmatpush1.bf16.msra.mxu1 %v5683_v44  ;;  %v3902_v44 = vld [vmem:[#allocation10 + $0x428] sm:$0xff]  ;;  %v3903_v6 = vld [vmem:[#allocation10 + $0x430] sm:$0xff] }
 0x4d8   : > { %5685 = vmatprep.subr.bf16.mxu1 %v8864_v30  ;;  %v5702_v9 = vpack.c.bf16 %v3902_v44, %v3901_v21  ;;  %v3677_v21 = vld [vmem:[#allocation3 + $0x3e0] sm:$0xff]  ;;  %v3676_v44 = vld [vmem:[#allocation3 + $0x3d8] sm:$0xff] }
 0x4da   : > { %4420 = vmatmul.mubr.f32.gmra.mrb[76].mxu1 %v3674_v26  ;;  %v3577_v26 = vld [vmem:[#allocation3 + $0xc0] sm:$0xff] }
 0x4db   : > { %4424 = vmatprep.mubr.f32.mxu1 %v3684_v49  ;;  %5687 = vmatpush1.bf16.msra.mxu1 %v5686_v11  ;;  %v3904_v11 = vld [vmem:[#allocation10 + $0x438] sm:$0xff]  ;;  %v3905_v49 = vld [vmem:[#allocation10 + $0x440] sm:$0xff] }
 0x4dc   : > { %5688 = vmatprep.subr.bf16.mxu1 %v8864_v30  ;;  %v5706_v42 = vpack.c.bf16 %v3904_v11, %v3903_v6  ;;  %v3694_v6 = vld [vmem:[#allocation3 + $0x468] sm:$0xff]  ;;  %v3704_v11 = vld [vmem:[#allocation3 + $0x4b8] sm:$0xff] }
 0x4de   : > { %4425 = vmatmul.mubr.f32.gmra.mrb[78].mxu1 %v3683_v29  ;;  %v3586_v29 = vld [vmem:[#allocation3 + $0x108] sm:$0xff] }
 0x4df   : > { %4429 = vmatprep.mubr.f32.mxu1 %v3693_v36  ;;  %5690 = vmatpush1.bf16.msra.mxu1 %v5689_v53  ;;  %v3906_v53 = vld [vmem:[#allocation10 + $0x448] sm:$0xff]  ;;  %v3596_v36 = vld [vmem:[#allocation3 + $0x158] sm:$0xff] }
 0x4e0   : > { %5691 = vmatprep.subr.bf16.mxu1 %v8864_v30  ;;  %v3728_v30 = vld [vmem:[#allocation3 + $0x578] sm:$0xff]  ;;  %v5710_v25 = vpack.c.bf16 %v3906_v53, %v3905_v49  ;;  %v3722_v49 = vld [vmem:[#allocation3 + $0x548] sm:$0xff]  ;;  %v3721_v53 = vld [vmem:[#allocation3 + $0x540] sm:$0xff] }
 0x4e2   : > { %4430 = vmatmul.mubr.f32.gmra.mrb[80].mxu1 %v3692_v56  ;;  %v3909_v56 = vld [vmem:[#allocation10 + $0x460] sm:$0xff] }
 0x4e3   : > { %4434 = vmatprep.mubr.f32.mxu1 %v3702_v52  ;;  %5693 = vmatpush1.bf16.msra.mxu1 %v5692_v16  ;;  %v5714_v16 = vpack.c.bf16 %v3908_v18, %v3907_v61  ;;  %v3910_v52 = vld [vmem:[#allocation10 + $0x468] sm:$0xff]  ;;  %v3749_v18 = vld [vmem:[#allocation3 + $0x620] sm:$0xff] }
 0x4e4   : > { %5695 = vmatprep.subr.bf16.mxu1 %v5694_v58  ;;  %v3739_v61 = vld [vmem:[#allocation3 + $0x5d0] sm:$0xff] }
 0x4e6   : > { %4435 = vmatmul.mubr.f32.gmra.mrb[82].mxu1 %v3701_v0  ;;  %v3605_v0 = vld [vmem:[#allocation3 + $0x1a0] sm:$0xff] }
 0x4e7   : > { %4439 = vmatprep.mubr.f32.mxu1 %v3711_v3  ;;  %v5718_v3 = vpack.c.bf16 %v3910_v52, %v3909_v56  ;;  %v3767_v56 = vld [vmem:[#allocation3 + $0x6b0] sm:$0xff]  ;;  %v3766_v52 = vld [vmem:[#allocation3 + $0x6a8] sm:$0xff] }
 0x4ea   : > { %4440 = vmatmul.mubr.f32.gmra.mrb[84].mxu1 %v3710_v32  ;;  %v3604_v32 = vld [vmem:[#allocation3 + $0x198] sm:$0xff] }
 0x4eb   : > { %4444 = vmatprep.mubr.f32.mxu1 %v3720_v40  ;;  %v3911_v40 = vld [vmem:[#allocation10 + $0x470] sm:$0xff] }
 0x4ee   : > { %4445 = vmatmul.mubr.f32.gmra.mrb[86].mxu1 %v3719_v51  ;;  %v3912_v51 = vld [vmem:[#allocation10 + $0x478] sm:$0xff] }
 0x4ef   : > { %4449 = vmatprep.mubr.f32.mxu1 %v3729_v47  ;;  %v3614_v47 = vld [vmem:[#allocation3 + $0x1e8] sm:$0xff] }
 0x4f2   : > { %4450 = vmatmul.mubr.f32.gmra.mrb[88].mxu1 %v3728_v30  ;;  %v5722_v30 = vpack.c.bf16 %v3912_v51, %v3911_v40  ;;  %v3588_v40 = vld [vmem:[#allocation3 + $0x118] sm:$0xff]  ;;  %v3597_v51 = vld [vmem:[#allocation3 + $0x160] sm:$0xff] }
 0x4f3   : > { %4454 = vmatprep.mubr.f32.mxu1 %v3738_v57  ;;  %v3613_v57 = vld [vmem:[#allocation3 + $0x1e0] sm:$0xff] }
 0x4f6   : > { %4455 = vmatmul.mubr.f32.gmra.mrb[90].mxu1 %v3737_v7  ;;  %v3623_v7 = vld [vmem:[#allocation3 + $0x230] sm:$0xff] }
 0x4f7   : > { %4459 = vmatprep.mubr.f32.mxu1 %v3747_v34  ;;  %v3622_v34 = vld [vmem:[#allocation3 + $0x228] sm:$0xff] }
 0x4fa   : > { %4460 = vmatmul.mubr.f32.gmra.mrb[92].mxu1 %v3746_v28  ;;  %v3632_v28 = vld [vmem:[#allocation3 + $0x278] sm:$0xff] }
 0x4fb   : > { %4464 = vmatprep.mubr.f32.mxu1 %v3756_v19  ;;  %v3631_v19 = vld [vmem:[#allocation3 + $0x270] sm:$0xff] }
 0x4fe   : > { %4465 = vmatmul.mubr.f32.gmra.mrb[94].mxu1 %v3755_v55  ;;  %v3641_v55 = vld [vmem:[#allocation3 + $0x2c0] sm:$0xff] }
 0x4ff   : > { %4469 = vmatprep.mubr.f32.mxu1 %v3765_v63  ;;  %v3640_v63 = vld [vmem:[#allocation3 + $0x2b8] sm:$0xff] }
 0x502   : > { %4470 = vmatmul.mubr.f32.gmra.mrb[96].mxu1 %v3764_v37  ;;  %v3650_v37 = vld [vmem:[#allocation3 + $0x308] sm:$0xff] }
 0x503   : > { %4539 = vmatprep.mubr.f32.mxu1 %v3560_v41  ;;  %v3658_v41 = vld [vmem:[#allocation3 + $0x348] sm:$0xff] }
 0x506   : > { %4540 = vmatmul.mubr.f32.vlgmr.msra.gmra.mrb[50].mxu1 %v3559_v24  ;;  %v3667_v24 = vld [vmem:[#allocation3 + $0x390] sm:$0xff] }
 0x507   : > { %4544 = vmatprep.mubr.f32.mxu1 %v3569_v38  ;;  %5697 = vmatpush3.bf16.msra.mxu1 %v5694_v58  ;;  %v3595_v58 = vld [vmem:[#allocation3 + $0x150] sm:$0xff]  ;;  %v3686_v38 = vld [vmem:[#allocation3 + $0x428] sm:$0xff] }
 0x508   : > { %5699 = vmatprep.subr.bf16.mxu1 %v5698_v54 }
 0x50a   : > { %4545 = vmatmul.mubr.f32.gmra.mrb[52].mxu1 %v3568_v35  ;;  %v3695_v35 = vld [vmem:[#allocation3 + $0x470] sm:$0xff] }
 0x50b   : > { %4549 = vmatprep.mubr.f32.mxu1 %v3578_v27  ;;  %5701 = vmatpush3.bf16.msra.mxu1 %v5698_v54  ;;  %v3668_v54 = vld [vmem:[#allocation3 + $0x398] sm:$0xff]  ;;  %v3703_v27 = vld [vmem:[#allocation3 + $0x4b0] sm:$0xff] }
 0x50c   : > { %5703 = vmatprep.subr.bf16.mxu1 %v5702_v9 }
 0x50e   : > { %4550 = vmatmul.mubr.f32.gmra.mrb[54].mxu1 %v3577_v26  ;;  %v3712_v26 = vld [vmem:[#allocation3 + $0x4f8] sm:$0xff] }
 0x50f   : > { %4554 = vmatprep.mubr.f32.mxu1 %v3587_v59  ;;  %5705 = vmatpush3.bf16.msra.mxu1 %v5702_v9  ;;  %v3685_v9 = vld [vmem:[#allocation3 + $0x420] sm:$0xff]  ;;  %v3731_v59 = vld [vmem:[#allocation3 + $0x590] sm:$0xff] }
 0x510   : > { %5707 = vmatprep.subr.bf16.mxu1 %v5706_v42 }
 0x512   : > { %4555 = vmatmul.mubr.f32.gmra.mrb[56].mxu1 %v3586_v29  ;;  %v3740_v29 = vld [vmem:[#allocation3 + $0x5d8] sm:$0xff] }
 0x513   : > { %4559 = vmatprep.mubr.f32.mxu1 %v3596_v36  ;;  %5709 = vmatpush3.bf16.msra.mxu1 %v5706_v42  ;;  %v3713_v42 = vld [vmem:[#allocation3 + $0x500] sm:$0xff]  ;;  %v3748_v36 = vld [vmem:[#allocation3 + $0x618] sm:$0xff] }
 0x514   : > { %5711 = vmatprep.subr.bf16.mxu1 %v5710_v25 }
 0x516   : > { %4560 = vmatmul.mubr.f32.gmra.mrb[58].mxu1 %v3595_v58  ;;  %v3757_v58 = vld [vmem:[#allocation3 + $0x660] sm:$0xff] }
 0x517   : > { %4564 = vmatprep.mubr.f32.mxu1 %v3605_v0  ;;  %5713 = vmatpush3.bf16.msra.mxu1 %v5710_v25  ;;  %v3730_v25 = vld [vmem:[#allocation3 + $0x588] sm:$0xff]  ;;  %v3561_v0 = vld [vmem:[#allocation3 + $0x40] sm:$0xff] }
 0x518   : > { %5715 = vmatprep.subr.bf16.mxu1 %v5714_v16 }
 0x51a   : > { %4565 = vmatmul.mubr.f32.gmra.mrb[60].mxu1 %v3604_v32  ;;  %v3579_v32 = vld [vmem:[#allocation3 + $0xd0] sm:$0xff] }
 0x51b   : > { %4569 = vmatprep.mubr.f32.mxu1 %v3614_v47  ;;  %5717 = vmatpush3.bf16.msra.mxu1 %v5714_v16  ;;  %v3758_v16 = vld [vmem:[#allocation3 + $0x668] sm:$0xff] }
 0x51c   : > { %5719 = vmatprep.subr.bf16.mxu1 %v5718_v3  ;;  %v3606_v47 = vld [vmem:[#allocation3 + $0x1a8] sm:$0xff] }
 0x51e   : > { %4570 = vmatmul.mubr.f32.gmra.mrb[62].mxu1 %v3613_v57  ;;  %v3624_v57 = vld [vmem:[#allocation3 + $0x238] sm:$0xff] }
 0x51f   : > { %4574 = vmatprep.mubr.f32.mxu1 %v3623_v7  ;;  %5721 = vmatpush3.bf16.msra.mxu1 %v5718_v3  ;;  %v3570_v3 = vld [vmem:[#allocation3 + $0x88] sm:$0xff]  ;;  %v3633_v7 = vld [vmem:[#allocation3 + $0x280] sm:$0xff] }
 0x520   : > { %5723 = vmatprep.subr.bf16.mxu1 %v5722_v30 }
 0x522   : > { %4575 = vmatmul.mubr.f32.gmra.mrb[64].mxu1 %v3622_v34  ;;  %v3642_v34 = vld [vmem:[#allocation3 + $0x2c8] sm:$0xff] }
 0x523   : > { %4579 = vmatprep.mubr.f32.mxu1 %v3632_v28  ;;  %5725 = vmatpush3.bf16.msra.mxu1 %v5722_v30  ;;  %v3615_v30 = vld [vmem:[#allocation3 + $0x1f0] sm:$0xff] }
 0x524   : > { %v3651_v28 = vld [vmem:[#allocation3 + $0x310] sm:$0xff] }
 0x526   : > { %4580 = vmatmul.mubr.f32.gmra.mrb[66].mxu1 %v3631_v19  ;;  %v3660_v19 = vld [vmem:[#allocation3 + $0x358] sm:$0xff] }
 0x527   : > { %4584 = vmatprep.mubr.f32.mxu1 %v3641_v55  ;;  %v3669_v55 = vld [vmem:[#allocation3 + $0x3a0] sm:$0xff] }
 0x52a   : > { %4585 = vmatmul.mubr.f32.gmra.mrb[68].mxu1 %v3640_v63  ;;  %v3678_v63 = vld [vmem:[#allocation3 + $0x3e8] sm:$0xff] }
 0x52b   : > { %4589 = vmatprep.mubr.f32.mxu1 %v3650_v37  ;;  %v3687_v37 = vld [vmem:[#allocation3 + $0x430] sm:$0xff] }
 0x52e   : > { %4590 = vmatmul.mubr.f32.gmra.mrb[70].mxu1 %v3649_v13  ;;  %v3696_v13 = vld [vmem:[#allocation3 + $0x478] sm:$0xff] }
 0x52f   : > { %4594 = vmatprep.mubr.f32.mxu1 %v3659_v50  ;;  %v3705_v50 = vld [vmem:[#allocation3 + $0x4c0] sm:$0xff] }
 0x532   : > { %4595 = vmatmul.mubr.f32.gmra.mrb[72].mxu1 %v3658_v41  ;;  %v3714_v41 = vld [vmem:[#allocation3 + $0x508] sm:$0xff] }
 0x533   : > { %4599 = vmatprep.mubr.f32.mxu1 %v3668_v54  ;;  %v3723_v54 = vld [vmem:[#allocation3 + $0x550] sm:$0xff] }
 0x536   : > { %4600 = vmatmul.mubr.f32.gmra.mrb[74].mxu1 %v3667_v24  ;;  %v3732_v24 = vld [vmem:[#allocation3 + $0x598] sm:$0xff] }
 0x537   : > { %4604 = vmatprep.mubr.f32.mxu1 %v3677_v21  ;;  %v3741_v21 = vld [vmem:[#allocation3 + $0x5e0] sm:$0xff] }
 0x53a   : > { %4605 = vmatmul.mubr.f32.gmra.mrb[76].mxu1 %v3676_v44  ;;  %v3750_v44 = vld [vmem:[#allocation3 + $0x628] sm:$0xff] }
 0x53b   : > { %4609 = vmatprep.mubr.f32.mxu1 %v3686_v38  ;;  %v3759_v38 = vld [vmem:[#allocation3 + $0x670] sm:$0xff] }
 0x53e   : > { %4610 = vmatmul.mubr.f32.gmra.mrb[78].mxu1 %v3685_v9  ;;  %v3768_v9 = vld [vmem:[#allocation3 + $0x6b8] sm:$0xff] }
 0x53f   : > { %4614 = vmatprep.mubr.f32.mxu1 %v3695_v35 }
 0x542   : > { %4615 = vmatmul.mubr.f32.gmra.mrb[80].mxu1 %v3694_v6 }
 0x543   : > { %4619 = vmatprep.mubr.f32.mxu1 %v3704_v11 }
 0x546   : > { %4620 = vmatmul.mubr.f32.gmra.mrb[82].mxu1 %v3703_v27 }
 0x547   : > { %4624 = vmatprep.mubr.f32.mxu1 %v3713_v42 }
 0x54a   : > { %4625 = vmatmul.mubr.f32.gmra.mrb[84].mxu1 %v3712_v26 }
 0x54b   : > { %4629 = vmatprep.mubr.f32.mxu1 %v3722_v49 }
 0x54e   : > { %4630 = vmatmul.mubr.f32.gmra.mrb[86].mxu1 %v3721_v53 }
 0x54f   : > { %4634 = vmatprep.mubr.f32.mxu1 %v3731_v59 }
 0x552   : > { %4635 = vmatmul.mubr.f32.gmra.mrb[88].mxu1 %v3730_v25 }
 0x553   : > { %4639 = vmatprep.mubr.f32.mxu1 %v3740_v29 }
 0x556   : > { %4640 = vmatmul.mubr.f32.gmra.mrb[90].mxu1 %v3739_v61 }
 0x557   : > { %4644 = vmatprep.mubr.f32.mxu1 %v3749_v18 }
 0x55a   : > { %4645 = vmatmul.mubr.f32.gmra.mrb[92].mxu1 %v3748_v36 }
 0x55b   : > { %4649 = vmatprep.mubr.f32.mxu1 %v3758_v16 }
 0x55e   : > { %4650 = vmatmul.mubr.f32.gmra.mrb[94].mxu1 %v3757_v58 }
 0x55f   : > { %4654 = vmatprep.mubr.f32.mxu1 %v3767_v56 }
 0x562   : > { %4655 = vmatmul.mubr.f32.gmra.mrb[96].mxu1 %v3766_v52 }
 0x563   : > { %5178 = vmatprep.mubr.f32.mxu1 %v3561_v0 }
 0x566   : > { %5179 = vmatmul.mubr.f32.vlgmr.msra.gmra.mrb[98].mxu1 %v3570_v3 }
 0x567   : > { %5181 = vmatprep.mubr.f32.mxu1 %v3579_v32 }
 0x56a   : > { %5182 = vmatmul.mubr.f32.gmra.mrb[100].mxu1 %v3588_v40 }
 0x56b   : > { %5184 = vmatprep.mubr.f32.mxu1 %v3597_v51 }
 0x56e   : > { %5185 = vmatmul.mubr.f32.gmra.mrb[102].mxu1 %v3606_v47 }
 0x56f   : > { %5187 = vmatprep.mubr.f32.mxu1 %v3615_v30 }
 0x572   : > { %5188 = vmatmul.mubr.f32.gmra.mrb[104].mxu1 %v3624_v57 }
 0x573   : > { %5190 = vmatprep.mubr.f32.mxu1 %v3633_v7 }
 0x576   : > { %5191 = vmatmul.mubr.f32.gmra.mrb[106].mxu1 %v3642_v34 }
 0x577   : > { %5193 = vmatprep.mubr.f32.mxu1 %v3651_v28 }
 0x57a   : > { %5194 = vmatmul.mubr.f32.gmra.mrb[108].mxu1 %v3660_v19 }
 0x57b   : > { %5196 = vmatprep.mubr.f32.mxu1 %v3669_v55 }
 0x57e   : > { %5197 = vmatmul.mubr.f32.gmra.mrb[110].mxu1 %v3678_v63 }
 0x57f   : > { %5199 = vmatprep.mubr.f32.mxu1 %v3687_v37 }
 0x582   : > { %5200 = vmatmul.mubr.f32.gmra.mrb[112].mxu1 %v3696_v13 }
 0x583   : > { %5202 = vmatprep.mubr.f32.mxu1 %v3705_v50 }
 0x586   : > { %5203 = vmatmul.mubr.f32.gmra.mrb[114].mxu1 %v3714_v41 }
 0x587   : > { %5205 = vmatprep.mubr.f32.mxu1 %v3723_v54 }
 0x58a   : > { %5206 = vmatmul.mubr.f32.gmra.mrb[116].mxu1 %v3732_v24 }
 0x58b   : > { %5208 = vmatprep.mubr.f32.mxu1 %v3741_v21 }
 0x58e   : > { %5209 = vmatmul.mubr.f32.gmra.mrb[118].mxu1 %v3750_v44 }
 0x58f   : > { %5211 = vmatprep.mubr.f32.mxu1 %v3759_v38 }
 0x592   : > { %5212 = vmatmul.mubr.f32.gmra.mrb[120].mxu1 %v3768_v9 }
 0x5d9   : > { %v4541_v35 = vpop.f32.mrb[50].mxu1 }
 0x5da   : > { %v4543_v6 = vpop.f32.mrb[51].mxu1 }
 0x5dd   : > { %v4546_v11 = vpop.f32.mrb[52].mxu1 }
 0x5de   : > { %v4548_v27 = vpop.f32.mrb[53].mxu1 }
 0x5e1   : > { %v4551_v42 = vpop.f32.mrb[54].mxu1 }
 0x5e2   : > { %v4553_v26 = vpop.f32.mrb[55].mxu1 }
 0x5e5   : > { %v4556_v49 = vpop.f32.mrb[56].mxu1 }
 0x5e6   : > { %v4558_v53 = vpop.f32.mrb[57].mxu1 }
 0x5e9   : > { %v8492_v59 = vpop.f32.mrb[58].mxu1 }
 0x5ea   : > { %v4563_v25 = vpop.f32.mrb[59].mxu1 }
 0x5ed   : > { %v4566_v29 = vpop.f32.mrb[60].mxu1 }
 0x5ee   : > { %v4568_v61 = vpop.f32.mrb[61].mxu1 }
 0x5ef   : > { %v8530_v61 = vld [vmem:[#allocation12] ss:$0 sm:$0xff] }
 0x5f1   : > { %v8494_v18 = vpop.f32.mrb[62].mxu1 }
 0x5f2   : > { %v4573_v36 = vpop.f32.mrb[63].mxu1 }
 0x5f5   : > { %v8496_v16 = vpop.f32.mrb[64].mxu1 }
 0x5f6   : > { %v4578_v58 = vpop.f32.mrb[65].mxu1 }
 0x5f7   : > { %v5787_v58 = vadd.f32 %v8530_v61, %v4546_v11  ;;  %v5788_v11 = vadd.f32 %v8530_v61, %v4551_v42 }
 0x5f9   : > { %v8498_v56 = vpop.f32.mrb[66].mxu1 }
 0x5fa   : > { %v4583_v52 = vpop.f32.mrb[67].mxu1 }
 0x5fb   : > { %v8533_v52 = vld [vmem:[#allocation13] ss:$0 sm:$0xff] }
 0x5fd   : > { %v8500_v0 = vpop.f32.mrb[68].mxu1 }
 0x5fe   : > { %v4588_v3 = vpop.f32.mrb[69].mxu1 }
 0x5ff   : > { %v5786_v3 = vadd.f32 %v8530_v61, %v4541_v35  ;;  %v8867_v35 = vld [vmem:[#allocation32_spill] sm:$0xff] }
 0x601   : > { %v8502_v32 = vpop.f32.mrb[70].mxu1 }
 0x602   : > { %v4593_v40 = vpop.f32.mrb[71].mxu1 }
 0x605   : > { %v8504_v51 = vpop.f32.mrb[72].mxu1 }
 0x606   : > { %v4598_v47 = vpop.f32.mrb[73].mxu1 }
 0x607   : > { %v2826_v47 = vadd.f32 %v8533_v52, %v8378_v62  ;;  %v8868_v62 = vld [vmem:[#allocation22_spill] sm:$0xff] }
 0x609   : > { %v8506_v30 = vpop.f32.mrb[74].mxu1 }
 0x60a   : > { %v4603_v57 = vpop.f32.mrb[75].mxu1 }
 0x60d   : > { %v8508_v7 = vpop.f32.mrb[76].mxu1 }
 0x60e   : > { %v4608_v34 = vpop.f32.mrb[77].mxu1 }
 0x611   : > { %v8510_v28 = vpop.f32.mrb[78].mxu1 }
 0x612   : > { %v4613_v19 = vpop.f32.mrb[79].mxu1 }
 0x613   : > { %v2825_v19 = vadd.f32 %v8533_v52, %v8368_v12  ;;  %v5791_v12 = vadd.f32 %v8530_v61, %v4566_v29 }
 0x615   : > { %v8512_v55 = vpop.f32.mrb[80].mxu1 }
 0x616   : > { %v4618_v63 = vpop.f32.mrb[81].mxu1 }
 0x619   : > { %v8514_v37 = vpop.f32.mrb[82].mxu1 }
 0x61a   : > { %v4623_v13 = vpop.f32.mrb[83].mxu1 }
 0x61b   : > { %v5789_v13 = vadd.f32 %v8530_v61, %v4556_v49  ;;  %v5790_v49 = vadd.f32 %v8530_v61, %v8492_v59 }
 0x61d   : > { %v8516_v50 = vpop.f32.mrb[84].mxu1 }
 0x61e   : > { %v4628_v41 = vpop.f32.mrb[85].mxu1 }
 0x621   : > { %v8518_v54 = vpop.f32.mrb[86].mxu1 }
 0x622   : > { %v4633_v24 = vpop.f32.mrb[87].mxu1 }
 0x625   : > { %v8520_v21 = vpop.f32.mrb[88].mxu1 }
 0x626   : > { %v4638_v44 = vpop.f32.mrb[89].mxu1 }
 0x629   : > { %v8522_v38 = vpop.f32.mrb[90].mxu1 }
 0x62a   : > { %v4643_v9 = vpop.f32.mrb[91].mxu1 }
 0x62b   : > { %v2828_v9 = vadd.f32 %v8867_v35, %v8533_v52 }
 0x62d   : > { %v8524_v6 = vpop.f32.mrb[92].mxu1 }
 0x62e   : > { %v4648_v27 = vpop.f32.mrb[93].mxu1 }
 0x631   : > { %v8526_v26 = vpop.f32.mrb[94].mxu1 }
 0x632   : > { %v4653_v53 = vpop.f32.mrb[95].mxu1 }
 0x635   : > { %v8528_v25 = vpop.f32.mrb[96].mxu1 }
 0x636   : > { %v4658_v36 = vpop.f32.mrb[97].mxu1 }
 0x639   : > { %v5180_v40 = vpop.f32.mrb[98].mxu1 }
 0x63a   : > { %v4732_v57 = vadd.f32 %v5787_v58, %v5180_v40  ;;  %v4726_v34 = vpop.f32.mrb[99].mxu1  ;;  %v2827_v58 = vadd.f32 %v8868_v62, %v8533_v52  ;;  %v5794_v62 = vadd.f32 %v8530_v61, %v8498_v56 }
 0x63b   : > { %v4727_v63 = vadd.f32 %v5786_v3, %v4726_v34 }
 0x63c   : > { %v4846_v41 = vadd.f32 %v4732_v57, %v2826_v47  ;;  %v2830_v57 = vadd.f32 %v8134_v46, %v8533_v52 }
 0x63d   : > { %v4845_v24 = vadd.f32 %v4727_v63, %v2825_v19  ;;  %v5183_v44 = vpop.f32.mrb[100].mxu1  ;;  %v2829_v63 = vadd.f32 %v8127_v31, %v8533_v52 }
 0x63e   : > { %v4870_v27 = vmax.f32 %v4846_v41, 0.0  ;;  %v4742_v53 = vadd.f32 %v5789_v13, %v5183_v44  ;;  %v4736_v36 = vpop.f32.mrb[101].mxu1  ;;  %v2832_v44 = vadd.f32 %v8152_v23, %v8533_v52 }
 0x63f   : > { %v4869_v40 = vmax.f32 %v4845_v24, 0.0  ;;  %v4737_v60 = vadd.f32 %v5788_v11, %v4736_v36  ;;  %v5793_v11 = vadd.f32 %v8530_v61, %v8496_v16  ;;  %v5795_v36 = vadd.f32 %v8530_v61, %v8500_v0 }
 0x640   : > { %4894 = vst [vmem:[%s8548_s7 + $0x8] sm:$0xff] %v4870_v27  ;;  %v4848_v42 = vadd.f32 %v4742_v53, %v2828_v9  ;;  %v2831_v27 = vadd.f32 %v8145_v43, %v8533_v52 }
 0x641   : > { %4893 = vst [vmem:[%s8548_s7] sm:$0xff] %v4869_v40  ;;  %v4847_v3 = vadd.f32 %v4737_v60, %v2827_v58  ;;  %v5186_v47 = vpop.f32.mrb[102].mxu1  ;;  %v5792_v60 = vadd.f32 %v8530_v61, %v8494_v18  ;;  %v2834_v40 = vadd.f32 %v8166_v10, %v8533_v52 }
 0x642   : > { %v4872_v34 = vmax.f32 %v4848_v42, 0.0  ;;  %v4752_v19 = vadd.f32 %v5791_v12, %v5186_v47  ;;  %v4746_v29 = vpop.f32.mrb[103].mxu1  ;;  %v5797_v47 = vadd.f32 %v8530_v61, %v8504_v51 }
 0x643   : > { %v4871_v13 = vmax.f32 %v4847_v3, 0.0  ;;  %v4747_v41 = vadd.f32 %v5790_v49, %v4746_v29  ;;  %v2833_v49 = vadd.f32 %v8159_v4, %v8533_v52 }
 0x644   : > { %4896 = vst [vmem:[%s8548_s7 + $0x18] sm:$0xff] %v4872_v34  ;;  %v4850_v59 = vadd.f32 %v4752_v19, %v2830_v57  ;;  %v5796_v57 = vadd.f32 %v8530_v61, %v8502_v32  ;;  %v2836_v19 = vadd.f32 %v8180_v22, %v8533_v52 }
 0x645   : > { %4895 = vst [vmem:[%s8548_s7 + $0x10] sm:$0xff] %v4871_v13  ;;  %v4849_v46 = vadd.f32 %v4747_v41, %v2829_v63  ;;  %v5189_v24 = vpop.f32.mrb[104].mxu1  ;;  %v2835_v13 = vadd.f32 %v8173_v33, %v8533_v52 }
 0x646   : > { %v4874_v35 = vmax.f32 %v4850_v59, 0.0  ;;  %v4762_v31 = vadd.f32 %v5793_v11, %v5189_v24  ;;  %v4756_v9 = vpop.f32.mrb[105].mxu1  ;;  %v5799_v11 = vadd.f32 %v8530_v61, %v8508_v7  ;;  %v5798_v59 = vadd.f32 %v8530_v61, %v8506_v30 }
 0x647   : > { %v4873_v53 = vmax.f32 %v4849_v46, 0.0  ;;  %v4757_v16 = vadd.f32 %v5792_v60, %v4756_v9  ;;  %v2838_v46 = vadd.f32 %v8194_v39, %v8533_v52  ;;  %v5801_v9 = vadd.f32 %v8530_v61, %v8512_v55 }
 0x648   : > { %4898 = vst [vmem:[%s8548_s7 + $0x28] sm:$0xff] %v4874_v35  ;;  %v4852_v18 = vadd.f32 %v4762_v31, %v2832_v44  ;;  %v2837_v35 = vadd.f32 %v8187_v45, %v8533_v52 }
 0x649   : > { %4897 = vst [vmem:[%s8548_s7 + $0x20] sm:$0xff] %v4873_v53  ;;  %v4851_v23 = vadd.f32 %v4757_v16, %v2831_v27  ;;  %v5192_v58 = vpop.f32.mrb[106].mxu1  ;;  %v5800_v27 = vadd.f32 %v8530_v61, %v8510_v28  ;;  %v2840_v16 = vadd.f32 %v8208_v1, %v8533_v52 }
 0x64a   : > { %v4876_v12 = vmax.f32 %v4852_v18, 0.0  ;;  %v4772_v43 = vadd.f32 %v5795_v36, %v5192_v58  ;;  %v4766_v42 = vpop.f32.mrb[107].mxu1  ;;  %v5803_v58 = vadd.f32 %v8530_v61, %v8516_v50 }
 0x64b   : > { %v4875_v3 = vmax.f32 %v4851_v23, 0.0  ;;  %v4767_v0 = vadd.f32 %v5794_v62, %v4766_v42  ;;  %v2839_v62 = vadd.f32 %v8201_v48, %v8533_v52 }
 0x64c   : > { %4900 = vst [vmem:[%s8548_s7 + $0x38] sm:$0xff] %v4876_v12  ;;  %v4854_v56 = vadd.f32 %v4772_v43, %v2834_v40  ;;  %v5802_v40 = vadd.f32 %v8530_v61, %v8514_v37  ;;  %v2842_v43 = vadd.f32 %v8234_v15, %v8533_v52 }
 0x64d   : > { %4899 = vst [vmem:[%s8548_s7 + $0x30] sm:$0xff] %v4875_v3  ;;  %v4853_v10 = vadd.f32 %v4767_v0, %v2833_v49  ;;  %v5195_v34 = vpop.f32.mrb[108].mxu1  ;;  %v2841_v3 = vadd.f32 %v8221_v20, %v8533_v52  ;;  %v2844_v20 = vadd.f32 %v8268_v14, %v8533_v52 }
 0x64e   : > { %v4878_v29 = vmax.f32 %v4854_v56, 0.0  ;;  %v4782_v4 = vadd.f32 %v5797_v47, %v5195_v34  ;;  %v4776_v63 = vpop.f32.mrb[109].mxu1  ;;  %v5805_v47 = vadd.f32 %v8530_v61, %v8520_v21  ;;  %v5804_v56 = vadd.f32 %v8530_v61, %v8518_v54 }
 0x64f   : > { %v4877_v41 = vmax.f32 %v4853_v10, 0.0  ;;  %v4777_v51 = vadd.f32 %v5796_v57, %v4776_v63  ;;  %v2843_v21 = vadd.f32 %v8251_v5, %v8533_v52  ;;  %v5807_v63 = vadd.f32 %v8530_v61, %v8524_v6 }
 0x650   : > { %4902 = vst [vmem:[%s8548_s7 + $0x48] sm:$0xff] %v4878_v29  ;;  %v4856_v32 = vadd.f32 %v4782_v4, %v2836_v19  ;;  %v2846_v5 = vadd.f32 %v8302_v8, %v8533_v52  ;;  %v2845_v6 = vadd.f32 %v8285_v17, %v8533_v52  ;;  %v2848_v17 = vadd.f32 %v8330_v2, %v8533_v52 }
 0x651   : > { %4901 = vst [vmem:[%s8548_s7 + $0x40] sm:$0xff] %v4877_v41  ;;  %v4855_v22 = vadd.f32 %v4777_v51, %v2835_v13  ;;  %v5198_v60 = vpop.f32.mrb[110].mxu1  ;;  %v5806_v13 = vadd.f32 %v8530_v61, %v8522_v38  ;;  %v5809_v38 = vadd.f32 %v8530_v61, %v8528_v25  ;;  %v8870_v25 = vld [vmem:[#allocation34_spill] sm:$0xff] }
 0x652   : > { %v4880_v24 = vmax.f32 %v4856_v32, 0.0  ;;  %v4792_v33 = vadd.f32 %v5799_v11, %v5198_v60  ;;  %v4786_v44 = vpop.f32.mrb[111].mxu1 }
 0x653   : > { %v4879_v31 = vmax.f32 %v4855_v22, 0.0  ;;  %v4787_v7 = vadd.f32 %v5798_v59, %v4786_v44 }
 0x654   : > { %4904 = vst [vmem:[%s8548_s7 + $0x58] sm:$0xff] %v4880_v24  ;;  %v4858_v30 = vadd.f32 %v4792_v33, %v2838_v46  ;;  %v5808_v46 = vadd.f32 %v8530_v61, %v8526_v26 }
 0x655   : > { %4903 = vst [vmem:[%s8548_s7 + $0x50] sm:$0xff] %v4879_v31  ;;  %v4857_v39 = vadd.f32 %v4787_v7, %v2837_v35  ;;  %v5201_v53 = vpop.f32.mrb[112].mxu1  ;;  %v2847_v31 = vadd.f32 %v8870_v25, %v8533_v52 }
 0x656   : > { %v4882_v36 = vmax.f32 %v4858_v30, 0.0  ;;  %v4802_v45 = vadd.f32 %v5801_v9, %v5201_v53  ;;  %v4796_v18 = vpop.f32.mrb[113].mxu1 }
 0x657   : > { %v4881_v23 = vmax.f32 %v4857_v39, 0.0  ;;  %v4797_v55 = vadd.f32 %v5800_v27, %v4796_v18 }
 0x658   : > { %4906 = vst [vmem:[%s8548_s7 + $0x68] sm:$0xff] %v4882_v36  ;;  %v4860_v28 = vadd.f32 %v4802_v45, %v2840_v16 }
 0x659   : > { %4905 = vst [vmem:[%s8548_s7 + $0x60] sm:$0xff] %v4881_v23  ;;  %v4859_v1 = vadd.f32 %v4797_v55, %v2839_v62  ;;  %v5204_v12 = vpop.f32.mrb[114].mxu1 }
 0x65a   : > { %v4884_v42 = vmax.f32 %v4860_v28, 0.0  ;;  %v4812_v48 = vadd.f32 %v5803_v58, %v5204_v12  ;;  %v4806_v49 = vpop.f32.mrb[115].mxu1 }
 0x65b   : > { %v4883_v0 = vmax.f32 %v4859_v1, 0.0  ;;  %v4807_v50 = vadd.f32 %v5802_v40, %v4806_v49 }
 0x65c   : > { %4908 = vst [vmem:[%s8548_s7 + $0x78] sm:$0xff] %v4884_v42  ;;  %v4862_v37 = vadd.f32 %v4812_v48, %v2842_v43 }
 0x65d   : > { %4907 = vst [vmem:[%s8548_s7 + $0x70] sm:$0xff] %v4883_v0  ;;  %v4861_v15 = vadd.f32 %v4807_v50, %v2841_v3  ;;  %v5207_v57 = vpop.f32.mrb[116].mxu1 }
 0x65e   : > { %v4886_v10 = vmax.f32 %v4862_v37, 0.0  ;;  %v4822_v34 = vadd.f32 %v5805_v47, %v5207_v57  ;;  %v4816_v19 = vpop.f32.mrb[117].mxu1 }
 0x65f   : > { %v4885_v29 = vmax.f32 %v4861_v15, 0.0  ;;  %v4817_v4 = vadd.f32 %v5804_v56, %v4816_v19 }
 0x660   : > { %4910 = vst [vmem:[%s8548_s7 + $0x88] sm:$0xff] %v4886_v10  ;;  %v4864_v54 = vadd.f32 %v4822_v34, %v2844_v20 }
 0x661   : > { %4909 = vst [vmem:[%s8548_s7 + $0x80] sm:$0xff] %v4885_v29  ;;  %v4863_v14 = vadd.f32 %v4817_v4, %v2843_v21  ;;  %v5210_v41 = vpop.f32.mrb[118].mxu1 }
 0x662   : > { %v4888_v51 = vmax.f32 %v4864_v54, 0.0  ;;  %v4832_v11 = vadd.f32 %v5807_v63, %v5210_v41  ;;  %v4826_v32 = vpop.f32.mrb[119].mxu1 }
 0x663   : > { %v4887_v59 = vmax.f32 %v4863_v14, 0.0  ;;  %v4827_v22 = vadd.f32 %v5806_v13, %v4826_v32 }
 0x664   : > { %4912 = vst [vmem:[%s8548_s7 + $0x98] sm:$0xff] %v4888_v51  ;;  %v4866_v60 = vadd.f32 %v4832_v11, %v2846_v5 }
 0x665   : > { %4911 = vst [vmem:[%s8548_s7 + $0x90] sm:$0xff] %v4887_v59  ;;  %v4865_v8 = vadd.f32 %v4827_v22, %v2845_v6  ;;  %v5213_v24 = vpop.f32.mrb[120].mxu1 }
 0x666   : > { %v4890_v33 = vmax.f32 %v4866_v60, 0.0  ;;  %v4842_v44 = vadd.f32 %v5809_v38, %v5213_v24  ;;  %v4836_v35 = vpop.f32.mrb[121].mxu1 }
 0x667   : > { %v4889_v7 = vmax.f32 %v4865_v8, 0.0  ;;  %v4837_v9 = vadd.f32 %v5808_v46, %v4836_v35 }
 0x668   : > { %4914 = vst [vmem:[%s8548_s7 + $0xa8] sm:$0xff] %v4890_v33  ;;  %v4868_v26 = vadd.f32 %v4842_v44, %v2848_v17 }
 0x669   : > { %4913 = vst [vmem:[%s8548_s7 + $0xa0] sm:$0xff] %v4889_v7  ;;  %v4867_v61 = vadd.f32 %v4837_v9, %v2847_v31 }
 0x66a   : > { %v4892_v30 = vmax.f32 %v4868_v26, 0.0 }
 0x66b   : > { %v4891_v2 = vmax.f32 %v4867_v61, 0.0 }
 0x66c   : > { %4916 = vst [vmem:[%s8548_s7 + $0xb8] sm:$0xff] %v4892_v30 }
 0x66d   : > { %4915 = vst [vmem:[%s8548_s7 + $0xb0] sm:$0xff] %v4891_v2 }
 0x66e   : > { %6487 = shalt.err (!%p6484_p3)
}
 0x66f   : > { %s6488_s7 = scalar_lea.hbm %s8658_s2, 3072  ;;  %s6492_s3 = scalar_lea.hbm %s8871_s1, 12288 }
 0x670   : > { %p6489_p8 = scmp.ne.s32.totalorder %s8658_s2, %s6488_s7  ;;  %p6493_p5 = scmp.lt.u32.totalorder %s8658_s2, %s8871_s1 }
 0x671   : > { %p6494_p12 = scmp.lt.u32.totalorder %s6492_s3, %s6488_s7  ;;  %p6496_p13 = scmp.lt.u32.totalorder %s6488_s7, %s8658_s2 }
 0x672   : > { %p6490_p9 = pnand %p6489_p8, %p8872_p7 }
 0x673   : > { %p6495_p11 = por %p6494_p12, %p6493_p5 }
 0x674   : > { %p6491_p10 = pneg %p6490_p9 }
 0x675   : > { %p6497_p1 = por %p6496_p13, %p6495_p11 }
 0x677   : > { %p6498_p0 = pnand %p6497_p1, %p6491_p10 }
 0x679   : > { %6501 = shalt.err (!%p6498_p0)
}
 0x67a   : > { %s6600_s12 = smov 128   ;;  %s6601_s9 = smov 8  }
 0x67b   : > { %6131 = dma.vmem_to_hbm [thread:$0]  (%p8872_p7), %s8653_s13, 3072, %s8658_s2, %s4918_s4, %s6600_s12, %s6600_s12, %s6601_s9  }
 0x67c PF: > { %p6168_p2 = scmp.ge.s32.totalorder %s6584_s8, 2  ;;  %s4948_s10 = sand.u32 1, %s6556_s24  }
 0x67d   : > { %p8873_p4 = scmp.ne.s32.totalorder %s8772_s18, 0  ;;  %s4949_s11 = scalar_lea.sflag [#allocation6], %s4948_s10 }
 0x67f   : > { %p6154_p6 = pnand %p6168_p2, %p8873_p4 }
 0x681   : > { %6551 = dma.done.wait (!%p6154_p6), %s4949_s11, 3072  }
 0x682   : > { %6553 = vsyncadd (!%p6154_p6), %s4949_s11, 4294964224  ;;  %s26_s8 = sadd.s32 1, %s6584_s8   ;;  %s8874_s24 = smov %s6560_s25 }
 0x683   : > { %p23_p3 = scmp.ge.s32.totalorder %s26_s8, 6   ;;  %s8875_s25 = smov %s6564_s26 }
 0x684   : > { %s8876_s26 = smov %s6860_s23  ;;  %s8877_s27 = smov %s6576_s29 }
 0x685   : > { %s8878_s28 = smov %s6580_s30  ;;  %s8879_s29 = smov %s8882_s14 }
 0x686   : > { %s8880_s30 = smov %s8886_s15  ;;  %25 = sbr.rel (!%p23_p3) target bundleno = 16 (0x10), region = 116 }
 0x68d   :  { %4954 = vsyncpa [#allocation5], 1 }
 0x68e   :  { %4956 = vsyncpa [#allocation5 + $0x1], 1 }
 0x68f   :  { %4957 = vsyncpa [#allocation8], 1 }
 0x690   :  { %4958 = vsyncpa [#allocation11], 1 }
 0x691   :  { %4959 = vsyncpa [#allocation14], 1 }
 0x692   :  { %4960 = vsyncpa [#allocation6], 1 }
 0x693   :  { %4962 = vsyncpa [#allocation6 + $0x1], 1 }

// kernel: tpu_custom_call.1
= control target key start
LH: loop header
LB: loop body
LE: loop exit
PB: predicated region body
PF: predicated region fallthrough
CT: control target
= control target key end

     0   :  { %s8714_s0 = inlined_call_operand.hbm [shape: f32[2,2,288,128], index: 0, kind: input, shape index: {}]   ;;  %s8715_s1 = inlined_call_operand.hbm [shape: f32[1152,256], index: 1, kind: input, shape index: {}]   ;;  %s8716_s2 = inlined_call_operand.hbm [shape: f32[1,128], index: 2, kind: input, shape index: {}]   ;;  %s8717_s3 = inlined_call_operand.hbm [shape: f32[1152,128], index: 3, kind: input, shape index: {}]   ;;  %s8718_s4 = inlined_call_operand.hbm [shape: f32[1,128], index: 4, kind: input, shape index: {}]   ;;  %s8719_s5 = inlined_call_operand.hbm [shape: f32[1,128], index: 5, kind: input, shape index: {}]   ;;  %s8720_s6 = inlined_call_operand.vmem [shape: f32[2,240,1], index: 6, kind: input, shape index: {}]   ;;  %s8721_s7 = inlined_call_operand.hbm [shape: f32[2,384,128], index: 7, kind: output, shape index: {}]  }
   0x1   :  { %8754 = sst [smem:[#allocation37_spill]] %s8715_s1 }
   0x2   :  { %8755 = sst [smem:[#allocation38_spill]] %s8716_s2 }
   0x3   :  { %8756 = sst [smem:[#allocation39_spill]] %s8717_s3 }
   0x4   :  { %8757 = sst [smem:[#allocation40_spill]] %s8718_s4 }
   0x5   :  { %8758 = sst [smem:[#allocation41_spill]] %s8721_s7 }
   0x6   :  { %12 = vsyncpa [#allocation5], 0 }
   0x7   :  { %14 = vsyncpa [#allocation5 + $0x1], 0 }
   0x8   :  { %15 = vsyncpa [#allocation8], 0 }
   0x9   :  { %16 = vsyncpa [#allocation11], 0 }
   0xa   :  { %17 = vsyncpa [#allocation14], 0 }
   0xb   :  { %18 = vsyncpa [#allocation6], 0 }
   0xc   :  { %20 = vsyncpa [#allocation6 + $0x1], 0  ;;  %s6642_s24 = smov 0   ;;  %s6644_s25 = smov 0  }
   0xd   :  { %s6646_s26 = smov 0   ;;  %s6648_s27 = smov 0  }
   0xe   :  { %s6650_s28 = smov 0   ;;  %s6652_s29 = smov 0  }
   0xf   :  { %s6654_s30 = smov 0   ;;  %s6656_s8 = smov 0  }
  0x10 LB: > { %8759 = sst [smem:[#allocation21_spill]] %s6572_s28  ;;  %s8725_s9 = sadd.s32 4294967295, %s6584_s8   ;;  %s6584_s8 = sphi %s6656_s8, %s26_s8   ;;  %s6580_s30 = sphi %s6654_s30, %s8880_s30   ;;  %s6576_s29 = sphi %s6652_s29, %s8879_s29   ;;  %s6572_s28 = sphi %s6650_s28, %s8878_s28   ;;  %s6568_s27 = sphi %s6648_s27, %s8877_s27   ;;  %s6564_s26 = sphi %s6646_s26, %s8876_s26   ;;  %s6560_s25 = sphi %s6644_s25, %s8875_s25   ;;  %s6556_s24 = sphi %s6642_s24, %s8874_s24  }
  0x11   : > { %p5085_p0 = scmp.ge.s32.totalorder %s6584_s8, 1  ;;  %p6686_p1 = scmp.eq.s32.totalorder %s8725_s9, 0 }
  0x12   : > { %p230_p2 = scmp.lt.s32.totalorder %s6584_s8, 5  ;;  %s6586_s12 = smov [#allocation7]  }
  0x13   : > { %s8760_s10 = scalar_select %p6686_p1, 1, 0 }
  0x14   : > { %p6691_p3 = pnand %p5085_p0, %p230_p2  ;;  %s242_s13 = sshll.u32 %s6586_s12, 4  ;;  %s243_s13 = int_to_ptr.vmem [resolvable:$true] %s242_s13 }
  0x15   : > { %s6587_s15 = smov [#allocation10]   ;;  %s8763_s1 = sld [smem:[#allocation37_spill]] }
  0x16   : > { %s8761_s11 = scalar_select %p6691_p3, 1, 0 }
  0x17   : > { %p6133_p4 = pneg %p6691_p3  ;;  %s266_s16 = sshll.u32 %s6587_s15, 4  ;;  %s6703_s16 = int_to_ptr.vmem [resolvable:$true] %s266_s16 }
  0x19   : > { %p6699_p5 = pnand %p6133_p4, %p6686_p1 }
  0x1b   : > { %s6304_s19 = scalar_lea.hbm %s8763_s1, 36864  ;;  %p6713_p7 = pneg %p6699_p5 }
  0x1c   : > { %p6305_p6 = scmp.ne.s32.totalorder %s8763_s1, %s6304_s19  ;;  %p6311_p10 = scmp.lt.u32.totalorder %s6304_s19, %s8763_s1 }
  0x1e   : > { %p6307_p8 = pnand %p6713_p7, %p6305_p6 }
  0x20   : > { %p6308_p9 = pneg %p6307_p8 }
  0x22   : > { %p6313_p11 = pnand %p6311_p10, %p6308_p9 }
  0x24   : > { %6316 = shalt.err (!%p6313_p11)
}
  0x25   : > { %s6317_s15 = scalar_lea.vmem %s243_s13, 36864  ;;  %p6325_p2 = scmp.lt.s32.totalorder %s243_s13, %s243_s13 }
  0x26   : > { %p6318_p12 = scmp.ne.s32.totalorder %s243_s13, %s6317_s15  ;;  %p6326_p4 = scmp.lt.s32.totalorder %s6317_s15, %s6317_s15 }
  0x28   : > { %p6320_p13 = pnand %p6318_p12, %p6713_p7  ;;  %p6327_p3 = por %p6326_p4, %p6325_p2 }
  0x2a   : > { %p6321_p0 = pneg %p6320_p13 }
  0x2c   : > { %p6328_p1 = pnand %p6327_p3, %p6321_p0 }
  0x2e   : > { %6331 = shalt.err (!%p6328_p1)
}
  0x2f   : > { %s6588_s17 = smov 256   ;;  %s6589_s18 = smov 16  }
  0x30   : > { %6136 = dma.hbm_to_vmem [thread:$0]  (!%p6699_p5), %s8763_s1, 36864, %s243_s13, [#allocation8], %s6588_s17, %s6588_s17, %s6589_s18  }
  0x31   : > { %s8765_s3 = sld [smem:[#allocation39_spill]] }
  0x37   : > { %s6332_s12 = scalar_lea.hbm %s8765_s3, 18432 }
  0x38   : > { %p6333_p6 = scmp.ne.s32.totalorder %s8765_s3, %s6332_s12  ;;  %p6339_p8 = scmp.lt.u32.totalorder %s6332_s12, %s8765_s3 }
  0x3a   : > { %p6335_p3 = pnand %p6333_p6, %p6713_p7 }
  0x3c   : > { %p6336_p1 = pneg %p6335_p3 }
  0x3e   : > { %p6341_p9 = pnand %p6339_p8, %p6336_p1 }
  0x40   : > { %6344 = shalt.err (!%p6341_p9)
}
  0x41   : > { %s6345_s13 = scalar_lea.vmem %s6703_s16, 18432  ;;  %p6353_p13 = scmp.lt.s32.totalorder %s6703_s16, %s6703_s16 }
  0x42   : > { %p6346_p10 = scmp.ne.s32.totalorder %s6703_s16, %s6345_s13  ;;  %p6354_p0 = scmp.lt.s32.totalorder %s6345_s13, %s6345_s13 }
  0x44   : > { %p6348_p11 = pnand %p6346_p10, %p6713_p7  ;;  %p6355_p2 = por %p6354_p0, %p6353_p13 }
  0x46   : > { %p6349_p12 = pneg %p6348_p11 }
  0x48   : > { %p6356_p4 = pnand %p6355_p2, %p6349_p12 }
  0x4a   : > { %6359 = shalt.err (!%p6356_p4)
}
  0x4b   : > { %s8727_s7 = smov 128   ;;  %s8728_s28 = smov 8  }
  0x4c   : > { %6142 = dma.hbm_to_vmem [thread:$0]  (!%p6699_p5), %s8765_s3, 18432, %s6703_s16, [#allocation11], %s8727_s7, %s8727_s7, %s8728_s28  }
  0x4d   : > { %s6592_s18 = smov [#allocation9]   ;;  %s6593_s19 = smov [#allocation12]  }
  0x4e   : > { %s256_s20 = sshll.u32 %s6592_s18, 4  ;;  %s280_s21 = sshll.u32 %s6593_s19, 4  ;;  %s257_s20 = int_to_ptr.vmem [resolvable:$true] %s256_s20  ;;  %s6755_s21 = int_to_ptr.vmem [resolvable:$true] %s280_s21 }
  0x4f   : > { %s8766_s2 = sld [smem:[#allocation38_spill]] }
  0x55   : > { %s6360_s15 = scalar_lea.hbm %s8766_s2, 16 }
  0x56   : > { %p6361_p6 = scmp.ne.s32.totalorder %s8766_s2, %s6360_s15  ;;  %p6367_p8 = scmp.lt.u32.totalorder %s6360_s15, %s8766_s2 }
  0x58   : > { %p6363_p3 = pnand %p6361_p6, %p6713_p7 }
  0x5a   : > { %p6364_p1 = pneg %p6363_p3 }
  0x5c   : > { %p6369_p9 = pnand %p6367_p8, %p6364_p1 }
  0x5e   : > { %6372 = shalt.err (!%p6369_p9)
}
  0x5f   : > { %s6373_s17 = scalar_lea.vmem %s257_s20, 16  ;;  %s6380_s18 = scalar_lea.vmem %s257_s20, 32 }
  0x60   : > { %p6374_p10 = scmp.ne.s32.totalorder %s257_s20, %s6373_s17  ;;  %p6381_p13 = scmp.lt.s32.totalorder %s257_s20, %s257_s20 }
  0x61   : > { %p6382_p0 = scmp.lt.s32.totalorder %s6380_s18, %s6373_s17 }
  0x62   : > { %p6376_p11 = pnand %p6374_p10, %p6713_p7 }
  0x63   : > { %p6383_p2 = por %p6382_p0, %p6381_p13 }
  0x64   : > { %p6377_p12 = pneg %p6376_p11 }
  0x66   : > { %p6384_p4 = pnand %p6383_p2, %p6377_p12 }
  0x68   : > { %6387 = shalt.err (!%p6384_p4)
}
  0x69   : > { %6139 = dma.hbm_to_vmem [thread:$0]  (!%p6699_p5), %s8766_s2, 16, %s257_s20, [#allocation8]  }
  0x6a   : > { %s8767_s4 = sld [smem:[#allocation40_spill]] }
  0x70   : > { %s6388_s15 = scalar_lea.hbm %s8767_s4, 16 }
  0x71   : > { %p6389_p6 = scmp.ne.s32.totalorder %s8767_s4, %s6388_s15  ;;  %p6395_p8 = scmp.lt.u32.totalorder %s6388_s15, %s8767_s4 }
  0x73   : > { %p6391_p3 = pnand %p6389_p6, %p6713_p7 }
  0x75   : > { %p6392_p1 = pneg %p6391_p3 }
  0x77   : > { %p6397_p9 = pnand %p6395_p8, %p6392_p1 }
  0x79   : > { %6400 = shalt.err (!%p6397_p9)
}
  0x7a   : > { %s6401_s20 = scalar_lea.vmem %s6755_s21, 16  ;;  %s6408_s18 = scalar_lea.vmem %s6755_s21, 32 }
  0x7b   : > { %p6402_p10 = scmp.ne.s32.totalorder %s6755_s21, %s6401_s20  ;;  %p6409_p13 = scmp.lt.s32.totalorder %s6755_s21, %s6755_s21 }
  0x7c   : > { %p6410_p0 = scmp.lt.s32.totalorder %s6408_s18, %s6401_s20 }
  0x7d   : > { %p6404_p11 = pnand %p6402_p10, %p6713_p7 }
  0x7e   : > { %p6411_p2 = por %p6410_p0, %p6409_p13 }
  0x7f   : > { %p6405_p12 = pneg %p6404_p11 }
  0x81   : > { %p6412_p4 = pnand %p6411_p2, %p6405_p12 }
  0x83   : > { %6415 = shalt.err (!%p6412_p4)
}
  0x84   : > { %6145 = dma.hbm_to_vmem [thread:$0]  (!%p6699_p5), %s8767_s4, 16, %s6755_s21, [#allocation11]  }
  0x85   : > { %s6594_s23 = smov [#allocation13]   ;;  %s6416_s9 = scalar_lea.hbm %s8719_s5, 16 }
  0x86   : > { %s291_s12 = sshll.u32 %s6594_s23, 4  ;;  %p6417_p6 = scmp.ne.s32.totalorder %s8719_s5, %s6416_s9  ;;  %s292_s12 = int_to_ptr.vmem [resolvable:$true] %s291_s12 }
  0x87   : > { %p6423_p8 = scmp.lt.u32.totalorder %s6416_s9, %s8719_s5 }
  0x88   : > { %p6419_p3 = pnand %p6417_p6, %p6713_p7 }
  0x8a   : > { %p6420_p1 = pneg %p6419_p3 }
  0x8c   : > { %p6425_p9 = pnand %p6423_p8, %p6420_p1 }
  0x8e   : > { %6428 = shalt.err (!%p6425_p9)
}
  0x8f   : > { %s6429_s21 = scalar_lea.vmem %s292_s12, 16  ;;  %s6436_s1 = scalar_lea.vmem %s292_s12, 32 }
  0x90   : > { %p6430_p10 = scmp.ne.s32.totalorder %s292_s12, %s6429_s21  ;;  %p6437_p13 = scmp.lt.s32.totalorder %s292_s12, %s292_s12 }
  0x91   : > { %p6438_p0 = scmp.lt.s32.totalorder %s6436_s1, %s6429_s21 }
  0x92   : > { %p6432_p11 = pnand %p6430_p10, %p6713_p7 }
  0x93   : > { %p6439_p2 = por %p6438_p0, %p6437_p13 }
  0x94   : > { %p6433_p12 = pneg %p6432_p11 }
  0x96   : > { %p6440_p4 = pnand %p6439_p2, %p6433_p12 }
  0x98   : > { %6443 = shalt.err (!%p6440_p4)
}
  0x99   : > { %6148 = dma.hbm_to_vmem [thread:$0]  (!%p6699_p5), %s8719_s5, 16, %s292_s12, [#allocation14]  }
  0x9a   : > { %s5084_s22 = sadd.s32 4294967294, %s6584_s8   ;;  %s35_s14 = sadd.s32 1, %s6576_s29 }
  0x9b   : > { %p36_p7 = scmp.ge.s32.totalorder %s35_s14, 2  ;;  %s38_s15 = sadd.s32 1, %s6580_s30 }
  0x9c   : > { %s47_s13 = sadd.s32 1, %s6564_s26  ;;  %p54_p6 = scmp.ne.s32.totalorder %s6564_s26, %s6560_s25 }
  0x9d   : > { %s8882_s14 = smov (%p36_p7, %s35_s14), 0  ;;  %s8884_s15 = smov (!%p36_p7, %s38_s15), %s6580_s30 }
  0x9e   : > { %s43_s9 = ssub.s32 %s6576_s29, %s8882_s14  ;;  %p55_p5 = scmp.eq.s32.totalorder %s6584_s8, 0 }
  0x9f   : > { %p40_p3 = scmp.ge.s32.totalorder %s8884_s15, 2  ;;  %p60_p1 = scmp.ne.s32.totalorder %s6560_s25, %s6556_s24 }
  0xa0   : > { %s8768_s12 = sadd.s32 4294967295, %s6584_s8   ;;  %p223_p9 = scmp.eq.s32.totalorder %s5084_s22, 3 }
  0xa1   : > { %p217_p8 = scmp.eq.s32.totalorder %s8768_s12, 3  ;;  %s8886_s15 = smov (%p40_p3, %s8884_s15), 0 }
  0xa2   : > { %p8769_p10 = scmp.ne.s32.totalorder %s8760_s10, 0  ;;  %s42_s20 = ssub.s32 %s6580_s30, %s8886_s15 }
  0xa3   : > { %p6844_p12 = por %p217_p8, %p54_p6  ;;  %p6850_p13 = por %p223_p9, %p60_p1 }
  0xa4   : > { %p6837_p11 = por %p8769_p10, %p60_p1  ;;  %s44_s21 = sor.u32 %s43_s9, %s42_s20 }
  0xa5   : > { %s8771_s17 = scalar_select %p6844_p12, 1, 0 }
  0xa6   : > { %s8772_s18 = scalar_select %p6850_p13, 1, 0 }
  0xa7   : > { %p56_p0 = por %p55_p5, %p54_p6  ;;  %p45_p2 = scmp.eq.s32.totalorder %s44_s21, 0 }
  0xa8   : > { %s302_s1 = sand.u32 1, %s6564_s26   ;;  %p6162_p4 = scmp.lt.s32.totalorder %s6584_s8, 4 }
  0xa9   : > { %s6102_s19 = smul.u32 288, %s302_s1 }
  0xaa   : > { %s6860_s23 = scalar_select %p45_p2, %s6564_s26, %s47_s13  }
  0xab   : > { %s6103_s22 = smul.u32 36, %s6576_s29  ;;  %s306_s7 = scalar_lea.vmem [#allocation4], %s6102_s19 }
  0xac   : > { %s6104_s12 = smul.u32 72, %s6580_s30  ;;  %s315_s28 = sshll.u32 %s306_s7, 4  ;;  %s6868_s28 = int_to_ptr.vmem [resolvable:$true] %s315_s28 }
  0xad   : > { %p6864_p7 = pnand %p6162_p4, %p56_p0  ;;  %s6875_s7 = scalar_lea.sflag [#allocation5], %s302_s1 }
  0xae   : > { %s312_s3 = sadd.s32 %s6104_s12, %s6103_s22  ;;  %s6449_s22 = scalar_lea.hbm %s8714_s0, 18432 }
  0xaf   : > { %s5092_s9 = sshll.u32 %s312_s3, 7  ;;  %p6446_p5 = pneg %p6864_p7 }
  0xb0   : > { %s6873_s4 = scalar_lea.hbm %s8714_s0, %s5092_s9 }
  0xb1   : > { %s6444_s13 = scalar_lea.hbm %s6873_s4, 4608  ;;  %p6450_p8 = scmp.lt.u32.totalorder %s6873_s4, %s8714_s0 }
  0xb2   : > { %p6445_p6 = scmp.ne.s32.totalorder %s6873_s4, %s6444_s13  ;;  %p6451_p9 = scmp.lt.u32.totalorder %s6449_s22, %s6444_s13 }
  0xb3   : > { %p6453_p0 = scmp.lt.u32.totalorder %s6444_s13, %s6873_s4 }
  0xb4   : > { %p6447_p3 = pnand %p6446_p5, %p6445_p6  ;;  %p6452_p10 = por %p6451_p9, %p6450_p8 }
  0xb6   : > { %p6448_p1 = pneg %p6447_p3  ;;  %p6454_p2 = por %p6453_p0, %p6452_p10 }
  0xb8   : > { %p6455_p4 = pnand %p6454_p2, %p6448_p1 }
  0xba   : > { %6458 = shalt.err (!%p6455_p4)
}
  0xbb   : > { %s6459_s1 = scalar_lea.vmem %s6868_s28, 4608  ;;  %s6595_s20 = smov [#allocation4]  }
  0xbc   : > { %p6460_p6 = scmp.ne.s32.totalorder %s6868_s28, %s6459_s1  ;;  %s6464_s21 = sshll.u32 %s6595_s20, 4  ;;  %s6465_s21 = int_to_ptr.vmem [resolvable:$false] %s6464_s21 }
  0xbd   : > { %s6466_s3 = scalar_lea.vmem %s6465_s21, 9216  ;;  %p6467_p12 = scmp.lt.s32.totalorder %s6868_s28, %s6465_s21 }
  0xbe   : > { %p6462_p3 = pnand %p6460_p6, %p6446_p5  ;;  %p6468_p8 = scmp.lt.s32.totalorder %s6466_s3, %s6459_s1 }
  0xc0   : > { %p6463_p13 = pneg %p6462_p3  ;;  %p6469_p9 = por %p6468_p8, %p6467_p12 }
  0xc2   : > { %p6470_p10 = pnand %p6469_p9, %p6463_p13 }
  0xc4   : > { %6473 = shalt.err (!%p6470_p10)
}
  0xc5   : > { %s8774_s13 = smov 8   ;;  %s8775_s19 = smov 128  }
  0xc6   : > { %6152 = dma.hbm_to_vmem [thread:$0]  (!%p6864_p7), %s6873_s4, 4608, %s6868_s28, %s6875_s7, %s8775_s19, %s8775_s19, %s8774_s13  }
  0xc7   : > { %p8776_p5 = scmp.ne.s32.totalorder %s8761_s11, 0 }
  0xc9   : > { %335 = sbr.rel (%p8776_p5) target bundleno = 1660 (0x67c), region = 48 }
  0xd0   : > { %s6909_s22 = sand.u32 1, %s6560_s25  }
  0xd1   : > { %s6105_s12 = smul.u32 288, %s6909_s22  ;;  %s338_s9 = scalar_lea.sflag [#allocation5], %s6909_s22 }
  0xd3   : > { %s6913_s1 = scalar_lea.vmem [#allocation4], %s6105_s12 }
  0xd4   : > { %6535 = dma.done.wait (%p6837_p11), %s338_s9, 4608  }
  0xd5   : > { %6537 = vsyncadd (%p6837_p11), %s338_s9, 4294962688  ;;  %p8777_p12 = scmp.ne.s32.totalorder %s8760_s10, 0 }
  0xd7   : > { %6539 = dma.done.wait (%p8777_p12), [#allocation8], 36880  }
  0xd8   : > { %6541 = vsyncadd (%p8777_p12), [#allocation8], 4294930416 }
  0xd9   : > { %6543 = dma.done.wait (%p8777_p12), [#allocation11], 18448  }
  0xda   : > { %6545 = vsyncadd (%p8777_p12), [#allocation11], 4294948848 }
  0xdb   : > { %6547 = dma.done.wait (%p8777_p12), [#allocation14], 16  }
  0xdc   : > { %6549 = vsyncadd (%p8777_p12), [#allocation14], 4294967280  ;;  %v8730_v0 = vmov 0.0   ;;  %v1336_v1 = vld [vmem:[#allocation7 + $0x8] sm:$0xff]  ;;  %v1338_v2 = vld [vmem:[#allocation7 + $0x18] sm:$0xff]  ;;  %vm464_vm0 = vcmask 1040384  }
  0xdd   : > { %403 = vst [vmem:[#allocation2] sm:$0x1] %v8730_v0  ;;  %1004 = vst [vmem:[#allocation2 + $0x86f] sm:$0x1] %v8730_v0  ;;  %2670 = vmatprep.mubr.f32.mxu1 %v8730_v0  ;;  %v1335_v3 = vld [vmem:[#allocation7] sm:$0xff]  ;;  %v5214_v4 = vpack.c.bf16 %v1338_v2, %v1336_v1  ;;  %v1337_v5 = vld [vmem:[#allocation7 + $0x10] sm:$0xff] }
  0xde   : > { %3126 = vst [vmem:[#allocation3] sm:$0x1] %v8730_v0  ;;  %3521 = vst [vmem:[#allocation3 + $0x6bf] sm:$0x1] %v8730_v0  ;;  %v1340_v6 = vld [vmem:[#allocation7 + $0x28] sm:$0xff]  ;;  %v1342_v7 = vld [vmem:[#allocation7 + $0x38] sm:$0xff]  ;;  %v5216_v8 = vpack.c.bf16 %v1337_v5, %v1335_v3 }
  0xdf   : > { %v5218_v9 = vpack.c.bf16 %v1342_v7, %v1340_v6  ;;  %v1339_v10 = vld [vmem:[#allocation7 + $0x20] sm:$0xff]  ;;  %v1341_v11 = vld [vmem:[#allocation7 + $0x30] sm:$0xff]  ;;  %v1344_v12 = vld [vmem:[#allocation7 + $0x48] sm:$0xff]  ;;  %5215 = vmatprep.subr.bf16.mxu0 %v5214_v4  ;;  %p397_p11 = scmp.lt.s32.totalorder %s6568_s27, 1  ;;  %vm3271_vm1 = vcmask 1046528   ;;  %s6106_s16 = smul.u32 192, %s6909_s22 }
  0xe0   : > { %v1346_v13 = vld [vmem:[#allocation7 + $0x58] sm:$0xff]  ;;  %5217 = vmatpush1.bf16.msra.mxu0 %v5216_v8  ;;  %v5220_v14 = vpack.c.bf16 %v1341_v11, %v1339_v10  ;;  %v1343_v16 = vld [vmem:[#allocation7 + $0x40] sm:$0xff]  ;;  %v1345_v17 = vld [vmem:[#allocation7 + $0x50] sm:$0xff]  ;;  %s8869_s20 = sld [smem:[#allocation21_spill]]  ;;  %s4925_s21 = smul.u32 24, %s6568_s27 }
  0xe1   : > { %5219 = vmatprep.subr.bf16.mxu0 %v5218_v9  ;;  %v5222_v15 = vpack.c.bf16 %v1346_v13, %v1344_v12  ;;  %v1348_v18 = vld [vmem:[#allocation7 + $0x68] sm:$0xff]  ;;  %v1350_v19 = vld [vmem:[#allocation7 + $0x78] sm:$0xff]  ;;  %v5224_v20 = vpack.c.bf16 %v1345_v17, %v1343_v16  ;;  %v1347_v22 = vld [vmem:[#allocation7 + $0x60] sm:$0xff]  ;;  %s398_s2 = scalar_select %p397_p11, %s6568_s27, 1 }
  0xe2   : > { %v5226_v21 = vpack.c.bf16 %v1350_v19, %v1348_v18  ;;  %v1349_v23 = vld [vmem:[#allocation7 + $0x70] sm:$0xff]  ;;  %v1352_v24 = vld [vmem:[#allocation7 + $0x88] sm:$0xff]  ;;  %v1354_v25 = vld [vmem:[#allocation7 + $0x98] sm:$0xff]  ;;  %s8548_s7 = scalar_lea.vmem [#allocation15], %s6106_s16  ;;  %p8872_p7 = scmp.ne.s32.totalorder %s8771_s17, 0 }
  0xe3   : > { %v5228_v26 = vpack.c.bf16 %v1349_v23, %v1347_v22  ;;  %v5230_v27 = vpack.c.bf16 %v1354_v25, %v1352_v24  ;;  %v1351_v28 = vld [vmem:[#allocation7 + $0x80] sm:$0xff]  ;;  %v1353_v29 = vld [vmem:[#allocation7 + $0x90] sm:$0xff]  ;;  %v1356_v30 = vld [vmem:[#allocation7 + $0xa8] sm:$0xff]  ;;  %s6107_s4 = smul.u32 240, %s398_s2  ;;  %s4933_s13 = sshll.u32 %s8548_s7, 4  ;;  %s8653_s13 = int_to_ptr.vmem [resolvable:$true] %s4933_s13 }
  0xe4   : > { %5221 = vmatpush1.bf16.msra.mxu0 %v5220_v14  ;;  %v1358_v31 = vld [vmem:[#allocation7 + $0xb8] sm:$0xff]  ;;  %v5232_v32 = vpack.c.bf16 %v1353_v29, %v1351_v28  ;;  %v1355_v34 = vld [vmem:[#allocation7 + $0xa0] sm:$0xff]  ;;  %v1357_v35 = vld [vmem:[#allocation7 + $0xb0] sm:$0xff]  ;;  %s6474_s10 = scalar_lea.vmem %s8653_s13, 3072  ;;  %s6599_s11 = smov [#allocation15]  }
  0xe5   : > { %5223 = vmatprep.subr.bf16.mxu0 %v5222_v15  ;;  %v5234_v33 = vpack.c.bf16 %v1358_v31, %v1356_v30  ;;  %v1360_v36 = vld [vmem:[#allocation7 + $0xc8] sm:$0xff]  ;;  %v1362_v37 = vld [vmem:[#allocation7 + $0xd8] sm:$0xff]  ;;  %v5236_v38 = vpack.c.bf16 %v1357_v35, %v1355_v34  ;;  %v1359_v40 = vld [vmem:[#allocation7 + $0xc0] sm:$0xff]  ;;  %s7802_s28 = scalar_lea.vmem %s8720_s6, %s6107_s4  ;;  %s4918_s4 = scalar_lea.sflag [#allocation6], %s6909_s22 }
  0xe6   : > { %v5238_v39 = vpack.c.bf16 %v1362_v37, %v1360_v36  ;;  %v1361_v41 = vld [vmem:[#allocation7 + $0xd0] sm:$0xff]  ;;  %v584_v42 = vld [vmem:[%s6913_s1] sm:$0xff]  ;;  %v1364_v43 = vld [vmem:[#allocation7 + $0xe8] sm:$0xff]  ;;  %s6108_s3 = smul.u32 48, %s8869_s20  ;;  %p6475_p13 = scmp.ne.s32.totalorder %s8653_s13, %s6474_s10 }
  0xe7   : > { %v1366_v44 = vld [vmem:[#allocation7 + $0xf8] sm:$0xff]  ;;  %1687 = vmatprep.mubr.f32.mxu0 %v584_v42  ;;  %v465_v45 = vrot.slane %v584_v42, 7  ;;  %v6938_v46 = vld [vmem:[%s6913_s1 + $0x8] sm:$0xff]  ;;  %v6941_v47 = vld [vmem:[%s6913_s1 + $0x10] sm:$0xff]  ;;  %v5240_v48 = vpack.c.bf16 %v1361_v41, %v1359_v40 }
  0xe8   : > { %5225 = vmatpush1.bf16.msra.mxu0 %v5224_v20  ;;  %v1363_v49 = vld [vmem:[#allocation7 + $0xe0] sm:$0xff]  ;;  %v1365_v50 = vld [vmem:[#allocation7 + $0xf0] sm:$0xff]  ;;  %v466_v51 = vrot.slane %v6938_v46, 7  ;;  %v468_v52 = vrot.slane %v6941_v47, 7  ;;  %v5242_v53 = vpack.c.bf16 %v1366_v44, %v1364_v43  ;;  %v6946_v54 = vld [vmem:[%s6913_s1 + $0x18] sm:$0xff]  ;;  %s4930_s27 = sadd.s32 %s6108_s3, %s4925_s21  ;;  %p6476_p1 = pnand %p6475_p13, %p8872_p7 }
  0xe9   : > { %5227 = vmatprep.subr.bf16.mxu0 %v5226_v21  ;;  %554 = vst [vmem:[#allocation2] sm:$0xfe] %v465_v45  ;;  %v6949_v55 = vld [vmem:[%s6913_s1 + $0x20] sm:$0xff]  ;;  %v1368_v56 = vld [vmem:[#allocation7 + $0x108] sm:$0xff]  ;;  %v1370_v57 = vld [vmem:[#allocation7 + $0x118] sm:$0xff]  ;;  %v470_v60 = vrot.slane %v6946_v54, 7  ;;  %v5244_v62 = vpack.c.bf16 %v1365_v50, %v1363_v49 }
  0xea   : > { %v6952_v58 = vsel %vm464_vm0, %v465_v45, %v466_v51  ;;  %v6955_v59 = vsel %vm464_vm0, %v466_v51, %v468_v52  ;;  %v472_v61 = vrot.slane %v6949_v55, 7  ;;  %v6960_v63 = vld [vmem:[%s6913_s1 + $0x28] sm:$0xff]  ;;  %v6963_v1 = vld [vmem:[%s6913_s1 + $0x30] sm:$0xff]  ;;  %v5246_v6 = vpack.c.bf16 %v1370_v57, %v1368_v56  ;;  %v1367_v7 = vld [vmem:[#allocation7 + $0x100] sm:$0xff]  ;;  %s5103_s19 = sshll.u32 %s4930_s27, 7  ;;  %p6477_p0 = pneg %p6476_p1 }
  0xeb   : > { %v6966_v2 = vsel %vm464_vm0, %v468_v52, %v470_v60  ;;  %v474_v4 = vrot.slane %v6960_v63, 7  ;;  %v476_v5 = vrot.slane %v6963_v1, 7  ;;  %v1369_v8 = vld [vmem:[#allocation7 + $0x110] sm:$0xff]  ;;  %v6974_v9 = vld [vmem:[%s6913_s1 + $0x38] sm:$0xff]  ;;  %v1372_v10 = vld [vmem:[#allocation7 + $0x128] sm:$0xff] }
  0xec   : > { %5229 = vmatpush1.bf16.msra.mxu0 %v5228_v26  ;;  %v6969_v3 = vsel %vm464_vm0, %v470_v60, %v472_v61  ;;  %v1374_v11 = vld [vmem:[#allocation7 + $0x138] sm:$0xff]  ;;  %v478_v14 = vrot.slane %v6974_v9, 7  ;;  %v6984_v15 = vld [vmem:[%s6913_s1 + $0x40] sm:$0xff]  ;;  %v6988_v17 = vld [vmem:[%s6913_s1 + $0x48] sm:$0xff]  ;;  %v5248_v18 = vpack.c.bf16 %v1369_v8, %v1367_v7 }
  0xed   : > { %5231 = vmatprep.subr.bf16.mxu0 %v5230_v27  ;;  %v6977_v12 = vsel %vm464_vm0, %v472_v61, %v474_v4  ;;  %v6980_v13 = vsel %vm464_vm0, %v474_v4, %v476_v5  ;;  %v480_v16 = vrot.slane %v6984_v15, 7  ;;  %v482_v20 = vrot.slane %v6988_v17, 7  ;;  %v6995_v21 = vld [vmem:[%s6913_s1 + $0x50] sm:$0xff]  ;;  %v1371_v23 = vld [vmem:[#allocation7 + $0x120] sm:$0xff]  ;;  %v7002_v27 = vld [vmem:[%s6913_s1 + $0x58] sm:$0xff] }
  0xee   : > { %v6991_v19 = vsel %vm464_vm0, %v476_v5, %v478_v14  ;;  %v5250_v22 = vpack.c.bf16 %v1374_v11, %v1372_v10  ;;  %v1373_v24 = vld [vmem:[#allocation7 + $0x130] sm:$0xff]  ;;  %v484_v26 = vrot.slane %v6995_v21, 7  ;;  %v1376_v28 = vld [vmem:[#allocation7 + $0x148] sm:$0xff]  ;;  %v1378_v29 = vld [vmem:[#allocation7 + $0x158] sm:$0xff]  ;;  %v486_v31 = vrot.slane %v7002_v27, 7 }
  0xef   : > { %v6998_v25 = vsel %vm464_vm0, %v478_v14, %v480_v16  ;;  %v7005_v30 = vsel %vm464_vm0, %v480_v16, %v482_v20  ;;  %v7015_v34 = vld [vmem:[%s6913_s1 + $0x68] sm:$0xff]  ;;  %v5252_v35 = vpack.c.bf16 %v1373_v24, %v1371_v23  ;;  %v1375_v36 = vld [vmem:[#allocation7 + $0x140] sm:$0xff]  ;;  %v1377_v37 = vld [vmem:[#allocation7 + $0x150] sm:$0xff]  ;;  %v5254_v41 = vpack.c.bf16 %v1378_v29, %v1376_v28 }
  0xf0   : > { %5233 = vmatpush1.bf16.msra.mxu0 %v5232_v32  ;;  %v7009_v32 = vsel %vm464_vm0, %v482_v20, %v484_v26  ;;  %v490_v40 = vrot.slane %v7015_v34, 7  ;;  %v7023_v42 = vld [vmem:[%s6913_s1 + $0x70] sm:$0xff]  ;;  %v7026_v43 = vld [vmem:[%s6913_s1 + $0x78] sm:$0xff]  ;;  %v1380_v44 = vld [vmem:[#allocation7 + $0x168] sm:$0xff]  ;;  %v5256_v52 = vpack.c.bf16 %v1377_v37, %v1375_v36 }
  0xf1   : > { %5235 = vmatprep.subr.bf16.mxu0 %v5234_v33  ;;  %v7012_v33 = vld [vmem:[%s6913_s1 + $0x60] sm:$0xff]  ;;  %v1382_v45 = vld [vmem:[#allocation7 + $0x178] sm:$0xff]  ;;  %v492_v50 = vrot.slane %v7023_v42, 7  ;;  %v494_v51 = vrot.slane %v7026_v43, 7  ;;  %v7040_v56 = vld [vmem:[%s6913_s1 + $0x88] sm:$0xff] }
  0xf2   : > { %v1379_v57 = vld [vmem:[#allocation7 + $0x160] sm:$0xff]  ;;  %v1381_v60 = vld [vmem:[#allocation7 + $0x170] sm:$0xff]  ;;  %v498_v5 = vrot.slane %v7040_v56, 7  ;;  %v7054_v8 = vld [vmem:[%s6913_s1 + $0x98] sm:$0xff] }
  0xf3   : > { %v7043_v61 = vsel %vm464_vm0, %v490_v40, %v492_v50  ;;  %v7051_v7 = vld [vmem:[%s6913_s1 + $0x90] sm:$0xff]  ;;  %v1384_v10 = vld [vmem:[#allocation7 + $0x188] sm:$0xff]  ;;  %v1386_v11 = vld [vmem:[#allocation7 + $0x198] sm:$0xff]  ;;  %v502_v20 = vrot.slane %v7054_v8, 7 }
  0xf4   : > { %5237 = vmatpush1.bf16.msra.mxu0 %v5236_v38  ;;  %v7018_v38 = vsel %vm464_vm0, %v484_v26, %v486_v31  ;;  %v7065_v23 = vld [vmem:[%s6913_s1 + $0xa0] sm:$0xff]  ;;  %v7068_v24 = vld [vmem:[%s6913_s1 + $0xa8] sm:$0xff]  ;;  %v1385_v37 = vld [vmem:[#allocation7 + $0x190] sm:$0xff] }
  0xf5   : > { %5239 = vmatprep.subr.bf16.mxu0 %v5238_v39  ;;  %v488_v39 = vrot.slane %v7012_v33, 7  ;;  %v504_v29 = vrot.slane %v7065_v23, 7  ;;  %v1383_v36 = vld [vmem:[#allocation7 + $0x180] sm:$0xff] }
  0xf7   : > { %v7032_v49 = vsel %vm464_vm0, %v488_v39, %v490_v40  ;;  %v1388_v40 = vld [vmem:[#allocation7 + $0x1a8] sm:$0xff] }
  0xf8   : > { %5241 = vmatpush1.bf16.msra.mxu0 %v5240_v48  ;;  %v7029_v48 = vsel %vm464_vm0, %v486_v31, %v488_v39  ;;  %v506_v31 = vrot.slane %v7068_v24, 7  ;;  %v7079_v39 = vld [vmem:[%s6913_s1 + $0xb0] sm:$0xff] }
  0xf9   : > { %5243 = vmatprep.subr.bf16.mxu0 %v5242_v53  ;;  %v7037_v53 = vld [vmem:[%s6913_s1 + $0x80] sm:$0xff] }
  0xfa   : > { %v496_v4 = vrot.slane %v7037_v53, 7 }
  0xfc   : > { %5245 = vmatpush1.bf16.msra.mxu0 %v5244_v62  ;;  %v7046_v62 = vsel %vm464_vm0, %v492_v50, %v494_v51  ;;  %v7057_v14 = vsel %vm464_vm0, %v494_v51, %v496_v4  ;;  %v7060_v16 = vsel %vm464_vm0, %v496_v4, %v498_v5  ;;  %v508_v50 = vrot.slane %v7079_v39, 7  ;;  %v7089_v51 = vld [vmem:[%s6913_s1 + $0xb8] sm:$0xff] }
  0xfd   : > { %5247 = vmatprep.subr.bf16.mxu0 %v5246_v6  ;;  %v5258_v6 = vpack.c.bf16 %v1382_v45, %v1380_v44  ;;  %v7082_v44 = vsel %vm464_vm0, %v502_v20, %v504_v29  ;;  %v7085_v45 = vsel %vm464_vm0, %v504_v29, %v506_v31  ;;  %8778 = vst [vmem:[#allocation22_spill] sm:$0xff] %v7089_v51  ;;  %v7107_v29 = vld [vmem:[%s6913_s1 + $0xd0] sm:$0xff] }
  0xfe   : > { %v7096_v4 = vsel %vm464_vm0, %v506_v31, %v508_v50  ;;  %8783 = vst [vmem:[#allocation27_spill] sm:$0xff] %v7107_v29  ;;  %v1394_v31 = vld [vmem:[#allocation7 + $0x1d8] sm:$0xff]  ;;  %v516_v0 = vrot.slane %v7107_v29, 7 }
  0xff   : > { %8780 = vst [vmem:[#allocation24_spill] sm:$0xff] %v7096_v4  ;;  %v1398_v4 = vld [vmem:[#allocation7 + $0x1f8] sm:$0xff] }
 0x100   : > { %5249 = vmatpush1.bf16.msra.mxu0 %v5248_v18  ;;  %v500_v18 = vrot.slane %v7051_v7, 7 }
 0x101   : > { %5251 = vmatprep.subr.bf16.mxu0 %v5250_v22  ;;  %v5260_v22 = vpack.c.bf16 %v1381_v60, %v1379_v57  ;;  %v7093_v57 = vld [vmem:[%s6913_s1 + $0xc0] sm:$0xff]  ;;  %v5264_v60 = vpack.c.bf16 %v1385_v37, %v1383_v36  ;;  %v1392_v36 = vld [vmem:[#allocation7 + $0x1c8] sm:$0xff] }
 0x102   : > { %v7071_v26 = vsel %vm464_vm0, %v498_v5, %v500_v18  ;;  %v7074_v28 = vsel %vm464_vm0, %v500_v18, %v502_v20  ;;  %8779 = vst [vmem:[#allocation23_spill] sm:$0xff] %v7093_v57  ;;  %v512_v5 = vrot.slane %v7093_v57, 7  ;;  %v1389_v18 = vld [vmem:[#allocation7 + $0x1b0] sm:$0xff]  ;;  %v5270_v29 = vpack.c.bf16 %v1394_v31, %v1392_v36  ;;  %v7144_v36 = vld [vmem:[%s6913_s1 + $0x1] sm:$0xff] }
 0x103   : > { %8791 = vst [vmem:[#allocation35_spill] sm:$0xff] %v7144_v36  ;;  %v1395_v31 = vld [vmem:[#allocation7 + $0x1e0] sm:$0xff]  ;;  %v7156_v36 = vld [vmem:[%s6913_s1 + $0x11] sm:$0xff] }
 0x104   : > { %5253 = vmatpush1.bf16.msra.mxu0 %v5252_v35  ;;  %v5262_v35 = vpack.c.bf16 %v1386_v11, %v1384_v10  ;;  %v1387_v11 = vld [vmem:[#allocation7 + $0x1a0] sm:$0xff] }
 0x105   : > { %5255 = vmatprep.subr.bf16.mxu0 %v5254_v41  ;;  %v1390_v41 = vld [vmem:[#allocation7 + $0x1b8] sm:$0xff] }
 0x106   : > { %v5266_v10 = vpack.c.bf16 %v1390_v41, %v1388_v40 }
 0x108   : > { %5257 = vmatpush1.bf16.msra.mxu0 %v5256_v52  ;;  %v510_v52 = vrot.slane %v7089_v51, 7  ;;  %v1396_v51 = vld [vmem:[#allocation7 + $0x1e8] sm:$0xff] }
 0x109   : > { %5259 = vmatprep.subr.bf16.mxu0 %v5258_v6  ;;  %v7100_v6 = vld [vmem:[%s6913_s1 + $0xc8] sm:$0xff] }
 0x10a   : > { %8781 = vst [vmem:[#allocation25_spill] sm:$0xff] %v7100_v6  ;;  %v7103_v20 = vsel %vm464_vm0, %v508_v50, %v510_v52  ;;  %v7110_v37 = vsel %vm464_vm0, %v510_v52, %v512_v5  ;;  %v7121_v50 = vld [vmem:[%s6913_s1 + $0xe0] sm:$0xff] }
 0x10b   : > { %8782 = vst [vmem:[#allocation26_spill] sm:$0xff] %v7103_v20  ;;  %8784 = vst [vmem:[#allocation28_spill] sm:$0xff] %v7110_v37  ;;  %v520_v52 = vrot.slane %v7121_v50, 7  ;;  %v7128_v37 = vld [vmem:[%s6913_s1 + $0xe8] sm:$0xff]  ;;  %v1391_v20 = vld [vmem:[#allocation7 + $0x1c0] sm:$0xff] }
 0x10c   : > { %5261 = vmatpush1.bf16.msra.mxu0 %v5260_v22  ;;  %v514_v22 = vrot.slane %v7100_v6, 7  ;;  %8787 = vst [vmem:[#allocation31_spill] sm:$0xff] %v7121_v50  ;;  %v5268_v6 = vpack.c.bf16 %v1389_v18, %v1387_v11  ;;  %8788 = vst [vmem:[#allocation32_spill] sm:$0xff] %v7128_v37  ;;  %v7138_v18 = vld [vmem:[%s6913_s1 + $0x17] sm:$0xff]  ;;  %v1400_v50 = vld [vmem:[#allocation7 + $0x208] sm:$0xff] }
 0x10d   : > { %5263 = vmatprep.subr.bf16.mxu0 %v5262_v35  ;;  %v7114_v35 = vld [vmem:[%s6913_s1 + $0xd8] sm:$0xff]  ;;  %8790 = vst [vmem:[#allocation34_spill] sm:$0xff] %v7138_v18  ;;  %v1397_v37 = vld [vmem:[#allocation7 + $0x1f0] sm:$0xff] }
 0x10e   : > { %8785 = vst [vmem:[#allocation29_spill] sm:$0xff] %v7114_v35  ;;  %v7117_v40 = vsel %vm464_vm0, %v512_v5, %v514_v22  ;;  %v518_v41 = vrot.slane %v7114_v35, 7  ;;  %v7124_v57 = vsel %vm464_vm0, %v514_v22, %v516_v0  ;;  %v1393_v5 = vld [vmem:[#allocation7 + $0x1d0] sm:$0xff]  ;;  %v433_v35 = vld [vmem:[%s6913_s1 + $0xe8] sm:$0x7f] }
 0x10f   : > { %8786 = vst [vmem:[#allocation30_spill] sm:$0xff] %v7117_v40  ;;  %v522_v11 = vrot.slane %v433_v35, 7  ;;  %v5272_v22 = vpack.c.bf16 %v1393_v5, %v1391_v20  ;;  %v7147_v35 = vld [vmem:[%s6913_s1 + $0x1f] sm:$0xff]  ;;  %v7150_v18 = vld [vmem:[%s6913_s1 + $0x9] sm:$0xff] }
 0x110   : > { %5265 = vmatpush1.bf16.msra.mxu0 %v5264_v60  ;;  %v7131_v40 = vsel %vm464_vm0, %v516_v0, %v518_v41  ;;  %v7135_v60 = vsel %vm464_vm0, %v518_v41, %v520_v52  ;;  %v5274_v0 = vpack.c.bf16 %v1398_v4, %v1396_v51  ;;  %v1402_v41 = vld [vmem:[#allocation7 + $0x218] sm:$0xff]  ;;  %8792 = vst [vmem:[#allocation36_spill] sm:$0xff] %v7150_v18  ;;  %v1399_v20 = vld [vmem:[#allocation7 + $0x200] sm:$0xff]  ;;  %v1404_v5 = vld [vmem:[#allocation7 + $0x228] sm:$0xff] }
 0x111   : > { %5267 = vmatprep.subr.bf16.mxu0 %v5266_v10  ;;  %8789 = vst [vmem:[#allocation33_spill] sm:$0xff] %v7135_v60  ;;  %v7141_v10 = vsel %vm464_vm0, %v520_v52, %v522_v11  ;;  %v5276_v60 = vpack.c.bf16 %v1397_v37, %v1395_v31  ;;  %v1401_v52 = vld [vmem:[#allocation7 + $0x210] sm:$0xff]  ;;  %v1406_v11 = vld [vmem:[#allocation7 + $0x238] sm:$0xff]  ;;  %v1408_v18 = vld [vmem:[#allocation7 + $0x248] sm:$0xff] }
 0x112   : > { %v1065_v51 = vld [vmem:[#allocation2] sm:$0xff]  ;;  %v5280_v4 = vpack.c.bf16 %v1401_v52, %v1399_v20  ;;  %v5282_v37 = vpack.c.bf16 %v1406_v11, %v1404_v5  ;;  %v1407_v52 = vld [vmem:[#allocation7 + $0x240] sm:$0xff]  ;;  %v1412_v5 = vld [vmem:[#allocation7 + $0x268] sm:$0xff] }
 0x113   : > { %v1405_v31 = vld [vmem:[#allocation7 + $0x230] sm:$0xff]  ;;  %v1414_v11 = vld [vmem:[#allocation7 + $0x278] sm:$0xff] }
 0x114   : > { %5269 = vmatpush1.bf16.msra.mxu0 %v5268_v6  ;;  %v5278_v6 = vpack.c.bf16 %v1402_v41, %v1400_v50  ;;  %v1410_v50 = vld [vmem:[#allocation7 + $0x258] sm:$0xff]  ;;  %v7160_v41 = vld [vmem:[%s6913_s1 + $0x2f] sm:$0xff] }
 0x115   : > { %5271 = vmatprep.subr.bf16.mxu0 %v5270_v29  ;;  %v7153_v29 = vld [vmem:[%s6913_s1 + $0x27] sm:$0xff]  ;;  %v5286_v20 = vpack.c.bf16 %v1410_v50, %v1408_v18  ;;  %v5290_v18 = vpack.c.bf16 %v1414_v11, %v1412_v5  ;;  %v1418_v50 = vld [vmem:[#allocation7 + $0x298] sm:$0xff] }
 0x116   : > { %v1420_v5 = vld [vmem:[#allocation7 + $0x2a8] sm:$0xff]  ;;  %v1422_v11 = vld [vmem:[#allocation7 + $0x2b8] sm:$0xff] }
 0x118   : > { %5273 = vmatpush1.bf16.msra.mxu0 %v5272_v22  ;;  %v1403_v22 = vld [vmem:[#allocation7 + $0x220] sm:$0xff] }
 0x119   : > { %5275 = vmatprep.subr.bf16.mxu0 %v5274_v0  ;;  %v5284_v0 = vpack.c.bf16 %v1405_v31, %v1403_v22  ;;  %v1413_v22 = vld [vmem:[#allocation7 + $0x270] sm:$0xff]  ;;  %v1416_v31 = vld [vmem:[#allocation7 + $0x288] sm:$0xff] }
 0x11c   : > { %5277 = vmatpush1.bf16.msra.mxu0 %v5276_v60  ;;  %v7163_v60 = vld [vmem:[%s6913_s1 + $0x19] sm:$0xff] }
 0x11d   : > { %5279 = vmatprep.subr.bf16.mxu0 %v5278_v6  ;;  %v1409_v6 = vld [vmem:[#allocation7 + $0x250] sm:$0xff]  ;;  %677 = vst [vmem:[#allocation2 + $0xe8] sm:$0xff] %v7163_v60 }
 0x11f   : > { %1688 = vmatmul.mubr.f32.vlgmr.msra.gmra.mrb[0].mxu0 %v1065_v51  ;;  %v7168_v51 = vld [vmem:[%s6913_s1 + $0x37] sm:$0xff] }
 0x120   : > { %5281 = vmatpush1.bf16.msra.mxu0 %v5280_v4  ;;  %1692 = vmatprep.mubr.f32.mxu0 %v6938_v46  ;;  %v5288_v46 = vpack.c.bf16 %v1409_v6, %v1407_v52  ;;  %v7172_v4 = vld [vmem:[%s6913_s1 + $0x21] sm:$0xff]  ;;  %v1417_v6 = vld [vmem:[#allocation7 + $0x290] sm:$0xff] }
 0x121   : > { %5283 = vmatprep.subr.bf16.mxu0 %v5282_v37  ;;  %v1411_v37 = vld [vmem:[#allocation7 + $0x260] sm:$0xff]  ;;  %678 = vst [vmem:[#allocation2 + $0x130] sm:$0xff] %v7172_v4 }
 0x122   : > { %v1415_v52 = vld [vmem:[#allocation7 + $0x280] sm:$0xff] }
 0x123   : > { %1693 = vmatmul.mubr.f32.gmra.mrb[2].mxu0 %v6952_v58  ;;  %v7177_v58 = vld [vmem:[%s6913_s1 + $0x3f] sm:$0xff] }
 0x124   : > { %1697 = vmatprep.mubr.f32.mxu0 %v6941_v47  ;;  %5285 = vmatpush1.bf16.msra.mxu0 %v5284_v0  ;;  %v5292_v47 = vpack.c.bf16 %v1413_v22, %v1411_v37  ;;  %v7181_v0 = vld [vmem:[%s6913_s1 + $0x29] sm:$0xff]  ;;  %v1419_v37 = vld [vmem:[#allocation7 + $0x2a0] sm:$0xff] }
 0x125   : > { %5287 = vmatprep.subr.bf16.mxu0 %v5286_v20  ;;  %v5294_v20 = vpack.c.bf16 %v1418_v50, %v1416_v31  ;;  %679 = vst [vmem:[#allocation2 + $0x178] sm:$0xff] %v7181_v0  ;;  %v1421_v22 = vld [vmem:[#allocation7 + $0x2b0] sm:$0xff]  ;;  %v1424_v31 = vld [vmem:[#allocation7 + $0x2c8] sm:$0xff]  ;;  %v1426_v50 = vld [vmem:[#allocation7 + $0x2d8] sm:$0xff] }
 0x127   : > { %1698 = vmatmul.mubr.f32.gmra.mrb[4].mxu0 %v6955_v59  ;;  %v7186_v59 = vld [vmem:[%s6913_s1 + $0x47] sm:$0xff] }
 0x128   : > { %1702 = vmatprep.mubr.f32.mxu0 %v6946_v54  ;;  %5289 = vmatpush1.bf16.msra.mxu0 %v5288_v46  ;;  %v5296_v54 = vpack.c.bf16 %v1417_v6, %v1415_v52  ;;  %v7190_v46 = vld [vmem:[%s6913_s1 + $0x31] sm:$0xff]  ;;  %v1423_v52 = vld [vmem:[#allocation7 + $0x2c0] sm:$0xff] }
 0x129   : > { %5291 = vmatprep.subr.bf16.mxu0 %v5290_v18  ;;  %v5298_v18 = vpack.c.bf16 %v1422_v11, %v1420_v5  ;;  %680 = vst [vmem:[#allocation2 + $0x1c0] sm:$0xff] %v7190_v46  ;;  %v1425_v6 = vld [vmem:[#allocation7 + $0x2d0] sm:$0xff]  ;;  %v1428_v5 = vld [vmem:[#allocation7 + $0x2e8] sm:$0xff]  ;;  %v1430_v11 = vld [vmem:[#allocation7 + $0x2f8] sm:$0xff] }
 0x12b   : > { %1703 = vmatmul.mubr.f32.gmra.mrb[6].mxu0 %v6966_v2  ;;  %v7195_v2 = vld [vmem:[%s6913_s1 + $0x4f] sm:$0xff] }
 0x12c   : > { %1708 = vmatprep.mubr.f32.mxu0 %v6949_v55  ;;  %5293 = vmatpush1.bf16.msra.mxu0 %v5292_v47  ;;  %v5300_v55 = vpack.c.bf16 %v1421_v22, %v1419_v37  ;;  %v7199_v47 = vld [vmem:[%s6913_s1 + $0x39] sm:$0xff]  ;;  %v1429_v22 = vld [vmem:[#allocation7 + $0x2f0] sm:$0xff] }
 0x12d   : > { %5295 = vmatprep.subr.bf16.mxu0 %v5294_v20  ;;  %v5302_v20 = vpack.c.bf16 %v1426_v50, %v1424_v31  ;;  %681 = vst [vmem:[#allocation2 + $0x208] sm:$0xff] %v7199_v47  ;;  %v1427_v37 = vld [vmem:[#allocation7 + $0x2e0] sm:$0xff]  ;;  %v1432_v31 = vld [vmem:[#allocation7 + $0x308] sm:$0xff]  ;;  %v1434_v50 = vld [vmem:[#allocation7 + $0x318] sm:$0xff] }
 0x12f   : > { %1709 = vmatmul.mubr.f32.gmra.mrb[8].mxu0 %v6969_v3  ;;  %v7204_v3 = vld [vmem:[%s6913_s1 + $0x57] sm:$0xff] }
 0x130   : > { %1714 = vmatprep.mubr.f32.mxu0 %v6960_v63  ;;  %5297 = vmatpush1.bf16.msra.mxu0 %v5296_v54  ;;  %v5304_v63 = vpack.c.bf16 %v1425_v6, %v1423_v52  ;;  %v7208_v54 = vld [vmem:[%s6913_s1 + $0x41] sm:$0xff]  ;;  %v1433_v6 = vld [vmem:[#allocation7 + $0x310] sm:$0xff] }
 0x131   : > { %5299 = vmatprep.subr.bf16.mxu0 %v5298_v18  ;;  %v5306_v18 = vpack.c.bf16 %v1430_v11, %v1428_v5  ;;  %682 = vst [vmem:[#allocation2 + $0x250] sm:$0xff] %v7208_v54  ;;  %v1431_v52 = vld [vmem:[#allocation7 + $0x300] sm:$0xff]  ;;  %v1436_v5 = vld [vmem:[#allocation7 + $0x328] sm:$0xff]  ;;  %v1438_v11 = vld [vmem:[#allocation7 + $0x338] sm:$0xff] }
 0x133   : > { %1715 = vmatmul.mubr.f32.gmra.mrb[10].mxu0 %v6977_v12  ;;  %v7213_v12 = vld [vmem:[%s6913_s1 + $0x5f] sm:$0xff] }
 0x134   : > { %1720 = vmatprep.mubr.f32.mxu0 %v6963_v1  ;;  %5301 = vmatpush1.bf16.msra.mxu0 %v5300_v55  ;;  %v5308_v1 = vpack.c.bf16 %v1429_v22, %v1427_v37  ;;  %v7217_v55 = vld [vmem:[%s6913_s1 + $0x49] sm:$0xff]  ;;  %v1435_v37 = vld [vmem:[#allocation7 + $0x320] sm:$0xff] }
 0x135   : > { %5303 = vmatprep.subr.bf16.mxu0 %v5302_v20  ;;  %v5310_v20 = vpack.c.bf16 %v1434_v50, %v1432_v31  ;;  %683 = vst [vmem:[#allocation2 + $0x298] sm:$0xff] %v7217_v55  ;;  %v1437_v22 = vld [vmem:[#allocation7 + $0x330] sm:$0xff]  ;;  %v1440_v31 = vld [vmem:[#allocation7 + $0x348] sm:$0xff]  ;;  %v1442_v50 = vld [vmem:[#allocation7 + $0x358] sm:$0xff] }
 0x137   : > { %1721 = vmatmul.mubr.f32.gmra.mrb[12].mxu0 %v6980_v13  ;;  %v7222_v13 = vld [vmem:[%s6913_s1 + $0x67] sm:$0xff] }
 0x138   : > { %1726 = vmatprep.mubr.f32.mxu0 %v6974_v9  ;;  %5305 = vmatpush1.bf16.msra.mxu0 %v5304_v63  ;;  %v5312_v9 = vpack.c.bf16 %v1433_v6, %v1431_v52  ;;  %v7226_v63 = vld [vmem:[%s6913_s1 + $0x51] sm:$0xff]  ;;  %v1439_v52 = vld [vmem:[#allocation7 + $0x340] sm:$0xff] }
 0x139   : > { %5307 = vmatprep.subr.bf16.mxu0 %v5306_v18  ;;  %v5314_v18 = vpack.c.bf16 %v1438_v11, %v1436_v5  ;;  %684 = vst [vmem:[#allocation2 + $0x2e0] sm:$0xff] %v7226_v63  ;;  %v1441_v6 = vld [vmem:[#allocation7 + $0x350] sm:$0xff]  ;;  %v1444_v5 = vld [vmem:[#allocation7 + $0x368] sm:$0xff]  ;;  %v1446_v11 = vld [vmem:[#allocation7 + $0x378] sm:$0xff] }
 0x13b   : > { %1727 = vmatmul.mubr.f32.gmra.mrb[14].mxu0 %v6991_v19  ;;  %v7231_v19 = vld [vmem:[%s6913_s1 + $0x6f] sm:$0xff] }
 0x13c   : > { %1732 = vmatprep.mubr.f32.mxu0 %v6984_v15  ;;  %5309 = vmatpush1.bf16.msra.mxu0 %v5308_v1  ;;  %v5316_v15 = vpack.c.bf16 %v1437_v22, %v1435_v37  ;;  %v7235_v1 = vld [vmem:[%s6913_s1 + $0x59] sm:$0xff]  ;;  %v1445_v22 = vld [vmem:[#allocation7 + $0x370] sm:$0xff] }
 0x13d   : > { %5311 = vmatprep.subr.bf16.mxu0 %v5310_v20  ;;  %v5318_v20 = vpack.c.bf16 %v1442_v50, %v1440_v31  ;;  %685 = vst [vmem:[#allocation2 + $0x328] sm:$0xff] %v7235_v1  ;;  %v1443_v37 = vld [vmem:[#allocation7 + $0x360] sm:$0xff]  ;;  %v1448_v31 = vld [vmem:[#allocation7 + $0x388] sm:$0xff]  ;;  %v1450_v50 = vld [vmem:[#allocation7 + $0x398] sm:$0xff] }
 0x13f   : > { %1733 = vmatmul.mubr.f32.gmra.mrb[16].mxu0 %v6998_v25  ;;  %v7241_v25 = vld [vmem:[%s6913_s1 + $0x77] sm:$0xff] }
 0x140   : > { %1738 = vmatprep.mubr.f32.mxu0 %v6988_v17  ;;  %5313 = vmatpush1.bf16.msra.mxu0 %v5312_v9  ;;  %v5320_v17 = vpack.c.bf16 %v1441_v6, %v1439_v52  ;;  %v7244_v9 = vld [vmem:[%s6913_s1 + $0x61] sm:$0xff]  ;;  %v1449_v6 = vld [vmem:[#allocation7 + $0x390] sm:$0xff] }
 0x141   : > { %5315 = vmatprep.subr.bf16.mxu0 %v5314_v18  ;;  %v5322_v18 = vpack.c.bf16 %v1446_v11, %v1444_v5  ;;  %686 = vst [vmem:[#allocation2 + $0x370] sm:$0xff] %v7244_v9  ;;  %v1447_v52 = vld [vmem:[#allocation7 + $0x380] sm:$0xff]  ;;  %v1452_v5 = vld [vmem:[#allocation7 + $0x3a8] sm:$0xff]  ;;  %v1454_v11 = vld [vmem:[#allocation7 + $0x3b8] sm:$0xff] }
 0x143   : > { %1739 = vmatmul.mubr.f32.gmra.mrb[18].mxu0 %v7005_v30  ;;  %v7249_v30 = vld [vmem:[%s6913_s1 + $0x7f] sm:$0xff] }
 0x144   : > { %1744 = vmatprep.mubr.f32.mxu0 %v6995_v21  ;;  %5317 = vmatpush1.bf16.msra.mxu0 %v5316_v15  ;;  %v5324_v21 = vpack.c.bf16 %v1445_v22, %v1443_v37  ;;  %v7253_v15 = vld [vmem:[%s6913_s1 + $0x69] sm:$0xff]  ;;  %v1451_v37 = vld [vmem:[#allocation7 + $0x3a0] sm:$0xff] }
 0x145   : > { %5319 = vmatprep.subr.bf16.mxu0 %v5318_v20  ;;  %v5326_v20 = vpack.c.bf16 %v1450_v50, %v1448_v31  ;;  %687 = vst [vmem:[#allocation2 + $0x3b8] sm:$0xff] %v7253_v15  ;;  %v1453_v22 = vld [vmem:[#allocation7 + $0x3b0] sm:$0xff]  ;;  %v1456_v31 = vld [vmem:[#allocation7 + $0x3c8] sm:$0xff]  ;;  %v1458_v50 = vld [vmem:[#allocation7 + $0x3d8] sm:$0xff] }
 0x147   : > { %1745 = vmatmul.mubr.f32.gmra.mrb[20].mxu0 %v7009_v32  ;;  %v7259_v32 = vld [vmem:[%s6913_s1 + $0x87] sm:$0xff] }
 0x148   : > { %1750 = vmatprep.mubr.f32.mxu0 %v7002_v27  ;;  %5321 = vmatpush1.bf16.msra.mxu0 %v5320_v17  ;;  %v5328_v27 = vpack.c.bf16 %v1449_v6, %v1447_v52  ;;  %v7262_v17 = vld [vmem:[%s6913_s1 + $0x71] sm:$0xff]  ;;  %v1455_v52 = vld [vmem:[#allocation7 + $0x3c0] sm:$0xff] }
 0x149   : > { %5323 = vmatprep.subr.bf16.mxu0 %v5322_v18  ;;  %v5330_v18 = vpack.c.bf16 %v1454_v11, %v1452_v5  ;;  %688 = vst [vmem:[#allocation2 + $0x400] sm:$0xff] %v7262_v17  ;;  %v1457_v6 = vld [vmem:[#allocation7 + $0x3d0] sm:$0xff]  ;;  %v1460_v5 = vld [vmem:[#allocation7 + $0x3e8] sm:$0xff]  ;;  %v1462_v11 = vld [vmem:[#allocation7 + $0x3f8] sm:$0xff] }
 0x14b   : > { %1751 = vmatmul.mubr.f32.gmra.mrb[22].mxu0 %v7018_v38  ;;  %v7267_v38 = vld [vmem:[%s6913_s1 + $0x8f] sm:$0xff] }
 0x14c   : > { %1756 = vmatprep.mubr.f32.mxu0 %v7012_v33  ;;  %5325 = vmatpush1.bf16.msra.mxu0 %v5324_v21  ;;  %v5332_v33 = vpack.c.bf16 %v1453_v22, %v1451_v37  ;;  %v7271_v21 = vld [vmem:[%s6913_s1 + $0x79] sm:$0xff]  ;;  %v1461_v22 = vld [vmem:[#allocation7 + $0x3f0] sm:$0xff] }
 0x14d   : > { %5327 = vmatprep.subr.bf16.mxu0 %v5326_v20  ;;  %v5334_v20 = vpack.c.bf16 %v1458_v50, %v1456_v31  ;;  %689 = vst [vmem:[#allocation2 + $0x448] sm:$0xff] %v7271_v21  ;;  %v1459_v37 = vld [vmem:[#allocation7 + $0x3e0] sm:$0xff]  ;;  %v1464_v31 = vld [vmem:[#allocation7 + $0x408] sm:$0xff]  ;;  %v1466_v50 = vld [vmem:[#allocation7 + $0x418] sm:$0xff] }
 0x14f   : > { %1757 = vmatmul.mubr.f32.gmra.mrb[24].mxu0 %v7029_v48  ;;  %v7277_v48 = vld [vmem:[%s6913_s1 + $0x97] sm:$0xff] }
 0x150   : > { %1762 = vmatprep.mubr.f32.mxu0 %v7015_v34  ;;  %5329 = vmatpush1.bf16.msra.mxu0 %v5328_v27  ;;  %v5336_v34 = vpack.c.bf16 %v1457_v6, %v1455_v52  ;;  %v7280_v27 = vld [vmem:[%s6913_s1 + $0x81] sm:$0xff]  ;;  %v7303_v52 = vld [vmem:[%s6913_s1 + $0xaf] sm:$0xff] }
 0x151   : > { %5331 = vmatprep.subr.bf16.mxu0 %v5330_v18  ;;  %v5338_v18 = vpack.c.bf16 %v1462_v11, %v1460_v5  ;;  %690 = vst [vmem:[#allocation2 + $0x490] sm:$0xff] %v7280_v27  ;;  %v7316_v6 = vld [vmem:[%s6913_s1 + $0xa1] sm:$0xff] }
 0x152   : > { %694 = vst [vmem:[#allocation2 + $0x5b0] sm:$0xff] %v7316_v6  ;;  %v7358_v5 = vld [vmem:[%s6913_s1 + $0xdf] sm:$0xff] }
 0x153   : > { %1763 = vmatmul.mubr.f32.gmra.mrb[26].mxu0 %v7032_v49  ;;  %v5340_v49 = vpack.c.bf16 %v1461_v22, %v1459_v37  ;;  %v8796_v11 = vld [vmem:[#allocation26_spill] sm:$0xff]  ;;  %v8800_v37 = vld [vmem:[#allocation28_spill] sm:$0xff]  ;;  %v8801_v22 = vld [vmem:[#allocation25_spill] sm:$0xff] }
 0x154   : > { %1768 = vmatprep.mubr.f32.mxu0 %v7023_v42  ;;  %5333 = vmatpush1.bf16.msra.mxu0 %v5332_v33  ;;  %v7285_v42 = vld [vmem:[%s6913_s1 + $0x9f] sm:$0xff]  ;;  %v7289_v33 = vld [vmem:[%s6913_s1 + $0x89] sm:$0xff] }
 0x155   : > { %5335 = vmatprep.subr.bf16.mxu0 %v5334_v20  ;;  %v5342_v20 = vpack.c.bf16 %v1466_v50, %v1464_v31  ;;  %691 = vst [vmem:[#allocation2 + $0x4d8] sm:$0xff] %v7289_v33  ;;  %v7376_v31 = vld [vmem:[%s6913_s1 + $0xef] sm:$0xff]  ;;  %v7379_v50 = vld [vmem:[%s6913_s1 + $0xd9] sm:$0xff] }
 0x156   : > { %8803 = vst [vmem:[#allocation28_spill] sm:$0xff] %v7379_v50  ;;  %701 = vst [vmem:[#allocation2 + $0x7a8] sm:$0xff] %v7379_v50  ;;  %v1470_v50 = vld [vmem:[#allocation7 + $0x438] sm:$0xff] }
 0x157   : > { %1769 = vmatmul.mubr.f32.gmra.mrb[28].mxu0 %v7043_v61  ;;  %v7295_v61 = vld [vmem:[%s6913_s1 + $0xa7] sm:$0xff] }
 0x158   : > { %1774 = vmatprep.mubr.f32.mxu0 %v7026_v43  ;;  %5337 = vmatpush1.bf16.msra.mxu0 %v5336_v34  ;;  %v7298_v43 = vld [vmem:[%s6913_s1 + $0x91] sm:$0xff] }
 0x159   : > { %5339 = vmatprep.subr.bf16.mxu0 %v5338_v18  ;;  %692 = vst [vmem:[#allocation2 + $0x520] sm:$0xff] %v7298_v43  ;;  %v8798_v34 = vld [vmem:[#allocation23_spill] sm:$0xff] }
 0x15a   : > { %v7370_v18 = vld [vmem:[%s6913_s1 + $0xd1] sm:$0xff]  ;;  %8802 = vst [vmem:[#allocation23_spill] sm:$0xff] %v7376_v31  ;;  %v7413_v31 = vld [vmem:[%s6913_s1 + $0x28] sm:$0xff] }
 0x15b   : > { %1775 = vmatmul.mubr.f32.gmra.mrb[30].mxu0 %v7046_v62  ;;  %v7307_v62 = vld [vmem:[%s6913_s1 + $0x99] sm:$0xff]  ;;  %8799 = vst [vmem:[#allocation26_spill] sm:$0xff] %v7370_v18  ;;  %700 = vst [vmem:[#allocation2 + $0x760] sm:$0xff] %v7370_v18  ;;  %v1469_v18 = vld [vmem:[#allocation7 + $0x430] sm:$0xff] }
 0x15c   : > { %1780 = vmatprep.mubr.f32.mxu0 %v7037_v53  ;;  %5341 = vmatpush1.bf16.msra.mxu0 %v5340_v49  ;;  %693 = vst [vmem:[#allocation2 + $0x568] sm:$0xff] %v7307_v62  ;;  %v7312_v53 = vld [vmem:[%s6913_s1 + $0xb7] sm:$0xff]  ;;  %v8804_v49 = vld [vmem:[#allocation30_spill] sm:$0xff] }
 0x15d   : > { %5343 = vmatprep.subr.bf16.mxu0 %v5342_v20  ;;  %v7384_v20 = vld [vmem:[%s6913_s1 + $0xf7] sm:$0xff] }
 0x15e   : > { %8805 = vst [vmem:[#allocation25_spill] sm:$0xff] %v7384_v20  ;;  %v1465_v20 = vld [vmem:[#allocation7 + $0x410] sm:$0xff] }
 0x15f   : > { %1781 = vmatmul.mubr.f32.gmra.mrb[32].mxu0 %v7057_v14  ;;  %v7325_v14 = vld [vmem:[%s6913_s1 + $0xa9] sm:$0xff] }
 0x160   : > { %1786 = vmatprep.mubr.f32.mxu0 %v7040_v56  ;;  %v7321_v56 = vld [vmem:[%s6913_s1 + $0xbf] sm:$0xff]  ;;  %695 = vst [vmem:[#allocation2 + $0x5f8] sm:$0xff] %v7325_v14 }
 0x163   : > { %1787 = vmatmul.mubr.f32.gmra.mrb[34].mxu0 %v7060_v16  ;;  %v7334_v16 = vld [vmem:[%s6913_s1 + $0xb1] sm:$0xff] }
 0x164   : > { %1792 = vmatprep.mubr.f32.mxu0 %v7051_v7  ;;  %v7330_v7 = vld [vmem:[%s6913_s1 + $0xc7] sm:$0xff]  ;;  %696 = vst [vmem:[#allocation2 + $0x640] sm:$0xff] %v7334_v16 }
 0x167   : > { %1793 = vmatmul.mubr.f32.gmra.mrb[36].mxu0 %v7071_v26  ;;  %v7343_v26 = vld [vmem:[%s6913_s1 + $0xb9] sm:$0xff] }
 0x168   : > { %1798 = vmatprep.mubr.f32.mxu0 %v7054_v8  ;;  %v7340_v8 = vld [vmem:[%s6913_s1 + $0xcf] sm:$0xff]  ;;  %697 = vst [vmem:[#allocation2 + $0x688] sm:$0xff] %v7343_v26 }
 0x16b   : > { %1799 = vmatmul.mubr.f32.gmra.mrb[38].mxu0 %v7074_v28  ;;  %v7352_v28 = vld [vmem:[%s6913_s1 + $0xc1] sm:$0xff] }
 0x16c   : > { %1804 = vmatprep.mubr.f32.mxu0 %v7065_v23  ;;  %v7349_v23 = vld [vmem:[%s6913_s1 + $0xd7] sm:$0xff]  ;;  %698 = vst [vmem:[#allocation2 + $0x6d0] sm:$0xff] %v7352_v28 }
 0x16f   : > { %1805 = vmatmul.mubr.f32.gmra.mrb[40].mxu0 %v7082_v44  ;;  %v8793_v44 = vld [vmem:[#allocation24_spill] sm:$0xff] }
 0x170   : > { %1810 = vmatprep.mubr.f32.mxu0 %v7068_v24  ;;  %v8794_v24 = vld [vmem:[#allocation22_spill] sm:$0xff] }
 0x173   : > { %1811 = vmatmul.mubr.f32.gmra.mrb[42].mxu0 %v7085_v45  ;;  %v7361_v45 = vld [vmem:[%s6913_s1 + $0xc9] sm:$0xff] }
 0x174   : > { %1816 = vmatprep.mubr.f32.mxu0 %v7079_v39  ;;  %8795 = vst [vmem:[#allocation24_spill] sm:$0xff] %v7361_v45  ;;  %699 = vst [vmem:[#allocation2 + $0x718] sm:$0xff] %v7361_v45  ;;  %v7366_v39 = vld [vmem:[%s6913_s1 + $0xe7] sm:$0xff]  ;;  %v7418_v45 = vld [vmem:[%s6913_s1 + $0x30] sm:$0xff] }
 0x175   : > { %8797 = vst [vmem:[#allocation22_spill] sm:$0xff] %v7366_v39  ;;  %v1474_v39 = vld [vmem:[#allocation7 + $0x458] sm:$0xff]  ;;  %797 = vst [vmem:[#allocation2 + $0xf8] sm:$0xff] %v7418_v45 }
 0x177   : > { %1817 = vmatmul.mubr.f32.gmra.mrb[44].mxu0 %v8793_v44  ;;  %v8806_v44 = vld [vmem:[#allocation27_spill] sm:$0xff] }
 0x178   : > { %1822 = vmatprep.mubr.f32.mxu0 %v8794_v24  ;;  %v7388_v24 = vld [vmem:[%s6913_s1 + $0xe1] sm:$0xff] }
 0x179   : > { %8807 = vst [vmem:[#allocation30_spill] sm:$0xff] %v7388_v24  ;;  %702 = vst [vmem:[#allocation2 + $0x7f0] sm:$0xff] %v7388_v24  ;;  %v8814_v24 = vld [vmem:[#allocation32_spill] sm:$0xff] }
 0x17b   : > { %1823 = vmatmul.mubr.f32.gmra.mrb[46].mxu0 %v8796_v11  ;;  %v8808_v11 = vld [vmem:[#allocation29_spill] sm:$0xff] }
 0x17c   : > { %1828 = vmatprep.mubr.f32.mxu0 %v8798_v34  ;;  %v7394_v34 = vld [vmem:[%s6913_s1 + $0xff] sm:$0xff] }
 0x17d   : > { %8809 = vst [vmem:[#allocation27_spill] sm:$0xff] %v7394_v34  ;;  %v1468_v34 = vld [vmem:[#allocation7 + $0x428] sm:$0xff] }
 0x17f   : > { %1829 = vmatmul.mubr.f32.gmra.mrb[48].mxu0 %v8800_v37  ;;  %v7397_v37 = vld [vmem:[%s6913_s1 + $0xe9] sm:$0xff] }
 0x180   : > { %1834 = vmatprep.mubr.f32.mxu0 %v8801_v22  ;;  %8810 = vst [vmem:[#allocation29_spill] sm:$0xff] %v7397_v37  ;;  %703 = vst [vmem:[#allocation2 + $0x838] sm:$0xff] %v7397_v37  ;;  %v8811_v22 = vld [vmem:[#allocation31_spill] sm:$0xff]  ;;  %v8816_v37 = vld [vmem:[#allocation34_spill] sm:$0xff] }
 0x183   : > { %1835 = vmatmul.mubr.f32.gmra.mrb[50].mxu0 %v8804_v49  ;;  %v7403_v49 = vld [vmem:[%s6913_s1 + $0x18] sm:$0xff] }
 0x184   : > { %1840 = vmatprep.mubr.f32.mxu0 %v8806_v44  ;;  %8812 = vst [vmem:[#allocation31_spill] sm:$0xff] %v7403_v49  ;;  %v8813_v44 = vld [vmem:[#allocation33_spill] sm:$0xff] }
 0x185   : > { %v1467_v49 = vld [vmem:[#allocation7 + $0x420] sm:$0xff] }
 0x187   : > { %1841 = vmatmul.mubr.f32.gmra.mrb[52].mxu0 %v7124_v57  ;;  %v7408_v57 = vld [vmem:[%s6913_s1 + $0x20] sm:$0xff] }
 0x188   : > { %1846 = vmatprep.mubr.f32.mxu0 %v8808_v11  ;;  %8815 = vst [vmem:[#allocation33_spill] sm:$0xff] %v7408_v57  ;;  %v1463_v11 = vld [vmem:[#allocation7 + $0x400] sm:$0xff]  ;;  %v5348_v57 = vpack.c.bf16 %v1469_v18, %v1467_v49  ;;  %v1477_v49 = vld [vmem:[#allocation7 + $0x470] sm:$0xff] }
 0x189   : > { %v1475_v18 = vld [vmem:[#allocation7 + $0x460] sm:$0xff] }
 0x18b   : > { %1847 = vmatmul.mubr.f32.gmra.mrb[54].mxu0 %v7131_v40  ;;  %v5344_v40 = vpack.c.bf16 %v1465_v20, %v1463_v11  ;;  %v1473_v20 = vld [vmem:[#allocation7 + $0x450] sm:$0xff] }
 0x18c   : > { %1851 = vmatprep.mubr.f32.mxu0 %v8811_v22  ;;  %v5346_v22 = vpack.c.bf16 %v1470_v50, %v1468_v34  ;;  %v1476_v50 = vld [vmem:[#allocation7 + $0x468] sm:$0xff]  ;;  %v1478_v34 = vld [vmem:[#allocation7 + $0x478] sm:$0xff] }
 0x18d   : > { %v8818_v11 = vld [vmem:[#allocation36_spill] sm:$0xff] }
 0x18f   : > { %1852 = vmatmul.mubr.f32.gmra.mrb[56].mxu0 %v8813_v44  ;;  %v1472_v44 = vld [vmem:[#allocation7 + $0x448] sm:$0xff] }
 0x190   : > { %1856 = vmatprep.mubr.f32.mxu0 %v8814_v24  ;;  %v8817_v24 = vld [vmem:[#allocation35_spill] sm:$0xff] }
 0x193   : > { %1857 = vmatmul.mubr.f32.gmra.mrb[58].mxu0 %v7141_v10  ;;  %v5350_v10 = vpack.c.bf16 %v1474_v39, %v1472_v44  ;;  %v1480_v39 = vld [vmem:[#allocation7 + $0x488] sm:$0xff]  ;;  %v5356_v44 = vpack.c.bf16 %v1477_v49, %v1475_v18  ;;  %v1490_v18 = vld [vmem:[#allocation7 + $0x4d8] sm:$0xff] }
 0x194   : > { %1926 = vmatprep.mubr.f32.mxu0 %v8816_v37  ;;  %v1471_v37 = vld [vmem:[#allocation7 + $0x440] sm:$0xff] }
 0x197   : > { %1927 = vmatmul.mubr.f32.vlgmr.msra.gmra.mrb[60].mxu0 %v8817_v24  ;;  %v7424_v24 = vld [vmem:[%s6913_s1 + $0x38] sm:$0xff] }
 0x198   : > { %5345 = vmatpush1.bf16.msra.mxu0 %v5344_v40  ;;  %1931 = vmatprep.mubr.f32.mxu0 %v7147_v35  ;;  %v5352_v40 = vpack.c.bf16 %v1473_v20, %v1471_v37  ;;  %v5354_v35 = vpack.c.bf16 %v1478_v34, %v1476_v50  ;;  %798 = vst [vmem:[#allocation2 + $0x140] sm:$0xff] %v7424_v24  ;;  %v1479_v37 = vld [vmem:[#allocation7 + $0x480] sm:$0xff]  ;;  %v1484_v20 = vld [vmem:[#allocation7 + $0x4a8] sm:$0xff]  ;;  %v1486_v50 = vld [vmem:[#allocation7 + $0x4b8] sm:$0xff] }
 0x199   : > { %5347 = vmatprep.subr.bf16.mxu0 %v5346_v22  ;;  %v1482_v22 = vld [vmem:[#allocation7 + $0x498] sm:$0xff]  ;;  %v5362_v34 = vpack.c.bf16 %v1486_v50, %v1484_v20  ;;  %v1493_v20 = vld [vmem:[#allocation7 + $0x4f0] sm:$0xff]  ;;  %v1496_v50 = vld [vmem:[#allocation7 + $0x508] sm:$0xff] }
 0x19b   : > { %1932 = vmatmul.mubr.f32.gmra.mrb[62].mxu0 %v8818_v11  ;;  %v1483_v11 = vld [vmem:[#allocation7 + $0x4a0] sm:$0xff] }
 0x19c   : > { %1936 = vmatprep.mubr.f32.mxu0 %v7153_v29  ;;  %5349 = vmatpush1.bf16.msra.mxu0 %v5348_v57  ;;  %v7430_v29 = vld [vmem:[%s6913_s1 + $0x40] sm:$0xff]  ;;  %v5358_v57 = vpack.c.bf16 %v1482_v22, %v1480_v39  ;;  %v1489_v22 = vld [vmem:[#allocation7 + $0x4d0] sm:$0xff] }
 0x19d   : > { %5351 = vmatprep.subr.bf16.mxu0 %v5350_v10  ;;  %v1481_v10 = vld [vmem:[#allocation7 + $0x490] sm:$0xff]  ;;  %799 = vst [vmem:[#allocation2 + $0x188] sm:$0xff] %v7430_v29  ;;  %v1487_v39 = vld [vmem:[#allocation7 + $0x4c0] sm:$0xff] }
 0x19f   : > { %1937 = vmatmul.mubr.f32.gmra.mrb[64].mxu0 %v7156_v36  ;;  %v5360_v36 = vpack.c.bf16 %v1481_v10, %v1479_v37  ;;  %v1491_v10 = vld [vmem:[#allocation7 + $0x4e0] sm:$0xff] }
 0x1a0   : > { %1941 = vmatprep.mubr.f32.mxu0 %v7160_v41  ;;  %5353 = vmatpush1.bf16.msra.mxu0 %v5352_v40  ;;  %v7436_v41 = vld [vmem:[%s6913_s1 + $0x48] sm:$0xff]  ;;  %v1485_v40 = vld [vmem:[#allocation7 + $0x4b0] sm:$0xff] }
 0x1a1   : > { %5355 = vmatprep.subr.bf16.mxu0 %v5354_v35  ;;  %800 = vst [vmem:[#allocation2 + $0x1d0] sm:$0xff] %v7436_v41  ;;  %v1488_v35 = vld [vmem:[#allocation7 + $0x4c8] sm:$0xff] }
 0x1a2   : > { %v5366_v49 = vpack.c.bf16 %v1490_v18, %v1488_v35  ;;  %v1500_v35 = vld [vmem:[#allocation7 + $0x528] sm:$0xff]  ;;  %v1502_v18 = vld [vmem:[#allocation7 + $0x538] sm:$0xff] }
 0x1a3   : > { %1942 = vmatmul.mubr.f32.gmra.mrb[6].mxu0 %v7163_v60  ;;  %v5364_v60 = vpack.c.bf16 %v1485_v40, %v1483_v11  ;;  %v1495_v11 = vld [vmem:[#allocation7 + $0x500] sm:$0xff]  ;;  %v1497_v40 = vld [vmem:[#allocation7 + $0x510] sm:$0xff] }
 0x1a4   : > { %1947 = vmatprep.mubr.f32.mxu0 %v7168_v51  ;;  %5357 = vmatpush1.bf16.msra.mxu0 %v5356_v44  ;;  %v7442_v51 = vld [vmem:[%s6913_s1 + $0x50] sm:$0xff]  ;;  %v1492_v44 = vld [vmem:[#allocation7 + $0x4e8] sm:$0xff] }
 0x1a5   : > { %5359 = vmatprep.subr.bf16.mxu0 %v5358_v57  ;;  %801 = vst [vmem:[#allocation2 + $0x218] sm:$0xff] %v7442_v51  ;;  %v1494_v57 = vld [vmem:[#allocation7 + $0x4f8] sm:$0xff] }
 0x1a6   : > { %v5370_v37 = vpack.c.bf16 %v1494_v57, %v1492_v44  ;;  %v1506_v44 = vld [vmem:[#allocation7 + $0x558] sm:$0xff] }
 0x1a7   : > { %1948 = vmatmul.mubr.f32.gmra.mrb[8].mxu0 %v7172_v4  ;;  %v5368_v4 = vpack.c.bf16 %v1489_v22, %v1487_v39  ;;  %v1501_v39 = vld [vmem:[#allocation7 + $0x530] sm:$0xff]  ;;  %v1504_v22 = vld [vmem:[#allocation7 + $0x548] sm:$0xff] }
 0x1a8   : > { %1953 = vmatprep.mubr.f32.mxu0 %v7177_v58  ;;  %5361 = vmatpush1.bf16.msra.mxu0 %v5360_v36  ;;  %v7448_v58 = vld [vmem:[%s6913_s1 + $0x58] sm:$0xff]  ;;  %v5382_v57 = vpack.c.bf16 %v1506_v44, %v1504_v22  ;;  %v1517_v22 = vld [vmem:[#allocation7 + $0x5b0] sm:$0xff]  ;;  %v1520_v44 = vld [vmem:[#allocation7 + $0x5c8] sm:$0xff] }
 0x1a9   : > { %5363 = vmatprep.subr.bf16.mxu0 %v5362_v34  ;;  %802 = vst [vmem:[#allocation2 + $0x260] sm:$0xff] %v7448_v58  ;;  %v1498_v36 = vld [vmem:[#allocation7 + $0x518] sm:$0xff] }
 0x1aa   : > { %v5374_v34 = vpack.c.bf16 %v1498_v36, %v1496_v50  ;;  %v1507_v36 = vld [vmem:[#allocation7 + $0x560] sm:$0xff] }
 0x1ab   : > { %1954 = vmatmul.mubr.f32.gmra.mrb[10].mxu0 %v7181_v0  ;;  %v5372_v0 = vpack.c.bf16 %v1493_v20, %v1491_v10  ;;  %v1508_v10 = vld [vmem:[#allocation7 + $0x568] sm:$0xff]  ;;  %v1510_v20 = vld [vmem:[#allocation7 + $0x578] sm:$0xff] }
 0x1ac   : > { %1959 = vmatprep.mubr.f32.mxu0 %v7186_v59  ;;  %5365 = vmatpush1.bf16.msra.mxu0 %v5364_v60  ;;  %v7454_v59 = vld [vmem:[%s6913_s1 + $0x60] sm:$0xff]  ;;  %v5378_v60 = vpack.c.bf16 %v1502_v18, %v1500_v35  ;;  %v5386_v50 = vpack.c.bf16 %v1510_v20, %v1508_v10  ;;  %v1513_v18 = vld [vmem:[#allocation7 + $0x590] sm:$0xff]  ;;  %v1524_v10 = vld [vmem:[#allocation7 + $0x5e8] sm:$0xff] }
 0x1ad   : > { %5367 = vmatprep.subr.bf16.mxu0 %v5366_v49  ;;  %803 = vst [vmem:[#allocation2 + $0x2a8] sm:$0xff] %v7454_v59  ;;  %v1499_v49 = vld [vmem:[#allocation7 + $0x520] sm:$0xff]  ;;  %v1526_v20 = vld [vmem:[#allocation7 + $0x5f8] sm:$0xff] }
 0x1ae   : > { %v1511_v35 = vld [vmem:[#allocation7 + $0x580] sm:$0xff] }
 0x1af   : > { %1960 = vmatmul.mubr.f32.gmra.mrb[12].mxu0 %v7190_v46  ;;  %v5376_v46 = vpack.c.bf16 %v1497_v40, %v1495_v11  ;;  %v1514_v11 = vld [vmem:[#allocation7 + $0x598] sm:$0xff] }
 0x1b0   : > { %1965 = vmatprep.mubr.f32.mxu0 %v7195_v2  ;;  %5369 = vmatpush1.bf16.msra.mxu0 %v5368_v4  ;;  %v7460_v2 = vld [vmem:[%s6913_s1 + $0x68] sm:$0xff]  ;;  %v1503_v4 = vld [vmem:[#allocation7 + $0x540] sm:$0xff] }
 0x1b1   : > { %5371 = vmatprep.subr.bf16.mxu0 %v5370_v37  ;;  %804 = vst [vmem:[#allocation2 + $0x2f0] sm:$0xff] %v7460_v2  ;;  %v1505_v37 = vld [vmem:[#allocation7 + $0x550] sm:$0xff] }
 0x1b3   : > { %1966 = vmatmul.mubr.f32.gmra.mrb[14].mxu0 %v7199_v47  ;;  %v5380_v47 = vpack.c.bf16 %v1501_v39, %v1499_v49  ;;  %v1515_v39 = vld [vmem:[#allocation7 + $0x5a0] sm:$0xff] }
 0x1b4   : > { %1971 = vmatprep.mubr.f32.mxu0 %v7204_v3  ;;  %5373 = vmatpush1.bf16.msra.mxu0 %v5372_v0  ;;  %v7466_v3 = vld [vmem:[%s6913_s1 + $0x70] sm:$0xff] }
 0x1b5   : > { %5375 = vmatprep.subr.bf16.mxu0 %v5374_v34  ;;  %805 = vst [vmem:[#allocation2 + $0x338] sm:$0xff] %v7466_v3  ;;  %v1509_v0 = vld [vmem:[#allocation7 + $0x570] sm:$0xff]  ;;  %v1512_v34 = vld [vmem:[#allocation7 + $0x588] sm:$0xff] }
 0x1b6   : > { %v5390_v40 = vpack.c.bf16 %v1514_v11, %v1512_v34  ;;  %v1530_v34 = vld [vmem:[#allocation7 + $0x618] sm:$0xff] }
 0x1b7   : > { %1972 = vmatmul.mubr.f32.gmra.mrb[16].mxu0 %v7208_v54  ;;  %v5384_v54 = vpack.c.bf16 %v1505_v37, %v1503_v4  ;;  %v1519_v4 = vld [vmem:[#allocation7 + $0x5c0] sm:$0xff]  ;;  %v1521_v37 = vld [vmem:[#allocation7 + $0x5d0] sm:$0xff] }
 0x1b8   : > { %1977 = vmatprep.mubr.f32.mxu0 %v7213_v12  ;;  %5377 = vmatpush1.bf16.msra.mxu0 %v5376_v46  ;;  %v7472_v12 = vld [vmem:[%s6913_s1 + $0x78] sm:$0xff]  ;;  %v1516_v46 = vld [vmem:[#allocation7 + $0x5a8] sm:$0xff] }
 0x1b9   : > { %5379 = vmatprep.subr.bf16.mxu0 %v5378_v60  ;;  %806 = vst [vmem:[#allocation2 + $0x380] sm:$0xff] %v7472_v12  ;;  %v1518_v60 = vld [vmem:[#allocation7 + $0x5b8] sm:$0xff] }
 0x1ba   : > { %v5394_v49 = vpack.c.bf16 %v1518_v60, %v1516_v46  ;;  %v7585_v46 = vld [vmem:[%s6913_s1 + $0xf8] sm:$0xff]  ;;  %v1596_v60 = vld [vmem:[#allocation7 + $0x828] sm:$0xff] }
 0x1bb   : > { %1978 = vmatmul.mubr.f32.gmra.mrb[18].mxu0 %v7217_v55  ;;  %v5388_v55 = vpack.c.bf16 %v1509_v0, %v1507_v36  ;;  %v1525_v36 = vld [vmem:[#allocation7 + $0x5f0] sm:$0xff]  ;;  %v1528_v0 = vld [vmem:[#allocation7 + $0x608] sm:$0xff]  ;;  %822 = vst [vmem:[#allocation2 + $0x800] sm:$0xff] %v7585_v46 }
 0x1bc   : > { %1983 = vmatprep.mubr.f32.mxu0 %v7222_v13  ;;  %5381 = vmatpush1.bf16.msra.mxu0 %v5380_v47  ;;  %v7478_v13 = vld [vmem:[%s6913_s1 + $0x80] sm:$0xff]  ;;  %v1522_v47 = vld [vmem:[#allocation7 + $0x5d8] sm:$0xff]  ;;  %v5406_v11 = vpack.c.bf16 %v1530_v34, %v1528_v0  ;;  %v7612_v34 = vld [vmem:[%s6913_s1 + $0x2f] sm:$0xff] }
 0x1bd   : > { %5383 = vmatprep.subr.bf16.mxu0 %v5382_v57  ;;  %807 = vst [vmem:[#allocation2 + $0x3c8] sm:$0xff] %v7478_v13  ;;  %v5398_v57 = vpack.c.bf16 %v1522_v47, %v1520_v44  ;;  %v8821_v47 = vld [vmem:[#allocation26_spill] sm:$0xff]  ;;  %v8824_v0 = vld [vmem:[#allocation25_spill] sm:$0xff] }
 0x1bf   : > { %1984 = vmatmul.mubr.f32.gmra.mrb[20].mxu0 %v7226_v63  ;;  %v5392_v63 = vpack.c.bf16 %v1513_v18, %v1511_v35  ;;  %v8819_v35 = vld [vmem:[#allocation24_spill] sm:$0xff]  ;;  %v8820_v18 = vld [vmem:[#allocation22_spill] sm:$0xff] }
 0x1c0   : > { %1989 = vmatprep.mubr.f32.mxu0 %v7231_v19  ;;  %5385 = vmatpush1.bf16.msra.mxu0 %v5384_v54  ;;  %v7484_v19 = vld [vmem:[%s6913_s1 + $0x88] sm:$0xff]  ;;  %v5402_v54 = vpack.c.bf16 %v1526_v20, %v1524_v10  ;;  %v1602_v10 = vld [vmem:[#allocation7 + $0x858] sm:$0xff]  ;;  %v1599_v20 = vld [vmem:[#allocation7 + $0x840] sm:$0xff] }
 0x1c1   : > { %5387 = vmatprep.subr.bf16.mxu0 %v5386_v50  ;;  %808 = vst [vmem:[#allocation2 + $0x410] sm:$0xff] %v7484_v19  ;;  %v1523_v50 = vld [vmem:[#allocation7 + $0x5e0] sm:$0xff] }
 0x1c3   : > { %1990 = vmatmul.mubr.f32.gmra.mrb[22].mxu0 %v7235_v1  ;;  %v5396_v1 = vpack.c.bf16 %v1517_v22, %v1515_v39  ;;  %v1595_v39 = vld [vmem:[#allocation7 + $0x820] sm:$0xff]  ;;  %v1597_v22 = vld [vmem:[#allocation7 + $0x830] sm:$0xff] }
 0x1c4   : > { %1995 = vmatprep.mubr.f32.mxu0 %v7241_v25  ;;  %5389 = vmatpush1.bf16.msra.mxu0 %v5388_v55  ;;  %v7490_v25 = vld [vmem:[%s6913_s1 + $0x90] sm:$0xff]  ;;  %v7508_v55 = vld [vmem:[%s6913_s1 + $0xa8] sm:$0xff]  ;;  %v7591_v44 = vpack.c.bf16 %v1597_v22, %v1595_v39  ;;  %v1607_v22 = vld [vmem:[#allocation7 + $0x880] sm:$0xff] }
 0x1c5   : > { %5391 = vmatprep.subr.bf16.mxu0 %v5390_v40  ;;  %809 = vst [vmem:[#allocation2 + $0x458] sm:$0xff] %v7490_v25  ;;  %812 = vst [vmem:[#allocation2 + $0x530] sm:$0xff] %v7508_v55 }
 0x1c7   : > { %1996 = vmatmul.mubr.f32.gmra.mrb[24].mxu0 %v7244_v9  ;;  %v5400_v9 = vpack.c.bf16 %v1521_v37, %v1519_v4  ;;  %v7600_v4 = vld [vmem:[%s6913_s1 + $0x100] sm:$0xff]  ;;  %v1600_v37 = vld [vmem:[#allocation7 + $0x848] sm:$0xff] }
 0x1c8   : > { %2001 = vmatprep.mubr.f32.mxu0 %v7249_v30  ;;  %5393 = vmatpush1.bf16.msra.mxu0 %v5392_v63  ;;  %v7496_v30 = vld [vmem:[%s6913_s1 + $0x98] sm:$0xff]  ;;  %823 = vst [vmem:[#allocation2 + $0x848] sm:$0xff] %v7600_v4 }
 0x1c9   : > { %5395 = vmatprep.subr.bf16.mxu0 %v5394_v49  ;;  %810 = vst [vmem:[#allocation2 + $0x4a0] sm:$0xff] %v7496_v30  ;;  %v1598_v63 = vld [vmem:[#allocation7 + $0x838] sm:$0xff] }
 0x1ca   : > { %v7589_v49 = vpack.c.bf16 %v1598_v63, %v1596_v60  ;;  %v1610_v60 = vld [vmem:[#allocation7 + $0x898] sm:$0xff]  ;;  %v1529_v63 = vld [vmem:[#allocation7 + $0x610] sm:$0xff] }
 0x1cb   : > { %2002 = vmatmul.mubr.f32.gmra.mrb[26].mxu0 %v7253_v15  ;;  %v5404_v15 = vpack.c.bf16 %v1525_v36, %v1523_v50  ;;  %v8823_v50 = vld [vmem:[#allocation28_spill] sm:$0xff] }
 0x1cc   : > { %2007 = vmatprep.mubr.f32.mxu0 %v7259_v32  ;;  %5397 = vmatpush1.bf16.msra.mxu0 %v5396_v1  ;;  %v7502_v32 = vld [vmem:[%s6913_s1 + $0xa0] sm:$0xff]  ;;  %v8822_v1 = vld [vmem:[#allocation23_spill] sm:$0xff] }
 0x1cd   : > { %5399 = vmatprep.subr.bf16.mxu0 %v5398_v57  ;;  %811 = vst [vmem:[#allocation2 + $0x4e8] sm:$0xff] %v7502_v32  ;;  %v7597_v57 = vld [vmem:[%s6913_s1 + $0x101] sm:$0xff] }
 0x1cf   : > { %2008 = vmatmul.mubr.f32.gmra.mrb[28].mxu0 %v7262_v17  ;;  %v7514_v17 = vld [vmem:[%s6913_s1 + $0xb0] sm:$0xff] }
 0x1d0   : > { %2013 = vmatprep.mubr.f32.mxu0 %v7267_v38  ;;  %5401 = vmatpush1.bf16.msra.mxu0 %v5400_v9  ;;  %813 = vst [vmem:[#allocation2 + $0x578] sm:$0xff] %v7514_v17  ;;  %v7520_v38 = vld [vmem:[%s6913_s1 + $0xb8] sm:$0xff]  ;;  %v7604_v9 = vpack.c.bf16 %v1602_v10, %v1600_v37 }
 0x1d1   : > { %5403 = vmatprep.subr.bf16.mxu0 %v5402_v54  ;;  %814 = vst [vmem:[#allocation2 + $0x5c0] sm:$0xff] %v7520_v38  ;;  %v1601_v54 = vld [vmem:[#allocation7 + $0x850] sm:$0xff]  ;;  %v1534_v37 = vld [vmem:[#allocation7 + $0x638] sm:$0xff] }
 0x1d2   : > { %v7607_v36 = vpack.c.bf16 %v1601_v54, %v1599_v20  ;;  %v8830_v20 = vld [vmem:[#allocation29_spill] sm:$0xff] }
 0x1d3   : > { %2014 = vmatmul.mubr.f32.gmra.mrb[30].mxu0 %v7271_v21  ;;  %v7526_v21 = vld [vmem:[%s6913_s1 + $0xc0] sm:$0xff] }
 0x1d4   : > { %2019 = vmatprep.mubr.f32.mxu0 %v7277_v48  ;;  %5405 = vmatpush1.bf16.msra.mxu0 %v5404_v15  ;;  %815 = vst [vmem:[#allocation2 + $0x608] sm:$0xff] %v7526_v21  ;;  %v7532_v48 = vld [vmem:[%s6913_s1 + $0xc8] sm:$0xff]  ;;  %v1531_v54 = vld [vmem:[#allocation7 + $0x620] sm:$0xff] }
 0x1d5   : > { %5407 = vmatprep.subr.bf16.mxu0 %v5406_v11  ;;  %816 = vst [vmem:[#allocation2 + $0x650] sm:$0xff] %v7532_v48  ;;  %v1604_v15 = vld [vmem:[#allocation7 + $0x868] sm:$0xff]  ;;  %v1606_v11 = vld [vmem:[#allocation7 + $0x878] sm:$0xff] }
 0x1d7   : > { %2020 = vmatmul.mubr.f32.gmra.mrb[32].mxu0 %v7280_v27  ;;  %v7538_v27 = vld [vmem:[%s6913_s1 + $0xd0] sm:$0xff] }
 0x1d8   : > { %2025 = vmatprep.mubr.f32.mxu0 %v7285_v42  ;;  %817 = vst [vmem:[#allocation2 + $0x698] sm:$0xff] %v7538_v27  ;;  %v7544_v42 = vld [vmem:[%s6913_s1 + $0xd8] sm:$0xff] }
 0x1d9   : > { %818 = vst [vmem:[#allocation2 + $0x6e0] sm:$0xff] %v7544_v42 }
 0x1db   : > { %2026 = vmatmul.mubr.f32.gmra.mrb[34].mxu0 %v7289_v33 }
 0x1dc   : > { %2031 = vmatprep.mubr.f32.mxu0 %v7295_v61  ;;  %v7552_v61 = vld [vmem:[%s6913_s1 + $0xe0] sm:$0xff] }
 0x1dd   : > { %819 = vst [vmem:[#allocation2 + $0x728] sm:$0xff] %v7552_v61 }
 0x1df   : > { %2032 = vmatmul.mubr.f32.gmra.mrb[36].mxu0 %v7298_v43 }
 0x1e0   : > { %2037 = vmatprep.mubr.f32.mxu0 %v7303_v52  ;;  %v7558_v52 = vld [vmem:[%s6913_s1 + $0xe8] sm:$0xff] }
 0x1e1   : > { %820 = vst [vmem:[#allocation2 + $0x770] sm:$0xff] %v7558_v52 }
 0x1e3   : > { %2038 = vmatmul.mubr.f32.gmra.mrb[38].mxu0 %v7307_v62 }
 0x1e4   : > { %2043 = vmatprep.mubr.f32.mxu0 %v7312_v53 }
 0x1e7   : > { %2044 = vmatmul.mubr.f32.gmra.mrb[40].mxu0 %v7316_v6  ;;  %v7566_v6 = vld [vmem:[%s6913_s1 + $0xf1] sm:$0xff] }
 0x1e8   : > { %2049 = vmatprep.mubr.f32.mxu0 %v7321_v56  ;;  %v7569_v56 = vld [vmem:[%s6913_s1 + $0xf0] sm:$0xff] }
 0x1e9   : > { %821 = vst [vmem:[#allocation2 + $0x7b8] sm:$0xff] %v7569_v56 }
 0x1eb   : > { %2050 = vmatmul.mubr.f32.gmra.mrb[42].mxu0 %v7325_v14  ;;  %v1592_v14 = vld [vmem:[#allocation7 + $0x808] sm:$0xff] }
 0x1ec   : > { %2055 = vmatprep.mubr.f32.mxu0 %v7330_v7  ;;  %v1594_v7 = vld [vmem:[#allocation7 + $0x818] sm:$0xff] }
 0x1ef   : > { %2056 = vmatmul.mubr.f32.gmra.mrb[44].mxu0 %v7334_v16  ;;  %v1591_v16 = vld [vmem:[#allocation7 + $0x800] sm:$0xff] }
 0x1f0   : > { %2061 = vmatprep.mubr.f32.mxu0 %v7340_v8 }
 0x1f2   : > { %v7549_v33 = vpop.f32.mrb[0].mxu0 }
 0x1f3   : > { %v1691_v43 = vpop.f32.mrb[1].mxu0  ;;  %2062 = vmatmul.mubr.f32.gmra.mrb[46].mxu0 %v7343_v26  ;;  %v7574_v26 = vpack.c.bf16 %v1594_v7, %v1592_v14  ;;  %v1605_v14 = vld [vmem:[#allocation7 + $0x870] sm:$0xff] }
 0x1f4   : > { %2067 = vmatprep.mubr.f32.mxu0 %v7349_v23  ;;  %v1593_v23 = vld [vmem:[#allocation7 + $0x810] sm:$0xff]  ;;  %v7615_v43 = vpack.c.bf16 %v1606_v11, %v1604_v15  ;;  %v7633_v15 = vld [vmem:[%s6913_s1 + $0x3f] sm:$0xff]  ;;  %v1612_v11 = vld [vmem:[#allocation7 + $0x8a8] sm:$0xff] }
 0x1f5   : > { %5726 = vmatprep.subr.bf16.mxu1 %v7574_v26 }
 0x1f6   : > { %v7561_v62 = vpop.f32.mrb[2].mxu0 }
 0x1f7   : > { %v1696_v53 = vpop.f32.mrb[3].mxu0  ;;  %2068 = vmatmul.mubr.f32.gmra.mrb[48].mxu0 %v7352_v28  ;;  %v7577_v28 = vpack.c.bf16 %v1593_v23, %v1591_v16  ;;  %v8826_v16 = vld [vmem:[#allocation30_spill] sm:$0xff] }
 0x1f8   : > { %2073 = vmatprep.mubr.f32.mxu0 %v7358_v5  ;;  %v7580_v5 = vld [vmem:[%s6913_s1 + $0xf9] sm:$0xff] }
 0x1f9   : > { %5734 = vmatpush1.bf16.msra.mxu1 %v7577_v28  ;;  %v1603_v53 = vld [vmem:[#allocation7 + $0x860] sm:$0xff] }
 0x1fa   : > { %v7572_v8 = vpop.f32.mrb[4].mxu0  ;;  %5727 = vmatprep.subr.bf16.mxu1 %v7589_v49  ;;  %v7617_v7 = vpack.c.bf16 %v1605_v14, %v1603_v53  ;;  %v1527_v23 = vld [vmem:[#allocation7 + $0x600] sm:$0xff]  ;;  %v1614_v53 = vld [vmem:[#allocation7 + $0x8b8] sm:$0xff] }
 0x1fb   : > { %v1701_v40 = vpop.f32.mrb[5].mxu0  ;;  %2074 = vmatmul.mubr.f32.gmra.mrb[50].mxu0 %v8819_v35  ;;  %v7623_v35 = vld [vmem:[%s6913_s1 + $0x37] sm:$0xff] }
 0x1fc   : > { %2079 = vmatprep.mubr.f32.mxu0 %v8820_v18  ;;  %8825 = vst [vmem:[#allocation32_spill] sm:$0xff] %v7617_v7  ;;  %v8827_v40 = vld [vmem:[#allocation27_spill] sm:$0xff] }
 0x1fd   : > { %5735 = vmatpush1.bf16.msra.mxu1 %v7591_v44  ;;  %v1608_v18 = vld [vmem:[#allocation7 + $0x888] sm:$0xff] }
 0x1fe   : > { %5728 = vmatprep.subr.bf16.mxu1 %v7604_v9  ;;  %v7626_v39 = vpack.c.bf16 %v1610_v60, %v1608_v18  ;;  %v1611_v18 = vld [vmem:[#allocation7 + $0x8a0] sm:$0xff]  ;;  %v1613_v60 = vld [vmem:[#allocation7 + $0x8b0] sm:$0xff] }
 0x1ff   : > { %2080 = vmatmul.mubr.f32.gmra.mrb[52].mxu0 %v8821_v47  ;;  %v1609_v47 = vld [vmem:[#allocation7 + $0x890] sm:$0xff] }
 0x200   : > { %2085 = vmatprep.mubr.f32.mxu0 %v8822_v1  ;;  %8828 = vst [vmem:[#allocation34_spill] sm:$0xff] %v7626_v39  ;;  %v1532_v1 = vld [vmem:[#allocation7 + $0x628] sm:$0xff]  ;;  %v7628_v10 = vpack.c.bf16 %v1609_v47, %v1607_v22  ;;  %v1538_v47 = vld [vmem:[#allocation7 + $0x658] sm:$0xff] }
 0x201   : > { %5736 = vmatpush1.bf16.msra.mxu1 %v7607_v36  ;;  %v5410_v14 = vpack.c.bf16 %v1534_v37, %v1532_v1  ;;  %v1536_v22 = vld [vmem:[#allocation7 + $0x648] sm:$0xff] }
 0x202   : > { %5729 = vmatprep.subr.bf16.mxu1 %v7615_v43  ;;  %8829 = vst [vmem:[#allocation35_spill] sm:$0xff] %v7628_v10  ;;  %v7643_v37 = vld [vmem:[%s6913_s1 + $0x47] sm:$0xff] }
 0x203   : > { %2086 = vmatmul.mubr.f32.gmra.mrb[66].mxu0 %v8823_v50  ;;  %v6249_v50 = vld [vmem:[#allocation2 + $0xe8] sm:$0xff]  ;;  %8834 = vst [vmem:[#allocation22_spill] sm:$0xff] %v7643_v37  ;;  %v1544_v37 = vld [vmem:[#allocation7 + $0x688] sm:$0xff] }
 0x204   : > { %2090 = vmatprep.mubr.f32.mxu0 %v8824_v0  ;;  %v5408_v0 = vpack.c.bf16 %v1529_v63, %v1527_v23  ;;  %v1535_v23 = vld [vmem:[#allocation7 + $0x640] sm:$0xff] }
 0x205   : > { %5737 = vmatpush1.bf16.msra.mxu1 %v7617_v7  ;;  %v6250_v63 = vld [vmem:[#allocation2 + $0x130] sm:$0xff]  ;;  %v1540_v7 = vld [vmem:[#allocation7 + $0x668] sm:$0xff] }
 0x206   : > { %5730 = vmatprep.subr.bf16.mxu1 %v7626_v39  ;;  %v8833_v39 = vld [vmem:[#allocation31_spill] sm:$0xff] }
 0x207   : > { %2091 = vmatmul.mubr.f32.gmra.mrb[68].mxu0 %v8826_v16  ;;  %v1533_v16 = vld [vmem:[#allocation7 + $0x630] sm:$0xff] }
 0x208   : > { %2095 = vmatprep.mubr.f32.mxu0 %v8827_v40  ;;  %v7636_v40 = vpack.c.bf16 %v1614_v53, %v1612_v11  ;;  %v5412_v1 = vpack.c.bf16 %v1533_v16, %v1531_v54  ;;  %v1618_v11 = vld [vmem:[#allocation7 + $0x8d8] sm:$0xff]  ;;  %v5414_v53 = vpack.c.bf16 %v1538_v47, %v1536_v22  ;;  %v1539_v54 = vld [vmem:[#allocation7 + $0x660] sm:$0xff]  ;;  %v6251_v16 = vld [vmem:[#allocation2 + $0x178] sm:$0xff] }
 0x209   : > { %5738 = vmatpush1.bf16.msra.mxu1 %v7628_v10  ;;  %v1537_v10 = vld [vmem:[#allocation7 + $0x650] sm:$0xff]  ;;  %v1620_v47 = vld [vmem:[#allocation7 + $0x8e8] sm:$0xff] }
 0x20a   : > { %8831 = vst [vmem:[#allocation36_spill] sm:$0xff] %v7636_v40  ;;  %5731 = vmatprep.subr.bf16.mxu1 %v7636_v40  ;;  %v1542_v40 = vld [vmem:[#allocation7 + $0x678] sm:$0xff]  ;;  %v7653_v22 = vld [vmem:[%s6913_s1 + $0x4f] sm:$0xff] }
 0x20b   : > { %2096 = vmatmul.mubr.f32.gmra.mrb[70].mxu0 %v8830_v20  ;;  %v7638_v20 = vpack.c.bf16 %v1613_v60, %v1611_v18  ;;  %v1617_v60 = vld [vmem:[#allocation7 + $0x8d0] sm:$0xff] }
 0x20c   : > { %2165 = vmatprep.mubr.f32.mxu0 %v6249_v50  ;;  %v1616_v50 = vld [vmem:[#allocation7 + $0x8c8] sm:$0xff] }
 0x20d   : > { %8832 = vst [vmem:[#allocation24_spill] sm:$0xff] %v7638_v20  ;;  %5739 = vmatpush1.bf16.msra.mxu1 %v7638_v20  ;;  %v7646_v18 = vpack.c.bf16 %v1618_v11, %v1616_v50  ;;  %v1622_v50 = vld [vmem:[#allocation7 + $0x8f8] sm:$0xff]  ;;  %v5418_v11 = vpack.c.bf16 %v1542_v40, %v1540_v7  ;;  %v1541_v20 = vld [vmem:[#allocation7 + $0x670] sm:$0xff] }
 0x20e   : > { %v5420_v7 = vpack.c.bf16 %v1541_v20, %v1539_v54  ;;  %v7663_v40 = vld [vmem:[%s6913_s1 + $0x57] sm:$0xff]  ;;  %v7669_v20 = vld [vmem:[%s6913_s1 + $0x5f] sm:$0xff] }
 0x20f   : > { %2166 = vmatmul.mubr.f32.vlgmr.msra.gmra.mrb[72].mxu0 %v8833_v39  ;;  %8835 = vst [vmem:[#allocation26_spill] sm:$0xff] %v7646_v18  ;;  %v1615_v39 = vld [vmem:[#allocation7 + $0x8c0] sm:$0xff]  ;;  %5732 = vmatprep.subr.bf16.mxu1 %v7646_v18  ;;  %v1546_v18 = vld [vmem:[#allocation7 + $0x698] sm:$0xff] }
 0x210   : > { %5409 = vmatpush1.bf16.msra.mxu0 %v5408_v0  ;;  %2170 = vmatprep.mubr.f32.mxu0 %v6250_v63  ;;  %v7648_v0 = vpack.c.bf16 %v1617_v60, %v1615_v39  ;;  %v8836_v63 = vld [vmem:[#allocation33_spill] sm:$0xff]  ;;  %v7656_v39 = vpack.c.bf16 %v1622_v50, %v1620_v47  ;;  %v1548_v47 = vld [vmem:[#allocation7 + $0x6a8] sm:$0xff] }
 0x211   : > { %5411 = vmatprep.subr.bf16.mxu0 %v5410_v14  ;;  %v5416_v14 = vpack.c.bf16 %v1537_v10, %v1535_v23  ;;  %v1619_v60 = vld [vmem:[#allocation7 + $0x8e0] sm:$0xff]  ;;  %v6252_v10 = vld [vmem:[#allocation2 + $0x1c0] sm:$0xff]  ;;  %v5422_v23 = vpack.c.bf16 %v1546_v18, %v1544_v37  ;;  %v1550_v50 = vld [vmem:[#allocation7 + $0x6b8] sm:$0xff] }
 0x212   : > { %5740 = vmatpush1.bf16.msra.mxu1 %v7648_v0  ;;  %v5426_v54 = vpack.c.bf16 %v1550_v50, %v1548_v47  ;;  %v1547_v37 = vld [vmem:[#allocation7 + $0x6a0] sm:$0xff]  ;;  %v1549_v18 = vld [vmem:[#allocation7 + $0x6b0] sm:$0xff]  ;;  %v1556_v50 = vld [vmem:[#allocation7 + $0x6e8] sm:$0xff] }
 0x213   : > { %2171 = vmatmul.mubr.f32.gmra.mrb[74].mxu0 %v8836_v63  ;;  %v1621_v63 = vld [vmem:[#allocation7 + $0x8f0] sm:$0xff]  ;;  %5733 = vmatprep.subr.bf16.mxu1 %v7656_v39 }
 0x214   : > { %2175 = vmatprep.mubr.f32.mxu0 %v6251_v16  ;;  %5413 = vmatpush1.bf16.msra.mxu0 %v5412_v1  ;;  %v7658_v16 = vpack.c.bf16 %v1621_v63, %v1619_v60  ;;  %v1543_v1 = vld [vmem:[#allocation7 + $0x680] sm:$0xff]  ;;  %v1554_v63 = vld [vmem:[#allocation7 + $0x6d8] sm:$0xff]  ;;  %v1553_v47 = vld [vmem:[#allocation7 + $0x6d0] sm:$0xff] }
 0x215   : > { %5415 = vmatprep.subr.bf16.mxu0 %v5414_v53  ;;  %v1545_v53 = vld [vmem:[#allocation7 + $0x690] sm:$0xff]  ;;  %v1010_v60 = vld [vmem:[%s6913_s1 + $0x59] sm:$0xff] }
 0x216   : > { %8837 = vst [vmem:[#allocation23_spill] sm:$0xff] %v7658_v16  ;;  %5741 = vmatpush1.bf16.msra.mxu1 %v7658_v16  ;;  %v1011_v16 = vld [vmem:[%s6913_s1 + $0x61] sm:$0xff] }
 0x217   : > { %2176 = vmatmul.mubr.f32.gmra.mrb[76].mxu0 %v7413_v31  ;;  %v6253_v31 = vld [vmem:[#allocation2 + $0x208] sm:$0xff] }
 0x218   : > { %2180 = vmatprep.mubr.f32.mxu0 %v6252_v10  ;;  %5417 = vmatpush1.bf16.msra.mxu0 %v5416_v14  ;;  %v5424_v14 = vpack.c.bf16 %v1545_v53, %v1543_v1  ;;  %v8838_v10 = vmov 0.0   ;;  %v7675_v1 = vld [vmem:[%s6913_s1 + $0x67] sm:$0xff] }
 0x219   : > { %5419 = vmatprep.subr.bf16.mxu0 %v5418_v11  ;;  %2671 = vmatmul.mubr.f32.vlgmr.msra.gmra.mrb[0].mxu1 %v1010_v60  ;;  %v1552_v11 = vld [vmem:[#allocation7 + $0x6c8] sm:$0xff]  ;;  %v1551_v53 = vld [vmem:[#allocation7 + $0x6c0] sm:$0xff]  ;;  %v1558_v60 = vld [vmem:[#allocation7 + $0x6f8] sm:$0xff] }
 0x21a   : > { %2676 = vmatprep.mubr.f32.mxu1 %v8838_v10 }
 0x21b   : > { %2181 = vmatmul.mubr.f32.gmra.mrb[6].mxu0 %v7418_v45  ;;  %v6254_v45 = vld [vmem:[#allocation2 + $0x250] sm:$0xff] }
 0x21c   : > { %2186 = vmatprep.mubr.f32.mxu0 %v6253_v31  ;;  %5421 = vmatpush1.bf16.msra.mxu0 %v5420_v7  ;;  %v5428_v7 = vpack.c.bf16 %v1549_v18, %v1547_v37  ;;  %v1012_v31 = vld [vmem:[%s6913_s1 + $0x69] sm:$0xff]  ;;  %v1555_v18 = vld [vmem:[#allocation7 + $0x6e0] sm:$0xff] }
 0x21d   : > { %5423 = vmatprep.subr.bf16.mxu0 %v5422_v23  ;;  %v5430_v23 = vpack.c.bf16 %v1554_v63, %v1552_v11  ;;  %2677 = vmatmul.mubr.f32.gmra.mrb[2].mxu1 %v1011_v16  ;;  %v7681_v37 = vld [vmem:[%s6913_s1 + $0x6f] sm:$0xff]  ;;  %v1562_v63 = vld [vmem:[#allocation7 + $0x718] sm:$0xff] }
 0x21e   : > { %2682 = vmatprep.mubr.f32.mxu1 %v8838_v10  ;;  %v1557_v11 = vld [vmem:[#allocation7 + $0x6f0] sm:$0xff]  ;;  %v1560_v16 = vld [vmem:[#allocation7 + $0x708] sm:$0xff] }
 0x21f   : > { %2187 = vmatmul.mubr.f32.gmra.mrb[8].mxu0 %v7424_v24  ;;  %v6255_v24 = vld [vmem:[#allocation2 + $0x298] sm:$0xff] }
 0x220   : > { %2192 = vmatprep.mubr.f32.mxu0 %v6254_v45  ;;  %5425 = vmatpush1.bf16.msra.mxu0 %v5424_v14  ;;  %v5432_v14 = vpack.c.bf16 %v1553_v47, %v1551_v53  ;;  %v1013_v45 = vld [vmem:[%s6913_s1 + $0x71] sm:$0xff]  ;;  %v1559_v47 = vld [vmem:[#allocation7 + $0x700] sm:$0xff] }
 0x221   : > { %5427 = vmatprep.subr.bf16.mxu0 %v5426_v54  ;;  %v5434_v54 = vpack.c.bf16 %v1558_v60, %v1556_v50  ;;  %2683 = vmatmul.mubr.f32.gmra.mrb[4].mxu1 %v1012_v31  ;;  %v7687_v53 = vld [vmem:[%s6913_s1 + $0x77] sm:$0xff]  ;;  %v1564_v60 = vld [vmem:[#allocation7 + $0x728] sm:$0xff] }
 0x222   : > { %2688 = vmatprep.mubr.f32.mxu1 %v8838_v10  ;;  %v1561_v50 = vld [vmem:[#allocation7 + $0x710] sm:$0xff]  ;;  %v1566_v31 = vld [vmem:[#allocation7 + $0x738] sm:$0xff] }
 0x223   : > { %2193 = vmatmul.mubr.f32.gmra.mrb[10].mxu0 %v7430_v29  ;;  %v6256_v29 = vld [vmem:[#allocation2 + $0x2e0] sm:$0xff] }
 0x224   : > { %2198 = vmatprep.mubr.f32.mxu0 %v6255_v24  ;;  %5429 = vmatpush1.bf16.msra.mxu0 %v5428_v7  ;;  %v5436_v7 = vpack.c.bf16 %v1557_v11, %v1555_v18  ;;  %v1014_v24 = vld [vmem:[%s6913_s1 + $0x79] sm:$0xff] }
 0x225   : > { %5431 = vmatprep.subr.bf16.mxu0 %v5430_v23  ;;  %v5438_v23 = vpack.c.bf16 %v1562_v63, %v1560_v16  ;;  %2689 = vmatmul.mubr.f32.gmra.mrb[6].mxu1 %v1013_v45  ;;  %v7693_v18 = vld [vmem:[%s6913_s1 + $0x7f] sm:$0xff]  ;;  %v1565_v16 = vld [vmem:[#allocation7 + $0x730] sm:$0xff]  ;;  %v1568_v63 = vld [vmem:[#allocation7 + $0x748] sm:$0xff] }
 0x226   : > { %2694 = vmatprep.mubr.f32.mxu1 %v8838_v10  ;;  %v1563_v11 = vld [vmem:[#allocation7 + $0x720] sm:$0xff]  ;;  %v1570_v45 = vld [vmem:[#allocation7 + $0x758] sm:$0xff] }
 0x227   : > { %2199 = vmatmul.mubr.f32.gmra.mrb[12].mxu0 %v7436_v41  ;;  %v6257_v41 = vld [vmem:[#allocation2 + $0x328] sm:$0xff] }
 0x228   : > { %2204 = vmatprep.mubr.f32.mxu0 %v6256_v29  ;;  %5433 = vmatpush1.bf16.msra.mxu0 %v5432_v14  ;;  %v5440_v14 = vpack.c.bf16 %v1561_v50, %v1559_v47  ;;  %v1015_v29 = vld [vmem:[%s6913_s1 + $0x81] sm:$0xff] }
 0x229   : > { %5435 = vmatprep.subr.bf16.mxu0 %v5434_v54  ;;  %v5442_v54 = vpack.c.bf16 %v1566_v31, %v1564_v60  ;;  %2695 = vmatmul.mubr.f32.gmra.mrb[8].mxu1 %v1014_v24  ;;  %v7699_v47 = vld [vmem:[%s6913_s1 + $0x87] sm:$0xff]  ;;  %v1569_v60 = vld [vmem:[#allocation7 + $0x750] sm:$0xff]  ;;  %v1574_v24 = vld [vmem:[#allocation7 + $0x778] sm:$0xff] }
 0x22a   : > { %2700 = vmatprep.mubr.f32.mxu1 %v8838_v10  ;;  %v1567_v50 = vld [vmem:[#allocation7 + $0x740] sm:$0xff]  ;;  %v1572_v31 = vld [vmem:[#allocation7 + $0x768] sm:$0xff] }
 0x22b   : > { %2205 = vmatmul.mubr.f32.gmra.mrb[14].mxu0 %v7442_v51  ;;  %v6258_v51 = vld [vmem:[#allocation2 + $0x370] sm:$0xff] }
 0x22c   : > { %2210 = vmatprep.mubr.f32.mxu0 %v6257_v41  ;;  %5437 = vmatpush1.bf16.msra.mxu0 %v5436_v7  ;;  %v5444_v7 = vpack.c.bf16 %v1565_v16, %v1563_v11  ;;  %v1016_v41 = vld [vmem:[%s6913_s1 + $0x89] sm:$0xff]  ;;  %v1571_v16 = vld [vmem:[#allocation7 + $0x760] sm:$0xff] }
 0x22d   : > { %5439 = vmatprep.subr.bf16.mxu0 %v5438_v23  ;;  %v5446_v23 = vpack.c.bf16 %v1570_v45, %v1568_v63  ;;  %2701 = vmatmul.mubr.f32.gmra.mrb[10].mxu1 %v1015_v29  ;;  %v7705_v11 = vld [vmem:[%s6913_s1 + $0x8f] sm:$0xff]  ;;  %v1578_v29 = vld [vmem:[#allocation7 + $0x798] sm:$0xff] }
 0x22e   : > { %2706 = vmatprep.mubr.f32.mxu1 %v8838_v10  ;;  %v1573_v63 = vld [vmem:[#allocation7 + $0x770] sm:$0xff]  ;;  %v1576_v45 = vld [vmem:[#allocation7 + $0x788] sm:$0xff] }
 0x22f   : > { %2211 = vmatmul.mubr.f32.gmra.mrb[16].mxu0 %v7448_v58  ;;  %v6259_v58 = vld [vmem:[#allocation2 + $0x3b8] sm:$0xff] }
 0x230   : > { %2216 = vmatprep.mubr.f32.mxu0 %v6258_v51  ;;  %5441 = vmatpush1.bf16.msra.mxu0 %v5440_v14  ;;  %v5448_v14 = vpack.c.bf16 %v1569_v60, %v1567_v50  ;;  %v1017_v51 = vld [vmem:[%s6913_s1 + $0x91] sm:$0xff]  ;;  %v1575_v60 = vld [vmem:[#allocation7 + $0x780] sm:$0xff] }
 0x231   : > { %5443 = vmatprep.subr.bf16.mxu0 %v5442_v54  ;;  %v5450_v54 = vpack.c.bf16 %v1574_v24, %v1572_v31  ;;  %2707 = vmatmul.mubr.f32.gmra.mrb[12].mxu1 %v1016_v41  ;;  %v7711_v50 = vld [vmem:[%s6913_s1 + $0x97] sm:$0xff]  ;;  %v1580_v24 = vld [vmem:[#allocation7 + $0x7a8] sm:$0xff] }
 0x232   : > { %2712 = vmatprep.mubr.f32.mxu1 %v8838_v10  ;;  %v1577_v31 = vld [vmem:[#allocation7 + $0x790] sm:$0xff]  ;;  %v1582_v41 = vld [vmem:[#allocation7 + $0x7b8] sm:$0xff] }
 0x233   : > { %2217 = vmatmul.mubr.f32.gmra.mrb[18].mxu0 %v7454_v59  ;;  %v6260_v59 = vld [vmem:[#allocation2 + $0x400] sm:$0xff] }
 0x234   : > { %2222 = vmatprep.mubr.f32.mxu0 %v6259_v58  ;;  %5445 = vmatpush1.bf16.msra.mxu0 %v5444_v7  ;;  %v5452_v7 = vpack.c.bf16 %v1573_v63, %v1571_v16  ;;  %v1018_v58 = vld [vmem:[%s6913_s1 + $0x99] sm:$0xff] }
 0x235   : > { %5447 = vmatprep.subr.bf16.mxu0 %v5446_v23  ;;  %v5454_v23 = vpack.c.bf16 %v1578_v29, %v1576_v45  ;;  %2713 = vmatmul.mubr.f32.gmra.mrb[14].mxu1 %v1017_v51  ;;  %v7717_v16 = vld [vmem:[%s6913_s1 + $0x9f] sm:$0xff]  ;;  %v1581_v45 = vld [vmem:[#allocation7 + $0x7b0] sm:$0xff]  ;;  %v1584_v29 = vld [vmem:[#allocation7 + $0x7c8] sm:$0xff] }
 0x236   : > { %2718 = vmatprep.mubr.f32.mxu1 %v8838_v10  ;;  %v1579_v63 = vld [vmem:[#allocation7 + $0x7a0] sm:$0xff]  ;;  %v1586_v51 = vld [vmem:[#allocation7 + $0x7d8] sm:$0xff] }
 0x237   : > { %2223 = vmatmul.mubr.f32.gmra.mrb[20].mxu0 %v7460_v2  ;;  %v6261_v2 = vld [vmem:[#allocation2 + $0x448] sm:$0xff] }
 0x238   : > { %2228 = vmatprep.mubr.f32.mxu0 %v6260_v59  ;;  %5449 = vmatpush1.bf16.msra.mxu0 %v5448_v14  ;;  %v5456_v14 = vpack.c.bf16 %v1577_v31, %v1575_v60  ;;  %v1019_v59 = vld [vmem:[%s6913_s1 + $0xa1] sm:$0xff] }
 0x239   : > { %5451 = vmatprep.subr.bf16.mxu0 %v5450_v54  ;;  %v5458_v54 = vpack.c.bf16 %v1582_v41, %v1580_v24  ;;  %2719 = vmatmul.mubr.f32.gmra.mrb[16].mxu1 %v1018_v58  ;;  %v7723_v60 = vld [vmem:[%s6913_s1 + $0xa7] sm:$0xff]  ;;  %v1585_v24 = vld [vmem:[#allocation7 + $0x7d0] sm:$0xff]  ;;  %v1590_v58 = vld [vmem:[#allocation7 + $0x7f8] sm:$0xff] }
 0x23a   : > { %2724 = vmatprep.mubr.f32.mxu1 %v8838_v10  ;;  %v1583_v31 = vld [vmem:[#allocation7 + $0x7c0] sm:$0xff]  ;;  %v1588_v41 = vld [vmem:[#allocation7 + $0x7e8] sm:$0xff] }
 0x23b   : > { %2229 = vmatmul.mubr.f32.gmra.mrb[22].mxu0 %v7466_v3  ;;  %v6262_v3 = vld [vmem:[#allocation2 + $0x490] sm:$0xff] }
 0x23c   : > { %2234 = vmatprep.mubr.f32.mxu0 %v6261_v2  ;;  %5453 = vmatpush1.bf16.msra.mxu0 %v5452_v7  ;;  %v5460_v7 = vpack.c.bf16 %v1581_v45, %v1579_v63  ;;  %v1020_v2 = vld [vmem:[%s6913_s1 + $0xa9] sm:$0xff]  ;;  %v1587_v45 = vld [vmem:[#allocation7 + $0x7e0] sm:$0xff] }
 0x23d   : > { %5455 = vmatprep.subr.bf16.mxu0 %v5454_v23  ;;  %v5462_v23 = vpack.c.bf16 %v1586_v51, %v1584_v29  ;;  %2725 = vmatmul.mubr.f32.gmra.mrb[18].mxu1 %v1019_v59  ;;  %v7729_v63 = vld [vmem:[%s6913_s1 + $0xaf] sm:$0xff] }
 0x23e   : > { %2730 = vmatprep.mubr.f32.mxu1 %v8838_v10  ;;  %v1589_v29 = vld [vmem:[#allocation7 + $0x7f0] sm:$0xff] }
 0x23f   : > { %2235 = vmatmul.mubr.f32.gmra.mrb[24].mxu0 %v7472_v12  ;;  %v6263_v12 = vld [vmem:[#allocation2 + $0x4d8] sm:$0xff]  ;;  %v1021_v51 = vld [vmem:[%s6913_s1 + $0xb1] sm:$0xff]  ;;  %v5468_v59 = vpack.c.bf16 %v1589_v29, %v1587_v45 }
 0x240   : > { %2240 = vmatprep.mubr.f32.mxu0 %v6262_v3  ;;  %5457 = vmatpush1.bf16.msra.mxu0 %v5456_v14  ;;  %v5464_v14 = vpack.c.bf16 %v1585_v24, %v1583_v31  ;;  %v7735_v3 = vld [vmem:[%s6913_s1 + $0xb7] sm:$0xff]  ;;  %v1023_v31 = vld [vmem:[%s6913_s1 + $0xc1] sm:$0xff] }
 0x241   : > { %5459 = vmatprep.subr.bf16.mxu0 %v5458_v54  ;;  %v5466_v54 = vpack.c.bf16 %v1590_v58, %v1588_v41  ;;  %2731 = vmatmul.mubr.f32.gmra.mrb[20].mxu1 %v1020_v2  ;;  %v6266_v24 = vld [vmem:[#allocation2 + $0x5b0] sm:$0xff]  ;;  %v7755_v58 = vld [vmem:[%s6913_s1 + $0xcf] sm:$0xff] }
 0x242   : > { %2736 = vmatprep.mubr.f32.mxu1 %v8838_v10  ;;  %v7748_v41 = vld [vmem:[%s6913_s1 + $0xc7] sm:$0xff]  ;;  %v6268_v2 = vld [vmem:[#allocation2 + $0x640] sm:$0xff] }
 0x243   : > { %2241 = vmatmul.mubr.f32.gmra.mrb[26].mxu0 %v7478_v13  ;;  %v6264_v13 = vld [vmem:[#allocation2 + $0x520] sm:$0xff]  ;;  %v1027_v45 = vld [vmem:[%s6913_s1 + $0xe1] sm:$0xff] }
 0x244   : > { %2246 = vmatprep.mubr.f32.mxu0 %v6263_v12  ;;  %5461 = vmatpush1.bf16.msra.mxu0 %v5460_v7  ;;  %v1022_v7 = vld [vmem:[%s6913_s1 + $0xb9] sm:$0xff] }
 0x245   : > { %5463 = vmatprep.subr.bf16.mxu0 %v5462_v23  ;;  %2737 = vmatmul.mubr.f32.gmra.mrb[22].mxu1 %v1021_v51  ;;  %v6265_v23 = vld [vmem:[#allocation2 + $0x568] sm:$0xff]  ;;  %v6270_v51 = vld [vmem:[#allocation2 + $0x6d0] sm:$0xff] }
 0x246   : > { %2742 = vmatprep.mubr.f32.mxu1 %v8838_v10  ;;  %v7761_v12 = vld [vmem:[%s6913_s1 + $0xd7] sm:$0xff] }
 0x247   : > { %2247 = vmatmul.mubr.f32.gmra.mrb[28].mxu0 %v7484_v19  ;;  %v7741_v19 = vld [vmem:[%s6913_s1 + $0xbf] sm:$0xff] }
 0x248   : > { %2252 = vmatprep.mubr.f32.mxu0 %v6264_v13  ;;  %5465 = vmatpush1.bf16.msra.mxu0 %v5464_v14  ;;  %v6269_v14 = vld [vmem:[#allocation2 + $0x688] sm:$0xff]  ;;  %v7777_v13 = vld [vmem:[%s6913_s1 + $0xe7] sm:$0xff] }
 0x249   : > { %5467 = vmatprep.subr.bf16.mxu0 %v5466_v54  ;;  %2743 = vmatmul.mubr.f32.gmra.mrb[24].mxu1 %v1022_v7 }
 0x24a   : > { %2748 = vmatprep.mubr.f32.mxu1 %v8838_v10 }
 0x24b   : > { %2253 = vmatmul.mubr.f32.gmra.mrb[30].mxu0 %v7490_v25  ;;  %v1024_v25 = vld [vmem:[%s6913_s1 + $0xc9] sm:$0xff] }
 0x24c   : > { %2258 = vmatprep.mubr.f32.mxu0 %v6265_v23  ;;  %5469 = vmatpush1.bf16.msra.mxu0 %v5468_v59  ;;  %v1028_v59 = vld [vmem:[%s6913_s1 + $0xe9] sm:$0xff] }
 0x24d   : > { %5471 = vmatprep.subr.bf16.mxu0 %v7574_v26  ;;  %2749 = vmatmul.mubr.f32.gmra.mrb[26].mxu1 %v1023_v31  ;;  %v6267_v26 = vld [vmem:[#allocation2 + $0x5f8] sm:$0xff] }
 0x24e   : > { %2754 = vmatprep.mubr.f32.mxu1 %v8838_v10  ;;  %v6271_v23 = vld [vmem:[#allocation2 + $0x718] sm:$0xff] }
 0x24f   : > { %2259 = vmatmul.mubr.f32.gmra.mrb[32].mxu0 %v7496_v30  ;;  %v1025_v30 = vld [vmem:[%s6913_s1 + $0xd1] sm:$0xff] }
 0x250   : > { %2264 = vmatprep.mubr.f32.mxu0 %v6266_v24  ;;  %v7786_v31 = vld [vmem:[%s6913_s1 + $0xef] sm:$0xff] }
 0x251   : > { %2755 = vmatmul.mubr.f32.gmra.mrb[28].mxu1 %v1024_v25  ;;  %v6272_v25 = vld [vmem:[#allocation2 + $0x760] sm:$0xff] }
 0x252   : > { %2760 = vmatprep.mubr.f32.mxu1 %v8838_v10 }
 0x253   : > { %2265 = vmatmul.mubr.f32.gmra.mrb[34].mxu0 %v7502_v32  ;;  %v1026_v32 = vld [vmem:[%s6913_s1 + $0xd9] sm:$0xff] }
 0x254   : > { %2270 = vmatprep.mubr.f32.mxu0 %v6267_v26  ;;  %v7793_v26 = vld [vmem:[%s6913_s1 + $0xf7] sm:$0xff] }
 0x255   : > { %2761 = vmatmul.mubr.f32.gmra.mrb[30].mxu1 %v1025_v30 }
 0x256   : > { %2766 = vmatprep.mubr.f32.mxu1 %v8838_v10 }
 0x257   : > { %2271 = vmatmul.mubr.f32.gmra.mrb[36].mxu0 %v7508_v55  ;;  %v7769_v55 = vld [vmem:[%s6913_s1 + $0xdf] sm:$0xff] }
 0x258   : > { %2276 = vmatprep.mubr.f32.mxu0 %v6268_v2 }
 0x259   : > { %2767 = vmatmul.mubr.f32.gmra.mrb[32].mxu1 %v1026_v32  ;;  %v6597_v32 = vmov 0  }
 0x25a   : > { %2772 = vmatprep.mubr.f32.mxu1 %v8838_v10  ;;  %6248 = vset.pattern.permute.xlu1 %v6597_v32 }
 0x25b   : > { %2277 = vmatmul.mubr.f32.gmra.mrb[38].mxu0 %v7514_v17  ;;  %6247 = vset.pattern.permute.xlu0 %v6597_v32  ;;  %v1032_v32 = vld [vmem:[%s6913_s1 + $0x109] sm:$0xff] }
 0x25c   : > { %2282 = vmatprep.mubr.f32.mxu0 %v6269_v14  ;;  %v2918_v14 = vld [vmem:[%s7802_s28 + $0x10] sm:$0xff] }
 0x25d   : > { %2773 = vmatmul.mubr.f32.gmra.mrb[34].mxu1 %v1027_v45  ;;  %v7807_v45 = vld [vmem:[%s6913_s1 + $0xff] sm:$0xff]  ;;  %2958 = vperm.xlu1 %6248, %v2918_v14   ;;  %v6275_v14 = vld [vmem:[#allocation2 + $0x838] sm:$0xff] }
 0x25e   : > { %v7765_v54 = vpop.f32.mrb[54].mxu0  ;;  %2778 = vmatprep.mubr.f32.mxu1 %v8838_v10 }
 0x25f   : > { %v1850_v29 = vpop.f32.mrb[55].mxu0  ;;  %2283 = vmatmul.mubr.f32.gmra.mrb[40].mxu0 %v7520_v38 }
 0x260   : > { %2288 = vmatprep.mubr.f32.mxu0 %v6270_v51 }
 0x261   : > { %2779 = vmatmul.mubr.f32.gmra.mrb[36].mxu1 %v1028_v59  ;;  %v2919_v59 = vld [vmem:[%s7802_s28 + $0x18] sm:$0xff] }
 0x262   : > { %v7773_v17 = vpop.f32.mrb[56].mxu0  ;;  %2784 = vmatprep.mubr.f32.mxu1 %v8838_v10  ;;  %2963 = vperm.xlu1 %6248, %v2919_v59   ;;  %v7844_v59 = vld [vmem:[%s6913_s1 + $0x118] sm:$0xff] }
 0x263   : > { %v1855_v7 = vpop.f32.mrb[57].mxu0  ;;  %2289 = vmatmul.mubr.f32.gmra.mrb[42].mxu0 %v7526_v21 }
 0x264   : > { %2294 = vmatprep.mubr.f32.mxu0 %v6271_v23  ;;  %v2917_v7 = vld [vmem:[%s7802_s28 + $0x8] sm:$0xff]  ;;  %v7818_v23 = vld [vmem:[%s6913_s1 + $0x108] sm:$0xff] }
 0x265   : > { %2785 = vmatmul.mubr.f32.gmra.mrb[38].mxu1 %v7566_v6 }
 0x266   : > { %v7782_v38 = vpop.f32.mrb[58].mxu0  ;;  %2790 = vmatprep.mubr.f32.mxu1 %v8838_v10 }
 0x267   : > { %v1860_v24 = vpop.f32.mrb[59].mxu0  ;;  %2295 = vmatmul.mubr.f32.gmra.mrb[44].mxu0 %v7532_v48  ;;  %v6273_v48 = vld [vmem:[#allocation2 + $0x7a8] sm:$0xff] }
 0x268   : > { %2300 = vmatprep.mubr.f32.mxu0 %v6272_v25  ;;  %v6274_v24 = vld [vmem:[#allocation2 + $0x7f0] sm:$0xff] }
 0x269   : > { %2791 = vmatmul.mubr.f32.gmra.mrb[40].mxu1 %v7580_v5  ;;  %v7821_v25 = vld [vmem:[%s6913_s1 + $0x107] sm:$0xff] }
 0x26a   : > { %v1928_v21 = vpop.f32.mrb[60].mxu0  ;;  %2796 = vmatprep.mubr.f32.mxu1 %v8838_v10 }
 0x26b   : > { %v7796_v30 = vadd.f32 %v1928_v21, %v7549_v33  ;;  %v1930_v2 = vpop.f32.mrb[61].mxu0  ;;  %2301 = vmatmul.mubr.f32.gmra.mrb[46].mxu0 %v7538_v27  ;;  %v2916_v33 = vld [vmem:[%s7802_s28] sm:$0xff] }
 0x26c   : > { %2306 = vmatprep.mubr.f32.mxu0 %v6273_v48  ;;  %2948 = vperm.xlu0 %6247, %v2916_v33   ;;  %v2921_v2 = vld [vmem:[%s7802_s28 + $0x28] sm:$0xff]  ;;  %v2920_v48 = vld [vmem:[%s7802_s28 + $0x20] sm:$0xff] }
 0x26d   : > { %2797 = vmatmul.mubr.f32.gmra.mrb[42].mxu1 %v7597_v57  ;;  %v7833_v33 = vld [vmem:[%s6913_s1 + $0x110] sm:$0xff]  ;;  %2973 = vperm.xlu1 %6248, %v2921_v2   ;;  %v7866_v2 = vld [vmem:[%s6913_s1 + $0x41] sm:$0xff] }
 0x26e   : > { %v1933_v27 = vpop.f32.mrb[62].mxu0  ;;  %2802 = vmatprep.mubr.f32.mxu1 %v8838_v10 }
 0x26f   : > { %v7811_v29 = vadd.f32 %v1933_v27, %v7561_v62  ;;  %v1935_v51 = vpop.f32.mrb[63].mxu0  ;;  %2307 = vmatmul.mubr.f32.gmra.mrb[48].mxu0 %v7544_v42  ;;  %v7836_v27 = vld [vmem:[%s6913_s1 + $0x10f] sm:$0xff] }
 0x270   : > { %2312 = vmatprep.mubr.f32.mxu0 %v6274_v24  ;;  %2953 = vperm.xlu0 %6247, %v2917_v7   ;;  %v1033_v51 = vld [vmem:[%s6913_s1 + $0x111] sm:$0xff] }
 0x271   : > { %2803 = vmatmul.mubr.f32.gmra.mrb[44].mxu1 %v1032_v32  ;;  %v7848_v7 = vld [vmem:[%s6913_s1 + $0x117] sm:$0xff] }
 0x272   : > { %v1938_v62 = vpop.f32.mrb[64].mxu0  ;;  %2807 = vmatprep.mubr.f32.mxu1 %v8838_v10  ;;  %v6278_v32 = vld [vmem:[#allocation2 + $0x188] sm:$0xff] }
 0x273   : > { %v7825_v42 = vadd.f32 %v1938_v62, %v7572_v8  ;;  %v1940_v21 = vpop.f32.mrb[65].mxu0  ;;  %2313 = vmatmul.mubr.f32.gmra.mrb[50].mxu0 %v7552_v61  ;;  %v1034_v8 = vld [vmem:[%s6913_s1 + $0x119] sm:$0x7f]  ;;  %v2922_v61 = vld [vmem:[%s7802_s28 + $0x30] sm:$0xff]  ;;  %v7855_v62 = vld [vmem:[%s6913_s1 + $0x31] sm:$0xff] }
 0x274   : > { %2318 = vmatprep.mubr.f32.mxu0 %v6275_v14  ;;  %1064 = vst [vmem:[#allocation2 + $0x868] sm:$0x7f] %v1034_v8  ;;  %2968 = vperm.xlu0 %6247, %v2920_v48   ;;  %v7861_v21 = vld [vmem:[%s6913_s1 + $0x39] sm:$0xff]  ;;  %v7872_v48 = vld [vmem:[%s6913_s1 + $0x49] sm:$0xff] }
 0x275   : > { %2808 = vmatmul.mubr.f32.gmra.mrb[46].mxu1 %v1033_v51  ;;  %v2929_v14 = vld [vmem:[%s7802_s28 + $0x68] sm:$0xff]  ;;  %v2931_v8 = vld [vmem:[%s7802_s28 + $0x78] sm:$0xff]  ;;  %v2932_v51 = vld [vmem:[%s7802_s28 + $0x80] sm:$0xff] }
 0x276   : > { %2812 = vmatprep.mubr.f32.mxu1 %v8838_v10 }
 0x277   : > { %2319 = vmatmul.mubr.f32.gmra.mrb[52].mxu0 %v7558_v52  ;;  %v2923_v52 = vld [vmem:[%s7802_s28 + $0x38] sm:$0xff] }
 0x278   : > { %2324 = vmatprep.mubr.f32.mxu0 %v7566_v6  ;;  %2978 = vperm.xlu0 %6247, %v2922_v61   ;;  %v2924_v6 = vld [vmem:[%s7802_s28 + $0x40] sm:$0xff]  ;;  %v8841_v61 = vld [vmem:[#allocation34_spill] sm:$0xff] }
 0x279   : > { %2983 = vperm.xlu1 %6248, %v2923_v52   ;;  %v8842_v52 = vld [vmem:[#allocation35_spill] sm:$0xff] }
 0x27b   : > { %2325 = vmatmul.mubr.f32.gmra.mrb[78].mxu0 %v7569_v56  ;;  %v1334_v24 = vld [vmem:[#allocation2 + $0x868] sm:$0xff] }
 0x27c   : > { %2329 = vmatprep.mubr.f32.mxu0 %v7580_v5  ;;  %2813 = vmatmul.mubr.f32.gmra.mrb[48].mxu1 %v1334_v24  ;;  %v2925_v56 = vld [vmem:[%s7802_s28 + $0x48] sm:$0xff]  ;;  %v6276_v5 = vld [vmem:[#allocation2 + $0xf8] sm:$0xff] }
 0x27d   : > { %2988 = vperm.xlu0 %6247, %v2924_v6   ;;  %2993 = vperm.xlu1 %6248, %v2925_v56   ;;  %v8843_v24 = vld [vmem:[#allocation36_spill] sm:$0xff]  ;;  %v2934_v6 = vld [vmem:[%s7802_s28 + $0x90] sm:$0xff]  ;;  %v2935_v56 = vld [vmem:[%s7802_s28 + $0x98] sm:$0xff] }
 0x27f   : > { %2330 = vmatmul.mubr.f32.gmra.mrb[80].mxu0 %v7585_v46  ;;  %v2926_v46 = vld [vmem:[%s7802_s28 + $0x50] sm:$0xff] }
 0x280   : > { %2334 = vmatprep.mubr.f32.mxu0 %v7597_v57  ;;  %v6277_v57 = vld [vmem:[#allocation2 + $0x140] sm:$0xff] }
 0x281   : > { %2998 = vperm.xlu0 %6247, %v2926_v46   ;;  %v8844_v46 = vld [vmem:[#allocation24_spill] sm:$0xff] }
 0x283   : > { %2335 = vmatmul.mubr.f32.gmra.mrb[82].mxu0 %v7600_v4  ;;  %v2927_v4 = vld [vmem:[%s7802_s28 + $0x58] sm:$0xff] }
 0x284   : > { %2404 = vmatprep.mubr.f32.mxu0 %v6276_v5  ;;  %3003 = vperm.xlu1 %6248, %v2927_v4   ;;  %v6282_v5 = vld [vmem:[#allocation2 + $0x2a8] sm:$0xff] }
 0x285   : > { %v2937_v4 = vld [vmem:[%s7802_s28 + $0xa8] sm:$0xff] }
 0x287   : > { %2405 = vmatmul.mubr.f32.vlgmr.msra.gmra.mrb[84].mxu0 %v7612_v34  ;;  %v7879_v34 = vld [vmem:[%s6913_s1 + $0x51] sm:$0xff]  ;;  %s8871_s1 = sld [smem:[#allocation41_spill]] }
 0x288   : > { %5473 = vmatpush1.bf16.msra.mxu0 %v7577_v28  ;;  %2409 = vmatprep.mubr.f32.mxu0 %v6277_v57  ;;  %v2928_v28 = vld [vmem:[%s7802_s28 + $0x60] sm:$0xff] }
 0x289   : > { %5475 = vmatprep.subr.bf16.mxu0 %v7589_v49  ;;  %v6279_v49 = vld [vmem:[#allocation2 + $0x1d0] sm:$0xff]  ;;  %3008 = vperm.xlu0 %6247, %v2928_v28   ;;  %v2936_v57 = vld [vmem:[%s7802_s28 + $0xa0] sm:$0xff]  ;;  %v2939_v28 = vld [vmem:[%s7802_s28 + $0xb8] sm:$0xff] }
 0x28a   : > { %3013 = vperm.xlu1 %6248, %v2929_v14   ;;  %v6284_v14 = vld [vmem:[#allocation2 + $0x338] sm:$0xff] }
 0x28b   : > { %2410 = vmatmul.mubr.f32.gmra.mrb[86].mxu0 %v7623_v35  ;;  %v8839_v35 = vld [vmem:[#allocation22_spill] sm:$0xff] }
 0x28c   : > { %2414 = vmatprep.mubr.f32.mxu0 %v6278_v32  ;;  %5477 = vmatpush1.bf16.msra.mxu0 %v7591_v44  ;;  %v2930_v44 = vld [vmem:[%s7802_s28 + $0x70] sm:$0xff] }
 0x28d   : > { %5479 = vmatprep.subr.bf16.mxu0 %v7604_v9  ;;  %v6280_v9 = vld [vmem:[#allocation2 + $0x218] sm:$0xff]  ;;  %3018 = vperm.xlu0 %6247, %v2930_v44   ;;  %v6283_v32 = vld [vmem:[#allocation2 + $0x2f0] sm:$0xff]  ;;  %v2941_v44 = vld [vmem:[%s7802_s28 + $0xc8] sm:$0xff]  ;;  %s8658_s2 = scalar_lea.hbm %s8871_s1, %s5103_s19 }
 0x28e   : > { %3023 = vperm.xlu1 %6248, %v2931_v8   ;;  %v6288_v8 = vld [vmem:[#allocation2 + $0x458] sm:$0xff] }
 0x28f   : > { %2415 = vmatmul.mubr.f32.gmra.mrb[88].mxu0 %v7633_v15  ;;  %v8840_v15 = vld [vmem:[#allocation32_spill] sm:$0xff] }
 0x290   : > { %2419 = vmatprep.mubr.f32.mxu0 %v6279_v49  ;;  %5481 = vmatpush1.bf16.msra.mxu0 %v7607_v36  ;;  %v2933_v36 = vld [vmem:[%s7802_s28 + $0x88] sm:$0xff]  ;;  %v8846_v49 = vld [vmem:[#allocation23_spill] sm:$0xff] }
 0x291   : > { %5483 = vmatprep.subr.bf16.mxu0 %v7615_v43  ;;  %v6281_v43 = vld [vmem:[#allocation2 + $0x260] sm:$0xff]  ;;  %3028 = vperm.xlu0 %6247, %v2932_v51  }
 0x292   : > { %3033 = vperm.xlu1 %6248, %v2933_v36   ;;  %v6297_v36 = vld [vmem:[#allocation2 + $0x6e0] sm:$0xff] }
 0x293   : > { %2420 = vmatmul.mubr.f32.gmra.mrb[6].mxu0 %v8839_v35  ;;  %v6286_v35 = vld [vmem:[#allocation2 + $0x3c8] sm:$0xff] }
 0x294   : > { %2425 = vmatprep.mubr.f32.mxu0 %v6280_v9  ;;  %5485 = vmatpush1.bf16.msra.mxu0 %v8840_v15  ;;  %v6290_v9 = vld [vmem:[#allocation2 + $0x4e8] sm:$0xff]  ;;  %v2944_v15 = vld [vmem:[%s7802_s28 + $0xe0] sm:$0xff] }
 0x295   : > { %5487 = vmatprep.subr.bf16.mxu0 %v8841_v61  ;;  %3038 = vperm.xlu0 %6247, %v2934_v6   ;;  %v2945_v61 = vld [vmem:[%s7802_s28 + $0xe8] sm:$0xff] }
 0x296   : > { %3043 = vperm.xlu1 %6248, %v2935_v56  }
 0x297   : > { %2426 = vmatmul.mubr.f32.gmra.mrb[8].mxu0 %v7653_v22  ;;  %v8845_v22 = vld [vmem:[#allocation26_spill] sm:$0xff] }
 0x298   : > { %2431 = vmatprep.mubr.f32.mxu0 %v6281_v43  ;;  %5489 = vmatpush1.bf16.msra.mxu0 %v8842_v52 }
 0x299   : > { %5491 = vmatprep.subr.bf16.mxu0 %v8843_v24  ;;  %3048 = vperm.xlu0 %6247, %v2936_v57   ;;  %v6301_v57 = vld [vmem:[#allocation2 + $0x800] sm:$0xff] }
 0x29a   : > { %3053 = vperm.xlu1 %6248, %v2937_v4  }
 0x29b   : > { %2432 = vmatmul.mubr.f32.gmra.mrb[10].mxu0 %v7663_v40  ;;  %v2938_v40 = vld [vmem:[%s7802_s28 + $0xb0] sm:$0xff] }
 0x29c   : > { %2437 = vmatprep.mubr.f32.mxu0 %v6282_v5  ;;  %5493 = vmatpush1.bf16.msra.mxu0 %v8844_v46  ;;  %v6300_v46 = vld [vmem:[#allocation2 + $0x7b8] sm:$0xff] }
 0x29d   : > { %5495 = vmatprep.subr.bf16.mxu0 %v8845_v22  ;;  %3058 = vperm.xlu0 %6247, %v2938_v40   ;;  %v3769_v40 = vld [vmem:[#allocation10] sm:$0xff] }
 0x29e   : > { %3063 = vperm.xlu1 %6248, %v2939_v28   ;;  %v3770_v28 = vld [vmem:[#allocation10 + $0x8] sm:$0xff] }
 0x29f   : > { %2438 = vmatmul.mubr.f32.gmra.mrb[12].mxu0 %v7669_v20  ;;  %v2940_v20 = vld [vmem:[%s7802_s28 + $0xc0] sm:$0xff] }
 0x2a0   : > { %2443 = vmatprep.mubr.f32.mxu0 %v6283_v32  ;;  %5497 = vmatpush1.bf16.msra.mxu0 %v7648_v0  ;;  %v6285_v0 = vld [vmem:[#allocation2 + $0x380] sm:$0xff]  ;;  %v6302_v32 = vld [vmem:[#allocation2 + $0x848] sm:$0xff] }
 0x2a1   : > { %5499 = vmatprep.subr.bf16.mxu0 %v7656_v39  ;;  %3068 = vperm.xlu0 %6247, %v2940_v20   ;;  %v2942_v39 = vld [vmem:[%s7802_s28 + $0xd0] sm:$0xff] }
 0x2a2   : > { %3073 = vperm.xlu1 %6248, %v2941_v44   ;;  %v3771_v44 = vld [vmem:[#allocation10 + $0x10] sm:$0xff] }
 0x2a3   : > { %2444 = vmatmul.mubr.f32.gmra.mrb[14].mxu0 %v7675_v1  ;;  %v6287_v1 = vld [vmem:[#allocation2 + $0x410] sm:$0xff] }
 0x2a4   : > { %2449 = vmatprep.mubr.f32.mxu0 %v6284_v14  ;;  %5501 = vmatpush1.bf16.msra.mxu0 %v8846_v49  ;;  %v8750_v14 = vmov 0.0|0.0  }
 0x2a5   : > { %3078 = vperm.xlu0 %6247, %v2942_v39   ;;  %5502 = vmatprep.subr.bf16.mxu1 %v8750_v14 }
 0x2a7   : > { %2450 = vmatmul.mubr.f32.gmra.mrb[16].mxu0 %v7681_v37  ;;  %v6289_v37 = vld [vmem:[#allocation2 + $0x4a0] sm:$0xff] }
 0x2a8   : > { %2455 = vmatprep.mubr.f32.mxu0 %v6285_v0  ;;  %v3772_v0 = vld [vmem:[#allocation10 + $0x18] sm:$0xff] }
 0x2a9   : > { %3088 = vperm.xlu0 %6247, %v2944_v15   ;;  %v5506_v39 = vpack.c.bf16 %v3772_v0, %v3771_v44 }
 0x2ab   : > { %2456 = vmatmul.mubr.f32.gmra.mrb[18].mxu0 %v7687_v53  ;;  %v6291_v53 = vld [vmem:[#allocation2 + $0x530] sm:$0xff] }
 0x2ac   : > { %2461 = vmatprep.mubr.f32.mxu0 %v6286_v35 }
 0x2af   : > { %2462 = vmatmul.mubr.f32.gmra.mrb[20].mxu0 %v7693_v18  ;;  %v6292_v18 = vld [vmem:[#allocation2 + $0x578] sm:$0xff] }
 0x2b0   : > { %2467 = vmatprep.mubr.f32.mxu0 %v6287_v1 }
 0x2b3   : > { %2468 = vmatmul.mubr.f32.gmra.mrb[22].mxu0 %v7699_v47  ;;  %v6293_v47 = vld [vmem:[#allocation2 + $0x5c0] sm:$0xff] }
 0x2b4   : > { %2473 = vmatprep.mubr.f32.mxu0 %v6288_v8 }
 0x2b7   : > { %2474 = vmatmul.mubr.f32.gmra.mrb[24].mxu0 %v7705_v11  ;;  %v6294_v11 = vld [vmem:[#allocation2 + $0x608] sm:$0xff] }
 0x2b8   : > { %2479 = vmatprep.mubr.f32.mxu0 %v6289_v37  ;;  %v3774_v37 = vld [vmem:[#allocation10 + $0x28] sm:$0xff] }
 0x2bb   : > { %2480 = vmatmul.mubr.f32.gmra.mrb[26].mxu0 %v7711_v50  ;;  %v2943_v50 = vld [vmem:[%s7802_s28 + $0xd8] sm:$0xff]  ;;  %s6478_s28 = sshll.u32 %s6599_s11, 4  ;;  %s6479_s28 = int_to_ptr.vmem [resolvable:$false] %s6478_s28 }
 0x2bc   : > { %2485 = vmatprep.mubr.f32.mxu0 %v6290_v9  ;;  %3083 = vperm.xlu1 %6248, %v2943_v50   ;;  %s6480_s16 = scalar_lea.vmem %s6479_s28, 6144  ;;  %p6481_p2 = scmp.lt.s32.totalorder %s8653_s13, %s6479_s28 }
 0x2bd   : > { %p6482_p4 = scmp.lt.s32.totalorder %s6480_s16, %s6474_s10 }
 0x2bf   : > { %2486 = vmatmul.mubr.f32.gmra.mrb[28].mxu0 %v7717_v16  ;;  %v6295_v16 = vld [vmem:[#allocation2 + $0x650] sm:$0xff]  ;;  %p6483_p6 = por %p6482_p4, %p6481_p2 }
 0x2c0   : > { %2491 = vmatprep.mubr.f32.mxu0 %v6291_v53  ;;  %3093 = vperm.xlu1 %6248, %v2945_v61   ;;  %v3778_v61 = vld [vmem:[#allocation10 + $0x48] sm:$0xff] }
 0x2c1   : > { %p6484_p3 = pnand %p6483_p6, %p6477_p0 }
 0x2c3   : > { %2492 = vmatmul.mubr.f32.gmra.mrb[30].mxu0 %v7723_v60  ;;  %v6296_v60 = vld [vmem:[#allocation2 + $0x698] sm:$0xff] }
 0x2c4   : > { %2497 = vmatprep.mubr.f32.mxu0 %v6292_v18 }
 0x2c7   : > { %2498 = vmatmul.mubr.f32.gmra.mrb[32].mxu0 %v7729_v63 }
 0x2c8   : > { %2503 = vmatprep.mubr.f32.mxu0 %v6293_v47  ;;  %v3776_v47 = vld [vmem:[#allocation10 + $0x38] sm:$0xff] }
 0x2cb   : > { %2504 = vmatmul.mubr.f32.gmra.mrb[34].mxu0 %v7735_v3 }
 0x2cc   : > { %2509 = vmatprep.mubr.f32.mxu0 %v6294_v11 }
 0x2cf   : > { %2510 = vmatmul.mubr.f32.gmra.mrb[36].mxu0 %v7741_v19 }
 0x2d0   : > { %2515 = vmatprep.mubr.f32.mxu0 %v6295_v16 }
 0x2d3   : > { %2516 = vmatmul.mubr.f32.gmra.mrb[38].mxu0 %v7748_v41  ;;  %v6298_v41 = vld [vmem:[#allocation2 + $0x728] sm:$0xff] }
 0x2d4   : > { %2521 = vmatprep.mubr.f32.mxu0 %v6296_v60 }
 0x2d6   : > { %v2087_v63 = vpop.f32.mrb[66].mxu0 }
 0x2d7   : > { %v7930_v51 = vadd.f32 %v2087_v63, %v7765_v54  ;;  %v2089_v3 = vpop.f32.mrb[67].mxu0  ;;  %2522 = vmatmul.mubr.f32.gmra.mrb[40].mxu0 %v7755_v58  ;;  %v6299_v58 = vld [vmem:[#allocation2 + $0x770] sm:$0xff] }
 0x2d8   : > { %2527 = vmatprep.mubr.f32.mxu0 %v6297_v36  ;;  %v3777_v63 = vld [vmem:[#allocation10 + $0x40] sm:$0xff] }
 0x2d9   : > { %v5515_v3 = vpack.c.bf16 %v3778_v61, %v3777_v63  ;;  %v3787_v63 = vld [vmem:[#allocation10 + $0x90] sm:$0xff]  ;;  %v3788_v61 = vld [vmem:[#allocation10 + $0x98] sm:$0xff] }
 0x2da   : > { %v2092_v19 = vpop.f32.mrb[68].mxu0 }
 0x2db   : > { %v7934_v43 = vadd.f32 %v2092_v19, %v7773_v17  ;;  %v2094_v52 = vpop.f32.mrb[69].mxu0  ;;  %2528 = vmatmul.mubr.f32.gmra.mrb[42].mxu0 %v7761_v12 }
 0x2dc   : > { %2533 = vmatprep.mubr.f32.mxu0 %v6298_v41  ;;  %v3779_v52 = vld [vmem:[#allocation10 + $0x50] sm:$0xff]  ;;  %v3780_v41 = vld [vmem:[#allocation10 + $0x58] sm:$0xff] }
 0x2de   : > { %v2097_v24 = vpop.f32.mrb[70].mxu0 }
 0x2df   : > { %v7938_v6 = vadd.f32 %v2097_v24, %v7782_v38  ;;  %v2099_v54 = vpop.f32.mrb[71].mxu0  ;;  %2534 = vmatmul.mubr.f32.gmra.mrb[44].mxu0 %v7769_v55  ;;  %v5518_v24 = vpack.c.bf16 %v3780_v41, %v3779_v52 }
 0x2e0   : > { %2539 = vmatprep.mubr.f32.mxu0 %v6299_v58 }
 0x2e2   : > { %v2167_v56 = vpop.f32.mrb[72].mxu0 }
 0x2e3   : > { %v7942_v5 = vadd.f32 %v2167_v56, %v7796_v30  ;;  %v2169_v17 = vpop.f32.mrb[73].mxu0  ;;  %2540 = vmatmul.mubr.f32.gmra.mrb[46].mxu0 %v7777_v13 }
 0x2e4   : > { %2545 = vmatprep.mubr.f32.mxu0 %v6300_v46  ;;  %v3781_v46 = vld [vmem:[#allocation10 + $0x60] sm:$0xff] }
 0x2e6   : > { %v2172_v12 = vpop.f32.mrb[74].mxu0 }
 0x2e7   : > { %v7946_v22 = vadd.f32 %v2172_v12, %v7811_v29  ;;  %v2174_v38 = vpop.f32.mrb[75].mxu0  ;;  %2546 = vmatmul.mubr.f32.gmra.mrb[48].mxu0 %v7786_v31  ;;  %v3782_v12 = vld [vmem:[#allocation10 + $0x68] sm:$0xff] }
 0x2e8   : > { %2551 = vmatprep.mubr.f32.mxu0 %v6301_v57  ;;  %v5521_v38 = vpack.c.bf16 %v3782_v12, %v3781_v46  ;;  %v3790_v46 = vld [vmem:[#allocation10 + $0xa8] sm:$0xff] }
 0x2ea   : > { %v2177_v55 = vpop.f32.mrb[76].mxu0 }
 0x2eb   : > { %v7950_v4 = vadd.f32 %v2177_v55, %v7825_v42  ;;  %v2179_v30 = vpop.f32.mrb[77].mxu0  ;;  %2552 = vmatmul.mubr.f32.gmra.mrb[50].mxu0 %v7793_v26 }
 0x2ec   : > { %2557 = vmatprep.mubr.f32.mxu0 %v6302_v32  ;;  %v7955_v13 = vpop.f32.mrb[0].mxu1  ;;  %v3783_v30 = vld [vmem:[#allocation10 + $0x70] sm:$0xff]  ;;  %v3784_v32 = vld [vmem:[#allocation10 + $0x78] sm:$0xff] }
 0x2ed   : > { %v7957_v29 = vpop.f32.mrb[1].mxu1 }
 0x2ef   : > { %2558 = vmatmul.mubr.f32.gmra.mrb[52].mxu0 %v7807_v45 }
 0x2f0   : > { %2563 = vmatprep.mubr.f32.mxu0 %v7818_v23  ;;  %v7961_v31 = vpop.f32.mrb[2].mxu1 }
 0x2f1   : > { %v7963_v42 = vpop.f32.mrb[3].mxu1 }
 0x2f3   : > { %2564 = vmatmul.mubr.f32.gmra.mrb[90].mxu0 %v7821_v25 }
 0x2f4   : > { %2568 = vmatprep.mubr.f32.mxu0 %v7833_v33  ;;  %v7967_v26 = vpop.f32.mrb[4].mxu1 }
 0x2f5   : > { %v7969_v45 = vpop.f32.mrb[5].mxu1 }
 0x2f7   : > { %2569 = vmatmul.mubr.f32.gmra.mrb[92].mxu0 %v7836_v27 }
 0x2f8   : > { %2573 = vmatprep.mubr.f32.mxu0 %v7844_v59  ;;  %v7973_v23 = vpop.f32.mrb[6].mxu1 }
 0x2f9   : > { %v7975_v25 = vpop.f32.mrb[7].mxu1 }
 0x2fb   : > { %2574 = vmatmul.mubr.f32.gmra.mrb[94].mxu0 %v7848_v7 }
 0x2fc   : > { %2643 = vmatprep.mubr.f32.mxu0 %v8838_v10  ;;  %v7979_v33 = vpop.f32.mrb[8].mxu1 }
 0x2fd   : > { %v7981_v27 = vpop.f32.mrb[9].mxu1 }
 0x2ff   : > { %2644 = vmatmul.mubr.f32.vlgmr.msra.gmra.mrb[96].mxu0 %v7855_v62  ;;  %v5503_v62 = vpack.c.bf16 %v3770_v28, %v3769_v40  ;;  %v5524_v40 = vpack.c.bf16 %v3784_v32, %v3783_v30 }
 0x300   : > { %2648 = vmatprep.mubr.f32.mxu0 %v8838_v10  ;;  %v7985_v59 = vpop.f32.mrb[10].mxu1 }
 0x301   : > { %v7987_v7 = vpop.f32.mrb[11].mxu1  ;;  %5504 = vmatpush1.bf16.msra.mxu1 %v5503_v62 }
 0x302   : > { %5505 = vmatprep.subr.bf16.mxu1 %v8750_v14 }
 0x303   : > { %2649 = vmatmul.mubr.f32.gmra.mrb[98].mxu0 %v7861_v21 }
 0x304   : > { %2653 = vmatprep.mubr.f32.mxu0 %v8838_v10  ;;  %v7992_v49 = vpop.f32.mrb[12].mxu1 }
 0x305   : > { %v7994_v21 = vpop.f32.mrb[13].mxu1  ;;  %5507 = vmatpush1.bf16.msra.mxu1 %v5506_v39  ;;  %v3785_v39 = vld [vmem:[#allocation10 + $0x80] sm:$0xff] }
 0x306   : > { %5508 = vmatprep.subr.bf16.mxu1 %v8750_v14 }
 0x307   : > { %2654 = vmatmul.mubr.f32.gmra.mrb[100].mxu0 %v7866_v2 }
 0x308   : > { %2658 = vmatprep.mubr.f32.mxu0 %v8838_v10  ;;  %v7999_v20 = vpop.f32.mrb[14].mxu1 }
 0x309   : > { %v8001_v2 = vpop.f32.mrb[15].mxu1 }
 0x30b   : > { %2659 = vmatmul.mubr.f32.gmra.mrb[6].mxu0 %v7872_v48 }
 0x30c   : > { %2664 = vmatprep.mubr.f32.mxu0 %v8838_v10  ;;  %v8004_v35 = vpop.f32.mrb[16].mxu1  ;;  %v3773_v10 = vld [vmem:[#allocation10 + $0x20] sm:$0xff] }
 0x30d   : > { %v8006_v1 = vpop.f32.mrb[17].mxu1  ;;  %v5509_v9 = vpack.c.bf16 %v3774_v37, %v3773_v10  ;;  %v3786_v10 = vld [vmem:[#allocation10 + $0x88] sm:$0xff] }
 0x30e   : > { %v5527_v37 = vpack.c.bf16 %v3786_v10, %v3785_v39  ;;  %v3791_v10 = vld [vmem:[#allocation10 + $0xb0] sm:$0xff] }
 0x30f   : > { %2665 = vmatmul.mubr.f32.gmra.mrb[8].mxu0 %v7879_v34  ;;  %5510 = vmatpush1.bf16.msra.mxu1 %v5509_v9  ;;  %v3775_v34 = vld [vmem:[#allocation10 + $0x30] sm:$0xff] }
 0x310   : > { %v8009_v8 = vpop.f32.mrb[18].mxu1  ;;  %5511 = vmatprep.subr.bf16.mxu1 %v8750_v14  ;;  %v5512_v11 = vpack.c.bf16 %v3776_v47, %v3775_v34 }
 0x311   : > { %v8011_v48 = vpop.f32.mrb[19].mxu1 }
 0x313   : > { %5513 = vmatpush1.bf16.msra.mxu1 %v5512_v11 }
 0x314   : > { %v8013_v53 = vpop.f32.mrb[20].mxu1  ;;  %5514 = vmatprep.subr.bf16.mxu1 %v8750_v14 }
 0x315   : > { %v8015_v18 = vpop.f32.mrb[21].mxu1 }
 0x317   : > { %5516 = vmatpush1.bf16.msra.mxu1 %v5515_v3  ;;  %v5530_v3 = vpack.c.bf16 %v3788_v61, %v3787_v63 }
 0x318   : > { %v8018_v50 = vpop.f32.mrb[22].mxu1  ;;  %5517 = vmatprep.subr.bf16.mxu1 %v8750_v14 }
 0x319   : > { %v8020_v16 = vpop.f32.mrb[23].mxu1 }
 0x31b   : > { %5519 = vmatpush1.bf16.msra.mxu1 %v5518_v24  ;;  %v3789_v24 = vld [vmem:[#allocation10 + $0xa0] sm:$0xff] }
 0x31c   : > { %v8023_v15 = vpop.f32.mrb[24].mxu1  ;;  %5520 = vmatprep.subr.bf16.mxu1 %v8750_v14  ;;  %v5533_v12 = vpack.c.bf16 %v3790_v46, %v3789_v24 }
 0x31d   : > { %v8025_v60 = vpop.f32.mrb[25].mxu1 }
 0x31f   : > { %5522 = vmatpush1.bf16.msra.mxu1 %v5521_v38 }
 0x320   : > { %v8027_v36 = vpop.f32.mrb[26].mxu1  ;;  %5523 = vmatprep.subr.bf16.mxu1 %v8750_v14 }
 0x321   : > { %v8029_v19 = vpop.f32.mrb[27].mxu1 }
 0x323   : > { %5525 = vmatpush1.bf16.msra.mxu1 %v5524_v40 }
 0x324   : > { %v8032_v54 = vpop.f32.mrb[28].mxu1  ;;  %5526 = vmatprep.subr.bf16.mxu1 %v8750_v14 }
 0x325   : > { %v8034_v58 = vpop.f32.mrb[29].mxu1 }
 0x327   : > { %5528 = vmatpush1.bf16.msra.mxu1 %v5527_v37  ;;  %v3792_v37 = vld [vmem:[#allocation10 + $0xb8] sm:$0xff] }
 0x328   : > { %v8037_v56 = vpop.f32.mrb[30].mxu1  ;;  %5529 = vmatprep.subr.bf16.mxu1 %v8750_v14 }
 0x329   : > { %v8039_v17 = vpop.f32.mrb[31].mxu1 }
 0x32b   : > { %5531 = vmatpush1.bf16.msra.mxu1 %v5530_v3  ;;  %v5536_v3 = vpack.c.bf16 %v3792_v37, %v3791_v10  ;;  %v3795_v10 = vld [vmem:[#allocation10 + $0xd0] sm:$0xff]  ;;  %v3796_v37 = vld [vmem:[#allocation10 + $0xd8] sm:$0xff] }
 0x32c   : > { %v8041_v57 = vpop.f32.mrb[32].mxu1  ;;  %5532 = vmatprep.subr.bf16.mxu1 %v8750_v14 }
 0x32d   : > { %v8043_v55 = vpop.f32.mrb[33].mxu1 }
 0x32f   : > { %5534 = vmatpush1.bf16.msra.mxu1 %v5533_v12 }
 0x330   : > { %v8046_v28 = vpop.f32.mrb[34].mxu1  ;;  %5535 = vmatprep.subr.bf16.mxu1 %v8750_v14 }
 0x331   : > { %v8048_v62 = vpop.f32.mrb[35].mxu1 }
 0x333   : > { %5537 = vmatpush1.bf16.msra.mxu1 %v5536_v3 }
 0x334   : > { %v8051_v44 = vpop.f32.mrb[36].mxu1  ;;  %5538 = vmatprep.subr.bf16.mxu1 %v8750_v14 }
 0x335   : > { %v8053_v0 = vpop.f32.mrb[37].mxu1 }
 0x338   : > { %v8055_v9 = vpop.f32.mrb[38].mxu1 }
 0x339   : > { %v8057_v34 = vpop.f32.mrb[39].mxu1 }
 0x33c   : > { %v8060_v47 = vpop.f32.mrb[40].mxu1 }
 0x33d   : > { %v8062_v11 = vpop.f32.mrb[41].mxu1 }
 0x340   : > { %v8064_v52 = vpop.f32.mrb[42].mxu1 }
 0x341   : > { %8847 = vst [vmem:[#allocation28_spill] sm:$0xff] %v8064_v52  ;;  %v8066_v41 = vpop.f32.mrb[43].mxu1 }
 0x342   : > { %8848 = vst [vmem:[#allocation25_spill] sm:$0xff] %v8066_v41 }
 0x344   : > { %v8069_v38 = vpop.f32.mrb[44].mxu1 }
 0x345   : > { %8849 = vst [vmem:[#allocation30_spill] sm:$0xff] %v8069_v38  ;;  %v2806_v30 = vpop.f32.mrb[45].mxu1 }
 0x348   : > { %v8072_v32 = vpop.f32.mrb[46].mxu1 }
 0x349   : > { %8850 = vst [vmem:[#allocation27_spill] sm:$0xff] %v8072_v32  ;;  %v2811_v40 = vpop.f32.mrb[47].mxu1  ;;  %v3794_v32 = vld [vmem:[#allocation10 + $0xc8] sm:$0xff] }
 0x34a   : > { %v3793_v40 = vld [vmem:[#allocation10 + $0xc0] sm:$0xff] }
 0x34b   : > { %v5539_v38 = vpack.c.bf16 %v3794_v32, %v3793_v40  ;;  %v3797_v32 = vld [vmem:[#allocation10 + $0xe0] sm:$0xff]  ;;  %v3799_v40 = vld [vmem:[#allocation10 + $0xf0] sm:$0xff] }
 0x34d   : > { %5540 = vmatpush1.bf16.msra.mxu1 %v5539_v38 }
 0x34e   : > { %v2326_v39 = vpop.f32.mrb[78].mxu0  ;;  %5541 = vmatprep.subr.bf16.mxu1 %v8750_v14 }
 0x34f   : > { %v8075_v63 = vadd.f32 %v2326_v39, %v7930_v51  ;;  %v2328_v61 = vpop.f32.mrb[79].mxu0  ;;  %v8077_v41 = vpop.f32.mrb[48].mxu1 }
 0x350   : > { %v2816_v24 = vpop.f32.mrb[49].mxu1  ;;  %v5542_v61 = vpack.c.bf16 %v3796_v37, %v3795_v10 }
 0x352   : > { %v2331_v46 = vpop.f32.mrb[80].mxu0  ;;  %5543 = vmatpush1.bf16.msra.mxu1 %v5542_v61 }
 0x353   : > { %v8081_v12 = vadd.f32 %v2331_v46, %v7934_v43  ;;  %v2333_v30 = vpop.f32.mrb[81].mxu0  ;;  %5544 = vmatprep.subr.bf16.mxu1 %v8750_v14  ;;  %v3798_v46 = vld [vmem:[#allocation10 + $0xe8] sm:$0xff] }
 0x354   : > { %v5545_v38 = vpack.c.bf16 %v3798_v46, %v3797_v32 }
 0x356   : > { %v2336_v52 = vpop.f32.mrb[82].mxu0  ;;  %5546 = vmatpush1.bf16.msra.mxu1 %v5545_v38  ;;  %v8107_v38 = vld [vmem:[#allocation9] ss:$0 sm:$0xff] }
 0x357   : > { %v8084_v51 = vadd.f32 %v2336_v52, %v7938_v6  ;;  %v2338_v39 = vpop.f32.mrb[83].mxu0  ;;  %5547 = vmatprep.subr.bf16.mxu1 %v8750_v14 }
 0x358   : > { %v3800_v39 = vld [vmem:[#allocation10 + $0xf8] sm:$0xff] }
 0x359   : > { %v5548_v10 = vpack.c.bf16 %v3800_v39, %v3799_v40 }
 0x35a   : > { %v2406_v3 = vpop.f32.mrb[84].mxu0 }
 0x35b   : > { %v8088_v24 = vadd.f32 %v2406_v3, %v7942_v5  ;;  %v2408_v43 = vpop.f32.mrb[85].mxu0  ;;  %5549 = vmatpush1.bf16.msra.mxu1 %v5548_v10  ;;  %v8098_v3 = vpop.permute.xlu0 %2948 }
 0x35c   : > { %5550 = vmatprep.subr.bf16.mxu1 %v8750_v14  ;;  %v8101_v43 = vpop.permute.xlu1 %2958 }
 0x35d   : > { %8851 = vst [vmem:[#allocation29_spill] sm:$0xff] %v8101_v43 }
 0x35e   : > { %v2411_v30 = vpop.f32.mrb[86].mxu0 }
 0x35f   : > { %v8092_v6 = vadd.f32 %v2411_v30, %v7946_v22  ;;  %v2413_v52 = vpop.f32.mrb[87].mxu0  ;;  %v8103_v22 = vpop.permute.xlu0 %2953 }
 0x360   : > { %8852 = vst [vmem:[#allocation31_spill] sm:$0xff] %v8103_v22  ;;  %v8105_v32 = vpop.permute.xlu1 %2963 }
 0x361   : > { %8853 = vst [vmem:[#allocation33_spill] sm:$0xff] %v8105_v32 }
 0x362   : > { %v2416_v5 = vpop.f32.mrb[88].mxu0 }
 0x363   : > { %v8096_v37 = vadd.f32 %v2416_v5, %v7950_v4  ;;  %v2418_v61 = vpop.f32.mrb[89].mxu0  ;;  %v8113_v40 = vpop.permute.xlu0 %2968 }
 0x364   : > { %v2974_v5 = vpop.permute.xlu1 %2973 }
 0x36e   : > { %v2433_v46 = vpop.f32.mrb[10].mxu0 }
 0x36f   : > { %v5742_v30 = vadd.f32 %v7955_v13, %v2433_v46  ;;  %v2435_v52 = vpop.f32.mrb[11].mxu0 }
 0x370   : > { %v8111_v4 = vadd.f32 %v7957_v29, %v2435_v52  ;;  %v2979_v29 = vpop.permute.xlu0 %2978 }
 0x371   : > { %v2861_v39 = vadd.f32 %v5742_v30, %v8107_v38 }
 0x372   : > { %8854 = vst [vmem:[#allocation22_spill] sm:$0xff] %v8111_v4  ;;  %v2439_v10 = vpop.f32.mrb[12].mxu0 }
 0x373   : > { %v5744_v61 = vadd.f32 %v7961_v31, %v2439_v10  ;;  %v2441_v14 = vpop.f32.mrb[13].mxu0  ;;  %v2891_v43 = vmax.f32 %v2861_v39, 0.0 }
 0x374   : > { %v8118_v32 = vadd.f32 %v7963_v42, %v2441_v14 }
 0x375   : > { %v2862_v22 = vadd.f32 %v5744_v61, %v8107_v38  ;;  %v8121_v13 = vmul.f32 %v2974_v5, %v2891_v43  ;;  %v2984_v5 = vpop.permute.xlu1 %2983 }
 0x376   : > { %8855 = vst [vmem:[#allocation32_spill] sm:$0xff] %v8118_v32  ;;  %v2445_v46 = vpop.f32.mrb[14].mxu0 }
 0x377   : > { %3251 = vst [vmem:[#allocation3 + $0x170] sm:$0xff] %v8121_v13  ;;  %3406 = vst [vmem:[#allocation3 + $0xb0] sm:$0xff] %v8121_v13  ;;  %v5746_v30 = vadd.f32 %v7967_v26, %v2445_v46  ;;  %v2447_v52 = vpop.f32.mrb[15].mxu0  ;;  %v2892_v4 = vmax.f32 %v2862_v22, 0.0  ;;  %v8752_v39 = vrot.slane %v8121_v13, 7  ;;  %v8753_v43 = vrot.slane %v8121_v13, 1 }
 0x378   : > { %v8127_v31 = vadd.f32 %v7969_v45, %v2447_v52 }
 0x379   : > { %v2863_v42 = vadd.f32 %v5746_v30, %v8107_v38  ;;  %v3102_v14 = vmul.f32 %v2979_v29, %v2892_v4 }
 0x37a   : > { %v2451_v10 = vpop.f32.mrb[16].mxu0 }
 0x37b   : > { %v3162_v61 = vrot.slane %v3102_v14, 7  ;;  %3252 = vst [vmem:[#allocation3 + $0x1b8] sm:$0xff] %v3102_v14  ;;  %v3283_v32 = vrot.slane %v3102_v14, 1  ;;  %3407 = vst [vmem:[#allocation3 + $0xf8] sm:$0xff] %v3102_v14  ;;  %v5748_v26 = vadd.f32 %v7973_v23, %v2451_v10  ;;  %v2453_v22 = vpop.f32.mrb[17].mxu0  ;;  %v2893_v45 = vmax.f32 %v2863_v42, 0.0  ;;  %v2989_v42 = vpop.permute.xlu0 %2988 }
 0x37c   : > { %3497 = vst [vmem:[#allocation3 + $0x38] sm:$0xff] %v3102_v14  ;;  %v8134_v46 = vadd.f32 %v7975_v25, %v2453_v22 }
 0x37d   : > { %v3163_v4 = vsel %vm464_vm0, %v8752_v39, %v3162_v61  ;;  %v3284_v29 = vsel %vm3271_vm1, %v8753_v43, %v3283_v32  ;;  %v2864_v30 = vadd.f32 %v5748_v26, %v8107_v38  ;;  %v3103_v52 = vmul.f32 %v2984_v5, %v2893_v45 }
 0x37e   : > { %3228 = vst [vmem:[#allocation3 + $0x1b0] sm:$0xff] %v3163_v4  ;;  %3350 = vst [vmem:[#allocation3 + $0x178] sm:$0xff] %v3284_v29  ;;  %v2457_v23 = vpop.f32.mrb[18].mxu0 }
 0x37f   : > { %3383 = vst [vmem:[#allocation3 + $0xf0] sm:$0xff] %v3163_v4  ;;  %3440 = vst [vmem:[#allocation3 + $0xb8] sm:$0xff] %v3284_v29  ;;  %v3164_v25 = vrot.slane %v3103_v52, 7  ;;  %v3285_v14 = vrot.slane %v3103_v52, 1  ;;  %v5750_v10 = vadd.f32 %v7979_v33, %v2457_v23  ;;  %v2459_v22 = vpop.f32.mrb[19].mxu0  ;;  %v2894_v39 = vmax.f32 %v2864_v30, 0.0  ;;  %v2994_v33 = vpop.permute.xlu1 %2993 }
 0x380   : > { %3473 = vst [vmem:[#allocation3 + $0x30] sm:$0xff] %v3163_v4  ;;  %3253 = vst [vmem:[#allocation3 + $0x200] sm:$0xff] %v3103_v52  ;;  %v8145_v43 = vadd.f32 %v7981_v27, %v2459_v22 }
 0x381   : > { %3408 = vst [vmem:[#allocation3 + $0x140] sm:$0xff] %v3103_v52  ;;  %3498 = vst [vmem:[#allocation3 + $0x80] sm:$0xff] %v3103_v52  ;;  %v3165_v5 = vsel %vm464_vm0, %v3162_v61, %v3164_v25  ;;  %v3286_v26 = vsel %vm3271_vm1, %v3283_v32, %v3285_v14  ;;  %v2865_v45 = vadd.f32 %v5750_v10, %v8107_v38 }
 0x382   : > { %v3104_v4 = vmul.f32 %v2989_v42, %v2894_v39  ;;  %3229 = vst [vmem:[#allocation3 + $0x1f8] sm:$0xff] %v3165_v5  ;;  %3351 = vst [vmem:[#allocation3 + $0x1c0] sm:$0xff] %v3286_v26  ;;  %v2463_v29 = vpop.f32.mrb[20].mxu0 }
 0x383   : > { %3384 = vst [vmem:[#allocation3 + $0x138] sm:$0xff] %v3165_v5  ;;  %3441 = vst [vmem:[#allocation3 + $0x100] sm:$0xff] %v3286_v26  ;;  %v5752_v27 = vadd.f32 %v7985_v59, %v2463_v29  ;;  %v2465_v61 = vpop.f32.mrb[21].mxu0  ;;  %v2895_v32 = vmax.f32 %v2865_v45, 0.0  ;;  %v2999_v59 = vpop.permute.xlu0 %2998 }
 0x384   : > { %3474 = vst [vmem:[#allocation3 + $0x78] sm:$0xff] %v3165_v5  ;;  %3529 = vst [vmem:[#allocation3 + $0x40] sm:$0xff] %v3286_v26  ;;  %v3166_v52 = vrot.slane %v3104_v4, 7  ;;  %v3287_v30 = vrot.slane %v3104_v4, 1  ;;  %v8152_v23 = vadd.f32 %v7987_v7, %v2465_v61 }
 0x385   : > { %3254 = vst [vmem:[#allocation3 + $0x248] sm:$0xff] %v3104_v4  ;;  %3409 = vst [vmem:[#allocation3 + $0x188] sm:$0xff] %v3104_v4  ;;  %v2866_v10 = vadd.f32 %v5752_v27, %v8107_v38  ;;  %v3105_v22 = vmul.f32 %v2994_v33, %v2895_v32 }
 0x386   : > { %3499 = vst [vmem:[#allocation3 + $0xc8] sm:$0xff] %v3104_v4  ;;  %v3167_v39 = vsel %vm464_vm0, %v3164_v25, %v3166_v52  ;;  %v3288_v42 = vsel %vm3271_vm1, %v3285_v14, %v3287_v30  ;;  %v2469_v5 = vpop.f32.mrb[22].mxu0 }
 0x387   : > { %3230 = vst [vmem:[#allocation3 + $0x240] sm:$0xff] %v3167_v39  ;;  %3352 = vst [vmem:[#allocation3 + $0x208] sm:$0xff] %v3288_v42  ;;  %v3168_v26 = vrot.slane %v3105_v22, 7  ;;  %v3289_v45 = vrot.slane %v3105_v22, 1  ;;  %v5754_v7 = vadd.f32 %v7992_v49, %v2469_v5  ;;  %v2471_v25 = vpop.f32.mrb[23].mxu0  ;;  %v2896_v14 = vmax.f32 %v2866_v10, 0.0  ;;  %v3004_v49 = vpop.permute.xlu1 %3003 }
 0x388   : > { %3385 = vst [vmem:[#allocation3 + $0x180] sm:$0xff] %v3167_v39  ;;  %3442 = vst [vmem:[#allocation3 + $0x148] sm:$0xff] %v3288_v42  ;;  %v8159_v4 = vadd.f32 %v7994_v21, %v2471_v25 }
 0x389   : > { %3475 = vst [vmem:[#allocation3 + $0xc0] sm:$0xff] %v3167_v39  ;;  %3530 = vst [vmem:[#allocation3 + $0x88] sm:$0xff] %v3288_v42  ;;  %v3169_v29 = vsel %vm464_vm0, %v3166_v52, %v3168_v26  ;;  %v3290_v33 = vsel %vm3271_vm1, %v3287_v30, %v3289_v45  ;;  %v2867_v27 = vadd.f32 %v5754_v7, %v8107_v38 }
 0x38a   : > { %3255 = vst [vmem:[#allocation3 + $0x290] sm:$0xff] %v3105_v22  ;;  %3410 = vst [vmem:[#allocation3 + $0x1d0] sm:$0xff] %v3105_v22  ;;  %v3106_v61 = vmul.f32 %v2999_v59, %v2896_v14  ;;  %v2475_v32 = vpop.f32.mrb[24].mxu0 }
 0x38b   : > { %3500 = vst [vmem:[#allocation3 + $0x110] sm:$0xff] %v3105_v22  ;;  %3231 = vst [vmem:[#allocation3 + $0x288] sm:$0xff] %v3169_v29  ;;  %v5756_v21 = vadd.f32 %v7999_v20, %v2475_v32  ;;  %v2477_v52 = vpop.f32.mrb[25].mxu0  ;;  %v2897_v30 = vmax.f32 %v2867_v27, 0.0  ;;  %v3009_v20 = vpop.permute.xlu0 %3008 }
 0x38c   : > { %3353 = vst [vmem:[#allocation3 + $0x250] sm:$0xff] %v3290_v33  ;;  %3386 = vst [vmem:[#allocation3 + $0x1c8] sm:$0xff] %v3169_v29  ;;  %v3170_v39 = vrot.slane %v3106_v61, 7  ;;  %v3291_v42 = vrot.slane %v3106_v61, 1  ;;  %v8166_v10 = vadd.f32 %v8001_v2, %v2477_v52 }
 0x38d   : > { %3443 = vst [vmem:[#allocation3 + $0x190] sm:$0xff] %v3290_v33  ;;  %3476 = vst [vmem:[#allocation3 + $0x108] sm:$0xff] %v3169_v29  ;;  %v2868_v59 = vadd.f32 %v5756_v21, %v8107_v38  ;;  %v3107_v7 = vmul.f32 %v3004_v49, %v2897_v30 }
 0x38e   : > { %3531 = vst [vmem:[#allocation3 + $0xd0] sm:$0xff] %v3290_v33  ;;  %3256 = vst [vmem:[#allocation3 + $0x2d8] sm:$0xff] %v3106_v61  ;;  %v3171_v22 = vsel %vm464_vm0, %v3168_v26, %v3170_v39  ;;  %v3292_v5 = vsel %vm3271_vm1, %v3289_v45, %v3291_v42  ;;  %v2481_v25 = vpop.f32.mrb[26].mxu0 }
 0x38f   : > { %3411 = vst [vmem:[#allocation3 + $0x218] sm:$0xff] %v3106_v61  ;;  %3501 = vst [vmem:[#allocation3 + $0x158] sm:$0xff] %v3106_v61  ;;  %v3172_v14 = vrot.slane %v3107_v7, 7  ;;  %v3293_v29 = vrot.slane %v3107_v7, 1  ;;  %v5758_v2 = vadd.f32 %v8004_v35, %v2481_v25  ;;  %v2483_v26 = vpop.f32.mrb[27].mxu0  ;;  %v2898_v45 = vmax.f32 %v2868_v59, 0.0  ;;  %v3014_v35 = vpop.permute.xlu1 %3013 }
 0x390   : > { %3232 = vst [vmem:[#allocation3 + $0x2d0] sm:$0xff] %v3171_v22  ;;  %3354 = vst [vmem:[#allocation3 + $0x298] sm:$0xff] %v3292_v5  ;;  %v8173_v33 = vadd.f32 %v8006_v1, %v2483_v26 }
 0x391   : > { %3387 = vst [vmem:[#allocation3 + $0x210] sm:$0xff] %v3171_v22  ;;  %3444 = vst [vmem:[#allocation3 + $0x1d8] sm:$0xff] %v3292_v5  ;;  %v3173_v27 = vsel %vm464_vm0, %v3170_v39, %v3172_v14  ;;  %v3294_v61 = vsel %vm3271_vm1, %v3291_v42, %v3293_v29  ;;  %v2869_v32 = vadd.f32 %v5758_v2, %v8107_v38 }
 0x392   : > { %3477 = vst [vmem:[#allocation3 + $0x150] sm:$0xff] %v3171_v22  ;;  %3532 = vst [vmem:[#allocation3 + $0x118] sm:$0xff] %v3292_v5  ;;  %v3108_v49 = vmul.f32 %v3009_v20, %v2898_v45  ;;  %v2487_v21 = vpop.f32.mrb[28].mxu0 }
 0x393   : > { %3257 = vst [vmem:[#allocation3 + $0x320] sm:$0xff] %v3107_v7  ;;  %3412 = vst [vmem:[#allocation3 + $0x260] sm:$0xff] %v3107_v7  ;;  %v5760_v1 = vadd.f32 %v8009_v8, %v2487_v21  ;;  %v2489_v39 = vpop.f32.mrb[29].mxu0  ;;  %v2899_v42 = vmax.f32 %v2869_v32, 0.0  ;;  %v3019_v8 = vpop.permute.xlu0 %3018 }
 0x394   : > { %3502 = vst [vmem:[#allocation3 + $0x1a0] sm:$0xff] %v3107_v7  ;;  %3233 = vst [vmem:[#allocation3 + $0x318] sm:$0xff] %v3173_v27  ;;  %v3174_v52 = vrot.slane %v3108_v49, 7  ;;  %v3295_v30 = vrot.slane %v3108_v49, 1  ;;  %v8180_v22 = vadd.f32 %v8011_v48, %v2489_v39 }
 0x395   : > { %3355 = vst [vmem:[#allocation3 + $0x2e0] sm:$0xff] %v3294_v61  ;;  %3388 = vst [vmem:[#allocation3 + $0x258] sm:$0xff] %v3173_v27  ;;  %v2870_v7 = vadd.f32 %v5760_v1, %v8107_v38  ;;  %v3109_v25 = vmul.f32 %v3014_v35, %v2899_v42 }
 0x396   : > { %3445 = vst [vmem:[#allocation3 + $0x220] sm:$0xff] %v3294_v61  ;;  %3478 = vst [vmem:[#allocation3 + $0x198] sm:$0xff] %v3173_v27  ;;  %v3175_v5 = vsel %vm464_vm0, %v3172_v14, %v3174_v52  ;;  %v3296_v59 = vsel %vm3271_vm1, %v3293_v29, %v3295_v30  ;;  %v2493_v20 = vpop.f32.mrb[30].mxu0 }
 0x397   : > { %3533 = vst [vmem:[#allocation3 + $0x160] sm:$0xff] %v3294_v61  ;;  %3258 = vst [vmem:[#allocation3 + $0x368] sm:$0xff] %v3108_v49  ;;  %v3176_v2 = vrot.slane %v3109_v25, 7  ;;  %v3297_v26 = vrot.slane %v3109_v25, 1  ;;  %v5762_v48 = vadd.f32 %v8013_v53, %v2493_v20  ;;  %v2495_v14 = vpop.f32.mrb[31].mxu0  ;;  %v2900_v29 = vmax.f32 %v2870_v7, 0.0  ;;  %v3024_v53 = vpop.permute.xlu1 %3023 }
 0x398   : > { %3413 = vst [vmem:[#allocation3 + $0x2a8] sm:$0xff] %v3108_v49  ;;  %3503 = vst [vmem:[#allocation3 + $0x1e8] sm:$0xff] %v3108_v49  ;;  %v8187_v45 = vadd.f32 %v8015_v18, %v2495_v14 }
 0x399   : > { %3234 = vst [vmem:[#allocation3 + $0x360] sm:$0xff] %v3175_v5  ;;  %3356 = vst [vmem:[#allocation3 + $0x328] sm:$0xff] %v3296_v59  ;;  %v3177_v27 = vsel %vm464_vm0, %v3174_v52, %v3176_v2  ;;  %v3298_v61 = vsel %vm3271_vm1, %v3295_v30, %v3297_v26  ;;  %v2871_v32 = vadd.f32 %v5762_v48, %v8107_v38 }
 0x39a   : > { %3389 = vst [vmem:[#allocation3 + $0x2a0] sm:$0xff] %v3175_v5  ;;  %3446 = vst [vmem:[#allocation3 + $0x268] sm:$0xff] %v3296_v59  ;;  %v3110_v49 = vmul.f32 %v3019_v8, %v2900_v29  ;;  %v2499_v21 = vpop.f32.mrb[32].mxu0 }
 0x39b   : > { %3479 = vst [vmem:[#allocation3 + $0x1e0] sm:$0xff] %v3175_v5  ;;  %3534 = vst [vmem:[#allocation3 + $0x1a8] sm:$0xff] %v3296_v59  ;;  %v5764_v18 = vadd.f32 %v8018_v50, %v2499_v21  ;;  %v2501_v52 = vpop.f32.mrb[33].mxu0  ;;  %v2901_v30 = vmax.f32 %v2871_v32, 0.0  ;;  %v3029_v50 = vpop.permute.xlu0 %3028 }
 0x39c   : > { %3259 = vst [vmem:[#allocation3 + $0x3b0] sm:$0xff] %v3109_v25  ;;  %3414 = vst [vmem:[#allocation3 + $0x2f0] sm:$0xff] %v3109_v25  ;;  %v3178_v35 = vrot.slane %v3110_v49, 7  ;;  %v3299_v1 = vrot.slane %v3110_v49, 1  ;;  %v8194_v39 = vadd.f32 %v8020_v16, %v2501_v52 }
 0x39d   : > { %3504 = vst [vmem:[#allocation3 + $0x230] sm:$0xff] %v3109_v25  ;;  %3235 = vst [vmem:[#allocation3 + $0x3a8] sm:$0xff] %v3177_v27  ;;  %v2872_v59 = vadd.f32 %v5764_v18, %v8107_v38  ;;  %v3111_v7 = vmul.f32 %v3024_v53, %v2901_v30 }
 0x39e   : > { %3357 = vst [vmem:[#allocation3 + $0x370] sm:$0xff] %v3298_v61  ;;  %3390 = vst [vmem:[#allocation3 + $0x2e8] sm:$0xff] %v3177_v27  ;;  %v3179_v42 = vsel %vm464_vm0, %v3176_v2, %v3178_v35  ;;  %v3300_v5 = vsel %vm3271_vm1, %v3297_v26, %v3299_v1  ;;  %v2505_v25 = vpop.f32.mrb[34].mxu0 }
 0x39f   : > { %3447 = vst [vmem:[#allocation3 + $0x2b0] sm:$0xff] %v3298_v61  ;;  %3480 = vst [vmem:[#allocation3 + $0x228] sm:$0xff] %v3177_v27  ;;  %v3180_v20 = vrot.slane %v3111_v7, 7  ;;  %v3301_v8 = vrot.slane %v3111_v7, 1  ;;  %v5766_v16 = vadd.f32 %v8023_v15, %v2505_v25  ;;  %v2507_v2 = vpop.f32.mrb[35].mxu0  ;;  %v2902_v26 = vmax.f32 %v2872_v59, 0.0  ;;  %v3034_v15 = vpop.permute.xlu1 %3033 }
 0x3a0   : > { %3535 = vst [vmem:[#allocation3 + $0x1f0] sm:$0xff] %v3298_v61  ;;  %3260 = vst [vmem:[#allocation3 + $0x3f8] sm:$0xff] %v3110_v49  ;;  %v8201_v48 = vadd.f32 %v8025_v60, %v2507_v2 }
 0x3a1   : > { %3415 = vst [vmem:[#allocation3 + $0x338] sm:$0xff] %v3110_v49  ;;  %3505 = vst [vmem:[#allocation3 + $0x278] sm:$0xff] %v3110_v49  ;;  %v3181_v14 = vsel %vm464_vm0, %v3178_v35, %v3180_v20  ;;  %v3302_v29 = vsel %vm3271_vm1, %v3299_v1, %v3301_v8  ;;  %v2873_v27 = vadd.f32 %v5766_v16, %v8107_v38 }
 0x3a2   : > { %3236 = vst [vmem:[#allocation3 + $0x3f0] sm:$0xff] %v3179_v42  ;;  %3358 = vst [vmem:[#allocation3 + $0x3b8] sm:$0xff] %v3300_v5  ;;  %v3112_v61 = vmul.f32 %v3029_v50, %v2902_v26  ;;  %v2511_v32 = vpop.f32.mrb[36].mxu0 }
 0x3a3   : > { %3391 = vst [vmem:[#allocation3 + $0x330] sm:$0xff] %v3179_v42  ;;  %3448 = vst [vmem:[#allocation3 + $0x2f8] sm:$0xff] %v3300_v5  ;;  %v5768_v60 = vadd.f32 %v8027_v36, %v2511_v32  ;;  %v2513_v53 = vpop.f32.mrb[37].mxu0  ;;  %v2903_v35 = vmax.f32 %v2873_v27, 0.0 }
 0x3a4   : > { %3481 = vst [vmem:[#allocation3 + $0x270] sm:$0xff] %v3179_v42  ;;  %3536 = vst [vmem:[#allocation3 + $0x238] sm:$0xff] %v3300_v5  ;;  %v3182_v49 = vrot.slane %v3112_v61, 7  ;;  %v3303_v21 = vrot.slane %v3112_v61, 1  ;;  %v8208_v1 = vadd.f32 %v8029_v19, %v2513_v53  ;;  %v3039_v5 = vpop.permute.xlu0 %3038 }
 0x3a5   : > { %3261 = vst [vmem:[#allocation3 + $0x440] sm:$0xff] %v3111_v7  ;;  %3416 = vst [vmem:[#allocation3 + $0x380] sm:$0xff] %v3111_v7  ;;  %v2874_v30 = vadd.f32 %v5768_v60, %v8107_v38  ;;  %v8213_v42 = vmul.f32 %v3034_v15, %v2903_v35 }
 0x3a6   : > { %3506 = vst [vmem:[#allocation3 + $0x2c0] sm:$0xff] %v3111_v7  ;;  %3237 = vst [vmem:[#allocation3 + $0x438] sm:$0xff] %v3181_v14  ;;  %v3183_v18 = vsel %vm464_vm0, %v3180_v20, %v3182_v49  ;;  %v3304_v52 = vsel %vm3271_vm1, %v3301_v8, %v3303_v21  ;;  %v2517_v36 = vpop.f32.mrb[38].mxu0 }
 0x3a7   : > { %3359 = vst [vmem:[#allocation3 + $0x400] sm:$0xff] %v3302_v29  ;;  %3392 = vst [vmem:[#allocation3 + $0x378] sm:$0xff] %v3181_v14  ;;  %v3184_v59 = vrot.slane %v8213_v42, 7  ;;  %v3305_v19 = vrot.slane %v8213_v42, 1  ;;  %v5770_v7 = vadd.f32 %v8032_v54, %v2517_v36  ;;  %v2519_v25 = vpop.f32.mrb[39].mxu0  ;;  %v2904_v50 = vmax.f32 %v2874_v30, 0.0 }
 0x3a8   : > { %3449 = vst [vmem:[#allocation3 + $0x340] sm:$0xff] %v3302_v29  ;;  %3482 = vst [vmem:[#allocation3 + $0x2b8] sm:$0xff] %v3181_v14  ;;  %v8221_v20 = vadd.f32 %v8034_v58, %v2519_v25  ;;  %v3044_v14 = vpop.permute.xlu1 %3043  ;;  %v3049_v35 = vpop.permute.xlu0 %3048 }
 0x3a9   : > { %3537 = vst [vmem:[#allocation3 + $0x280] sm:$0xff] %v3302_v29  ;;  %3262 = vst [vmem:[#allocation3 + $0x488] sm:$0xff] %v3112_v61  ;;  %v3185_v8 = vsel %vm464_vm0, %v3182_v49, %v3184_v59  ;;  %v3306_v16 = vsel %vm3271_vm1, %v3303_v21, %v3305_v19  ;;  %v2875_v2 = vadd.f32 %v5770_v7, %v8107_v38 }
 0x3aa   : > { %3417 = vst [vmem:[#allocation3 + $0x3c8] sm:$0xff] %v3112_v61  ;;  %3507 = vst [vmem:[#allocation3 + $0x308] sm:$0xff] %v3112_v61  ;;  %v8226_v26 = vmul.f32 %v3039_v5, %v2904_v50  ;;  %v2523_v54 = vpop.f32.mrb[40].mxu0 }
 0x3ab   : > { %3238 = vst [vmem:[#allocation3 + $0x480] sm:$0xff] %v3183_v18  ;;  %3360 = vst [vmem:[#allocation3 + $0x448] sm:$0xff] %v3304_v52  ;;  %v5772_v27 = vadd.f32 %v8037_v56, %v2523_v54  ;;  %v2525_v61 = vpop.f32.mrb[41].mxu0  ;;  %v2905_v32 = vmax.f32 %v2875_v2, 0.0 }
 0x3ac   : > { %3393 = vst [vmem:[#allocation3 + $0x3c0] sm:$0xff] %v3183_v18  ;;  %3450 = vst [vmem:[#allocation3 + $0x388] sm:$0xff] %v3304_v52  ;;  %v3186_v29 = vrot.slane %v8226_v26, 7  ;;  %v3307_v58 = vrot.slane %v8226_v26, 1  ;;  %v8234_v15 = vadd.f32 %v8039_v17, %v2525_v61  ;;  %v3054_v50 = vpop.permute.xlu1 %3053 }
 0x3ad   : > { %3483 = vst [vmem:[#allocation3 + $0x300] sm:$0xff] %v3183_v18  ;;  %3538 = vst [vmem:[#allocation3 + $0x2c8] sm:$0xff] %v3304_v52  ;;  %v2876_v60 = vadd.f32 %v5772_v27, %v8107_v38  ;;  %v8241_v53 = vmul.f32 %v3044_v14, %v2905_v32  ;;  %v3059_v32 = vpop.permute.xlu0 %3058 }
 0x3ae   : > { %3418 = vst [vmem:[#allocation3 + $0x410] sm:$0xff] %v8213_v42  ;;  %3508 = vst [vmem:[#allocation3 + $0x350] sm:$0xff] %v8213_v42  ;;  %v8237_v49 = vsel %vm464_vm0, %v3184_v59, %v3186_v29  ;;  %v3308_v21 = vsel %vm3271_vm1, %v3305_v19, %v3307_v58  ;;  %v2529_v56 = vpop.f32.mrb[42].mxu0 }
 0x3af   : > { %3239 = vst [vmem:[#allocation3 + $0x4c8] sm:$0xff] %v3185_v8  ;;  %3361 = vst [vmem:[#allocation3 + $0x490] sm:$0xff] %v3306_v16  ;;  %v3188_v17 = vrot.slane %v8241_v53, 7  ;;  %v3309_v18 = vrot.slane %v8241_v53, 1  ;;  %v5774_v52 = vadd.f32 %v8041_v57, %v2529_v56  ;;  %v2531_v30 = vpop.f32.mrb[43].mxu0  ;;  %v2906_v36 = vmax.f32 %v2876_v60, 0.0 }
 0x3b0   : > { %3394 = vst [vmem:[#allocation3 + $0x408] sm:$0xff] %v3185_v8  ;;  %3451 = vst [vmem:[#allocation3 + $0x3d0] sm:$0xff] %v3306_v16  ;;  %v8251_v5 = vadd.f32 %v8043_v55, %v2531_v30 }
 0x3b1   : > { %3484 = vst [vmem:[#allocation3 + $0x348] sm:$0xff] %v3185_v8  ;;  %3539 = vst [vmem:[#allocation3 + $0x310] sm:$0xff] %v3306_v16  ;;  %v8254_v59 = vsel %vm464_vm0, %v3186_v29, %v3188_v17  ;;  %v3310_v19 = vsel %vm3271_vm1, %v3307_v58, %v3309_v18  ;;  %v2877_v7 = vadd.f32 %v5774_v52, %v8107_v38 }
 0x3b2   : > { %3419 = vst [vmem:[#allocation3 + $0x458] sm:$0xff] %v8226_v26  ;;  %3509 = vst [vmem:[#allocation3 + $0x398] sm:$0xff] %v8226_v26  ;;  %v8258_v25 = vmul.f32 %v3049_v35, %v2906_v36  ;;  %v2535_v57 = vpop.f32.mrb[44].mxu0 }
 0x3b3   : > { %3362 = vst [vmem:[#allocation3 + $0x4d8] sm:$0xff] %v3308_v21  ;;  %3395 = vst [vmem:[#allocation3 + $0x450] sm:$0xff] %v8237_v49  ;;  %v5776_v16 = vadd.f32 %v8046_v28, %v2535_v57  ;;  %v2537_v2 = vpop.f32.mrb[45].mxu0  ;;  %v2907_v54 = vmax.f32 %v2877_v7, 0.0 }
 0x3b4   : > { %3452 = vst [vmem:[#allocation3 + $0x418] sm:$0xff] %v3308_v21  ;;  %3485 = vst [vmem:[#allocation3 + $0x390] sm:$0xff] %v8237_v49  ;;  %v3190_v55 = vrot.slane %v8258_v25, 7  ;;  %v3311_v8 = vrot.slane %v8258_v25, 1  ;;  %v8268_v14 = vadd.f32 %v8048_v62, %v2537_v2 }
 0x3b5   : > { %3540 = vst [vmem:[#allocation3 + $0x358] sm:$0xff] %v3308_v21  ;;  %3420 = vst [vmem:[#allocation3 + $0x4a0] sm:$0xff] %v8241_v53  ;;  %v2878_v27 = vadd.f32 %v5776_v16, %v8107_v38  ;;  %v8275_v61 = vmul.f32 %v3054_v50, %v2907_v54 }
 0x3b6   : > { %3510 = vst [vmem:[#allocation3 + $0x3e0] sm:$0xff] %v8241_v53  ;;  %3363 = vst [vmem:[#allocation3 + $0x520] sm:$0xff] %v3310_v19  ;;  %v8271_v29 = vsel %vm464_vm0, %v3188_v17, %v3190_v55  ;;  %v3312_v58 = vsel %vm3271_vm1, %v3309_v18, %v3311_v8  ;;  %v2541_v28 = vpop.f32.mrb[46].mxu0 }
 0x3b7   : > { %3396 = vst [vmem:[#allocation3 + $0x498] sm:$0xff] %v8254_v59  ;;  %3453 = vst [vmem:[#allocation3 + $0x460] sm:$0xff] %v3310_v19  ;;  %v3192_v62 = vrot.slane %v8275_v61, 7  ;;  %v3313_v21 = vrot.slane %v8275_v61, 1  ;;  %v5778_v60 = vadd.f32 %v8051_v44, %v2541_v28  ;;  %v2543_v56 = vpop.f32.mrb[47].mxu0  ;;  %v2908_v35 = vmax.f32 %v2878_v27, 0.0  ;;  %v3069_v27 = vpop.permute.xlu0 %3068 }
 0x3b8   : > { %3486 = vst [vmem:[#allocation3 + $0x3d8] sm:$0xff] %v8254_v59  ;;  %3541 = vst [vmem:[#allocation3 + $0x3a0] sm:$0xff] %v3310_v19  ;;  %v8285_v17 = vadd.f32 %v8053_v0, %v2543_v56  ;;  %v3064_v19 = vpop.permute.xlu1 %3063 }
 0x3b9   : > { %3421 = vst [vmem:[#allocation3 + $0x4e8] sm:$0xff] %v8258_v25  ;;  %3511 = vst [vmem:[#allocation3 + $0x428] sm:$0xff] %v8258_v25  ;;  %v8288_v18 = vsel %vm464_vm0, %v3190_v55, %v3192_v62  ;;  %v3314_v52 = vsel %vm3271_vm1, %v3311_v8, %v3313_v21  ;;  %v2879_v30 = vadd.f32 %v5778_v60, %v8107_v38 }
 0x3ba   : > { %3364 = vst [vmem:[#allocation3 + $0x568] sm:$0xff] %v3312_v58  ;;  %3397 = vst [vmem:[#allocation3 + $0x4e0] sm:$0xff] %v8271_v29  ;;  %v8292_v36 = vmul.f32 %v3059_v32, %v2908_v35  ;;  %v2547_v44 = vpop.f32.mrb[48].mxu0 }
 0x3bb   : > { %3454 = vst [vmem:[#allocation3 + $0x4a8] sm:$0xff] %v3312_v58  ;;  %3487 = vst [vmem:[#allocation3 + $0x420] sm:$0xff] %v8271_v29  ;;  %v5780_v57 = vadd.f32 %v8055_v9, %v2547_v44  ;;  %v2549_v50 = vpop.f32.mrb[49].mxu0  ;;  %v2909_v55 = vmax.f32 %v2879_v30, 0.0 }
 0x3bc   : > { %3542 = vst [vmem:[#allocation3 + $0x3e8] sm:$0xff] %v3312_v58  ;;  %3422 = vst [vmem:[#allocation3 + $0x530] sm:$0xff] %v8275_v61  ;;  %v3194_v0 = vrot.slane %v8292_v36, 7  ;;  %v3315_v7 = vrot.slane %v8292_v36, 1  ;;  %v8302_v8 = vadd.f32 %v8057_v34, %v2549_v50  ;;  %v3074_v44 = vpop.permute.xlu1 %3073 }
 0x3bd   : > { %3512 = vst [vmem:[#allocation3 + $0x470] sm:$0xff] %v8275_v61  ;;  %3365 = vst [vmem:[#allocation3 + $0x5b0] sm:$0xff] %v3314_v52  ;;  %v2880_v54 = vadd.f32 %v5780_v57, %v8107_v38  ;;  %v8309_v58 = vmul.f32 %v3064_v19, %v2909_v55  ;;  %v8858_v55 = vld [vmem:[#allocation25_spill] sm:$0xff] }
 0x3be   : > { %3398 = vst [vmem:[#allocation3 + $0x528] sm:$0xff] %v8288_v18  ;;  %3455 = vst [vmem:[#allocation3 + $0x4f0] sm:$0xff] %v3314_v52  ;;  %v8305_v16 = vsel %vm464_vm0, %v3192_v62, %v3194_v0  ;;  %v3316_v2 = vsel %vm3271_vm1, %v3313_v21, %v3315_v7  ;;  %v2553_v9 = vpop.f32.mrb[50].mxu0 }
 0x3bf   : > { %3488 = vst [vmem:[#allocation3 + $0x468] sm:$0xff] %v8288_v18  ;;  %3543 = vst [vmem:[#allocation3 + $0x430] sm:$0xff] %v3314_v52  ;;  %v3196_v34 = vrot.slane %v8309_v58, 7  ;;  %v3317_v28 = vrot.slane %v8309_v58, 1  ;;  %v5782_v32 = vadd.f32 %v8060_v47, %v2553_v9  ;;  %v2555_v62 = vpop.f32.mrb[51].mxu0  ;;  %v2910_v21 = vmax.f32 %v2880_v54, 0.0 }
 0x3c0   : > { %3423 = vst [vmem:[#allocation3 + $0x578] sm:$0xff] %v8292_v36  ;;  %3513 = vst [vmem:[#allocation3 + $0x4b8] sm:$0xff] %v8292_v36  ;;  %v8319_v60 = vadd.f32 %v8062_v11, %v2555_v62 }
 0x3c1   : > { %3366 = vst [vmem:[#allocation3 + $0x5f8] sm:$0xff] %v3316_v2  ;;  %3399 = vst [vmem:[#allocation3 + $0x570] sm:$0xff] %v8305_v16  ;;  %v8322_v56 = vsel %vm464_vm0, %v3194_v0, %v3196_v34  ;;  %v3318_v35 = vsel %vm3271_vm1, %v3315_v7, %v3317_v28  ;;  %v2881_v52 = vadd.f32 %v5782_v32, %v8107_v38  ;;  %v8857_v0 = vld [vmem:[#allocation28_spill] sm:$0xff] }
 0x3c2   : > { %3456 = vst [vmem:[#allocation3 + $0x538] sm:$0xff] %v3316_v2  ;;  %3489 = vst [vmem:[#allocation3 + $0x4b0] sm:$0xff] %v8305_v16  ;;  %v3120_v30 = vmul.f32 %v3069_v27, %v2910_v21  ;;  %v2559_v47 = vpop.f32.mrb[52].mxu0  ;;  %v3079_v21 = vpop.permute.xlu0 %3078 }
 0x3c3   : > { %3544 = vst [vmem:[#allocation3 + $0x478] sm:$0xff] %v3316_v2  ;;  %3424 = vst [vmem:[#allocation3 + $0x5c0] sm:$0xff] %v8309_v58  ;;  %v5784_v57 = vadd.f32 %v8857_v0, %v2559_v47  ;;  %v2561_v50 = vpop.f32.mrb[53].mxu0  ;;  %v2911_v7 = vmax.f32 %v2881_v52, 0.0 }
 0x3c4   : > { %3514 = vst [vmem:[#allocation3 + $0x500] sm:$0xff] %v8309_v58  ;;  %8856 = vst [vmem:[#allocation34_spill] sm:$0xff] %v8319_v60  ;;  %v3319_v19 = vrot.slane %v3120_v30, 1  ;;  %v3371_v11 = vrot.slane %v3120_v30, 7  ;;  %v8330_v2 = vadd.f32 %v8858_v55, %v2561_v50 }
 0x3c5   : > { %3367 = vst [vmem:[#allocation3 + $0x640] sm:$0xff] %v3318_v35  ;;  %3400 = vst [vmem:[#allocation3 + $0x5b8] sm:$0xff] %v8322_v56  ;;  %v2882_v27 = vadd.f32 %v5784_v57, %v8107_v38  ;;  %v3121_v32 = vmul.f32 %v3074_v44, %v2911_v7  ;;  %v8859_v57 = vld [vmem:[#allocation30_spill] sm:$0xff] }
 0x3c6   : > { %3457 = vst [vmem:[#allocation3 + $0x580] sm:$0xff] %v3318_v35  ;;  %3490 = vst [vmem:[#allocation3 + $0x4f8] sm:$0xff] %v8322_v56  ;;  %v3320_v54 = vsel %vm3271_vm1, %v3317_v28, %v3319_v19  ;;  %v3372_v9 = vsel %vm464_vm0, %v3196_v34, %v3371_v11  ;;  %v2565_v62 = vpop.f32.mrb[90].mxu0 }
 0x3c7   : > { %3545 = vst [vmem:[#allocation3 + $0x4c0] sm:$0xff] %v3318_v35  ;;  %3425 = vst [vmem:[#allocation3 + $0x608] sm:$0xff] %v3120_v30  ;;  %v3373_v35 = vrot.slane %v3121_v32, 7  ;;  %v3429_v52 = vrot.slane %v3121_v32, 1  ;;  %v2567_v47 = vpop.f32.mrb[91].mxu0  ;;  %v2912_v28 = vmax.f32 %v2882_v27, 0.0  ;;  %v3084_v27 = vpop.permute.xlu1 %3083 }
 0x3c8   : > { %3515 = vst [vmem:[#allocation3 + $0x548] sm:$0xff] %v3120_v30  ;;  %3368 = vst [vmem:[#allocation3 + $0x688] sm:$0xff] %v3320_v54  ;;  %v2566_v30 = vadd.f32 %v2565_v62, %v8075_v63  ;;  %v8860_v62 = vld [vmem:[#allocation27_spill] sm:$0xff] }
 0x3c9   : > { %3401 = vst [vmem:[#allocation3 + $0x600] sm:$0xff] %v3372_v9  ;;  %3458 = vst [vmem:[#allocation3 + $0x5c8] sm:$0xff] %v3320_v54  ;;  %v8337_v34 = vsel %vm464_vm0, %v3371_v11, %v3373_v35  ;;  %v3430_v44 = vsel %vm3271_vm1, %v3319_v19, %v3429_v52  ;;  %v3122_v0 = vmul.f32 %v3079_v21, %v2912_v28 }
 0x3ca   : > { %3491 = vst [vmem:[#allocation3 + $0x540] sm:$0xff] %v3372_v9  ;;  %3546 = vst [vmem:[#allocation3 + $0x508] sm:$0xff] %v3320_v54  ;;  %v2805_v50 = vadd.f32 %v8859_v57, %v2566_v30  ;;  %v2570_v7 = vpop.f32.mrb[92].mxu0  ;;  %v3089_v57 = vpop.permute.xlu0 %3088 }
 0x3cb   : > { %3426 = vst [vmem:[#allocation3 + $0x650] sm:$0xff] %v3121_v32  ;;  %3516 = vst [vmem:[#allocation3 + $0x590] sm:$0xff] %v3121_v32  ;;  %v3375_v55 = vrot.slane %v3122_v0, 7  ;;  %v3431_v54 = vrot.slane %v3122_v0, 1  ;;  %v2571_v9 = vadd.f32 %v2570_v7, %v8081_v12  ;;  %v2572_v11 = vpop.f32.mrb[93].mxu0 }
 0x3cc   : > { %3459 = vst [vmem:[#allocation3 + $0x610] sm:$0xff] %v3430_v44  ;;  %3492 = vst [vmem:[#allocation3 + $0x588] sm:$0xff] %v8337_v34  ;;  %v2883_v63 = vadd.f32 %v8107_v38, %v2805_v50 }
 0x3cd   : > { %3547 = vst [vmem:[#allocation3 + $0x550] sm:$0xff] %v3430_v44  ;;  %3427 = vst [vmem:[#allocation3 + $0x698] sm:$0xff] %v3122_v0  ;;  %v8345_v19 = vsel %vm464_vm0, %v3373_v35, %v3375_v55  ;;  %v3432_v32 = vsel %vm3271_vm1, %v3429_v52, %v3431_v54  ;;  %v2810_v21 = vadd.f32 %v8860_v62, %v2571_v9 }
 0x3ce   : > { %3517 = vst [vmem:[#allocation3 + $0x5d8] sm:$0xff] %v3122_v0  ;;  %v2913_v30 = vmax.f32 %v2883_v63, 0.0  ;;  %3460 = vst [vmem:[#allocation3 + $0x658] sm:$0xff] %v3432_v32  ;;  %v2575_v47 = vpop.f32.mrb[94].mxu0 }
 0x3cf   : > { %3493 = vst [vmem:[#allocation3 + $0x5d0] sm:$0xff] %v8345_v19  ;;  %3548 = vst [vmem:[#allocation3 + $0x598] sm:$0xff] %v3432_v32  ;;  %v2884_v28 = vadd.f32 %v8107_v38, %v2810_v21  ;;  %v2576_v12 = vadd.f32 %v2575_v47, %v8084_v51  ;;  %v2577_v0 = vpop.f32.mrb[95].mxu0 }
 0x3d0   : > { %v3123_v44 = vmul.f32 %v3084_v27, %v2913_v30  ;;  %v3094_v27 = vpop.permute.xlu1 %3093 }
 0x3d1   : > { %v2815_v52 = vadd.f32 %v8077_v41, %v2576_v12  ;;  %v2914_v7 = vmax.f32 %v2884_v28, 0.0 }
 0x3d2   : > { %v3433_v50 = vrot.slane %v3123_v44, 1  ;;  %v3464_v35 = vrot.slane %v3123_v44, 7  ;;  %3518 = vst [vmem:[#allocation3 + $0x620] sm:$0xff] %v3123_v44  ;;  %v2645_v9 = vpop.f32.mrb[96].mxu0 }
 0x3d3   : > { %v2885_v32 = vadd.f32 %v8107_v38, %v2815_v52  ;;  %v3124_v62 = vmul.f32 %v3089_v57, %v2914_v7  ;;  %v2647_v21 = vpop.f32.mrb[97].mxu0  ;;  %v2646_v51 = vadd.f32 %v2645_v9, %v8088_v24 }
 0x3d4   : > { %v3434_v63 = vsel %vm3271_vm1, %v3431_v54, %v3433_v50  ;;  %v3465_v11 = vsel %vm464_vm0, %v3375_v55, %v3464_v35 }
 0x3d5   : > { %3461 = vst [vmem:[#allocation3 + $0x6a0] sm:$0xff] %v3434_v63  ;;  %3494 = vst [vmem:[#allocation3 + $0x618] sm:$0xff] %v3465_v11  ;;  %v3466_v30 = vrot.slane %v3124_v62, 7  ;;  %v3522_v47 = vrot.slane %v3124_v62, 1  ;;  %v2915_v41 = vmax.f32 %v2885_v32, 0.0  ;;  %v2856_v28 = vadd.f32 %v8107_v38, %v2646_v51  ;;  %v8861_v51 = vld [vmem:[#allocation31_spill] sm:$0xff] }
 0x3d6   : > { %3549 = vst [vmem:[#allocation3 + $0x5e0] sm:$0xff] %v3434_v63  ;;  %3519 = vst [vmem:[#allocation3 + $0x668] sm:$0xff] %v3124_v62  ;;  %v2650_v44 = vpop.f32.mrb[98].mxu0 }
 0x3d7   : > { %v3467_v54 = vsel %vm464_vm0, %v3464_v35, %v3466_v30  ;;  %v3523_v55 = vsel %vm3271_vm1, %v3433_v50, %v3522_v47  ;;  %v3125_v12 = vmul.f32 %v3094_v27, %v2915_v41  ;;  %v2651_v0 = vadd.f32 %v2650_v44, %v8092_v6  ;;  %v2652_v57 = vpop.f32.mrb[99].mxu0 }
 0x3d8   : > { %3495 = vst [vmem:[#allocation3 + $0x660] sm:$0xff] %v3467_v54  ;;  %3550 = vst [vmem:[#allocation3 + $0x628] sm:$0xff] %v3523_v55  ;;  %v2886_v52 = vmax.f32 %v2856_v28, 0.0 }
 0x3d9   : > { %v3468_v24 = vrot.slane %v3125_v12, 7  ;;  %3520 = vst [vmem:[#allocation3 + $0x6b0] sm:$0xff] %v3125_v12  ;;  %v3524_v7 = vrot.slane %v3125_v12, 1  ;;  %v2857_v9 = vadd.f32 %v8107_v38, %v2651_v0  ;;  %v3802_v0 = vld [vmem:[#allocation10 + $0x108] sm:$0xff] }
 0x3da   : > { %v3096_v63 = vmul.f32 %v8098_v3, %v2886_v52  ;;  %v2655_v11 = vpop.f32.mrb[100].mxu0 }
 0x3db   : > { %v3469_v32 = vsel %vm464_vm0, %v3466_v30, %v3468_v24  ;;  %v3525_v35 = vsel %vm3271_vm1, %v3522_v47, %v3524_v7  ;;  %3552 = vst [vmem:[#allocation3 + $0x6b8] sm:$0x7f] %v3524_v7  ;;  %v2887_v50 = vmax.f32 %v2857_v9, 0.0  ;;  %v2656_v6 = vadd.f32 %v2655_v11, %v8096_v37  ;;  %v2657_v62 = vpop.f32.mrb[101].mxu0  ;;  %v6303_v47 = vld [vmem:[#allocation9] ss:$0 sm:$0xff] }
 0x3dc   : > { %v3151_v21 = vrot.slane %v3096_v63, 7  ;;  %3496 = vst [vmem:[#allocation3 + $0x6a8] sm:$0xff] %v3469_v32  ;;  %3551 = vst [vmem:[#allocation3 + $0x670] sm:$0xff] %v3525_v35  ;;  %3984 = vmatprep.mubr.f32.mxu1 %v3096_v63  ;;  %v3272_v3 = vrot.slane %v3096_v63, 1  ;;  %v3801_v37 = vld [vmem:[#allocation10 + $0x100] sm:$0xff] }
 0x3dd   : > { %v3097_v27 = vmul.f32 %v8861_v51, %v2887_v50  ;;  %v2858_v41 = vadd.f32 %v8107_v38, %v2656_v6  ;;  %v8862_v24 = vld [vmem:[#allocation29_spill] sm:$0xff]  ;;  %v5551_v63 = vpack.c.bf16 %v3802_v0, %v3801_v37  ;;  %v3803_v51 = vld [vmem:[#allocation10 + $0x110] sm:$0xff] }
 0x3de   : > { %3222 = vst [vmem:[#allocation3] sm:$0xfe] %v3151_v21  ;;  %v2660_v28 = vpop.f32.mrb[6].mxu0  ;;  %v8863_v35 = vld [vmem:[#allocation33_spill] sm:$0xff] }
 0x3df   : > { %v3152_v44 = vrot.slane %v3097_v27, 7  ;;  %v3273_v30 = vrot.slane %v3097_v27, 1  ;;  %v2888_v54 = vmax.f32 %v2858_v41, 0.0  ;;  %v2859_v55 = vadd.f32 %v6303_v47, %v2660_v28  ;;  %v8368_v12 = vpop.f32.mrb[7].mxu0  ;;  %v3804_v41 = vld [vmem:[#allocation10 + $0x118] sm:$0xff] }
 0x3e1   : > { %v3153_v57 = vsel %vm464_vm0, %v3151_v21, %v3152_v44  ;;  %v8372_v52 = vsel %vm3271_vm1, %v3272_v3, %v3273_v30  ;;  %v3098_v7 = vmul.f32 %v8862_v24, %v2888_v54  ;;  %v2889_v38 = vmax.f32 %v2859_v55, 0.0 }
 0x3e2   : > { %v2666_v9 = vpop.f32.mrb[8].mxu0  ;;  %v5554_v24 = vpack.c.bf16 %v3804_v41, %v3803_v51  ;;  %v8866_v51 = vrot.slane %v8121_v13, 1 }
 0x3e3   : > { %v3154_v11 = vrot.slane %v3098_v7, 7  ;;  %v3275_v32 = vrot.slane %v3098_v7, 1  ;;  %v8376_v50 = vmul.f32 %v8863_v35, %v2889_v38  ;;  %v2860_v6 = vadd.f32 %v6303_v47, %v2666_v9  ;;  %v8378_v62 = vpop.f32.mrb[9].mxu0  ;;  %v3805_v38 = vld [vmem:[#allocation10 + $0x120] sm:$0xff]  ;;  %v3806_v9 = vld [vmem:[#allocation10 + $0x128] sm:$0xff] }
 0x3e5   : > { %v3155_v21 = vsel %vm464_vm0, %v3152_v44, %v3154_v11  ;;  %v8382_v3 = vsel %vm3271_vm1, %v3273_v30, %v3275_v32  ;;  %v3156_v28 = vrot.slane %v8376_v50, 7  ;;  %v3277_v54 = vrot.slane %v8376_v50, 1  ;;  %v3553_v55 = vld [vmem:[#allocation3] sm:$0xff] }
 0x3e6   : > { %v2890_v37 = vmax.f32 %v2860_v6, 0.0  ;;  %3985 = vmatmul.mubr.f32.vlgmr.msra.gmra.mrb[50].mxu1 %v3553_v55  ;;  %v8864_v30 = vmov 0.0|0.0   ;;  %v3809_v55 = vld [vmem:[#allocation10 + $0x140] sm:$0xff] }
 0x3e7   : > { %v8387_v0 = vsel %vm464_vm0, %v3154_v11, %v3156_v28  ;;  %v8390_v47 = vsel %vm3271_vm1, %v3275_v32, %v3277_v54  ;;  %3989 = vmatprep.mubr.f32.mxu1 %v3097_v27  ;;  %5552 = vmatpush1.bf16.msra.mxu1 %v5551_v63  ;;  %v5557_v11 = vpack.c.bf16 %v3806_v9, %v3805_v38  ;;  %v8865_v27 = vrot.slane %v8121_v13, 7  ;;  %v3813_v9 = vld [vmem:[#allocation10 + $0x160] sm:$0xff] }
 0x3e8   : > { %v8393_v44 = vmul.f32 %v8113_v40, %v2890_v37  ;;  %5553 = vmatprep.subr.bf16.mxu1 %v8864_v30  ;;  %v3810_v37 = vld [vmem:[#allocation10 + $0x148] sm:$0xff] }
 0x3e9   : > { %v5563_v13 = vpack.c.bf16 %v3810_v37, %v3809_v55  ;;  %v3817_v55 = vld [vmem:[#allocation10 + $0x180] sm:$0xff]  ;;  %v3818_v37 = vld [vmem:[#allocation10 + $0x188] sm:$0xff] }
 0x3ea   : > { %v3158_v35 = vrot.slane %v8393_v44, 7  ;;  %v3279_v6 = vrot.slane %v8393_v44, 1  ;;  %3990 = vmatmul.mubr.f32.gmra.mrb[52].mxu1 %v3153_v57  ;;  %v3807_v57 = vld [vmem:[#allocation10 + $0x130] sm:$0xff] }
 0x3eb   : > { %3994 = vmatprep.mubr.f32.mxu1 %v3098_v7  ;;  %5555 = vmatpush1.bf16.msra.mxu1 %v5554_v24  ;;  %v3808_v7 = vld [vmem:[#allocation10 + $0x138] sm:$0xff] }
 0x3ec   : > { %v8399_v32 = vsel %vm464_vm0, %v3156_v28, %v3158_v35  ;;  %v8404_v40 = vsel %vm464_vm0, %v3158_v35, %v8865_v27  ;;  %v8407_v63 = vsel %vm3271_vm1, %v3277_v54, %v3279_v6  ;;  %v8412_v41 = vsel %vm3271_vm1, %v3279_v6, %v8866_v51  ;;  %5556 = vmatprep.subr.bf16.mxu1 %v8864_v30  ;;  %v3811_v54 = vld [vmem:[#allocation10 + $0x150] sm:$0xff]  ;;  %v3812_v24 = vld [vmem:[#allocation10 + $0x158] sm:$0xff]  ;;  %v3814_v35 = vld [vmem:[#allocation10 + $0x168] sm:$0xff] }
 0x3ed   : > { %v5560_v28 = vpack.c.bf16 %v3808_v7, %v3807_v57  ;;  %v5566_v38 = vpack.c.bf16 %v3812_v24, %v3811_v54  ;;  %v3608_v6 = vld [vmem:[#allocation3 + $0x1b8] sm:$0xff]  ;;  %v3607_v57 = vld [vmem:[#allocation3 + $0x1b0] sm:$0xff]  ;;  %v3617_v7 = vld [vmem:[#allocation3 + $0x200] sm:$0xff]  ;;  %v5575_v24 = vpack.c.bf16 %v3818_v37, %v3817_v55 }
 0x3ee   : > { %3995 = vmatmul.mubr.f32.gmra.mrb[54].mxu1 %v3155_v21  ;;  %v3599_v21 = vld [vmem:[#allocation3 + $0x170] sm:$0xff]  ;;  %v3816_v51 = vld [vmem:[#allocation10 + $0x178] sm:$0xff]  ;;  %v3626_v54 = vld [vmem:[#allocation3 + $0x248] sm:$0xff] }
 0x3ef   : > { %3999 = vmatprep.mubr.f32.mxu1 %v8376_v50  ;;  %5558 = vmatpush1.bf16.msra.mxu1 %v5557_v11  ;;  %v5569_v11 = vpack.c.bf16 %v3814_v35, %v3813_v9  ;;  %v3815_v27 = vld [vmem:[#allocation10 + $0x170] sm:$0xff]  ;;  %v3625_v9 = vld [vmem:[#allocation3 + $0x240] sm:$0xff] }
 0x3f0   : > { %5559 = vmatprep.subr.bf16.mxu1 %v8864_v30  ;;  %v3635_v35 = vld [vmem:[#allocation3 + $0x290] sm:$0xff]  ;;  %v3824_v55 = vld [vmem:[#allocation10 + $0x1b8] sm:$0xff] }
 0x3f1   : > { %v3643_v37 = vld [vmem:[#allocation3 + $0x2d0] sm:$0xff] }
 0x3f2   : > { %4000 = vmatmul.mubr.f32.gmra.mrb[56].mxu1 %v8387_v0 }
 0x3f3   : > { %4004 = vmatprep.mubr.f32.mxu1 %v8393_v44  ;;  %5561 = vmatpush1.bf16.msra.mxu1 %v5560_v28  ;;  %v5572_v28 = vpack.c.bf16 %v3816_v51, %v3815_v27  ;;  %v3822_v27 = vld [vmem:[#allocation10 + $0x1a8] sm:$0xff] }
 0x3f4   : > { %5562 = vmatprep.subr.bf16.mxu1 %v8864_v30  ;;  %v3634_v51 = vld [vmem:[#allocation3 + $0x288] sm:$0xff] }
 0x3f6   : > { %4005 = vmatmul.mubr.f32.gmra.mrb[58].mxu1 %v8399_v32 }
 0x3f7   : > { %4009 = vmatprep.mubr.f32.mxu1 %v3599_v21  ;;  %5564 = vmatpush1.bf16.msra.mxu1 %v5563_v13  ;;  %v3616_v13 = vld [vmem:[#allocation3 + $0x1f8] sm:$0xff] }
 0x3f8   : > { %5565 = vmatprep.subr.bf16.mxu1 %v8864_v30  ;;  %v3819_v21 = vld [vmem:[#allocation10 + $0x190] sm:$0xff] }
 0x3fa   : > { %4010 = vmatmul.mubr.f32.gmra.mrb[60].mxu1 %v8404_v40 }
 0x3fb   : > { %4014 = vmatprep.mubr.f32.mxu1 %v3608_v6  ;;  %5567 = vmatpush1.bf16.msra.mxu1 %v5566_v38  ;;  %v3820_v38 = vld [vmem:[#allocation10 + $0x198] sm:$0xff] }
 0x3fc   : > { %5568 = vmatprep.subr.bf16.mxu1 %v8864_v30  ;;  %v5578_v6 = vpack.c.bf16 %v3820_v38, %v3819_v21  ;;  %v3826_v21 = vld [vmem:[#allocation10 + $0x1c8] sm:$0xff]  ;;  %v3652_v38 = vld [vmem:[#allocation3 + $0x318] sm:$0xff] }
 0x3fe   : > { %4015 = vmatmul.mubr.f32.gmra.mrb[62].mxu1 %v3607_v57  ;;  %v3644_v57 = vld [vmem:[#allocation3 + $0x2d8] sm:$0xff] }
 0x3ff   : > { %4019 = vmatprep.mubr.f32.mxu1 %v3617_v7  ;;  %5570 = vmatpush1.bf16.msra.mxu1 %v5569_v11  ;;  %v3821_v11 = vld [vmem:[#allocation10 + $0x1a0] sm:$0xff] }
 0x400   : > { %5571 = vmatprep.subr.bf16.mxu1 %v8864_v30  ;;  %v5581_v7 = vpack.c.bf16 %v3822_v27, %v3821_v11  ;;  %v3828_v11 = vld [vmem:[#allocation10 + $0x1d8] sm:$0xff] }
 0x401   : > { %v3661_v27 = vld [vmem:[#allocation3 + $0x360] sm:$0xff] }
 0x402   : > { %4020 = vmatmul.mubr.f32.gmra.mrb[64].mxu1 %v3616_v13  ;;  %v3653_v13 = vld [vmem:[#allocation3 + $0x320] sm:$0xff] }
 0x403   : > { %4024 = vmatprep.mubr.f32.mxu1 %v3626_v54  ;;  %5573 = vmatpush1.bf16.msra.mxu1 %v5572_v28  ;;  %v3823_v28 = vld [vmem:[#allocation10 + $0x1b0] sm:$0xff] }
 0x404   : > { %5574 = vmatprep.subr.bf16.mxu1 %v8864_v30  ;;  %v5584_v54 = vpack.c.bf16 %v3824_v55, %v3823_v28  ;;  %v3830_v28 = vld [vmem:[#allocation10 + $0x1e8] sm:$0xff] }
 0x405   : > { %v3670_v55 = vld [vmem:[#allocation3 + $0x3a8] sm:$0xff] }
 0x406   : > { %4025 = vmatmul.mubr.f32.gmra.mrb[66].mxu1 %v3625_v9  ;;  %v3662_v9 = vld [vmem:[#allocation3 + $0x368] sm:$0xff] }
 0x407   : > { %4029 = vmatprep.mubr.f32.mxu1 %v3635_v35  ;;  %5576 = vmatpush1.bf16.msra.mxu1 %v5575_v24  ;;  %v3825_v24 = vld [vmem:[#allocation10 + $0x1c0] sm:$0xff] }
 0x408   : > { %5577 = vmatprep.subr.bf16.mxu1 %v8864_v30  ;;  %v5587_v35 = vpack.c.bf16 %v3826_v21, %v3825_v24  ;;  %v3832_v24 = vld [vmem:[#allocation10 + $0x1f8] sm:$0xff]  ;;  %v3679_v21 = vld [vmem:[#allocation3 + $0x3f0] sm:$0xff] }
 0x40a   : > { %4030 = vmatmul.mubr.f32.gmra.mrb[68].mxu1 %v3634_v51  ;;  %v3671_v51 = vld [vmem:[#allocation3 + $0x3b0] sm:$0xff] }
 0x40b   : > { %4034 = vmatprep.mubr.f32.mxu1 %v3644_v57  ;;  %5579 = vmatpush1.bf16.msra.mxu1 %v5578_v6  ;;  %v3827_v6 = vld [vmem:[#allocation10 + $0x1d0] sm:$0xff] }
 0x40c   : > { %5580 = vmatprep.subr.bf16.mxu1 %v8864_v30  ;;  %v5590_v57 = vpack.c.bf16 %v3828_v11, %v3827_v6  ;;  %v3698_v6 = vld [vmem:[#allocation3 + $0x488] sm:$0xff]  ;;  %v3697_v11 = vld [vmem:[#allocation3 + $0x480] sm:$0xff] }
 0x40e   : > { %4035 = vmatmul.mubr.f32.gmra.mrb[70].mxu1 %v3643_v37  ;;  %v3680_v37 = vld [vmem:[#allocation3 + $0x3f8] sm:$0xff] }
 0x40f   : > { %4039 = vmatprep.mubr.f32.mxu1 %v3653_v13  ;;  %5582 = vmatpush1.bf16.msra.mxu1 %v5581_v7  ;;  %v3829_v7 = vld [vmem:[#allocation10 + $0x1e0] sm:$0xff] }
 0x410   : > { %5583 = vmatprep.subr.bf16.mxu1 %v8864_v30  ;;  %v5593_v13 = vpack.c.bf16 %v3830_v28, %v3829_v7  ;;  %v3845_v7 = vld [vmem:[#allocation10 + $0x260] sm:$0xff]  ;;  %v3846_v28 = vld [vmem:[#allocation10 + $0x268] sm:$0xff] }
 0x412   : > { %4040 = vmatmul.mubr.f32.gmra.mrb[72].mxu1 %v3652_v38  ;;  %v3689_v38 = vld [vmem:[#allocation3 + $0x440] sm:$0xff] }
 0x413   : > { %4044 = vmatprep.mubr.f32.mxu1 %v3662_v9  ;;  %5585 = vmatpush1.bf16.msra.mxu1 %v5584_v54  ;;  %v3831_v54 = vld [vmem:[#allocation10 + $0x1f0] sm:$0xff] }
 0x414   : > { %5586 = vmatprep.subr.bf16.mxu1 %v8864_v30  ;;  %v5596_v9 = vpack.c.bf16 %v3832_v24, %v3831_v54  ;;  %v3847_v54 = vld [vmem:[#allocation10 + $0x270] sm:$0xff]  ;;  %v3848_v24 = vld [vmem:[#allocation10 + $0x278] sm:$0xff] }
 0x416   : > { %4045 = vmatmul.mubr.f32.gmra.mrb[74].mxu1 %v3661_v27  ;;  %v3706_v27 = vld [vmem:[#allocation3 + $0x4c8] sm:$0xff] }
 0x417   : > { %4049 = vmatprep.mubr.f32.mxu1 %v3671_v51  ;;  %5588 = vmatpush1.bf16.msra.mxu1 %v5587_v35  ;;  %v3688_v35 = vld [vmem:[#allocation3 + $0x438] sm:$0xff] }
 0x418   : > { %5589 = vmatprep.subr.bf16.mxu1 %v8864_v30  ;;  %v3844_v51 = vld [vmem:[#allocation10 + $0x258] sm:$0xff] }
 0x41a   : > { %4050 = vmatmul.mubr.f32.gmra.mrb[76].mxu1 %v3670_v55  ;;  %v3600_v55 = vld [vmem:[#allocation3 + $0x178] sm:$0xff] }
 0x41b   : > { %4054 = vmatprep.mubr.f32.mxu1 %v3680_v37  ;;  %5591 = vmatpush1.bf16.msra.mxu1 %v5590_v57  ;;  %v3610_v37 = vld [vmem:[#allocation3 + $0x1c8] sm:$0xff] }
 0x41c   : > { %5592 = vmatprep.subr.bf16.mxu1 %v8864_v30 }
 0x41e   : > { %4055 = vmatmul.mubr.f32.gmra.mrb[78].mxu1 %v3679_v21  ;;  %v3609_v21 = vld [vmem:[#allocation3 + $0x1c0] sm:$0xff] }
 0x41f   : > { %4059 = vmatprep.mubr.f32.mxu1 %v3689_v38  ;;  %5594 = vmatpush1.bf16.msra.mxu1 %v5593_v13  ;;  %v5617_v13 = vpack.c.bf16 %v3846_v28, %v3845_v7  ;;  %v3619_v38 = vld [vmem:[#allocation3 + $0x210] sm:$0xff]  ;;  %v3860_v28 = vld [vmem:[#allocation10 + $0x2d8] sm:$0xff] }
 0x420   : > { %5595 = vmatprep.subr.bf16.mxu1 %v8864_v30  ;;  %v3859_v7 = vld [vmem:[#allocation10 + $0x2d0] sm:$0xff] }
 0x422   : > { %4060 = vmatmul.mubr.f32.gmra.mrb[80].mxu1 %v3688_v35  ;;  %v3849_v35 = vld [vmem:[#allocation10 + $0x280] sm:$0xff] }
 0x423   : > { %4064 = vmatprep.mubr.f32.mxu1 %v3698_v6  ;;  %5597 = vmatpush1.bf16.msra.mxu1 %v5596_v9  ;;  %v5620_v9 = vpack.c.bf16 %v3848_v24, %v3847_v54  ;;  %v3850_v6 = vld [vmem:[#allocation10 + $0x288] sm:$0xff]  ;;  %v3861_v54 = vld [vmem:[#allocation10 + $0x2e0] sm:$0xff] }
 0x424   : > { %5598 = vmatprep.subr.bf16.mxu1 %v8864_v30  ;;  %v3862_v24 = vld [vmem:[#allocation10 + $0x2e8] sm:$0xff] }
 0x426   : > { %4065 = vmatmul.mubr.f32.gmra.mrb[82].mxu1 %v3697_v11  ;;  %v3618_v11 = vld [vmem:[#allocation3 + $0x208] sm:$0xff] }
 0x427   : > { %4069 = vmatprep.mubr.f32.mxu1 %v8213_v42  ;;  %v3833_v42 = vld [vmem:[#allocation10 + $0x200] sm:$0xff] }
 0x42a   : > { %4070 = vmatmul.mubr.f32.gmra.mrb[84].mxu1 %v3706_v27  ;;  %v3628_v27 = vld [vmem:[#allocation3 + $0x258] sm:$0xff] }
 0x42b   : > { %4074 = vmatprep.mubr.f32.mxu1 %v8226_v26  ;;  %v3834_v26 = vld [vmem:[#allocation10 + $0x208] sm:$0xff] }
 0x42e   : > { %4075 = vmatmul.mubr.f32.gmra.mrb[86].mxu1 %v8237_v49  ;;  %v5599_v49 = vpack.c.bf16 %v3834_v26, %v3833_v42  ;;  %v5623_v42 = vpack.c.bf16 %v3850_v6, %v3849_v35  ;;  %v3851_v26 = vld [vmem:[#allocation10 + $0x290] sm:$0xff]  ;;  %v3864_v6 = vld [vmem:[#allocation10 + $0x2f8] sm:$0xff] }
 0x42f   : > { %4079 = vmatprep.mubr.f32.mxu1 %v8241_v53  ;;  %v3835_v53 = vld [vmem:[#allocation10 + $0x210] sm:$0xff] }
 0x430   : > { %v3863_v35 = vld [vmem:[#allocation10 + $0x2f0] sm:$0xff] }
 0x432   : > { %4080 = vmatmul.mubr.f32.gmra.mrb[88].mxu1 %v8254_v59  ;;  %v3836_v59 = vld [vmem:[#allocation10 + $0x218] sm:$0xff] }
 0x433   : > { %4084 = vmatprep.mubr.f32.mxu1 %v8258_v25  ;;  %v5602_v25 = vpack.c.bf16 %v3836_v59, %v3835_v53  ;;  %v3627_v53 = vld [vmem:[#allocation3 + $0x250] sm:$0xff]  ;;  %v3637_v59 = vld [vmem:[#allocation3 + $0x2a0] sm:$0xff] }
 0x436   : > { %4085 = vmatmul.mubr.f32.gmra.mrb[90].mxu1 %v8271_v29  ;;  %v3837_v29 = vld [vmem:[#allocation10 + $0x220] sm:$0xff] }
 0x437   : > { %4089 = vmatprep.mubr.f32.mxu1 %v8275_v61  ;;  %v3838_v61 = vld [vmem:[#allocation10 + $0x228] sm:$0xff] }
 0x43a   : > { %4090 = vmatmul.mubr.f32.gmra.mrb[92].mxu1 %v8288_v18  ;;  %v5605_v18 = vpack.c.bf16 %v3838_v61, %v3837_v29  ;;  %v3853_v29 = vld [vmem:[#allocation10 + $0x2a0] sm:$0xff]  ;;  %v3854_v61 = vld [vmem:[#allocation10 + $0x2a8] sm:$0xff] }
 0x43b   : > { %4094 = vmatprep.mubr.f32.mxu1 %v8292_v36  ;;  %v3839_v36 = vld [vmem:[#allocation10 + $0x230] sm:$0xff] }
 0x43e   : > { %4095 = vmatmul.mubr.f32.gmra.mrb[94].mxu1 %v8305_v16  ;;  %v3840_v16 = vld [vmem:[#allocation10 + $0x238] sm:$0xff] }
 0x43f   : > { %4099 = vmatprep.mubr.f32.mxu1 %v8309_v58  ;;  %v3583_v58 = vld [vmem:[#allocation3 + $0xf0] sm:$0xff] }
 0x442   : > { %4100 = vmatmul.mubr.f32.gmra.mrb[96].mxu1 %v8322_v56  ;;  %v5608_v56 = vpack.c.bf16 %v3840_v16, %v3839_v36  ;;  %v3646_v36 = vld [vmem:[#allocation3 + $0x2e8] sm:$0xff]  ;;  %v5629_v16 = vpack.c.bf16 %v3854_v61, %v3853_v29  ;;  %v3717_v61 = vld [vmem:[#allocation3 + $0x520] sm:$0xff] }
 0x443   : > { %4169 = vmatprep.mubr.f32.mxu1 %v8387_v0  ;;  %v3842_v0 = vld [vmem:[#allocation10 + $0x248] sm:$0xff] }
 0x444   : > { %v3718_v29 = vld [vmem:[#allocation3 + $0x528] sm:$0xff] }
 0x446   : > { %4170 = vmatmul.mubr.f32.vlgmr.msra.gmra.mrb[50].mxu1 %v8372_v52  ;;  %v3841_v52 = vld [vmem:[#allocation10 + $0x240] sm:$0xff] }
 0x447   : > { %4174 = vmatprep.mubr.f32.mxu1 %v8399_v32  ;;  %5600 = vmatpush1.bf16.msra.mxu1 %v5599_v49  ;;  %v5611_v32 = vpack.c.bf16 %v3842_v0, %v3841_v52  ;;  %v3852_v49 = vld [vmem:[#allocation10 + $0x298] sm:$0xff]  ;;  %v3655_v0 = vld [vmem:[#allocation3 + $0x330] sm:$0xff] }
 0x448   : > { %5601 = vmatprep.subr.bf16.mxu1 %v8864_v30  ;;  %v3645_v52 = vld [vmem:[#allocation3 + $0x2e0] sm:$0xff] }
 0x44a   : > { %4175 = vmatmul.mubr.f32.gmra.mrb[52].mxu1 %v8382_v3  ;;  %v3592_v3 = vld [vmem:[#allocation3 + $0x138] sm:$0xff] }
 0x44b   : > { %4179 = vmatprep.mubr.f32.mxu1 %v8404_v40  ;;  %5603 = vmatpush1.bf16.msra.mxu1 %v5602_v25  ;;  %v3843_v40 = vld [vmem:[#allocation10 + $0x250] sm:$0xff]  ;;  %v5626_v25 = vpack.c.bf16 %v3852_v49, %v3851_v26  ;;  %v3690_v26 = vld [vmem:[#allocation3 + $0x448] sm:$0xff] }
 0x44c   : > { %5604 = vmatprep.subr.bf16.mxu1 %v8864_v30  ;;  %v5614_v57 = vpack.c.bf16 %v3844_v51, %v3843_v40  ;;  %v3858_v40 = vld [vmem:[#allocation10 + $0x2c8] sm:$0xff]  ;;  %v3700_v49 = vld [vmem:[#allocation3 + $0x498] sm:$0xff] }
 0x44d   : > { %v3654_v51 = vld [vmem:[#allocation3 + $0x328] sm:$0xff] }
 0x44e   : > { %4180 = vmatmul.mubr.f32.gmra.mrb[54].mxu1 %v8390_v47  ;;  %v3601_v47 = vld [vmem:[#allocation3 + $0x180] sm:$0xff] }
 0x44f   : > { %4184 = vmatprep.mubr.f32.mxu1 %v3583_v58  ;;  %5606 = vmatpush1.bf16.msra.mxu1 %v5605_v18  ;;  %v3636_v18 = vld [vmem:[#allocation3 + $0x298] sm:$0xff] }
 0x450   : > { %5607 = vmatprep.subr.bf16.mxu1 %v8864_v30  ;;  %v3855_v58 = vld [vmem:[#allocation10 + $0x2b0] sm:$0xff] }
 0x452   : > { %4185 = vmatmul.mubr.f32.gmra.mrb[56].mxu1 %v8407_v63 }
 0x453   : > { %4189 = vmatprep.mubr.f32.mxu1 %v3592_v3  ;;  %5609 = vmatpush1.bf16.msra.mxu1 %v5608_v56  ;;  %v3856_v56 = vld [vmem:[#allocation10 + $0x2b8] sm:$0xff] }
 0x454   : > { %5610 = vmatprep.subr.bf16.mxu1 %v8864_v30  ;;  %v5632_v3 = vpack.c.bf16 %v3856_v56, %v3855_v58  ;;  %v3735_v58 = vld [vmem:[#allocation3 + $0x5b0] sm:$0xff]  ;;  %v3745_v56 = vld [vmem:[#allocation3 + $0x600] sm:$0xff] }
 0x456   : > { %4190 = vmatmul.mubr.f32.gmra.mrb[58].mxu1 %v8412_v41 }
 0x457   : > { %4194 = vmatprep.mubr.f32.mxu1 %v3601_v47  ;;  %5612 = vmatpush1.bf16.msra.mxu1 %v5611_v32  ;;  %v3857_v32 = vld [vmem:[#allocation10 + $0x2c0] sm:$0xff]  ;;  %v3664_v47 = vld [vmem:[#allocation3 + $0x378] sm:$0xff] }
 0x458   : > { %5613 = vmatprep.subr.bf16.mxu1 %v8864_v30 }
 0x45a   : > { %4195 = vmatmul.mubr.f32.gmra.mrb[60].mxu1 %v3600_v55  ;;  %v3663_v55 = vld [vmem:[#allocation3 + $0x370] sm:$0xff] }
 0x45b   : > { %4199 = vmatprep.mubr.f32.mxu1 %v3610_v37  ;;  %5615 = vmatpush1.bf16.msra.mxu1 %v5614_v57  ;;  %v5635_v57 = vpack.c.bf16 %v3858_v40, %v3857_v32  ;;  %v3673_v37 = vld [vmem:[#allocation3 + $0x3c0] sm:$0xff]  ;;  %v3866_v32 = vld [vmem:[#allocation10 + $0x308] sm:$0xff] }
 0x45c   : > { %5616 = vmatprep.subr.bf16.mxu1 %v8864_v30  ;;  %v3762_v40 = vld [vmem:[#allocation3 + $0x688] sm:$0xff] }
 0x45e   : > { %4200 = vmatmul.mubr.f32.gmra.mrb[62].mxu1 %v3609_v21  ;;  %v3672_v21 = vld [vmem:[#allocation3 + $0x3b8] sm:$0xff] }
 0x45f   : > { %4204 = vmatprep.mubr.f32.mxu1 %v3619_v38  ;;  %5618 = vmatpush1.bf16.msra.mxu1 %v5617_v13  ;;  %v5638_v13 = vpack.c.bf16 %v3860_v28, %v3859_v7  ;;  %v3682_v38 = vld [vmem:[#allocation3 + $0x408] sm:$0xff] }
 0x460   : > { %5619 = vmatprep.subr.bf16.mxu1 %v8864_v30  ;;  %v3870_v28 = vld [vmem:[#allocation10 + $0x328] sm:$0xff] }
 0x462   : > { %4205 = vmatmul.mubr.f32.gmra.mrb[64].mxu1 %v3618_v11  ;;  %v3681_v11 = vld [vmem:[#allocation3 + $0x400] sm:$0xff] }
 0x463   : > { %4209 = vmatprep.mubr.f32.mxu1 %v3628_v27  ;;  %5621 = vmatpush1.bf16.msra.mxu1 %v5620_v9  ;;  %v5641_v9 = vpack.c.bf16 %v3862_v24, %v3861_v54  ;;  %v3691_v27 = vld [vmem:[#allocation3 + $0x450] sm:$0xff]  ;;  %v3873_v54 = vld [vmem:[#allocation10 + $0x340] sm:$0xff] }
 0x464   : > { %5622 = vmatprep.subr.bf16.mxu1 %v8864_v30  ;;  %v3874_v24 = vld [vmem:[#allocation10 + $0x348] sm:$0xff] }
 0x466   : > { %4210 = vmatmul.mubr.f32.gmra.mrb[66].mxu1 %v3627_v53  ;;  %v3699_v53 = vld [vmem:[#allocation3 + $0x490] sm:$0xff] }
 0x467   : > { %4214 = vmatprep.mubr.f32.mxu1 %v3637_v59  ;;  %5624 = vmatpush1.bf16.msra.mxu1 %v5623_v42  ;;  %v5644_v42 = vpack.c.bf16 %v3864_v6, %v3863_v35  ;;  %v3709_v59 = vld [vmem:[#allocation3 + $0x4e0] sm:$0xff] }
 0x468   : > { %5625 = vmatprep.subr.bf16.mxu1 %v8864_v30  ;;  %v3876_v35 = vld [vmem:[#allocation10 + $0x358] sm:$0xff] }
 0x469   : > { %v3593_v6 = vld [vmem:[#allocation3 + $0x140] sm:$0xff] }
 0x46a   : > { %4215 = vmatmul.mubr.f32.gmra.mrb[68].mxu1 %v3636_v18  ;;  %v3727_v18 = vld [vmem:[#allocation3 + $0x570] sm:$0xff] }
 0x46b   : > { %4219 = vmatprep.mubr.f32.mxu1 %v3646_v36  ;;  %5627 = vmatpush1.bf16.msra.mxu1 %v5626_v25  ;;  %v3708_v25 = vld [vmem:[#allocation3 + $0x4d8] sm:$0xff]  ;;  %v3726_v36 = vld [vmem:[#allocation3 + $0x568] sm:$0xff] }
 0x46c   : > { %5628 = vmatprep.subr.bf16.mxu1 %v8864_v30 }
 0x46e   : > { %4220 = vmatmul.mubr.f32.gmra.mrb[70].mxu1 %v3645_v52  ;;  %v3744_v52 = vld [vmem:[#allocation3 + $0x5f8] sm:$0xff] }
 0x46f   : > { %4224 = vmatprep.mubr.f32.mxu1 %v3655_v0  ;;  %5630 = vmatpush1.bf16.msra.mxu1 %v5629_v16  ;;  %v3736_v16 = vld [vmem:[#allocation3 + $0x5b8] sm:$0xff]  ;;  %v3753_v0 = vld [vmem:[#allocation3 + $0x640] sm:$0xff] }
 0x470   : > { %5631 = vmatprep.subr.bf16.mxu1 %v8864_v30 }
 0x472   : > { %4225 = vmatmul.mubr.f32.gmra.mrb[72].mxu1 %v3654_v51 }
 0x473   : > { %4229 = vmatprep.mubr.f32.mxu1 %v3664_v47  ;;  %5633 = vmatpush1.bf16.msra.mxu1 %v5632_v3  ;;  %v3865_v3 = vld [vmem:[#allocation10 + $0x300] sm:$0xff]  ;;  %v3867_v47 = vld [vmem:[#allocation10 + $0x310] sm:$0xff] }
 0x474   : > { %5634 = vmatprep.subr.bf16.mxu1 %v8864_v30  ;;  %v5647_v51 = vpack.c.bf16 %v3866_v32, %v3865_v3  ;;  %v3883_v3 = vld [vmem:[#allocation10 + $0x390] sm:$0xff]  ;;  %v3884_v32 = vld [vmem:[#allocation10 + $0x398] sm:$0xff] }
 0x476   : > { %4230 = vmatmul.mubr.f32.gmra.mrb[74].mxu1 %v3663_v55 }
 0x477   : > { %4234 = vmatprep.mubr.f32.mxu1 %v3673_v37  ;;  %5636 = vmatpush1.bf16.msra.mxu1 %v5635_v57  ;;  %v3868_v57 = vld [vmem:[#allocation10 + $0x318] sm:$0xff] }
 0x478   : > { %5637 = vmatprep.subr.bf16.mxu1 %v8864_v30  ;;  %v5650_v7 = vpack.c.bf16 %v3868_v57, %v3867_v47  ;;  %v3872_v37 = vld [vmem:[#allocation10 + $0x338] sm:$0xff]  ;;  %v5674_v47 = vpack.c.bf16 %v3884_v32, %v3883_v3  ;;  %v3885_v57 = vld [vmem:[#allocation10 + $0x3a0] sm:$0xff]  ;;  %v3711_v3 = vld [vmem:[#allocation3 + $0x4f0] sm:$0xff] }
 0x479   : > { %v3710_v32 = vld [vmem:[#allocation3 + $0x4e8] sm:$0xff] }
 0x47a   : > { %4235 = vmatmul.mubr.f32.gmra.mrb[76].mxu1 %v3672_v21  ;;  %v3584_v21 = vld [vmem:[#allocation3 + $0xf8] sm:$0xff] }
 0x47b   : > { %4239 = vmatprep.mubr.f32.mxu1 %v3682_v38  ;;  %5639 = vmatpush1.bf16.msra.mxu1 %v5638_v13  ;;  %v3575_v13 = vld [vmem:[#allocation3 + $0xb0] sm:$0xff]  ;;  %v5659_v38 = vpack.c.bf16 %v3874_v24, %v3873_v54  ;;  %v3656_v24 = vld [vmem:[#allocation3 + $0x338] sm:$0xff] }
 0x47c   : > { %5640 = vmatprep.subr.bf16.mxu1 %v8864_v30  ;;  %v3890_v54 = vld [vmem:[#allocation10 + $0x3c8] sm:$0xff] }
 0x47e   : > { %4240 = vmatmul.mubr.f32.gmra.mrb[78].mxu1 %v3681_v11  ;;  %v3603_v11 = vld [vmem:[#allocation3 + $0x190] sm:$0xff] }
 0x47f   : > { %4244 = vmatprep.mubr.f32.mxu1 %v3691_v27  ;;  %5642 = vmatpush1.bf16.msra.mxu1 %v5641_v9  ;;  %v3875_v9 = vld [vmem:[#allocation10 + $0x350] sm:$0xff] }
 0x480   : > { %5643 = vmatprep.subr.bf16.mxu1 %v8864_v30  ;;  %v5662_v27 = vpack.c.bf16 %v3876_v35, %v3875_v9  ;;  %v3892_v9 = vld [vmem:[#allocation10 + $0x3d8] sm:$0xff] }
 0x481   : > { %v3665_v35 = vld [vmem:[#allocation3 + $0x380] sm:$0xff] }
 0x482   : > { %4245 = vmatmul.mubr.f32.gmra.mrb[80].mxu1 %v3690_v26  ;;  %v3878_v26 = vld [vmem:[#allocation10 + $0x368] sm:$0xff] }
 0x483   : > { %4249 = vmatprep.mubr.f32.mxu1 %v3700_v49  ;;  %5645 = vmatpush1.bf16.msra.mxu1 %v5644_v42  ;;  %v3877_v42 = vld [vmem:[#allocation10 + $0x360] sm:$0xff] }
 0x484   : > { %5646 = vmatprep.subr.bf16.mxu1 %v8864_v30  ;;  %v3602_v49 = vld [vmem:[#allocation3 + $0x188] sm:$0xff] }
 0x486   : > { %4250 = vmatmul.mubr.f32.gmra.mrb[82].mxu1 %v3699_v53  ;;  %v3612_v53 = vld [vmem:[#allocation3 + $0x1d8] sm:$0xff] }
 0x487   : > { %4254 = vmatprep.mubr.f32.mxu1 %v3709_v59  ;;  %v5665_v59 = vpack.c.bf16 %v3878_v26, %v3877_v42  ;;  %v3894_v42 = vld [vmem:[#allocation10 + $0x3e8] sm:$0xff] }
 0x488   : > { %v3674_v26 = vld [vmem:[#allocation3 + $0x3c8] sm:$0xff] }
 0x48a   : > { %4255 = vmatmul.mubr.f32.gmra.mrb[84].mxu1 %v3708_v25  ;;  %v3879_v25 = vld [vmem:[#allocation10 + $0x370] sm:$0xff] }
 0x48b   : > { %4259 = vmatprep.mubr.f32.mxu1 %v3718_v29  ;;  %v3880_v29 = vld [vmem:[#allocation10 + $0x378] sm:$0xff] }
 0x48e   : > { %4260 = vmatmul.mubr.f32.gmra.mrb[86].mxu1 %v3717_v61  ;;  %v3611_v61 = vld [vmem:[#allocation3 + $0x1d0] sm:$0xff] }
 0x48f   : > { %4264 = vmatprep.mubr.f32.mxu1 %v3727_v18  ;;  %v3621_v18 = vld [vmem:[#allocation3 + $0x220] sm:$0xff] }
 0x492   : > { %4265 = vmatmul.mubr.f32.gmra.mrb[88].mxu1 %v3726_v36  ;;  %v5668_v36 = vpack.c.bf16 %v3880_v29, %v3879_v25  ;;  %v3896_v25 = vld [vmem:[#allocation10 + $0x3f8] sm:$0xff]  ;;  %v3683_v29 = vld [vmem:[#allocation3 + $0x410] sm:$0xff] }
 0x493   : > { %4269 = vmatprep.mubr.f32.mxu1 %v3736_v16  ;;  %v3881_v16 = vld [vmem:[#allocation10 + $0x380] sm:$0xff] }
 0x496   : > { %4270 = vmatmul.mubr.f32.gmra.mrb[90].mxu1 %v3735_v58  ;;  %v3882_v58 = vld [vmem:[#allocation10 + $0x388] sm:$0xff] }
 0x497   : > { %4274 = vmatprep.mubr.f32.mxu1 %v3745_v56  ;;  %v3620_v56 = vld [vmem:[#allocation3 + $0x218] sm:$0xff] }
 0x49a   : > { %4275 = vmatmul.mubr.f32.gmra.mrb[92].mxu1 %v3744_v52  ;;  %v3630_v52 = vld [vmem:[#allocation3 + $0x268] sm:$0xff] }
 0x49b   : > { %4279 = vmatprep.mubr.f32.mxu1 %v8337_v34  ;;  %v3869_v34 = vld [vmem:[#allocation10 + $0x320] sm:$0xff] }
 0x49c   : > { %v5653_v55 = vpack.c.bf16 %v3870_v28, %v3869_v34  ;;  %v3638_v34 = vld [vmem:[#allocation3 + $0x2a8] sm:$0xff]  ;;  %v3648_v28 = vld [vmem:[#allocation3 + $0x2f8] sm:$0xff] }
 0x49e   : > { %4280 = vmatmul.mubr.f32.gmra.mrb[94].mxu1 %v3753_v0  ;;  %v5671_v0 = vpack.c.bf16 %v3882_v58, %v3881_v16 }
 0x49f   : > { %4284 = vmatprep.mubr.f32.mxu1 %v8345_v19  ;;  %v3576_v19 = vld [vmem:[#allocation3 + $0xb8] sm:$0xff] }
 0x4a2   : > { %4285 = vmatmul.mubr.f32.gmra.mrb[96].mxu1 %v3762_v40  ;;  %v3629_v40 = vld [vmem:[#allocation3 + $0x260] sm:$0xff] }
 0x4a3   : > { %4354 = vmatprep.mubr.f32.mxu1 %v8407_v63  ;;  %v3871_v63 = vld [vmem:[#allocation10 + $0x330] sm:$0xff] }
 0x4a6   : > { %4355 = vmatmul.mubr.f32.vlgmr.msra.gmra.mrb[50].mxu1 %v8376_v50  ;;  %v3585_v50 = vld [vmem:[#allocation3 + $0x100] sm:$0xff] }
 0x4a7   : > { %4359 = vmatprep.mubr.f32.mxu1 %v8412_v41  ;;  %5648 = vmatpush1.bf16.msra.mxu1 %v5647_v51  ;;  %v5656_v41 = vpack.c.bf16 %v3872_v37, %v3871_v63  ;;  %v3639_v51 = vld [vmem:[#allocation3 + $0x2b0] sm:$0xff]  ;;  %v3888_v63 = vld [vmem:[#allocation10 + $0x3b8] sm:$0xff] }
 0x4a8   : > { %5649 = vmatprep.subr.bf16.mxu1 %v8864_v30  ;;  %v3647_v37 = vld [vmem:[#allocation3 + $0x2f0] sm:$0xff] }
 0x4aa   : > { %4360 = vmatmul.mubr.f32.gmra.mrb[52].mxu1 %v8393_v44  ;;  %v3594_v44 = vld [vmem:[#allocation3 + $0x148] sm:$0xff] }
 0x4ab   : > { %4364 = vmatprep.mubr.f32.mxu1 %v3576_v19  ;;  %5651 = vmatpush1.bf16.msra.mxu1 %v5650_v7  ;;  %v3886_v7 = vld [vmem:[#allocation10 + $0x3a8] sm:$0xff] }
 0x4ac   : > { %5652 = vmatprep.subr.bf16.mxu1 %v8864_v30  ;;  %v5677_v19 = vpack.c.bf16 %v3886_v7, %v3885_v57  ;;  %v3738_v57 = vld [vmem:[#allocation3 + $0x5c8] sm:$0xff]  ;;  %v3737_v7 = vld [vmem:[#allocation3 + $0x5c0] sm:$0xff] }
 0x4ae   : > { %4365 = vmatmul.mubr.f32.gmra.mrb[54].mxu1 %v3575_v13  ;;  %v3657_v13 = vld [vmem:[#allocation3 + $0x340] sm:$0xff] }
 0x4af   : > { %4369 = vmatprep.mubr.f32.mxu1 %v3585_v50  ;;  %5654 = vmatpush1.bf16.msra.mxu1 %v5653_v55  ;;  %v3887_v55 = vld [vmem:[#allocation10 + $0x3b0] sm:$0xff] }
 0x4b0   : > { %5655 = vmatprep.subr.bf16.mxu1 %v8864_v30  ;;  %v5680_v50 = vpack.c.bf16 %v3888_v63, %v3887_v55  ;;  %v3755_v55 = vld [vmem:[#allocation3 + $0x650] sm:$0xff]  ;;  %v3765_v63 = vld [vmem:[#allocation3 + $0x6a0] sm:$0xff] }
 0x4b2   : > { %4370 = vmatmul.mubr.f32.gmra.mrb[56].mxu1 %v3584_v21  ;;  %v3666_v21 = vld [vmem:[#allocation3 + $0x388] sm:$0xff] }
 0x4b3   : > { %4374 = vmatprep.mubr.f32.mxu1 %v3594_v44  ;;  %5657 = vmatpush1.bf16.msra.mxu1 %v5656_v41  ;;  %v3889_v41 = vld [vmem:[#allocation10 + $0x3c0] sm:$0xff] }
 0x4b4   : > { %5658 = vmatprep.subr.bf16.mxu1 %v8864_v30  ;;  %v5683_v44 = vpack.c.bf16 %v3890_v54, %v3889_v41  ;;  %v3560_v41 = vld [vmem:[#allocation3 + $0x38] sm:$0xff] }
 0x4b6   : > { %4375 = vmatmul.mubr.f32.gmra.mrb[58].mxu1 %v3593_v6  ;;  %v3675_v6 = vld [vmem:[#allocation3 + $0x3d0] sm:$0xff] }
 0x4b7   : > { %4379 = vmatprep.mubr.f32.mxu1 %v3603_v11  ;;  %5660 = vmatpush1.bf16.msra.mxu1 %v5659_v38  ;;  %v3891_v38 = vld [vmem:[#allocation10 + $0x3d0] sm:$0xff] }
 0x4b8   : > { %5661 = vmatprep.subr.bf16.mxu1 %v8864_v30  ;;  %v5686_v11 = vpack.c.bf16 %v3892_v9, %v3891_v38  ;;  %v3569_v38 = vld [vmem:[#allocation3 + $0x80] sm:$0xff] }
 0x4ba   : > { %4380 = vmatmul.mubr.f32.gmra.mrb[60].mxu1 %v3602_v49  ;;  %v3684_v49 = vld [vmem:[#allocation3 + $0x418] sm:$0xff] }
 0x4bb   : > { %4384 = vmatprep.mubr.f32.mxu1 %v3612_v53  ;;  %5663 = vmatpush1.bf16.msra.mxu1 %v5662_v27  ;;  %v3893_v27 = vld [vmem:[#allocation10 + $0x3e0] sm:$0xff] }
 0x4bc   : > { %5664 = vmatprep.subr.bf16.mxu1 %v8864_v30  ;;  %v5689_v53 = vpack.c.bf16 %v3894_v42, %v3893_v27  ;;  %v3578_v27 = vld [vmem:[#allocation3 + $0xc8] sm:$0xff] }
 0x4be   : > { %4385 = vmatmul.mubr.f32.gmra.mrb[62].mxu1 %v3611_v61  ;;  %v3897_v61 = vld [vmem:[#allocation10 + $0x400] sm:$0xff] }
 0x4bf   : > { %4389 = vmatprep.mubr.f32.mxu1 %v3621_v18  ;;  %5666 = vmatpush1.bf16.msra.mxu1 %v5665_v59  ;;  %v3895_v59 = vld [vmem:[#allocation10 + $0x3f0] sm:$0xff]  ;;  %v3898_v18 = vld [vmem:[#allocation10 + $0x408] sm:$0xff] }
 0x4c0   : > { %5667 = vmatprep.subr.bf16.mxu1 %v8864_v30  ;;  %v5692_v16 = vpack.c.bf16 %v3896_v25, %v3895_v59  ;;  %v5694_v58 = vpack.c.bf16 %v3898_v18, %v3897_v61  ;;  %v3587_v59 = vld [vmem:[#allocation3 + $0x110] sm:$0xff]  ;;  %v3908_v18 = vld [vmem:[#allocation10 + $0x458] sm:$0xff] }
 0x4c1   : > { %v3907_v61 = vld [vmem:[#allocation10 + $0x450] sm:$0xff] }
 0x4c2   : > { %4390 = vmatmul.mubr.f32.gmra.mrb[64].mxu1 %v3620_v56  ;;  %v3692_v56 = vld [vmem:[#allocation3 + $0x458] sm:$0xff] }
 0x4c3   : > { %4394 = vmatprep.mubr.f32.mxu1 %v3630_v52  ;;  %5669 = vmatpush1.bf16.msra.mxu1 %v5668_v36  ;;  %v3693_v36 = vld [vmem:[#allocation3 + $0x460] sm:$0xff]  ;;  %v3702_v52 = vld [vmem:[#allocation3 + $0x4a8] sm:$0xff] }
 0x4c4   : > { %5670 = vmatprep.subr.bf16.mxu1 %v8864_v30 }
 0x4c6   : > { %4395 = vmatmul.mubr.f32.gmra.mrb[66].mxu1 %v3629_v40  ;;  %v3720_v40 = vld [vmem:[#allocation3 + $0x538] sm:$0xff] }
 0x4c7   : > { %4399 = vmatprep.mubr.f32.mxu1 %v3639_v51  ;;  %5672 = vmatpush1.bf16.msra.mxu1 %v5671_v0  ;;  %v3701_v0 = vld [vmem:[#allocation3 + $0x4a0] sm:$0xff]  ;;  %v3719_v51 = vld [vmem:[#allocation3 + $0x530] sm:$0xff] }
 0x4c8   : > { %5673 = vmatprep.subr.bf16.mxu1 %v8864_v30 }
 0x4ca   : > { %4400 = vmatmul.mubr.f32.gmra.mrb[68].mxu1 %v3638_v34  ;;  %v3747_v34 = vld [vmem:[#allocation3 + $0x610] sm:$0xff] }
 0x4cb   : > { %4404 = vmatprep.mubr.f32.mxu1 %v3648_v28  ;;  %5675 = vmatpush1.bf16.msra.mxu1 %v5674_v47  ;;  %v3729_v47 = vld [vmem:[#allocation3 + $0x580] sm:$0xff]  ;;  %v3746_v28 = vld [vmem:[#allocation3 + $0x608] sm:$0xff] }
 0x4cc   : > { %5676 = vmatprep.subr.bf16.mxu1 %v8864_v30 }
 0x4ce   : > { %4405 = vmatmul.mubr.f32.gmra.mrb[70].mxu1 %v3647_v37  ;;  %v3764_v37 = vld [vmem:[#allocation3 + $0x698] sm:$0xff] }
 0x4cf   : > { %4409 = vmatprep.mubr.f32.mxu1 %v3657_v13  ;;  %5678 = vmatpush1.bf16.msra.mxu1 %v5677_v19  ;;  %v3756_v19 = vld [vmem:[#allocation3 + $0x658] sm:$0xff] }
 0x4d0   : > { %5679 = vmatprep.subr.bf16.mxu1 %v8864_v30  ;;  %v3899_v13 = vld [vmem:[#allocation10 + $0x410] sm:$0xff] }
 0x4d2   : > { %4410 = vmatmul.mubr.f32.gmra.mrb[72].mxu1 %v3656_v24  ;;  %v3559_v24 = vld [vmem:[#allocation3 + $0x30] sm:$0xff] }
 0x4d3   : > { %4414 = vmatprep.mubr.f32.mxu1 %v3666_v21  ;;  %5681 = vmatpush1.bf16.msra.mxu1 %v5680_v50  ;;  %v3900_v50 = vld [vmem:[#allocation10 + $0x418] sm:$0xff]  ;;  %v3901_v21 = vld [vmem:[#allocation10 + $0x420] sm:$0xff] }
 0x4d4   : > { %5682 = vmatprep.subr.bf16.mxu1 %v8864_v30  ;;  %v5698_v54 = vpack.c.bf16 %v3900_v50, %v3899_v13  ;;  %v3649_v13 = vld [vmem:[#allocation3 + $0x300] sm:$0xff]  ;;  %v3659_v50 = vld [vmem:[#allocation3 + $0x350] sm:$0xff] }
 0x4d6   : > { %4415 = vmatmul.mubr.f32.gmra.mrb[74].mxu1 %v3665_v35  ;;  %v3568_v35 = vld [vmem:[#allocation3 + $0x78] sm:$0xff] }
 0x4d7   : > { %4419 = vmatprep.mubr.f32.mxu1 %v3675_v6  ;;  %5684 = vmatpush1.bf16.msra.mxu1 %v5683_v44  ;;  %v3902_v44 = vld [vmem:[#allocation10 + $0x428] sm:$0xff]  ;;  %v3903_v6 = vld [vmem:[#allocation10 + $0x430] sm:$0xff] }
 0x4d8   : > { %5685 = vmatprep.subr.bf16.mxu1 %v8864_v30  ;;  %v5702_v9 = vpack.c.bf16 %v3902_v44, %v3901_v21  ;;  %v3677_v21 = vld [vmem:[#allocation3 + $0x3e0] sm:$0xff]  ;;  %v3676_v44 = vld [vmem:[#allocation3 + $0x3d8] sm:$0xff] }
 0x4da   : > { %4420 = vmatmul.mubr.f32.gmra.mrb[76].mxu1 %v3674_v26  ;;  %v3577_v26 = vld [vmem:[#allocation3 + $0xc0] sm:$0xff] }
 0x4db   : > { %4424 = vmatprep.mubr.f32.mxu1 %v3684_v49  ;;  %5687 = vmatpush1.bf16.msra.mxu1 %v5686_v11  ;;  %v3904_v11 = vld [vmem:[#allocation10 + $0x438] sm:$0xff]  ;;  %v3905_v49 = vld [vmem:[#allocation10 + $0x440] sm:$0xff] }
 0x4dc   : > { %5688 = vmatprep.subr.bf16.mxu1 %v8864_v30  ;;  %v5706_v42 = vpack.c.bf16 %v3904_v11, %v3903_v6  ;;  %v3694_v6 = vld [vmem:[#allocation3 + $0x468] sm:$0xff]  ;;  %v3704_v11 = vld [vmem:[#allocation3 + $0x4b8] sm:$0xff] }
 0x4de   : > { %4425 = vmatmul.mubr.f32.gmra.mrb[78].mxu1 %v3683_v29  ;;  %v3586_v29 = vld [vmem:[#allocation3 + $0x108] sm:$0xff] }
 0x4df   : > { %4429 = vmatprep.mubr.f32.mxu1 %v3693_v36  ;;  %5690 = vmatpush1.bf16.msra.mxu1 %v5689_v53  ;;  %v3906_v53 = vld [vmem:[#allocation10 + $0x448] sm:$0xff]  ;;  %v3596_v36 = vld [vmem:[#allocation3 + $0x158] sm:$0xff] }
 0x4e0   : > { %5691 = vmatprep.subr.bf16.mxu1 %v8864_v30  ;;  %v3728_v30 = vld [vmem:[#allocation3 + $0x578] sm:$0xff]  ;;  %v5710_v25 = vpack.c.bf16 %v3906_v53, %v3905_v49  ;;  %v3722_v49 = vld [vmem:[#allocation3 + $0x548] sm:$0xff]  ;;  %v3721_v53 = vld [vmem:[#allocation3 + $0x540] sm:$0xff] }
 0x4e2   : > { %4430 = vmatmul.mubr.f32.gmra.mrb[80].mxu1 %v3692_v56  ;;  %v3909_v56 = vld [vmem:[#allocation10 + $0x460] sm:$0xff] }
 0x4e3   : > { %4434 = vmatprep.mubr.f32.mxu1 %v3702_v52  ;;  %5693 = vmatpush1.bf16.msra.mxu1 %v5692_v16  ;;  %v5714_v16 = vpack.c.bf16 %v3908_v18, %v3907_v61  ;;  %v3910_v52 = vld [vmem:[#allocation10 + $0x468] sm:$0xff]  ;;  %v3749_v18 = vld [vmem:[#allocation3 + $0x620] sm:$0xff] }
 0x4e4   : > { %5695 = vmatprep.subr.bf16.mxu1 %v5694_v58  ;;  %v3739_v61 = vld [vmem:[#allocation3 + $0x5d0] sm:$0xff] }
 0x4e6   : > { %4435 = vmatmul.mubr.f32.gmra.mrb[82].mxu1 %v3701_v0  ;;  %v3605_v0 = vld [vmem:[#allocation3 + $0x1a0] sm:$0xff] }
 0x4e7   : > { %4439 = vmatprep.mubr.f32.mxu1 %v3711_v3  ;;  %v5718_v3 = vpack.c.bf16 %v3910_v52, %v3909_v56  ;;  %v3767_v56 = vld [vmem:[#allocation3 + $0x6b0] sm:$0xff]  ;;  %v3766_v52 = vld [vmem:[#allocation3 + $0x6a8] sm:$0xff] }
 0x4ea   : > { %4440 = vmatmul.mubr.f32.gmra.mrb[84].mxu1 %v3710_v32  ;;  %v3604_v32 = vld [vmem:[#allocation3 + $0x198] sm:$0xff] }
 0x4eb   : > { %4444 = vmatprep.mubr.f32.mxu1 %v3720_v40  ;;  %v3911_v40 = vld [vmem:[#allocation10 + $0x470] sm:$0xff] }
 0x4ee   : > { %4445 = vmatmul.mubr.f32.gmra.mrb[86].mxu1 %v3719_v51  ;;  %v3912_v51 = vld [vmem:[#allocation10 + $0x478] sm:$0xff] }
 0x4ef   : > { %4449 = vmatprep.mubr.f32.mxu1 %v3729_v47  ;;  %v3614_v47 = vld [vmem:[#allocation3 + $0x1e8] sm:$0xff] }
 0x4f2   : > { %4450 = vmatmul.mubr.f32.gmra.mrb[88].mxu1 %v3728_v30  ;;  %v5722_v30 = vpack.c.bf16 %v3912_v51, %v3911_v40  ;;  %v3588_v40 = vld [vmem:[#allocation3 + $0x118] sm:$0xff]  ;;  %v3597_v51 = vld [vmem:[#allocation3 + $0x160] sm:$0xff] }
 0x4f3   : > { %4454 = vmatprep.mubr.f32.mxu1 %v3738_v57  ;;  %v3613_v57 = vld [vmem:[#allocation3 + $0x1e0] sm:$0xff] }
 0x4f6   : > { %4455 = vmatmul.mubr.f32.gmra.mrb[90].mxu1 %v3737_v7  ;;  %v3623_v7 = vld [vmem:[#allocation3 + $0x230] sm:$0xff] }
 0x4f7   : > { %4459 = vmatprep.mubr.f32.mxu1 %v3747_v34  ;;  %v3622_v34 = vld [vmem:[#allocation3 + $0x228] sm:$0xff] }
 0x4fa   : > { %4460 = vmatmul.mubr.f32.gmra.mrb[92].mxu1 %v3746_v28  ;;  %v3632_v28 = vld [vmem:[#allocation3 + $0x278] sm:$0xff] }
 0x4fb   : > { %4464 = vmatprep.mubr.f32.mxu1 %v3756_v19  ;;  %v3631_v19 = vld [vmem:[#allocation3 + $0x270] sm:$0xff] }
 0x4fe   : > { %4465 = vmatmul.mubr.f32.gmra.mrb[94].mxu1 %v3755_v55  ;;  %v3641_v55 = vld [vmem:[#allocation3 + $0x2c0] sm:$0xff] }
 0x4ff   : > { %4469 = vmatprep.mubr.f32.mxu1 %v3765_v63  ;;  %v3640_v63 = vld [vmem:[#allocation3 + $0x2b8] sm:$0xff] }
 0x502   : > { %4470 = vmatmul.mubr.f32.gmra.mrb[96].mxu1 %v3764_v37  ;;  %v3650_v37 = vld [vmem:[#allocation3 + $0x308] sm:$0xff] }
 0x503   : > { %4539 = vmatprep.mubr.f32.mxu1 %v3560_v41  ;;  %v3658_v41 = vld [vmem:[#allocation3 + $0x348] sm:$0xff] }
 0x506   : > { %4540 = vmatmul.mubr.f32.vlgmr.msra.gmra.mrb[50].mxu1 %v3559_v24  ;;  %v3667_v24 = vld [vmem:[#allocation3 + $0x390] sm:$0xff] }
 0x507   : > { %4544 = vmatprep.mubr.f32.mxu1 %v3569_v38  ;;  %5697 = vmatpush3.bf16.msra.mxu1 %v5694_v58  ;;  %v3595_v58 = vld [vmem:[#allocation3 + $0x150] sm:$0xff]  ;;  %v3686_v38 = vld [vmem:[#allocation3 + $0x428] sm:$0xff] }
 0x508   : > { %5699 = vmatprep.subr.bf16.mxu1 %v5698_v54 }
 0x50a   : > { %4545 = vmatmul.mubr.f32.gmra.mrb[52].mxu1 %v3568_v35  ;;  %v3695_v35 = vld [vmem:[#allocation3 + $0x470] sm:$0xff] }
 0x50b   : > { %4549 = vmatprep.mubr.f32.mxu1 %v3578_v27  ;;  %5701 = vmatpush3.bf16.msra.mxu1 %v5698_v54  ;;  %v3668_v54 = vld [vmem:[#allocation3 + $0x398] sm:$0xff]  ;;  %v3703_v27 = vld [vmem:[#allocation3 + $0x4b0] sm:$0xff] }
 0x50c   : > { %5703 = vmatprep.subr.bf16.mxu1 %v5702_v9 }
 0x50e   : > { %4550 = vmatmul.mubr.f32.gmra.mrb[54].mxu1 %v3577_v26  ;;  %v3712_v26 = vld [vmem:[#allocation3 + $0x4f8] sm:$0xff] }
 0x50f   : > { %4554 = vmatprep.mubr.f32.mxu1 %v3587_v59  ;;  %5705 = vmatpush3.bf16.msra.mxu1 %v5702_v9  ;;  %v3685_v9 = vld [vmem:[#allocation3 + $0x420] sm:$0xff]  ;;  %v3731_v59 = vld [vmem:[#allocation3 + $0x590] sm:$0xff] }
 0x510   : > { %5707 = vmatprep.subr.bf16.mxu1 %v5706_v42 }
 0x512   : > { %4555 = vmatmul.mubr.f32.gmra.mrb[56].mxu1 %v3586_v29  ;;  %v3740_v29 = vld [vmem:[#allocation3 + $0x5d8] sm:$0xff] }
 0x513   : > { %4559 = vmatprep.mubr.f32.mxu1 %v3596_v36  ;;  %5709 = vmatpush3.bf16.msra.mxu1 %v5706_v42  ;;  %v3713_v42 = vld [vmem:[#allocation3 + $0x500] sm:$0xff]  ;;  %v3748_v36 = vld [vmem:[#allocation3 + $0x618] sm:$0xff] }
 0x514   : > { %5711 = vmatprep.subr.bf16.mxu1 %v5710_v25 }
 0x516   : > { %4560 = vmatmul.mubr.f32.gmra.mrb[58].mxu1 %v3595_v58  ;;  %v3757_v58 = vld [vmem:[#allocation3 + $0x660] sm:$0xff] }
 0x517   : > { %4564 = vmatprep.mubr.f32.mxu1 %v3605_v0  ;;  %5713 = vmatpush3.bf16.msra.mxu1 %v5710_v25  ;;  %v3730_v25 = vld [vmem:[#allocation3 + $0x588] sm:$0xff]  ;;  %v3561_v0 = vld [vmem:[#allocation3 + $0x40] sm:$0xff] }
 0x518   : > { %5715 = vmatprep.subr.bf16.mxu1 %v5714_v16 }
 0x51a   : > { %4565 = vmatmul.mubr.f32.gmra.mrb[60].mxu1 %v3604_v32  ;;  %v3579_v32 = vld [vmem:[#allocation3 + $0xd0] sm:$0xff] }
 0x51b   : > { %4569 = vmatprep.mubr.f32.mxu1 %v3614_v47  ;;  %5717 = vmatpush3.bf16.msra.mxu1 %v5714_v16  ;;  %v3758_v16 = vld [vmem:[#allocation3 + $0x668] sm:$0xff] }
 0x51c   : > { %5719 = vmatprep.subr.bf16.mxu1 %v5718_v3  ;;  %v3606_v47 = vld [vmem:[#allocation3 + $0x1a8] sm:$0xff] }
 0x51e   : > { %4570 = vmatmul.mubr.f32.gmra.mrb[62].mxu1 %v3613_v57  ;;  %v3624_v57 = vld [vmem:[#allocation3 + $0x238] sm:$0xff] }
 0x51f   : > { %4574 = vmatprep.mubr.f32.mxu1 %v3623_v7  ;;  %5721 = vmatpush3.bf16.msra.mxu1 %v5718_v3  ;;  %v3570_v3 = vld [vmem:[#allocation3 + $0x88] sm:$0xff]  ;;  %v3633_v7 = vld [vmem:[#allocation3 + $0x280] sm:$0xff] }
 0x520   : > { %5723 = vmatprep.subr.bf16.mxu1 %v5722_v30 }
 0x522   : > { %4575 = vmatmul.mubr.f32.gmra.mrb[64].mxu1 %v3622_v34  ;;  %v3642_v34 = vld [vmem:[#allocation3 + $0x2c8] sm:$0xff] }
 0x523   : > { %4579 = vmatprep.mubr.f32.mxu1 %v3632_v28  ;;  %5725 = vmatpush3.bf16.msra.mxu1 %v5722_v30  ;;  %v3615_v30 = vld [vmem:[#allocation3 + $0x1f0] sm:$0xff] }
 0x524   : > { %v3651_v28 = vld [vmem:[#allocation3 + $0x310] sm:$0xff] }
 0x526   : > { %4580 = vmatmul.mubr.f32.gmra.mrb[66].mxu1 %v3631_v19  ;;  %v3660_v19 = vld [vmem:[#allocation3 + $0x358] sm:$0xff] }
 0x527   : > { %4584 = vmatprep.mubr.f32.mxu1 %v3641_v55  ;;  %v3669_v55 = vld [vmem:[#allocation3 + $0x3a0] sm:$0xff] }
 0x52a   : > { %4585 = vmatmul.mubr.f32.gmra.mrb[68].mxu1 %v3640_v63  ;;  %v3678_v63 = vld [vmem:[#allocation3 + $0x3e8] sm:$0xff] }
 0x52b   : > { %4589 = vmatprep.mubr.f32.mxu1 %v3650_v37  ;;  %v3687_v37 = vld [vmem:[#allocation3 + $0x430] sm:$0xff] }
 0x52e   : > { %4590 = vmatmul.mubr.f32.gmra.mrb[70].mxu1 %v3649_v13  ;;  %v3696_v13 = vld [vmem:[#allocation3 + $0x478] sm:$0xff] }
 0x52f   : > { %4594 = vmatprep.mubr.f32.mxu1 %v3659_v50  ;;  %v3705_v50 = vld [vmem:[#allocation3 + $0x4c0] sm:$0xff] }
 0x532   : > { %4595 = vmatmul.mubr.f32.gmra.mrb[72].mxu1 %v3658_v41  ;;  %v3714_v41 = vld [vmem:[#allocation3 + $0x508] sm:$0xff] }
 0x533   : > { %4599 = vmatprep.mubr.f32.mxu1 %v3668_v54  ;;  %v3723_v54 = vld [vmem:[#allocation3 + $0x550] sm:$0xff] }
 0x536   : > { %4600 = vmatmul.mubr.f32.gmra.mrb[74].mxu1 %v3667_v24  ;;  %v3732_v24 = vld [vmem:[#allocation3 + $0x598] sm:$0xff] }
 0x537   : > { %4604 = vmatprep.mubr.f32.mxu1 %v3677_v21  ;;  %v3741_v21 = vld [vmem:[#allocation3 + $0x5e0] sm:$0xff] }
 0x53a   : > { %4605 = vmatmul.mubr.f32.gmra.mrb[76].mxu1 %v3676_v44  ;;  %v3750_v44 = vld [vmem:[#allocation3 + $0x628] sm:$0xff] }
 0x53b   : > { %4609 = vmatprep.mubr.f32.mxu1 %v3686_v38  ;;  %v3759_v38 = vld [vmem:[#allocation3 + $0x670] sm:$0xff] }
 0x53e   : > { %4610 = vmatmul.mubr.f32.gmra.mrb[78].mxu1 %v3685_v9  ;;  %v3768_v9 = vld [vmem:[#allocation3 + $0x6b8] sm:$0xff] }
 0x53f   : > { %4614 = vmatprep.mubr.f32.mxu1 %v3695_v35 }
 0x542   : > { %4615 = vmatmul.mubr.f32.gmra.mrb[80].mxu1 %v3694_v6 }
 0x543   : > { %4619 = vmatprep.mubr.f32.mxu1 %v3704_v11 }
 0x546   : > { %4620 = vmatmul.mubr.f32.gmra.mrb[82].mxu1 %v3703_v27 }
 0x547   : > { %4624 = vmatprep.mubr.f32.mxu1 %v3713_v42 }
 0x54a   : > { %4625 = vmatmul.mubr.f32.gmra.mrb[84].mxu1 %v3712_v26 }
 0x54b   : > { %4629 = vmatprep.mubr.f32.mxu1 %v3722_v49 }
 0x54e   : > { %4630 = vmatmul.mubr.f32.gmra.mrb[86].mxu1 %v3721_v53 }
 0x54f   : > { %4634 = vmatprep.mubr.f32.mxu1 %v3731_v59 }
 0x552   : > { %4635 = vmatmul.mubr.f32.gmra.mrb[88].mxu1 %v3730_v25 }
 0x553   : > { %4639 = vmatprep.mubr.f32.mxu1 %v3740_v29 }
 0x556   : > { %4640 = vmatmul.mubr.f32.gmra.mrb[90].mxu1 %v3739_v61 }
 0x557   : > { %4644 = vmatprep.mubr.f32.mxu1 %v3749_v18 }
 0x55a   : > { %4645 = vmatmul.mubr.f32.gmra.mrb[92].mxu1 %v3748_v36 }
 0x55b   : > { %4649 = vmatprep.mubr.f32.mxu1 %v3758_v16 }
 0x55e   : > { %4650 = vmatmul.mubr.f32.gmra.mrb[94].mxu1 %v3757_v58 }
 0x55f   : > { %4654 = vmatprep.mubr.f32.mxu1 %v3767_v56 }
 0x562   : > { %4655 = vmatmul.mubr.f32.gmra.mrb[96].mxu1 %v3766_v52 }
 0x563   : > { %5178 = vmatprep.mubr.f32.mxu1 %v3561_v0 }
 0x566   : > { %5179 = vmatmul.mubr.f32.vlgmr.msra.gmra.mrb[98].mxu1 %v3570_v3 }
 0x567   : > { %5181 = vmatprep.mubr.f32.mxu1 %v3579_v32 }
 0x56a   : > { %5182 = vmatmul.mubr.f32.gmra.mrb[100].mxu1 %v3588_v40 }
 0x56b   : > { %5184 = vmatprep.mubr.f32.mxu1 %v3597_v51 }
 0x56e   : > { %5185 = vmatmul.mubr.f32.gmra.mrb[102].mxu1 %v3606_v47 }
 0x56f   : > { %5187 = vmatprep.mubr.f32.mxu1 %v3615_v30 }
 0x572   : > { %5188 = vmatmul.mubr.f32.gmra.mrb[104].mxu1 %v3624_v57 }
 0x573   : > { %5190 = vmatprep.mubr.f32.mxu1 %v3633_v7 }
 0x576   : > { %5191 = vmatmul.mubr.f32.gmra.mrb[106].mxu1 %v3642_v34 }
 0x577   : > { %5193 = vmatprep.mubr.f32.mxu1 %v3651_v28 }
 0x57a   : > { %5194 = vmatmul.mubr.f32.gmra.mrb[108].mxu1 %v3660_v19 }
 0x57b   : > { %5196 = vmatprep.mubr.f32.mxu1 %v3669_v55 }
 0x57e   : > { %5197 = vmatmul.mubr.f32.gmra.mrb[110].mxu1 %v3678_v63 }
 0x57f   : > { %5199 = vmatprep.mubr.f32.mxu1 %v3687_v37 }
 0x582   : > { %5200 = vmatmul.mubr.f32.gmra.mrb[112].mxu1 %v3696_v13 }
 0x583   : > { %5202 = vmatprep.mubr.f32.mxu1 %v3705_v50 }
 0x586   : > { %5203 = vmatmul.mubr.f32.gmra.mrb[114].mxu1 %v3714_v41 }
 0x587   : > { %5205 = vmatprep.mubr.f32.mxu1 %v3723_v54 }
 0x58a   : > { %5206 = vmatmul.mubr.f32.gmra.mrb[116].mxu1 %v3732_v24 }
 0x58b   : > { %5208 = vmatprep.mubr.f32.mxu1 %v3741_v21 }
 0x58e   : > { %5209 = vmatmul.mubr.f32.gmra.mrb[118].mxu1 %v3750_v44 }
 0x58f   : > { %5211 = vmatprep.mubr.f32.mxu1 %v3759_v38 }
 0x592   : > { %5212 = vmatmul.mubr.f32.gmra.mrb[120].mxu1 %v3768_v9 }
 0x5d9   : > { %v4541_v35 = vpop.f32.mrb[50].mxu1 }
 0x5da   : > { %v4543_v6 = vpop.f32.mrb[51].mxu1 }
 0x5dd   : > { %v4546_v11 = vpop.f32.mrb[52].mxu1 }
 0x5de   : > { %v4548_v27 = vpop.f32.mrb[53].mxu1 }
 0x5e1   : > { %v4551_v42 = vpop.f32.mrb[54].mxu1 }
 0x5e2   : > { %v4553_v26 = vpop.f32.mrb[55].mxu1 }
 0x5e5   : > { %v4556_v49 = vpop.f32.mrb[56].mxu1 }
 0x5e6   : > { %v4558_v53 = vpop.f32.mrb[57].mxu1 }
 0x5e9   : > { %v8492_v59 = vpop.f32.mrb[58].mxu1 }
 0x5ea   : > { %v4563_v25 = vpop.f32.mrb[59].mxu1 }
 0x5ed   : > { %v4566_v29 = vpop.f32.mrb[60].mxu1 }
 0x5ee   : > { %v4568_v61 = vpop.f32.mrb[61].mxu1 }
 0x5ef   : > { %v8530_v61 = vld [vmem:[#allocation12] ss:$0 sm:$0xff] }
 0x5f1   : > { %v8494_v18 = vpop.f32.mrb[62].mxu1 }
 0x5f2   : > { %v4573_v36 = vpop.f32.mrb[63].mxu1 }
 0x5f5   : > { %v8496_v16 = vpop.f32.mrb[64].mxu1 }
 0x5f6   : > { %v4578_v58 = vpop.f32.mrb[65].mxu1 }
 0x5f7   : > { %v5787_v58 = vadd.f32 %v8530_v61, %v4546_v11  ;;  %v5788_v11 = vadd.f32 %v8530_v61, %v4551_v42 }
 0x5f9   : > { %v8498_v56 = vpop.f32.mrb[66].mxu1 }
 0x5fa   : > { %v4583_v52 = vpop.f32.mrb[67].mxu1 }
 0x5fb   : > { %v8533_v52 = vld [vmem:[#allocation13] ss:$0 sm:$0xff] }
 0x5fd   : > { %v8500_v0 = vpop.f32.mrb[68].mxu1 }
 0x5fe   : > { %v4588_v3 = vpop.f32.mrb[69].mxu1 }
 0x5ff   : > { %v5786_v3 = vadd.f32 %v8530_v61, %v4541_v35  ;;  %v8867_v35 = vld [vmem:[#allocation32_spill] sm:$0xff] }
 0x601   : > { %v8502_v32 = vpop.f32.mrb[70].mxu1 }
 0x602   : > { %v4593_v40 = vpop.f32.mrb[71].mxu1 }
 0x605   : > { %v8504_v51 = vpop.f32.mrb[72].mxu1 }
 0x606   : > { %v4598_v47 = vpop.f32.mrb[73].mxu1 }
 0x607   : > { %v2826_v47 = vadd.f32 %v8533_v52, %v8378_v62  ;;  %v8868_v62 = vld [vmem:[#allocation22_spill] sm:$0xff] }
 0x609   : > { %v8506_v30 = vpop.f32.mrb[74].mxu1 }
 0x60a   : > { %v4603_v57 = vpop.f32.mrb[75].mxu1 }
 0x60d   : > { %v8508_v7 = vpop.f32.mrb[76].mxu1 }
 0x60e   : > { %v4608_v34 = vpop.f32.mrb[77].mxu1 }
 0x611   : > { %v8510_v28 = vpop.f32.mrb[78].mxu1 }
 0x612   : > { %v4613_v19 = vpop.f32.mrb[79].mxu1 }
 0x613   : > { %v2825_v19 = vadd.f32 %v8533_v52, %v8368_v12  ;;  %v5791_v12 = vadd.f32 %v8530_v61, %v4566_v29 }
 0x615   : > { %v8512_v55 = vpop.f32.mrb[80].mxu1 }
 0x616   : > { %v4618_v63 = vpop.f32.mrb[81].mxu1 }
 0x619   : > { %v8514_v37 = vpop.f32.mrb[82].mxu1 }
 0x61a   : > { %v4623_v13 = vpop.f32.mrb[83].mxu1 }
 0x61b   : > { %v5789_v13 = vadd.f32 %v8530_v61, %v4556_v49  ;;  %v5790_v49 = vadd.f32 %v8530_v61, %v8492_v59 }
 0x61d   : > { %v8516_v50 = vpop.f32.mrb[84].mxu1 }
 0x61e   : > { %v4628_v41 = vpop.f32.mrb[85].mxu1 }
 0x621   : > { %v8518_v54 = vpop.f32.mrb[86].mxu1 }
 0x622   : > { %v4633_v24 = vpop.f32.mrb[87].mxu1 }
 0x625   : > { %v8520_v21 = vpop.f32.mrb[88].mxu1 }
 0x626   : > { %v4638_v44 = vpop.f32.mrb[89].mxu1 }
 0x629   : > { %v8522_v38 = vpop.f32.mrb[90].mxu1 }
 0x62a   : > { %v4643_v9 = vpop.f32.mrb[91].mxu1 }
 0x62b   : > { %v2828_v9 = vadd.f32 %v8867_v35, %v8533_v52 }
 0x62d   : > { %v8524_v6 = vpop.f32.mrb[92].mxu1 }
 0x62e   : > { %v4648_v27 = vpop.f32.mrb[93].mxu1 }
 0x631   : > { %v8526_v26 = vpop.f32.mrb[94].mxu1 }
 0x632   : > { %v4653_v53 = vpop.f32.mrb[95].mxu1 }
 0x635   : > { %v8528_v25 = vpop.f32.mrb[96].mxu1 }
 0x636   : > { %v4658_v36 = vpop.f32.mrb[97].mxu1 }
 0x639   : > { %v5180_v40 = vpop.f32.mrb[98].mxu1 }
 0x63a   : > { %v4732_v57 = vadd.f32 %v5787_v58, %v5180_v40  ;;  %v4726_v34 = vpop.f32.mrb[99].mxu1  ;;  %v2827_v58 = vadd.f32 %v8868_v62, %v8533_v52  ;;  %v5794_v62 = vadd.f32 %v8530_v61, %v8498_v56 }
 0x63b   : > { %v4727_v63 = vadd.f32 %v5786_v3, %v4726_v34 }
 0x63c   : > { %v4846_v41 = vadd.f32 %v4732_v57, %v2826_v47  ;;  %v2830_v57 = vadd.f32 %v8134_v46, %v8533_v52 }
 0x63d   : > { %v4845_v24 = vadd.f32 %v4727_v63, %v2825_v19  ;;  %v5183_v44 = vpop.f32.mrb[100].mxu1  ;;  %v2829_v63 = vadd.f32 %v8127_v31, %v8533_v52 }
 0x63e   : > { %v4870_v27 = vmax.f32 %v4846_v41, 0.0  ;;  %v4742_v53 = vadd.f32 %v5789_v13, %v5183_v44  ;;  %v4736_v36 = vpop.f32.mrb[101].mxu1  ;;  %v2832_v44 = vadd.f32 %v8152_v23, %v8533_v52 }
 0x63f   : > { %v4869_v40 = vmax.f32 %v4845_v24, 0.0  ;;  %v4737_v60 = vadd.f32 %v5788_v11, %v4736_v36  ;;  %v5793_v11 = vadd.f32 %v8530_v61, %v8496_v16  ;;  %v5795_v36 = vadd.f32 %v8530_v61, %v8500_v0 }
 0x640   : > { %4894 = vst [vmem:[%s8548_s7 + $0x8] sm:$0xff] %v4870_v27  ;;  %v4848_v42 = vadd.f32 %v4742_v53, %v2828_v9  ;;  %v2831_v27 = vadd.f32 %v8145_v43, %v8533_v52 }
 0x641   : > { %4893 = vst [vmem:[%s8548_s7] sm:$0xff] %v4869_v40  ;;  %v4847_v3 = vadd.f32 %v4737_v60, %v2827_v58  ;;  %v5186_v47 = vpop.f32.mrb[102].mxu1  ;;  %v5792_v60 = vadd.f32 %v8530_v61, %v8494_v18  ;;  %v2834_v40 = vadd.f32 %v8166_v10, %v8533_v52 }
 0x642   : > { %v4872_v34 = vmax.f32 %v4848_v42, 0.0  ;;  %v4752_v19 = vadd.f32 %v5791_v12, %v5186_v47  ;;  %v4746_v29 = vpop.f32.mrb[103].mxu1  ;;  %v5797_v47 = vadd.f32 %v8530_v61, %v8504_v51 }
 0x643   : > { %v4871_v13 = vmax.f32 %v4847_v3, 0.0  ;;  %v4747_v41 = vadd.f32 %v5790_v49, %v4746_v29  ;;  %v2833_v49 = vadd.f32 %v8159_v4, %v8533_v52 }
 0x644   : > { %4896 = vst [vmem:[%s8548_s7 + $0x18] sm:$0xff] %v4872_v34  ;;  %v4850_v59 = vadd.f32 %v4752_v19, %v2830_v57  ;;  %v5796_v57 = vadd.f32 %v8530_v61, %v8502_v32  ;;  %v2836_v19 = vadd.f32 %v8180_v22, %v8533_v52 }
 0x645   : > { %4895 = vst [vmem:[%s8548_s7 + $0x10] sm:$0xff] %v4871_v13  ;;  %v4849_v46 = vadd.f32 %v4747_v41, %v2829_v63  ;;  %v5189_v24 = vpop.f32.mrb[104].mxu1  ;;  %v2835_v13 = vadd.f32 %v8173_v33, %v8533_v52 }
 0x646   : > { %v4874_v35 = vmax.f32 %v4850_v59, 0.0  ;;  %v4762_v31 = vadd.f32 %v5793_v11, %v5189_v24  ;;  %v4756_v9 = vpop.f32.mrb[105].mxu1  ;;  %v5799_v11 = vadd.f32 %v8530_v61, %v8508_v7  ;;  %v5798_v59 = vadd.f32 %v8530_v61, %v8506_v30 }
 0x647   : > { %v4873_v53 = vmax.f32 %v4849_v46, 0.0  ;;  %v4757_v16 = vadd.f32 %v5792_v60, %v4756_v9  ;;  %v2838_v46 = vadd.f32 %v8194_v39, %v8533_v52  ;;  %v5801_v9 = vadd.f32 %v8530_v61, %v8512_v55 }
 0x648   : > { %4898 = vst [vmem:[%s8548_s7 + $0x28] sm:$0xff] %v4874_v35  ;;  %v4852_v18 = vadd.f32 %v4762_v31, %v2832_v44  ;;  %v2837_v35 = vadd.f32 %v8187_v45, %v8533_v52 }
 0x649   : > { %4897 = vst [vmem:[%s8548_s7 + $0x20] sm:$0xff] %v4873_v53  ;;  %v4851_v23 = vadd.f32 %v4757_v16, %v2831_v27  ;;  %v5192_v58 = vpop.f32.mrb[106].mxu1  ;;  %v5800_v27 = vadd.f32 %v8530_v61, %v8510_v28  ;;  %v2840_v16 = vadd.f32 %v8208_v1, %v8533_v52 }
 0x64a   : > { %v4876_v12 = vmax.f32 %v4852_v18, 0.0  ;;  %v4772_v43 = vadd.f32 %v5795_v36, %v5192_v58  ;;  %v4766_v42 = vpop.f32.mrb[107].mxu1  ;;  %v5803_v58 = vadd.f32 %v8530_v61, %v8516_v50 }
 0x64b   : > { %v4875_v3 = vmax.f32 %v4851_v23, 0.0  ;;  %v4767_v0 = vadd.f32 %v5794_v62, %v4766_v42  ;;  %v2839_v62 = vadd.f32 %v8201_v48, %v8533_v52 }
 0x64c   : > { %4900 = vst [vmem:[%s8548_s7 + $0x38] sm:$0xff] %v4876_v12  ;;  %v4854_v56 = vadd.f32 %v4772_v43, %v2834_v40  ;;  %v5802_v40 = vadd.f32 %v8530_v61, %v8514_v37  ;;  %v2842_v43 = vadd.f32 %v8234_v15, %v8533_v52 }
 0x64d   : > { %4899 = vst [vmem:[%s8548_s7 + $0x30] sm:$0xff] %v4875_v3  ;;  %v4853_v10 = vadd.f32 %v4767_v0, %v2833_v49  ;;  %v5195_v34 = vpop.f32.mrb[108].mxu1  ;;  %v2841_v3 = vadd.f32 %v8221_v20, %v8533_v52  ;;  %v2844_v20 = vadd.f32 %v8268_v14, %v8533_v52 }
 0x64e   : > { %v4878_v29 = vmax.f32 %v4854_v56, 0.0  ;;  %v4782_v4 = vadd.f32 %v5797_v47, %v5195_v34  ;;  %v4776_v63 = vpop.f32.mrb[109].mxu1  ;;  %v5805_v47 = vadd.f32 %v8530_v61, %v8520_v21  ;;  %v5804_v56 = vadd.f32 %v8530_v61, %v8518_v54 }
 0x64f   : > { %v4877_v41 = vmax.f32 %v4853_v10, 0.0  ;;  %v4777_v51 = vadd.f32 %v5796_v57, %v4776_v63  ;;  %v2843_v21 = vadd.f32 %v8251_v5, %v8533_v52  ;;  %v5807_v63 = vadd.f32 %v8530_v61, %v8524_v6 }
 0x650   : > { %4902 = vst [vmem:[%s8548_s7 + $0x48] sm:$0xff] %v4878_v29  ;;  %v4856_v32 = vadd.f32 %v4782_v4, %v2836_v19  ;;  %v2846_v5 = vadd.f32 %v8302_v8, %v8533_v52  ;;  %v2845_v6 = vadd.f32 %v8285_v17, %v8533_v52  ;;  %v2848_v17 = vadd.f32 %v8330_v2, %v8533_v52 }
 0x651   : > { %4901 = vst [vmem:[%s8548_s7 + $0x40] sm:$0xff] %v4877_v41  ;;  %v4855_v22 = vadd.f32 %v4777_v51, %v2835_v13  ;;  %v5198_v60 = vpop.f32.mrb[110].mxu1  ;;  %v5806_v13 = vadd.f32 %v8530_v61, %v8522_v38  ;;  %v5809_v38 = vadd.f32 %v8530_v61, %v8528_v25  ;;  %v8870_v25 = vld [vmem:[#allocation34_spill] sm:$0xff] }
 0x652   : > { %v4880_v24 = vmax.f32 %v4856_v32, 0.0  ;;  %v4792_v33 = vadd.f32 %v5799_v11, %v5198_v60  ;;  %v4786_v44 = vpop.f32.mrb[111].mxu1 }
 0x653   : > { %v4879_v31 = vmax.f32 %v4855_v22, 0.0  ;;  %v4787_v7 = vadd.f32 %v5798_v59, %v4786_v44 }
 0x654   : > { %4904 = vst [vmem:[%s8548_s7 + $0x58] sm:$0xff] %v4880_v24  ;;  %v4858_v30 = vadd.f32 %v4792_v33, %v2838_v46  ;;  %v5808_v46 = vadd.f32 %v8530_v61, %v8526_v26 }
 0x655   : > { %4903 = vst [vmem:[%s8548_s7 + $0x50] sm:$0xff] %v4879_v31  ;;  %v4857_v39 = vadd.f32 %v4787_v7, %v2837_v35  ;;  %v5201_v53 = vpop.f32.mrb[112].mxu1  ;;  %v2847_v31 = vadd.f32 %v8870_v25, %v8533_v52 }
 0x656   : > { %v4882_v36 = vmax.f32 %v4858_v30, 0.0  ;;  %v4802_v45 = vadd.f32 %v5801_v9, %v5201_v53  ;;  %v4796_v18 = vpop.f32.mrb[113].mxu1 }
 0x657   : > { %v4881_v23 = vmax.f32 %v4857_v39, 0.0  ;;  %v4797_v55 = vadd.f32 %v5800_v27, %v4796_v18 }
 0x658   : > { %4906 = vst [vmem:[%s8548_s7 + $0x68] sm:$0xff] %v4882_v36  ;;  %v4860_v28 = vadd.f32 %v4802_v45, %v2840_v16 }
 0x659   : > { %4905 = vst [vmem:[%s8548_s7 + $0x60] sm:$0xff] %v4881_v23  ;;  %v4859_v1 = vadd.f32 %v4797_v55, %v2839_v62  ;;  %v5204_v12 = vpop.f32.mrb[114].mxu1 }
 0x65a   : > { %v4884_v42 = vmax.f32 %v4860_v28, 0.0  ;;  %v4812_v48 = vadd.f32 %v5803_v58, %v5204_v12  ;;  %v4806_v49 = vpop.f32.mrb[115].mxu1 }
 0x65b   : > { %v4883_v0 = vmax.f32 %v4859_v1, 0.0  ;;  %v4807_v50 = vadd.f32 %v5802_v40, %v4806_v49 }
 0x65c   : > { %4908 = vst [vmem:[%s8548_s7 + $0x78] sm:$0xff] %v4884_v42  ;;  %v4862_v37 = vadd.f32 %v4812_v48, %v2842_v43 }
 0x65d   : > { %4907 = vst [vmem:[%s8548_s7 + $0x70] sm:$0xff] %v4883_v0  ;;  %v4861_v15 = vadd.f32 %v4807_v50, %v2841_v3  ;;  %v5207_v57 = vpop.f32.mrb[116].mxu1 }
 0x65e   : > { %v4886_v10 = vmax.f32 %v4862_v37, 0.0  ;;  %v4822_v34 = vadd.f32 %v5805_v47, %v5207_v57  ;;  %v4816_v19 = vpop.f32.mrb[117].mxu1 }
 0x65f   : > { %v4885_v29 = vmax.f32 %v4861_v15, 0.0  ;;  %v4817_v4 = vadd.f32 %v5804_v56, %v4816_v19 }
 0x660   : > { %4910 = vst [vmem:[%s8548_s7 + $0x88] sm:$0xff] %v4886_v10  ;;  %v4864_v54 = vadd.f32 %v4822_v34, %v2844_v20 }
 0x661   : > { %4909 = vst [vmem:[%s8548_s7 + $0x80] sm:$0xff] %v4885_v29  ;;  %v4863_v14 = vadd.f32 %v4817_v4, %v2843_v21  ;;  %v5210_v41 = vpop.f32.mrb[118].mxu1 }
 0x662   : > { %v4888_v51 = vmax.f32 %v4864_v54, 0.0  ;;  %v4832_v11 = vadd.f32 %v5807_v63, %v5210_v41  ;;  %v4826_v32 = vpop.f32.mrb[119].mxu1 }
 0x663   : > { %v4887_v59 = vmax.f32 %v4863_v14, 0.0  ;;  %v4827_v22 = vadd.f32 %v5806_v13, %v4826_v32 }
 0x664   : > { %4912 = vst [vmem:[%s8548_s7 + $0x98] sm:$0xff] %v4888_v51  ;;  %v4866_v60 = vadd.f32 %v4832_v11, %v2846_v5 }
 0x665   : > { %4911 = vst [vmem:[%s8548_s7 + $0x90] sm:$0xff] %v4887_v59  ;;  %v4865_v8 = vadd.f32 %v4827_v22, %v2845_v6  ;;  %v5213_v24 = vpop.f32.mrb[120].mxu1 }
 0x666   : > { %v4890_v33 = vmax.f32 %v4866_v60, 0.0  ;;  %v4842_v44 = vadd.f32 %v5809_v38, %v5213_v24  ;;  %v4836_v35 = vpop.f32.mrb[121].mxu1 }
 0x667   : > { %v4889_v7 = vmax.f32 %v4865_v8, 0.0  ;;  %v4837_v9 = vadd.f32 %v5808_v46, %v4836_v35 }
 0x668   : > { %4914 = vst [vmem:[%s8548_s7 + $0xa8] sm:$0xff] %v4890_v33  ;;  %v4868_v26 = vadd.f32 %v4842_v44, %v2848_v17 }
 0x669   : > { %4913 = vst [vmem:[%s8548_s7 + $0xa0] sm:$0xff] %v4889_v7  ;;  %v4867_v61 = vadd.f32 %v4837_v9, %v2847_v31 }
 0x66a   : > { %v4892_v30 = vmax.f32 %v4868_v26, 0.0 }
 0x66b   : > { %v4891_v2 = vmax.f32 %v4867_v61, 0.0 }
 0x66c   : > { %4916 = vst [vmem:[%s8548_s7 + $0xb8] sm:$0xff] %v4892_v30 }
 0x66d   : > { %4915 = vst [vmem:[%s8548_s7 + $0xb0] sm:$0xff] %v4891_v2 }
 0x66e   : > { %6487 = shalt.err (!%p6484_p3)
}
 0x66f   : > { %s6488_s7 = scalar_lea.hbm %s8658_s2, 3072  ;;  %s6492_s3 = scalar_lea.hbm %s8871_s1, 12288 }
 0x670   : > { %p6489_p8 = scmp.ne.s32.totalorder %s8658_s2, %s6488_s7  ;;  %p6493_p5 = scmp.lt.u32.totalorder %s8658_s2, %s8871_s1 }
 0x671   : > { %p6494_p12 = scmp.lt.u32.totalorder %s6492_s3, %s6488_s7  ;;  %p6496_p13 = scmp.lt.u32.totalorder %s6488_s7, %s8658_s2 }
 0x672   : > { %p6490_p9 = pnand %p6489_p8, %p8872_p7 }
 0x673   : > { %p6495_p11 = por %p6494_p12, %p6493_p5 }
 0x674   : > { %p6491_p10 = pneg %p6490_p9 }
 0x675   : > { %p6497_p1 = por %p6496_p13, %p6495_p11 }
 0x677   : > { %p6498_p0 = pnand %p6497_p1, %p6491_p10 }
 0x679   : > { %6501 = shalt.err (!%p6498_p0)
}
 0x67a   : > { %s6600_s12 = smov 128   ;;  %s6601_s9 = smov 8  }
 0x67b   : > { %6131 = dma.vmem_to_hbm [thread:$0]  (%p8872_p7), %s8653_s13, 3072, %s8658_s2, %s4918_s4, %s6600_s12, %s6600_s12, %s6601_s9  }
 0x67c PF: > { %p6168_p2 = scmp.ge.s32.totalorder %s6584_s8, 2  ;;  %s4948_s10 = sand.u32 1, %s6556_s24  }
 0x67d   : > { %p8873_p4 = scmp.ne.s32.totalorder %s8772_s18, 0  ;;  %s4949_s11 = scalar_lea.sflag [#allocation6], %s4948_s10 }
 0x67f   : > { %p6154_p6 = pnand %p6168_p2, %p8873_p4 }
 0x681   : > { %6551 = dma.done.wait (!%p6154_p6), %s4949_s11, 3072  }
 0x682   : > { %6553 = vsyncadd (!%p6154_p6), %s4949_s11, 4294964224  ;;  %s26_s8 = sadd.s32 1, %s6584_s8   ;;  %s8874_s24 = smov %s6560_s25 }
 0x683   : > { %p23_p3 = scmp.ge.s32.totalorder %s26_s8, 6   ;;  %s8875_s25 = smov %s6564_s26 }
 0x684   : > { %s8876_s26 = smov %s6860_s23  ;;  %s8877_s27 = smov %s6576_s29 }
 0x685   : > { %s8878_s28 = smov %s6580_s30  ;;  %s8879_s29 = smov %s8882_s14 }
 0x686   : > { %s8880_s30 = smov %s8886_s15  ;;  %25 = sbr.rel (!%p23_p3) target bundleno = 16 (0x10), region = 116 }
 0x68d   :  { %4954 = vsyncpa [#allocation5], 1 }
 0x68e   :  { %4956 = vsyncpa [#allocation5 + $0x1], 1 }
 0x68f   :  { %4957 = vsyncpa [#allocation8], 1 }
 0x690   :  { %4958 = vsyncpa [#allocation11], 1 }
 0x691   :  { %4959 = vsyncpa [#allocation14], 1 }
 0x692   :  { %4960 = vsyncpa [#allocation6], 1 }
 0x693   :  { %4962 = vsyncpa [#allocation6 + $0x1], 1 }

</bundles_post_ra>
